<compile_context>
chip_gen: v5e
topology: v5e:2x2
jax: 0.10.0
libtpu: 0.0.40
codegen_flags: <defaults>
</compile_context>

<pallas_src>
import functools

import jax
import jax.numpy as jnp
from jax.experimental import pallas as pl
from jax.experimental.pallas import tpu as pltpu

_LANES = 128          # grid rows are laid out 128 wide (one vreg lane width)
_LANE_SHIFT = 7       # log2(_LANES)
_CORNERS = 8          # trilinear interpolation corners


def _round_up(x, m):
    return (x + m - 1) // m * m


def _transmittance_kernel(g_ref, idx_ref, wdt_ref, out_ref):
    # g_ref:   (vr, 128)            clamped density grid (flat, row-major), resident
    # idx_ref: (S, 8*R_TILE) int32  flat voxel index, lanes ordered (corner, ray)
    # wdt_ref: (S, 8*R_TILE) f32    trilinear corner weight * dt
    # out_ref: (S, R_TILE)   f32    transmittance, rays on lanes (lane-dense)
    vr = g_ref.shape[0]
    n_samples, n_lk = idx_ref.shape
    r_tile = out_ref.shape[1]

    g = g_ref[...]                                            # (vr, 128) MXU operand

    # Hoisted iota constants (broadcasts are not CSE'd -- build once).
    lane_iota = jax.lax.broadcasted_iota(jnp.int32, (_LANES, n_lk), 0)
    row_iota = jax.lax.broadcasted_iota(jnp.int32, (vr, n_lk), 0)

    tau = jnp.zeros((1, r_tile), jnp.float32)                 # running optical depth
    for s in range(n_samples):                                # static unroll, S small
        idx = idx_ref[pl.ds(s, 1), :]                         # (1, 8*R_TILE) i32
        w = wdt_ref[pl.ds(s, 1), :]                           # (1, 8*R_TILE) f32
        row = jnp.right_shift(idx, _LANE_SHIFT)               # idx // 128
        col = jnp.bitwise_and(idx, _LANES - 1)                # idx %  128

        # Lane-parallel gather of grid[idx]:
        #   p[i, j]    = g[i, col[j]]   (lane one-hot row-select on the MXU)
        #   vals[0, j] = p[row[j], j]   (sublane mask-reduce on the VPU/XLU)
        colsel = jnp.where(lane_iota == col, 1.0, 0.0).astype(g.dtype)  # (128, 8*R_TILE)
        p = jnp.dot(g, colsel, preferred_element_type=jnp.float32)      # (vr, 8*R_TILE)
        vals = jnp.sum(jnp.where(row_iota == row, p, 0.0),
                       axis=0, keepdims=True)                            # (1, 8*R_TILE)

        wv = vals * w                                         # weight * dt * density
        sig = wv[:, 0:r_tile]
        for k in range(1, _CORNERS):                          # corner sum (7 VPU adds)
            sig = sig + wv[:, k * r_tile:(k + 1) * r_tile]

        tau = tau + sig                                       # inclusive cumsum
        out_ref[pl.ds(s, 1), :] = jnp.exp(-tau)               # lane-dense row store


def _build_lookups(rays, dims, n_samples, t_near=0.0, t_far=1.0):
    """Per-(ray, sample, corner) flat voxel index and trilinear weight * dt."""
    D, H, W = dims
    S = n_samples
    origins = rays[:, 0:3]
    dirs = rays[:, 3:6]
    dirs = dirs / (jnp.linalg.norm(dirs, axis=-1, keepdims=True) + 1e-8)

    dt = (t_far - t_near) / S
    ts = t_near + (jnp.arange(S, dtype=jnp.float32) + 0.5) * dt          # (S,)
    pts = origins[:, None, :] + ts[None, :, None] * dirs[:, None, :]     # (R,S,3)

    scale = jnp.array([D - 1, H - 1, W - 1], jnp.float32)
    p = jnp.clip(pts, 0.0, 1.0) * scale                                  # voxel coords
    i0 = jnp.clip(jnp.floor(p).astype(jnp.int32), 0,
                  jnp.array([D - 2, H - 2, W - 2], jnp.int32))
    f = p - i0.astype(jnp.float32)                                       # (R,S,3)

    corners = jnp.array([[dx, dy, dz] for dx in (0, 1) for dy in (0, 1)
                         for dz in (0, 1)], jnp.int32)                   # (8,3)
    idx3 = i0[:, :, None, :] + corners[None, None, :, :]                 # (R,S,8,3)
    flat = (idx3[..., 0] * H + idx3[..., 1]) * W + idx3[..., 2]          # (R,S,8)
    fw = jnp.where(corners[None, None, :, :] == 1,
                   f[:, :, None, :], 1.0 - f[:, :, None, :])             # (R,S,8,3)
    wdt = jnp.prod(fw, axis=-1) * dt                                     # dt folded in
    return flat.astype(jnp.int32), wdt.astype(jnp.float32)


@functools.partial(jax.jit,
                   static_argnames=("n_samples", "ray_tile", "use_bf16_mxu"))
def transmittance_render(rays, grid, n_samples=8, ray_tile=128,
                         use_bf16_mxu=False):
    D, H, W = grid.shape
    V = D * H * W
    R = rays.shape[0]
    S = n_samples

    flat, wdt = _build_lookups(rays, (D, H, W), S)                       # (R,S,8) each

    # clamp(Grid, 0, 1) ONCE (hoisted), laid out flat row-major as (V/128, 128).
    g = jnp.clip(grid.reshape(-1).astype(jnp.float32), 0.0, 1.0)
    vr = _round_up(pl.cdiv(V, _LANES), 8)
    g2d = jnp.pad(g, (0, vr * _LANES - V)).reshape(vr, _LANES)
    if use_bf16_mxu:
        g2d = g2d.astype(jnp.bfloat16)   # 2x MXU / half residency; ~3-digit densities

    # Lane-dense ray tiling: >=128 rays per tile (unmasked stores) and >=2 tiles
    # so both v7x TensorCores get work along the "parallel" grid axis.
    ray_tile = max(_LANES, _round_up(ray_tile, _LANES))
    n_tiles = max(2, pl.cdiv(R, ray_tile))
    r_pad = n_tiles * ray_tile

    # Padding rays: voxel 0 (always valid) with weight 0 -> T = 1, sliced off.
    flat = jnp.pad(flat, ((0, r_pad - R), (0, 0), (0, 0)))
    wdt = jnp.pad(wdt, ((0, r_pad - R), (0, 0), (0, 0)))

    def lane_major(x):  # (r_pad, S, 8) -> (S, n_tiles * 8 * ray_tile)
        x = x.reshape(n_tiles, ray_tile, S, _CORNERS)
        x = jnp.transpose(x, (2, 0, 3, 1))                   # (S, tile, corner, ray)
        return x.reshape(S, n_tiles * _CORNERS * ray_tile)

    idx_l = lane_major(flat).astype(jnp.int32)
    wdt_l = lane_major(wdt).astype(jnp.float32)

    out_t = pl.pallas_call(
        _transmittance_kernel,
        out_shape=jax.ShapeDtypeStruct((S, r_pad), jnp.float32),
        grid=(n_tiles,),
        in_specs=[
            pl.BlockSpec((vr, _LANES), lambda t: (0, 0)),              # grid (resident)
            pl.BlockSpec((S, _CORNERS * ray_tile), lambda t: (0, t)),  # corner indices
            pl.BlockSpec((S, _CORNERS * ray_tile), lambda t: (0, t)),  # weights * dt
        ],
        out_specs=pl.BlockSpec((S, ray_tile), lambda t: (0, t)),
        compiler_params=pltpu.CompilerParams(
            dimension_semantics=("parallel",),
            vmem_limit_bytes=32 * 1024 * 1024),
    )(g2d, idx_l, wdt_l)

    return out_t.T[:R]                                        # (R, S)


class TrainableCloud:
    """JAX/Pallas port of the PyTorch TrainableCloud module (forward pass)."""

    def __init__(self, grid_or_dim, n_samples=8):
        if isinstance(grid_or_dim, (tuple, list)):
            self.Grid = jnp.zeros(tuple(grid_or_dim), jnp.float32)
        else:
            self.Grid = jnp.asarray(grid_or_dim, jnp.float32)
        self.n_samples = n_samples

    def __call__(self, rays):
        # torch.clamp(self.Grid, 0, 1) is applied once inside the wrapper.
        return transmittance_render(rays, self.Grid, n_samples=self.n_samples)


def _reference(rays, grid, n_samples=8):
    """Pure-JAX reference (exact gather) for the same semantics."""
    flat, wdt = _build_lookups(rays, grid.shape, n_samples)
    g = jnp.clip(grid.reshape(-1), 0.0, 1.0)
    sigma_dt = jnp.sum(g[flat] * wdt, axis=-1)                # (R, S)
    return jnp.exp(-jnp.cumsum(sigma_dt, axis=-1))


if __name__ == "__main__":
    key = jax.random.PRNGKey(0)
    k1, k2, k3 = jax.random.split(key, 3)

    D = H = W = 16          # Grid (trainable parameter) dimensions
    R, S = 8, 8             # rays, samples per ray

    grid_init = jax.random.uniform(k1, (D, H, W), dtype=jnp.float32)
    model = TrainableCloud(grid_init, n_samples=S)

    # Rays: origin near one corner of the unit cube, random directions.
    origins = jax.random.uniform(k2, (R, 3), dtype=jnp.float32) * 0.2
    dirs = jax.random.normal(k3, (R, 3), dtype=jnp.float32)
    rays = jnp.concatenate([origins, dirs], axis=-1)            # (R, 6)

    out = jax.block_until_ready(model(rays))
    ref = _reference(rays, model.Grid, S)
    assert out.shape == (R, S), out.shape
    assert bool(jnp.allclose(out, ref, atol=2e-5, rtol=2e-5)), \
        "Pallas kernel (f32) mismatch vs JAX reference"

    # bf16 MXU-operand variant (densities quantized to bf16; looser tolerance).
    out_bf16 = jax.block_until_ready(
        transmittance_render(rays, model.Grid, n_samples=S, use_bf16_mxu=True))
    assert bool(jnp.allclose(out_bf16, ref, atol=1e-2, rtol=1e-2)), \
        "Pallas kernel (bf16 MXU) mismatch vs JAX reference"

    print("KERNEL_OK")
</pallas_src>

<mosaic_0001>
module attributes {stable_mosaic.version = 11 : i64} {
  func.func @_transmittance_kernel(%arg0: i32, %arg1: memref<32x128xf32, #tpu.memory_space<vmem>>, %arg2: memref<8x1024xi32, #tpu.memory_space<vmem>>, %arg3: memref<8x1024xf32, #tpu.memory_space<vmem>>, %arg4: memref<8x128xf32, #tpu.memory_space<vmem>>) attributes {dimension_semantics = [#tpu.dimension_semantics<parallel>], iteration_bounds = array<i64: 2>, scalar_prefetch = 0 : i64, scratch_operands = 0 : i64, tpu.core_type = #tpu.core_type<tc>, window_params = [{pipeline_mode = #tpu.pipeline_mode<synchronous>, transform_indices = @transform_0, window_bounds = array<i64: 32, 128>}, {transform_indices = @transform_1, window_bounds = array<i64: 8, 1024>}, {transform_indices = @transform_2, window_bounds = array<i64: 8, 1024>}, {transform_indices = @transform_3, window_bounds = array<i64: 8, 128>}]} {
    %c0 = arith.constant 0 : index
    %c0_0 = arith.constant 0 : index
    %0 = vector.load %arg1[%c0, %c0_0] : memref<32x128xf32, #tpu.memory_space<vmem>>, vector<32x128xf32>
    %1 = tpu.iota {dimensions = array<i32: 0>} : vector<128x1024xi32>
    %2 = tpu.iota {dimensions = array<i32: 0>} : vector<32x1024xi32>
    %cst = arith.constant 0.000000e+00 : f32
    %3 = vector.broadcast %cst : f32 to vector<1x128xf32>
    %c0_1 = arith.constant 0 : index
    %c0_2 = arith.constant 0 : index
    %4 = vector.load %arg2[%c0_1, %c0_2] : memref<8x1024xi32, #tpu.memory_space<vmem>>, vector<1x1024xi32>
    %c0_3 = arith.constant 0 : index
    %c0_4 = arith.constant 0 : index
    %5 = vector.load %arg3[%c0_3, %c0_4] : memref<8x1024xf32, #tpu.memory_space<vmem>>, vector<1x1024xf32>
    %c7_i32 = arith.constant 7 : i32
    %6 = vector.broadcast %c7_i32 : i32 to vector<1x1024xi32>
    %7 = arith.shrsi %4, %6 : vector<1x1024xi32>
    %c127_i32 = arith.constant 127 : i32
    %8 = vector.broadcast %c127_i32 : i32 to vector<1x1024xi32>
    %9 = arith.andi %4, %8 : vector<1x1024xi32>
    %10 = vector.broadcast %9 : vector<1x1024xi32> to vector<128x1024xi32>
    %11 = arith.cmpi eq, %1, %10 : vector<128x1024xi32>
    %cst_5 = arith.constant 1.000000e+00 : f32
    %cst_6 = arith.constant 0.000000e+00 : f32
    %12 = vector.broadcast %cst_5 : f32 to vector<128x1024xf32>
    %13 = vector.broadcast %cst_6 : f32 to vector<128x1024xf32>
    %14 = arith.select %11, %12, %13 : vector<128x1024xi1>, vector<128x1024xf32>
    %cst_7 = arith.constant dense<0.000000e+00> : vector<32x1024xf32>
    %15 = tpu.matmul %0, %14, %cst_7 {dimension_numbers = #tpu.dot_dimension_numbers<[1], [0], [0], [1], [0, 0, 1, 1], [], []>} : vector<32x128xf32>, vector<128x1024xf32>, vector<32x1024xf32> -> vector<32x1024xf32>
    %16 = vector.broadcast %7 : vector<1x1024xi32> to vector<32x1024xi32>
    %17 = arith.cmpi eq, %2, %16 : vector<32x1024xi32>
    %cst_8 = arith.constant 0.000000e+00 : f32
    %18 = vector.broadcast %cst_8 : f32 to vector<32x1024xf32>
    %19 = arith.select %17, %15, %18 : vector<32x1024xi1>, vector<32x1024xf32>
    %cst_9 = arith.constant dense<0.000000e+00> : vector<1024xf32>
    %20 = vector.multi_reduction <add>, %19, %cst_9 [0] : vector<32x1024xf32> to vector<1024xf32>
    %21 = vector.shape_cast %20 : vector<1024xf32> to vector<1x1024xf32>
    %22 = arith.mulf %21, %5 : vector<1x1024xf32>
    %23 = vector.extract_strided_slice %22 {offsets = [0, 0], sizes = [1, 128], strides = [1, 1]} : vector<1x1024xf32> to vector<1x128xf32>
    %24 = vector.extract_strided_slice %22 {offsets = [0, 128], sizes = [1, 128], strides = [1, 1]} : vector<1x1024xf32> to vector<1x128xf32>
    %25 = arith.addf %23, %24 : vector<1x128xf32>
    %26 = vector.extract_strided_slice %22 {offsets = [0, 256], sizes = [1, 128], strides = [1, 1]} : vector<1x1024xf32> to vector<1x128xf32>
    %27 = arith.addf %25, %26 : vector<1x128xf32>
    %28 = vector.extract_strided_slice %22 {offsets = [0, 384], sizes = [1, 128], strides = [1, 1]} : vector<1x1024xf32> to vector<1x128xf32>
    %29 = arith.addf %27, %28 : vector<1x128xf32>
    %30 = vector.extract_strided_slice %22 {offsets = [0, 512], sizes = [1, 128], strides = [1, 1]} : vector<1x1024xf32> to vector<1x128xf32>
    %31 = arith.addf %29, %30 : vector<1x128xf32>
    %32 = vector.extract_strided_slice %22 {offsets = [0, 640], sizes = [1, 128], strides = [1, 1]} : vector<1x1024xf32> to vector<1x128xf32>
    %33 = arith.addf %31, %32 : vector<1x128xf32>
    %34 = vector.extract_strided_slice %22 {offsets = [0, 768], sizes = [1, 128], strides = [1, 1]} : vector<1x1024xf32> to vector<1x128xf32>
    %35 = arith.addf %33, %34 : vector<1x128xf32>
    %36 = vector.extract_strided_slice %22 {offsets = [0, 896], sizes = [1, 128], strides = [1, 1]} : vector<1x1024xf32> to vector<1x128xf32>
    %37 = arith.addf %35, %36 : vector<1x128xf32>
    %38 = arith.addf %3, %37 : vector<1x128xf32>
    %cst_10 = arith.constant 0.000000e+00 : f32
    %39 = vector.broadcast %cst_10 : f32 to vector<1x128xf32>
    %40 = arith.subf %39, %38 : vector<1x128xf32>
    %41 = math.exp %40 : vector<1x128xf32>
    %c0_11 = arith.constant 0 : index
    %c0_12 = arith.constant 0 : index
    %42 = vector.load %arg4[%c0_11, %c0_12] : memref<8x128xf32, #tpu.memory_space<vmem>>, vector<1x128xf32>
    tpu.vector_store %arg4[%c0_11, %c0_12], %41 {strides = array<i32>} : memref<8x128xf32, #tpu.memory_space<vmem>>, vector<1x128xf32>,
    %c1 = arith.constant 1 : index
    %c0_13 = arith.constant 0 : index
    %43 = vector.load %arg2[%c1, %c0_13] : memref<8x1024xi32, #tpu.memory_space<vmem>>, vector<1x1024xi32>
    %c1_14 = arith.constant 1 : index
    %c0_15 = arith.constant 0 : index
    %44 = vector.load %arg3[%c1_14, %c0_15] : memref<8x1024xf32, #tpu.memory_space<vmem>>, vector<1x1024xf32>
    %c7_i32_16 = arith.constant 7 : i32
    %45 = vector.broadcast %c7_i32_16 : i32 to vector<1x1024xi32>
    %46 = arith.shrsi %43, %45 : vector<1x1024xi32>
    %c127_i32_17 = arith.constant 127 : i32
    %47 = vector.broadcast %c127_i32_17 : i32 to vector<1x1024xi32>
    %48 = arith.andi %43, %47 : vector<1x1024xi32>
    %49 = vector.broadcast %48 : vector<1x1024xi32> to vector<128x1024xi32>
    %50 = arith.cmpi eq, %1, %49 : vector<128x1024xi32>
    %cst_18 = arith.constant 1.000000e+00 : f32
    %cst_19 = arith.constant 0.000000e+00 : f32
    %51 = vector.broadcast %cst_18 : f32 to vector<128x1024xf32>
    %52 = vector.broadcast %cst_19 : f32 to vector<128x1024xf32>
    %53 = arith.select %50, %51, %52 : vector<128x1024xi1>, vector<128x1024xf32>
    %cst_20 = arith.constant dense<0.000000e+00> : vector<32x1024xf32>
    %54 = tpu.matmul %0, %53, %cst_20 {dimension_numbers = #tpu.dot_dimension_numbers<[1], [0], [0], [1], [0, 0, 1, 1], [], []>} : vector<32x128xf32>, vector<128x1024xf32>, vector<32x1024xf32> -> vector<32x1024xf32>
    %55 = vector.broadcast %46 : vector<1x1024xi32> to vector<32x1024xi32>
    %56 = arith.cmpi eq, %2, %55 : vector<32x1024xi32>
    %cst_21 = arith.constant 0.000000e+00 : f32
    %57 = vector.broadcast %cst_21 : f32 to vector<32x1024xf32>
    %58 = arith.select %56, %54, %57 : vector<32x1024xi1>, vector<32x1024xf32>
    %cst_22 = arith.constant dense<0.000000e+00> : vector<1024xf32>
    %59 = vector.multi_reduction <add>, %58, %cst_22 [0] : vector<32x1024xf32> to vector<1024xf32>
    %60 = vector.shape_cast %59 : vector<1024xf32> to vector<1x1024xf32>
    %61 = arith.mulf %60, %44 : vector<1x1024xf32>
    %62 = vector.extract_strided_slice %61 {offsets = [0, 0], sizes = [1, 128], strides = [1, 1]} : vector<1x1024xf32> to vector<1x128xf32>
    %63 = vector.extract_strided_slice %61 {offsets = [0, 128], sizes = [1, 128], strides = [1, 1]} : vector<1x1024xf32> to vector<1x128xf32>
    %64 = arith.addf %62, %63 : vector<1x128xf32>
    %65 = vector.extract_strided_slice %61 {offsets = [0, 256], sizes = [1, 128], strides = [1, 1]} : vector<1x1024xf32> to vector<1x128xf32>
    %66 = arith.addf %64, %65 : vector<1x128xf32>
    %67 = vector.extract_strided_slice %61 {offsets = [0, 384], sizes = [1, 128], strides = [1, 1]} : vector<1x1024xf32> to vector<1x128xf32>
    %68 = arith.addf %66, %67 : vector<1x128xf32>
    %69 = vector.extract_strided_slice %61 {offsets = [0, 512], sizes = [1, 128], strides = [1, 1]} : vector<1x1024xf32> to vector<1x128xf32>
    %70 = arith.addf %68, %69 : vector<1x128xf32>
    %71 = vector.extract_strided_slice %61 {offsets = [0, 640], sizes = [1, 128], strides = [1, 1]} : vector<1x1024xf32> to vector<1x128xf32>
    %72 = arith.addf %70, %71 : vector<1x128xf32>
    %73 = vector.extract_strided_slice %61 {offsets = [0, 768], sizes = [1, 128], strides = [1, 1]} : vector<1x1024xf32> to vector<1x128xf32>
    %74 = arith.addf %72, %73 : vector<1x128xf32>
    %75 = vector.extract_strided_slice %61 {offsets = [0, 896], sizes = [1, 128], strides = [1, 1]} : vector<1x1024xf32> to vector<1x128xf32>
    %76 = arith.addf %74, %75 : vector<1x128xf32>
    %77 = arith.addf %38, %76 : vector<1x128xf32>
    %cst_23 = arith.constant 0.000000e+00 : f32
    %78 = vector.broadcast %cst_23 : f32 to vector<1x128xf32>
    %79 = arith.subf %78, %77 : vector<1x128xf32>
    %80 = math.exp %79 : vector<1x128xf32>
    %c1_24 = arith.constant 1 : index
    %c0_25 = arith.constant 0 : index
    %81 = vector.load %arg4[%c1_24, %c0_25] : memref<8x128xf32, #tpu.memory_space<vmem>>, vector<1x128xf32>
    tpu.vector_store %arg4[%c1_24, %c0_25], %80 {strides = array<i32>} : memref<8x128xf32, #tpu.memory_space<vmem>>, vector<1x128xf32>,
    %c2 = arith.constant 2 : index
    %c0_26 = arith.constant 0 : index
    %82 = vector.load %arg2[%c2, %c0_26] : memref<8x1024xi32, #tpu.memory_space<vmem>>, vector<1x1024xi32>
    %c2_27 = arith.constant 2 : index
    %c0_28 = arith.constant 0 : index
    %83 = vector.load %arg3[%c2_27, %c0_28] : memref<8x1024xf32, #tpu.memory_space<vmem>>, vector<1x1024xf32>
    %c7_i32_29 = arith.constant 7 : i32
    %84 = vector.broadcast %c7_i32_29 : i32 to vector<1x1024xi32>
    %85 = arith.shrsi %82, %84 : vector<1x1024xi32>
    %c127_i32_30 = arith.constant 127 : i32
    %86 = vector.broadcast %c127_i32_30 : i32 to vector<1x1024xi32>
    %87 = arith.andi %82, %86 : vector<1x1024xi32>
    %88 = vector.broadcast %87 : vector<1x1024xi32> to vector<128x1024xi32>
    %89 = arith.cmpi eq, %1, %88 : vector<128x1024xi32>
    %cst_31 = arith.constant 1.000000e+00 : f32
    %cst_32 = arith.constant 0.000000e+00 : f32
    %90 = vector.broadcast %cst_31 : f32 to vector<128x1024xf32>
    %91 = vector.broadcast %cst_32 : f32 to vector<128x1024xf32>
    %92 = arith.select %89, %90, %91 : vector<128x1024xi1>, vector<128x1024xf32>
    %cst_33 = arith.constant dense<0.000000e+00> : vector<32x1024xf32>
    %93 = tpu.matmul %0, %92, %cst_33 {dimension_numbers = #tpu.dot_dimension_numbers<[1], [0], [0], [1], [0, 0, 1, 1], [], []>} : vector<32x128xf32>, vector<128x1024xf32>, vector<32x1024xf32> -> vector<32x1024xf32>
    %94 = vector.broadcast %85 : vector<1x1024xi32> to vector<32x1024xi32>
    %95 = arith.cmpi eq, %2, %94 : vector<32x1024xi32>
    %cst_34 = arith.constant 0.000000e+00 : f32
    %96 = vector.broadcast %cst_34 : f32 to vector<32x1024xf32>
    %97 = arith.select %95, %93, %96 : vector<32x1024xi1>, vector<32x1024xf32>
    %cst_35 = arith.constant dense<0.000000e+00> : vector<1024xf32>
    %98 = vector.multi_reduction <add>, %97, %cst_35 [0] : vector<32x1024xf32> to vector<1024xf32>
    %99 = vector.shape_cast %98 : vector<1024xf32> to vector<1x1024xf32>
    %100 = arith.mulf %99, %83 : vector<1x1024xf32>
    %101 = vector.extract_strided_slice %100 {offsets = [0, 0], sizes = [1, 128], strides = [1, 1]} : vector<1x1024xf32> to vector<1x128xf32>
    %102 = vector.extract_strided_slice %100 {offsets = [0, 128], sizes = [1, 128], strides = [1, 1]} : vector<1x1024xf32> to vector<1x128xf32>
    %103 = arith.addf %101, %102 : vector<1x128xf32>
    %104 = vector.extract_strided_slice %100 {offsets = [0, 256], sizes = [1, 128], strides = [1, 1]} : vector<1x1024xf32> to vector<1x128xf32>
    %105 = arith.addf %103, %104 : vector<1x128xf32>
    %106 = vector.extract_strided_slice %100 {offsets = [0, 384], sizes = [1, 128], strides = [1, 1]} : vector<1x1024xf32> to vector<1x128xf32>
    %107 = arith.addf %105, %106 : vector<1x128xf32>
    %108 = vector.extract_strided_slice %100 {offsets = [0, 512], sizes = [1, 128], strides = [1, 1]} : vector<1x1024xf32> to vector<1x128xf32>
    %109 = arith.addf %107, %108 : vector<1x128xf32>
    %110 = vector.extract_strided_slice %100 {offsets = [0, 640], sizes = [1, 128], strides = [1, 1]} : vector<1x1024xf32> to vector<1x128xf32>
    %111 = arith.addf %109, %110 : vector<1x128xf32>
    %112 = vector.extract_strided_slice %100 {offsets = [0, 768], sizes = [1, 128], strides = [1, 1]} : vector<1x1024xf32> to vector<1x128xf32>
    %113 = arith.addf %111, %112 : vector<1x128xf32>
    %114 = vector.extract_strided_slice %100 {offsets = [0, 896], sizes = [1, 128], strides = [1, 1]} : vector<1x1024xf32> to vector<1x128xf32>
    %115 = arith.addf %113, %114 : vector<1x128xf32>
    %116 = arith.addf %77, %115 : vector<1x128xf32>
    %cst_36 = arith.constant 0.000000e+00 : f32
    %117 = vector.broadcast %cst_36 : f32 to vector<1x128xf32>
    %118 = arith.subf %117, %116 : vector<1x128xf32>
    %119 = math.exp %118 : vector<1x128xf32>
    %c2_37 = arith.constant 2 : index
    %c0_38 = arith.constant 0 : index
    %120 = vector.load %arg4[%c2_37, %c0_38] : memref<8x128xf32, #tpu.memory_space<vmem>>, vector<1x128xf32>
    tpu.vector_store %arg4[%c2_37, %c0_38], %119 {strides = array<i32>} : memref<8x128xf32, #tpu.memory_space<vmem>>, vector<1x128xf32>,
    %c3 = arith.constant 3 : index
    %c0_39 = arith.constant 0 : index
    %121 = vector.load %arg2[%c3, %c0_39] : memref<8x1024xi32, #tpu.memory_space<vmem>>, vector<1x1024xi32>
    %c3_40 = arith.constant 3 : index
    %c0_41 = arith.constant 0 : index
    %122 = vector.load %arg3[%c3_40, %c0_41] : memref<8x1024xf32, #tpu.memory_space<vmem>>, vector<1x1024xf32>
    %c7_i32_42 = arith.constant 7 : i32
    %123 = vector.broadcast %c7_i32_42 : i32 to vector<1x1024xi32>
    %124 = arith.shrsi %121, %123 : vector<1x1024xi32>
    %c127_i32_43 = arith.constant 127 : i32
    %125 = vector.broadcast %c127_i32_43 : i32 to vector<1x1024xi32>
    %126 = arith.andi %121, %125 : vector<1x1024xi32>
    %127 = vector.broadcast %126 : vector<1x1024xi32> to vector<128x1024xi32>
    %128 = arith.cmpi eq, %1, %127 : vector<128x1024xi32>
    %cst_44 = arith.constant 1.000000e+00 : f32
    %cst_45 = arith.constant 0.000000e+00 : f32
    %129 = vector.broadcast %cst_44 : f32 to vector<128x1024xf32>
    %130 = vector.broadcast %cst_45 : f32 to vector<128x1024xf32>
    %131 = arith.select %128, %129, %130 : vector<128x1024xi1>, vector<128x1024xf32>
    %cst_46 = arith.constant dense<0.000000e+00> : vector<32x1024xf32>
    %132 = tpu.matmul %0, %131, %cst_46 {dimension_numbers = #tpu.dot_dimension_numbers<[1], [0], [0], [1], [0, 0, 1, 1], [], []>} : vector<32x128xf32>, vector<128x1024xf32>, vector<32x1024xf32> -> vector<32x1024xf32>
    %133 = vector.broadcast %124 : vector<1x1024xi32> to vector<32x1024xi32>
    %134 = arith.cmpi eq, %2, %133 : vector<32x1024xi32>
    %cst_47 = arith.constant 0.000000e+00 : f32
    %135 = vector.broadcast %cst_47 : f32 to vector<32x1024xf32>
    %136 = arith.select %134, %132, %135 : vector<32x1024xi1>, vector<32x1024xf32>
    %cst_48 = arith.constant dense<0.000000e+00> : vector<1024xf32>
    %137 = vector.multi_reduction <add>, %136, %cst_48 [0] : vector<32x1024xf32> to vector<1024xf32>
    %138 = vector.shape_cast %137 : vector<1024xf32> to vector<1x1024xf32>
    %139 = arith.mulf %138, %122 : vector<1x1024xf32>
    %140 = vector.extract_strided_slice %139 {offsets = [0, 0], sizes = [1, 128], strides = [1, 1]} : vector<1x1024xf32> to vector<1x128xf32>
    %141 = vector.extract_strided_slice %139 {offsets = [0, 128], sizes = [1, 128], strides = [1, 1]} : vector<1x1024xf32> to vector<1x128xf32>
    %142 = arith.addf %140, %141 : vector<1x128xf32>
    %143 = vector.extract_strided_slice %139 {offsets = [0, 256], sizes = [1, 128], strides = [1, 1]} : vector<1x1024xf32> to vector<1x128xf32>
    %144 = arith.addf %142, %143 : vector<1x128xf32>
    %145 = vector.extract_strided_slice %139 {offsets = [0, 384], sizes = [1, 128], strides = [1, 1]} : vector<1x1024xf32> to vector<1x128xf32>
    %146 = arith.addf %144, %145 : vector<1x128xf32>
    %147 = vector.extract_strided_slice %139 {offsets = [0, 512], sizes = [1, 128], strides = [1, 1]} : vector<1x1024xf32> to vector<1x128xf32>
    %148 = arith.addf %146, %147 : vector<1x128xf32>
    %149 = vector.extract_strided_slice %139 {offsets = [0, 640], sizes = [1, 128], strides = [1, 1]} : vector<1x1024xf32> to vector<1x128xf32>
    %150 = arith.addf %148, %149 : vector<1x128xf32>
    %151 = vector.extract_strided_slice %139 {offsets = [0, 768], sizes = [1, 128], strides = [1, 1]} : vector<1x1024xf32> to vector<1x128xf32>
    %152 = arith.addf %150, %151 : vector<1x128xf32>
    %153 = vector.extract_strided_slice %139 {offsets = [0, 896], sizes = [1, 128], strides = [1, 1]} : vector<1x1024xf32> to vector<1x128xf32>
    %154 = arith.addf %152, %153 : vector<1x128xf32>
    %155 = arith.addf %116, %154 : vector<1x128xf32>
    %cst_49 = arith.constant 0.000000e+00 : f32
    %156 = vector.broadcast %cst_49 : f32 to vector<1x128xf32>
    %157 = arith.subf %156, %155 : vector<1x128xf32>
    %158 = math.exp %157 : vector<1x128xf32>
    %c3_50 = arith.constant 3 : index
    %c0_51 = arith.constant 0 : index
    %159 = vector.load %arg4[%c3_50, %c0_51] : memref<8x128xf32, #tpu.memory_space<vmem>>, vector<1x128xf32>
    tpu.vector_store %arg4[%c3_50, %c0_51], %158 {strides = array<i32>} : memref<8x128xf32, #tpu.memory_space<vmem>>, vector<1x128xf32>,
    %c4 = arith.constant 4 : index
    %c0_52 = arith.constant 0 : index
    %160 = vector.load %arg2[%c4, %c0_52] : memref<8x1024xi32, #tpu.memory_space<vmem>>, vector<1x1024xi32>
    %c4_53 = arith.constant 4 : index
    %c0_54 = arith.constant 0 : index
    %161 = vector.load %arg3[%c4_53, %c0_54] : memref<8x1024xf32, #tpu.memory_space<vmem>>, vector<1x1024xf32>
    %c7_i32_55 = arith.constant 7 : i32
    %162 = vector.broadcast %c7_i32_55 : i32 to vector<1x1024xi32>
    %163 = arith.shrsi %160, %162 : vector<1x1024xi32>
    %c127_i32_56 = arith.constant 127 : i32
    %164 = vector.broadcast %c127_i32_56 : i32 to vector<1x1024xi32>
    %165 = arith.andi %160, %164 : vector<1x1024xi32>
    %166 = vector.broadcast %165 : vector<1x1024xi32> to vector<128x1024xi32>
    %167 = arith.cmpi eq, %1, %166 : vector<128x1024xi32>
    %cst_57 = arith.constant 1.000000e+00 : f32
    %cst_58 = arith.constant 0.000000e+00 : f32
    %168 = vector.broadcast %cst_57 : f32 to vector<128x1024xf32>
    %169 = vector.broadcast %cst_58 : f32 to vector<128x1024xf32>
    %170 = arith.select %167, %168, %169 : vector<128x1024xi1>, vector<128x1024xf32>
    %cst_59 = arith.constant dense<0.000000e+00> : vector<32x1024xf32>
    %171 = tpu.matmul %0, %170, %cst_59 {dimension_numbers = #tpu.dot_dimension_numbers<[1], [0], [0], [1], [0, 0, 1, 1], [], []>} : vector<32x128xf32>, vector<128x1024xf32>, vector<32x1024xf32> -> vector<32x1024xf32>
    %172 = vector.broadcast %163 : vector<1x1024xi32> to vector<32x1024xi32>
    %173 = arith.cmpi eq, %2, %172 : vector<32x1024xi32>
    %cst_60 = arith.constant 0.000000e+00 : f32
    %174 = vector.broadcast %cst_60 : f32 to vector<32x1024xf32>
    %175 = arith.select %173, %171, %174 : vector<32x1024xi1>, vector<32x1024xf32>
    %cst_61 = arith.constant dense<0.000000e+00> : vector<1024xf32>
    %176 = vector.multi_reduction <add>, %175, %cst_61 [0] : vector<32x1024xf32> to vector<1024xf32>
    %177 = vector.shape_cast %176 : vector<1024xf32> to vector<1x1024xf32>
    %178 = arith.mulf %177, %161 : vector<1x1024xf32>
    %179 = vector.extract_strided_slice %178 {offsets = [0, 0], sizes = [1, 128], strides = [1, 1]} : vector<1x1024xf32> to vector<1x128xf32>
    %180 = vector.extract_strided_slice %178 {offsets = [0, 128], sizes = [1, 128], strides = [1, 1]} : vector<1x1024xf32> to vector<1x128xf32>
    %181 = arith.addf %179, %180 : vector<1x128xf32>
    %182 = vector.extract_strided_slice %178 {offsets = [0, 256], sizes = [1, 128], strides = [1, 1]} : vector<1x1024xf32> to vector<1x128xf32>
    %183 = arith.addf %181, %182 : vector<1x128xf32>
    %184 = vector.extract_strided_slice %178 {offsets = [0, 384], sizes = [1, 128], strides = [1, 1]} : vector<1x1024xf32> to vector<1x128xf32>
    %185 = arith.addf %183, %184 : vector<1x128xf32>
    %186 = vector.extract_strided_slice %178 {offsets = [0, 512], sizes = [1, 128], strides = [1, 1]} : vector<1x1024xf32> to vector<1x128xf32>
    %187 = arith.addf %185, %186 : vector<1x128xf32>
    %188 = vector.extract_strided_slice %178 {offsets = [0, 640], sizes = [1, 128], strides = [1, 1]} : vector<1x1024xf32> to vector<1x128xf32>
    %189 = arith.addf %187, %188 : vector<1x128xf32>
    %190 = vector.extract_strided_slice %178 {offsets = [0, 768], sizes = [1, 128], strides = [1, 1]} : vector<1x1024xf32> to vector<1x128xf32>
    %191 = arith.addf %189, %190 : vector<1x128xf32>
    %192 = vector.extract_strided_slice %178 {offsets = [0, 896], sizes = [1, 128], strides = [1, 1]} : vector<1x1024xf32> to vector<1x128xf32>
    %193 = arith.addf %191, %192 : vector<1x128xf32>
    %194 = arith.addf %155, %193 : vector<1x128xf32>
    %cst_62 = arith.constant 0.000000e+00 : f32
    %195 = vector.broadcast %cst_62 : f32 to vector<1x128xf32>
    %196 = arith.subf %195, %194 : vector<1x128xf32>
    %197 = math.exp %196 : vector<1x128xf32>
    %c4_63 = arith.constant 4 : index
    %c0_64 = arith.constant 0 : index
    %198 = vector.load %arg4[%c4_63, %c0_64] : memref<8x128xf32, #tpu.memory_space<vmem>>, vector<1x128xf32>
    tpu.vector_store %arg4[%c4_63, %c0_64], %197 {strides = array<i32>} : memref<8x128xf32, #tpu.memory_space<vmem>>, vector<1x128xf32>,
    %c5 = arith.constant 5 : index
    %c0_65 = arith.constant 0 : index
    %199 = vector.load %arg2[%c5, %c0_65] : memref<8x1024xi32, #tpu.memory_space<vmem>>, vector<1x1024xi32>
    %c5_66 = arith.constant 5 : index
    %c0_67 = arith.constant 0 : index
    %200 = vector.load %arg3[%c5_66, %c0_67] : memref<8x1024xf32, #tpu.memory_space<vmem>>, vector<1x1024xf32>
    %c7_i32_68 = arith.constant 7 : i32
    %201 = vector.broadcast %c7_i32_68 : i32 to vector<1x1024xi32>
    %202 = arith.shrsi %199, %201 : vector<1x1024xi32>
    %c127_i32_69 = arith.constant 127 : i32
    %203 = vector.broadcast %c127_i32_69 : i32 to vector<1x1024xi32>
    %204 = arith.andi %199, %203 : vector<1x1024xi32>
    %205 = vector.broadcast %204 : vector<1x1024xi32> to vector<128x1024xi32>
    %206 = arith.cmpi eq, %1, %205 : vector<128x1024xi32>
    %cst_70 = arith.constant 1.000000e+00 : f32
    %cst_71 = arith.constant 0.000000e+00 : f32
    %207 = vector.broadcast %cst_70 : f32 to vector<128x1024xf32>
    %208 = vector.broadcast %cst_71 : f32 to vector<128x1024xf32>
    %209 = arith.select %206, %207, %208 : vector<128x1024xi1>, vector<128x1024xf32>
    %cst_72 = arith.constant dense<0.000000e+00> : vector<32x1024xf32>
    %210 = tpu.matmul %0, %209, %cst_72 {dimension_numbers = #tpu.dot_dimension_numbers<[1], [0], [0], [1], [0, 0, 1, 1], [], []>} : vector<32x128xf32>, vector<128x1024xf32>, vector<32x1024xf32> -> vector<32x1024xf32>
    %211 = vector.broadcast %202 : vector<1x1024xi32> to vector<32x1024xi32>
    %212 = arith.cmpi eq, %2, %211 : vector<32x1024xi32>
    %cst_73 = arith.constant 0.000000e+00 : f32
    %213 = vector.broadcast %cst_73 : f32 to vector<32x1024xf32>
    %214 = arith.select %212, %210, %213 : vector<32x1024xi1>, vector<32x1024xf32>
    %cst_74 = arith.constant dense<0.000000e+00> : vector<1024xf32>
    %215 = vector.multi_reduction <add>, %214, %cst_74 [0] : vector<32x1024xf32> to vector<1024xf32>
    %216 = vector.shape_cast %215 : vector<1024xf32> to vector<1x1024xf32>
    %217 = arith.mulf %216, %200 : vector<1x1024xf32>
    %218 = vector.extract_strided_slice %217 {offsets = [0, 0], sizes = [1, 128], strides = [1, 1]} : vector<1x1024xf32> to vector<1x128xf32>
    %219 = vector.extract_strided_slice %217 {offsets = [0, 128], sizes = [1, 128], strides = [1, 1]} : vector<1x1024xf32> to vector<1x128xf32>
    %220 = arith.addf %218, %219 : vector<1x128xf32>
    %221 = vector.extract_strided_slice %217 {offsets = [0, 256], sizes = [1, 128], strides = [1, 1]} : vector<1x1024xf32> to vector<1x128xf32>
    %222 = arith.addf %220, %221 : vector<1x128xf32>
    %223 = vector.extract_strided_slice %217 {offsets = [0, 384], sizes = [1, 128], strides = [1, 1]} : vector<1x1024xf32> to vector<1x128xf32>
    %224 = arith.addf %222, %223 : vector<1x128xf32>
    %225 = vector.extract_strided_slice %217 {offsets = [0, 512], sizes = [1, 128], strides = [1, 1]} : vector<1x1024xf32> to vector<1x128xf32>
    %226 = arith.addf %224, %225 : vector<1x128xf32>
    %227 = vector.extract_strided_slice %217 {offsets = [0, 640], sizes = [1, 128], strides = [1, 1]} : vector<1x1024xf32> to vector<1x128xf32>
    %228 = arith.addf %226, %227 : vector<1x128xf32>
    %229 = vector.extract_strided_slice %217 {offsets = [0, 768], sizes = [1, 128], strides = [1, 1]} : vector<1x1024xf32> to vector<1x128xf32>
    %230 = arith.addf %228, %229 : vector<1x128xf32>
    %231 = vector.extract_strided_slice %217 {offsets = [0, 896], sizes = [1, 128], strides = [1, 1]} : vector<1x1024xf32> to vector<1x128xf32>
    %232 = arith.addf %230, %231 : vector<1x128xf32>
    %233 = arith.addf %194, %232 : vector<1x128xf32>
    %cst_75 = arith.constant 0.000000e+00 : f32
    %234 = vector.broadcast %cst_75 : f32 to vector<1x128xf32>
    %235 = arith.subf %234, %233 : vector<1x128xf32>
    %236 = math.exp %235 : vector<1x128xf32>
    %c5_76 = arith.constant 5 : index
    %c0_77 = arith.constant 0 : index
    %237 = vector.load %arg4[%c5_76, %c0_77] : memref<8x128xf32, #tpu.memory_space<vmem>>, vector<1x128xf32>
    tpu.vector_store %arg4[%c5_76, %c0_77], %236 {strides = array<i32>} : memref<8x128xf32, #tpu.memory_space<vmem>>, vector<1x128xf32>,
    %c6 = arith.constant 6 : index
    %c0_78 = arith.constant 0 : index
    %238 = vector.load %arg2[%c6, %c0_78] : memref<8x1024xi32, #tpu.memory_space<vmem>>, vector<1x1024xi32>
    %c6_79 = arith.constant 6 : index
    %c0_80 = arith.constant 0 : index
    %239 = vector.load %arg3[%c6_79, %c0_80] : memref<8x1024xf32, #tpu.memory_space<vmem>>, vector<1x1024xf32>
    %c7_i32_81 = arith.constant 7 : i32
    %240 = vector.broadcast %c7_i32_81 : i32 to vector<1x1024xi32>
    %241 = arith.shrsi %238, %240 : vector<1x1024xi32>
    %c127_i32_82 = arith.constant 127 : i32
    %242 = vector.broadcast %c127_i32_82 : i32 to vector<1x1024xi32>
    %243 = arith.andi %238, %242 : vector<1x1024xi32>
    %244 = vector.broadcast %243 : vector<1x1024xi32> to vector<128x1024xi32>
    %245 = arith.cmpi eq, %1, %244 : vector<128x1024xi32>
    %cst_83 = arith.constant 1.000000e+00 : f32
    %cst_84 = arith.constant 0.000000e+00 : f32
    %246 = vector.broadcast %cst_83 : f32 to vector<128x1024xf32>
    %247 = vector.broadcast %cst_84 : f32 to vector<128x1024xf32>
    %248 = arith.select %245, %246, %247 : vector<128x1024xi1>, vector<128x1024xf32>
    %cst_85 = arith.constant dense<0.000000e+00> : vector<32x1024xf32>
    %249 = tpu.matmul %0, %248, %cst_85 {dimension_numbers = #tpu.dot_dimension_numbers<[1], [0], [0], [1], [0, 0, 1, 1], [], []>} : vector<32x128xf32>, vector<128x1024xf32>, vector<32x1024xf32> -> vector<32x1024xf32>
    %250 = vector.broadcast %241 : vector<1x1024xi32> to vector<32x1024xi32>
    %251 = arith.cmpi eq, %2, %250 : vector<32x1024xi32>
    %cst_86 = arith.constant 0.000000e+00 : f32
    %252 = vector.broadcast %cst_86 : f32 to vector<32x1024xf32>
    %253 = arith.select %251, %249, %252 : vector<32x1024xi1>, vector<32x1024xf32>
    %cst_87 = arith.constant dense<0.000000e+00> : vector<1024xf32>
    %254 = vector.multi_reduction <add>, %253, %cst_87 [0] : vector<32x1024xf32> to vector<1024xf32>
    %255 = vector.shape_cast %254 : vector<1024xf32> to vector<1x1024xf32>
    %256 = arith.mulf %255, %239 : vector<1x1024xf32>
    %257 = vector.extract_strided_slice %256 {offsets = [0, 0], sizes = [1, 128], strides = [1, 1]} : vector<1x1024xf32> to vector<1x128xf32>
    %258 = vector.extract_strided_slice %256 {offsets = [0, 128], sizes = [1, 128], strides = [1, 1]} : vector<1x1024xf32> to vector<1x128xf32>
    %259 = arith.addf %257, %258 : vector<1x128xf32>
    %260 = vector.extract_strided_slice %256 {offsets = [0, 256], sizes = [1, 128], strides = [1, 1]} : vector<1x1024xf32> to vector<1x128xf32>
    %261 = arith.addf %259, %260 : vector<1x128xf32>
    %262 = vector.extract_strided_slice %256 {offsets = [0, 384], sizes = [1, 128], strides = [1, 1]} : vector<1x1024xf32> to vector<1x128xf32>
    %263 = arith.addf %261, %262 : vector<1x128xf32>
    %264 = vector.extract_strided_slice %256 {offsets = [0, 512], sizes = [1, 128], strides = [1, 1]} : vector<1x1024xf32> to vector<1x128xf32>
    %265 = arith.addf %263, %264 : vector<1x128xf32>
    %266 = vector.extract_strided_slice %256 {offsets = [0, 640], sizes = [1, 128], strides = [1, 1]} : vector<1x1024xf32> to vector<1x128xf32>
    %267 = arith.addf %265, %266 : vector<1x128xf32>
    %268 = vector.extract_strided_slice %256 {offsets = [0, 768], sizes = [1, 128], strides = [1, 1]} : vector<1x1024xf32> to vector<1x128xf32>
    %269 = arith.addf %267, %268 : vector<1x128xf32>
    %270 = vector.extract_strided_slice %256 {offsets = [0, 896], sizes = [1, 128], strides = [1, 1]} : vector<1x1024xf32> to vector<1x128xf32>
    %271 = arith.addf %269, %270 : vector<1x128xf32>
    %272 = arith.addf %233, %271 : vector<1x128xf32>
    %cst_88 = arith.constant 0.000000e+00 : f32
    %273 = vector.broadcast %cst_88 : f32 to vector<1x128xf32>
    %274 = arith.subf %273, %272 : vector<1x128xf32>
    %275 = math.exp %274 : vector<1x128xf32>
    %c6_89 = arith.constant 6 : index
    %c0_90 = arith.constant 0 : index
    %276 = vector.load %arg4[%c6_89, %c0_90] : memref<8x128xf32, #tpu.memory_space<vmem>>, vector<1x128xf32>
    tpu.vector_store %arg4[%c6_89, %c0_90], %275 {strides = array<i32>} : memref<8x128xf32, #tpu.memory_space<vmem>>, vector<1x128xf32>,
    %c7 = arith.constant 7 : index
    %c0_91 = arith.constant 0 : index
    %277 = vector.load %arg2[%c7, %c0_91] : memref<8x1024xi32, #tpu.memory_space<vmem>>, vector<1x1024xi32>
    %c7_92 = arith.constant 7 : index
    %c0_93 = arith.constant 0 : index
    %278 = vector.load %arg3[%c7_92, %c0_93] : memref<8x1024xf32, #tpu.memory_space<vmem>>, vector<1x1024xf32>
    %c7_i32_94 = arith.constant 7 : i32
    %279 = vector.broadcast %c7_i32_94 : i32 to vector<1x1024xi32>
    %280 = arith.shrsi %277, %279 : vector<1x1024xi32>
    %c127_i32_95 = arith.constant 127 : i32
    %281 = vector.broadcast %c127_i32_95 : i32 to vector<1x1024xi32>
    %282 = arith.andi %277, %281 : vector<1x1024xi32>
    %283 = vector.broadcast %282 : vector<1x1024xi32> to vector<128x1024xi32>
    %284 = arith.cmpi eq, %1, %283 : vector<128x1024xi32>
    %cst_96 = arith.constant 1.000000e+00 : f32
    %cst_97 = arith.constant 0.000000e+00 : f32
    %285 = vector.broadcast %cst_96 : f32 to vector<128x1024xf32>
    %286 = vector.broadcast %cst_97 : f32 to vector<128x1024xf32>
    %287 = arith.select %284, %285, %286 : vector<128x1024xi1>, vector<128x1024xf32>
    %cst_98 = arith.constant dense<0.000000e+00> : vector<32x1024xf32>
    %288 = tpu.matmul %0, %287, %cst_98 {dimension_numbers = #tpu.dot_dimension_numbers<[1], [0], [0], [1], [0, 0, 1, 1], [], []>} : vector<32x128xf32>, vector<128x1024xf32>, vector<32x1024xf32> -> vector<32x1024xf32>
    %289 = vector.broadcast %280 : vector<1x1024xi32> to vector<32x1024xi32>
    %290 = arith.cmpi eq, %2, %289 : vector<32x1024xi32>
    %cst_99 = arith.constant 0.000000e+00 : f32
    %291 = vector.broadcast %cst_99 : f32 to vector<32x1024xf32>
    %292 = arith.select %290, %288, %291 : vector<32x1024xi1>, vector<32x1024xf32>
    %cst_100 = arith.constant dense<0.000000e+00> : vector<1024xf32>
    %293 = vector.multi_reduction <add>, %292, %cst_100 [0] : vector<32x1024xf32> to vector<1024xf32>
    %294 = vector.shape_cast %293 : vector<1024xf32> to vector<1x1024xf32>
    %295 = arith.mulf %294, %278 : vector<1x1024xf32>
    %296 = vector.extract_strided_slice %295 {offsets = [0, 0], sizes = [1, 128], strides = [1, 1]} : vector<1x1024xf32> to vector<1x128xf32>
    %297 = vector.extract_strided_slice %295 {offsets = [0, 128], sizes = [1, 128], strides = [1, 1]} : vector<1x1024xf32> to vector<1x128xf32>
    %298 = arith.addf %296, %297 : vector<1x128xf32>
    %299 = vector.extract_strided_slice %295 {offsets = [0, 256], sizes = [1, 128], strides = [1, 1]} : vector<1x1024xf32> to vector<1x128xf32>
    %300 = arith.addf %298, %299 : vector<1x128xf32>
    %301 = vector.extract_strided_slice %295 {offsets = [0, 384], sizes = [1, 128], strides = [1, 1]} : vector<1x1024xf32> to vector<1x128xf32>
    %302 = arith.addf %300, %301 : vector<1x128xf32>
    %303 = vector.extract_strided_slice %295 {offsets = [0, 512], sizes = [1, 128], strides = [1, 1]} : vector<1x1024xf32> to vector<1x128xf32>
    %304 = arith.addf %302, %303 : vector<1x128xf32>
    %305 = vector.extract_strided_slice %295 {offsets = [0, 640], sizes = [1, 128], strides = [1, 1]} : vector<1x1024xf32> to vector<1x128xf32>
    %306 = arith.addf %304, %305 : vector<1x128xf32>
    %307 = vector.extract_strided_slice %295 {offsets = [0, 768], sizes = [1, 128], strides = [1, 1]} : vector<1x1024xf32> to vector<1x128xf32>
    %308 = arith.addf %306, %307 : vector<1x128xf32>
    %309 = vector.extract_strided_slice %295 {offsets = [0, 896], sizes = [1, 128], strides = [1, 1]} : vector<1x1024xf32> to vector<1x128xf32>
    %310 = arith.addf %308, %309 : vector<1x128xf32>
    %311 = arith.addf %272, %310 : vector<1x128xf32>
    %cst_101 = arith.constant 0.000000e+00 : f32
    %312 = vector.broadcast %cst_101 : f32 to vector<1x128xf32>
    %313 = arith.subf %312, %311 : vector<1x128xf32>
    %314 = math.exp %313 : vector<1x128xf32>
    %c7_102 = arith.constant 7 : index
    %c0_103 = arith.constant 0 : index
    %315 = vector.load %arg4[%c7_102, %c0_103] : memref<8x128xf32, #tpu.memory_space<vmem>>, vector<1x128xf32>
    tpu.vector_store %arg4[%c7_102, %c0_103], %314 {strides = array<i32>} : memref<8x128xf32, #tpu.memory_space<vmem>>, vector<1x128xf32>,
    return
  }
  func.func @transform_0(%arg0: i32) -> (i32, i32) {
    %c0_i32 = arith.constant 0 : i32
    %c0_i32_0 = arith.constant 0 : i32
    %c0_i32_1 = arith.constant 0 : i32
    return %c0_i32, %c0_i32_0 : i32, i32
  }
  func.func @transform_1(%arg0: i32) -> (i32, i32) {
    %c0_i32 = arith.constant 0 : i32
    %c0_i32_0 = arith.constant 0 : i32
    return %c0_i32, %arg0 : i32, i32
  }
  func.func @transform_2(%arg0: i32) -> (i32, i32) {
    %c0_i32 = arith.constant 0 : i32
    %c0_i32_0 = arith.constant 0 : i32
    return %c0_i32, %arg0 : i32, i32
  }
  func.func @transform_3(%arg0: i32) -> (i32, i32) {
    %c0_i32 = arith.constant 0 : i32
    %c0_i32_0 = arith.constant 0 : i32
    return %c0_i32, %arg0 : i32, i32
  }
}

</mosaic_0001>

<bundles_post_ra>
// kernel: transmittance_render.1
= control target key start
LH: loop header
LB: loop body
LE: loop exit
PB: predicated region body
PF: predicated region fallthrough
CT: control target
= control target key end

     0   :  { %s6909_s12 = smov 0   ;;  %s14569_s0 = inlined_call_operand.vmem [shape: f32[32,128], index: 0, kind: input, shape index: {}]   ;;  %s14570_s1 = inlined_call_operand.vmem [shape: s32[8,2048], index: 1, kind: input, shape index: {}]   ;;  %s14571_s2 = inlined_call_operand.vmem [shape: f32[8,2048], index: 2, kind: input, shape index: {}]   ;;  %s14572_s3 = inlined_call_operand.vmem [shape: f32[8,256], index: 3, kind: output, shape index: {}]  }
   0x1 LB: > { %s6915_s13 = sadd.s32 4294967295, %s6886_s12   ;;  %p5777_p0 = scmp.ge.s32.totalorder %s6886_s12, 1  ;;  %s6886_s12 = sphi %s6909_s12, %s13_s12  }
   0x2   : > { %p149_p1 = scmp.lt.s32.totalorder %s6886_s12, 3 }
   0x4   : > { %p150_p2 = pnand %p5777_p0, %p149_p1 }
   0x5   : > { %s5778_s14 = sshll.u32 (!%p150_p2), %s6915_s13, 3  ;;  %p189_p4 = scmp.lt.s32.totalorder (!%p150_p2), %s6915_s13, 1 }
   0x6   : > { %153 = sbr.rel (%p150_p2) target bundleno = 849 (0x351), region = 32  ;;  %p178_p3 = scmp.lt.s32.totalorder (!%p150_p2), %s5778_s14, 15 }
   0xb   : > { %v197_v0 = vlaneseq  ;;  %s14653_s14 = smov (!%p178_p3, %s5778_s14), 15  ;;  %v6888_v14 = vmov 1.0   ;;  %v7199_v30 = vld [vmem:[%s14569_s0] sm:$0xff]  ;;  %v7256_v31 = vld [vmem:[%s14569_s0 + $0x8] sm:$0xff]  ;;  %v7313_v32 = vld [vmem:[%s14569_s0 + $0x10] sm:$0xff]  ;;  %s14655_s13 = smov (!%p189_p4, %s6915_s13), 1 }
   0xc   : > { %s5779_s15 = sshll.u32 %s14653_s14, 3  ;;  %v7372_v35 = vld [vmem:[%s14569_s0 + $0x18] sm:$0xff]  ;;  %s5782_s11 = sshll.u32 %s14655_s13, 3 }
   0xd   : > { %s6928_s18 = scalar_lea.vmem %s14570_s1, %s5779_s15  ;;  %v6930_v1 = vshrl.u32 %v197_v0, 7  ;;  %s8432_s4 = scalar_lea.vmem %s14571_s2, %s5779_s15 }
   0xe   : > { %v214_v2 = vld [vmem:[%s6928_s18] ss:$8 sm:$0xf]  ;;  %v5911_v33 = vld [vmem:[%s6928_s18 + $0x1] ss:$8 sm:$0xf]  ;;  %s9355_s15 = scalar_lea.vmem %s14572_s3, %s5782_s11 }
   0xf   : > { %v215_v3 = vld [vmem:[%s6928_s18] ss:$8 sm:$0xf0]  ;;  %v6937_v5 = vadd.s32 120, %v6930_v1  ;;  %v6943_v7 = vadd.s32 112, %v6930_v1  ;;  %v6946_v8 = vadd.s32 104, %v6930_v1 }
  0x10   : > { %v6934_v4 = vor.u32 %v215_v3, %v214_v2  ;;  %v6961_v13 = vadd.s32 96, %v6930_v1  ;;  %v6988_v15 = vadd.s32 88, %v6930_v1  ;;  %v7003_v16 = vadd.s32 80, %v6930_v1  ;;  %v5912_v34 = vld [vmem:[%s6928_s18 + $0x1] ss:$8 sm:$0xf0] }
  0x11   : > { %v7018_v17 = vadd.s32 72, %v6930_v1  ;;  %v7033_v18 = vadd.s32 64, %v6930_v1  ;;  %v7048_v19 = vadd.s32 56, %v6930_v1  ;;  %v7063_v20 = vadd.s32 48, %v6930_v1 }
  0x12   : > { %v6940_v6 = vand.u32 127, %v6934_v4  ;;  %v7078_v21 = vadd.s32 40, %v6930_v1  ;;  %v7093_v22 = vadd.s32 32, %v6930_v1  ;;  %v7108_v23 = vadd.s32 24, %v6930_v1 }
  0x13   : > { %v7123_v24 = vadd.s32 16, %v6930_v1  ;;  %v7138_v25 = vadd.s32 8, %v6930_v1  ;;  %v7374_v36 = vor.u32 %v5912_v34, %v5911_v33  ;;  %v6043_v46 = vld [vmem:[%s6928_s18 + $0x2] ss:$8 sm:$0xf]  ;;  %v8029_v60 = vshra.s32 %v6934_v4, 7 }
  0x14   : > { %v6949_v9 = vperm.slane %v6940_v6, 0  ;;  %v6952_v10 = vperm.slane %v6940_v6, 1  ;;  %v6955_v11 = vperm.slane %v6940_v6, 2  ;;  %v6958_v12 = vperm.slane %v6940_v6, 3 }
  0x15   : > { %v7177_v26 = vperm.slane %v6940_v6, 6  ;;  %v7180_v27 = vperm.slane %v6940_v6, 4  ;;  %v7189_v28 = vperm.slane %v6940_v6, 5  ;;  %v7192_v29 = vperm.slane %v6940_v6, 7 }
  0x16   : > { %vm350_vm0 = vcmp.eq.s32.totalorder %v6937_v5, %v6949_v9  ;;  %vm351_vm1 = vcmp.eq.s32.totalorder %v6937_v5, %v6952_v10  ;;  %vm352_vm2 = vcmp.eq.s32.totalorder %v6937_v5, %v6955_v11  ;;  %vm353_vm3 = vcmp.eq.s32.totalorder %v6937_v5, %v6958_v12  ;;  %v6044_v47 = vld [vmem:[%s6928_s18 + $0x2] ss:$8 sm:$0xf0] }
  0x17   : > { %5783 = vmatpush.msk.msra.mxu0 %vm350_vm0, %v6888_v14  ;;  %5799 = vmatpush.msk.msra.mxu1 %vm351_vm1, %v6888_v14  ;;  %vm342_vm4 = vcmp.eq.s32.totalorder %v6943_v7, %v6949_v9  ;;  %vm343_vm5 = vcmp.eq.s32.totalorder %v6943_v7, %v6952_v10  ;;  %vm344_vm6 = vcmp.eq.s32.totalorder %v6943_v7, %v6955_v11  ;;  %v7397_v37 = vand.u32 127, %v7374_v36 }
  0x18   : > { %5815 = vmatpush.msk.msra.mxu2 %vm352_vm2, %v6888_v14  ;;  %5831 = vmatpush.msk.msra.mxu3 %vm353_vm3, %v6888_v14  ;;  %vm345_vm7 = vcmp.eq.s32.totalorder %v6943_v7, %v6958_v12  ;;  %vm334_vm8 = vcmp.eq.s32.totalorder %v6946_v8, %v6949_v9  ;;  %vm335_vm9 = vcmp.eq.s32.totalorder %v6946_v8, %v6952_v10  ;;  %v8078_v63 = vperm.slane %v8029_v60, 0 }
  0x19   : > { %5784 = vmatpush.msk.msra.mxu0 %vm342_vm4, %v6888_v14  ;;  %5800 = vmatpush.msk.msra.mxu1 %vm343_vm5, %v6888_v14  ;;  %vm336_vm10 = vcmp.eq.s32.totalorder %v6946_v8, %v6955_v11  ;;  %vm337_vm11 = vcmp.eq.s32.totalorder %v6946_v8, %v6958_v12  ;;  %vm326_vm12 = vcmp.eq.s32.totalorder %v6961_v13, %v6949_v9  ;;  %v7424_v38 = vperm.slane %v7397_v37, 2 }
  0x1a   : > { %5816 = vmatpush.msk.msra.mxu2 %vm344_vm6, %v6888_v14  ;;  %5832 = vmatpush.msk.msra.mxu3 %vm345_vm7, %v6888_v14  ;;  %vm327_vm13 = vcmp.eq.s32.totalorder %v6961_v13, %v6952_v10  ;;  %vm328_vm14 = vcmp.eq.s32.totalorder %v6961_v13, %v6955_v11  ;;  %vm329_vm15 = vcmp.eq.s32.totalorder %v6961_v13, %v6958_v12  ;;  %v7427_v39 = vperm.slane %v7397_v37, 0 }
  0x1b   : > { %5785 = vmatpush.msk.msra.mxu0 %vm334_vm8, %v6888_v14  ;;  %5801 = vmatpush.msk.msra.mxu1 %vm335_vm9, %v6888_v14  ;;  %vm318_vm0 = vcmp.eq.s32.totalorder %v6988_v15, %v6949_v9  ;;  %vm319_vm1 = vcmp.eq.s32.totalorder %v6988_v15, %v6952_v10  ;;  %vm320_vm2 = vcmp.eq.s32.totalorder %v6988_v15, %v6955_v11  ;;  %v7436_v40 = vperm.slane %v7397_v37, 1 }
  0x1c   : > { %5817 = vmatpush.msk.msra.mxu2 %vm336_vm10, %v6888_v14  ;;  %5833 = vmatpush.msk.msra.mxu3 %vm337_vm11, %v6888_v14  ;;  %vm321_vm3 = vcmp.eq.s32.totalorder %v6988_v15, %v6958_v12  ;;  %vm310_vm4 = vcmp.eq.s32.totalorder %v7003_v16, %v6949_v9  ;;  %vm311_vm5 = vcmp.eq.s32.totalorder %v7003_v16, %v6952_v10  ;;  %v7439_v41 = vperm.slane %v7397_v37, 3 }
  0x1d   : > { %5786 = vmatpush.msk.msra.mxu0 %vm326_vm12, %v6888_v14  ;;  %5802 = vmatpush.msk.msra.mxu1 %vm327_vm13, %v6888_v14  ;;  %vm312_vm6 = vcmp.eq.s32.totalorder %v7003_v16, %v6955_v11  ;;  %vm313_vm7 = vcmp.eq.s32.totalorder %v7003_v16, %v6958_v12  ;;  %vm302_vm8 = vcmp.eq.s32.totalorder %v7018_v17, %v6949_v9  ;;  %v7644_v42 = vperm.slane %v7397_v37, 6 }
  0x1e   : > { %5818 = vmatpush.msk.msra.mxu2 %vm328_vm14, %v6888_v14  ;;  %5834 = vmatpush.msk.msra.mxu3 %vm329_vm15, %v6888_v14  ;;  %vm303_vm9 = vcmp.eq.s32.totalorder %v7018_v17, %v6952_v10  ;;  %vm304_vm10 = vcmp.eq.s32.totalorder %v7018_v17, %v6955_v11  ;;  %vm305_vm11 = vcmp.eq.s32.totalorder %v7018_v17, %v6958_v12  ;;  %v7647_v43 = vperm.slane %v7397_v37, 4 }
  0x1f   : > { %5787 = vmatpush.msk.msra.mxu0 %vm318_vm0, %v6888_v14  ;;  %5803 = vmatpush.msk.msra.mxu1 %vm319_vm1, %v6888_v14  ;;  %vm294_vm12 = vcmp.eq.s32.totalorder %v7033_v18, %v6949_v9  ;;  %vm295_vm13 = vcmp.eq.s32.totalorder %v7033_v18, %v6952_v10  ;;  %vm296_vm14 = vcmp.eq.s32.totalorder %v7033_v18, %v6955_v11  ;;  %v7656_v44 = vperm.slane %v7397_v37, 5 }
  0x20   : > { %5819 = vmatpush.msk.msra.mxu2 %vm320_vm2, %v6888_v14  ;;  %5835 = vmatpush.msk.msra.mxu3 %vm321_vm3, %v6888_v14  ;;  %vm297_vm15 = vcmp.eq.s32.totalorder %v7033_v18, %v6958_v12  ;;  %vm286_vm0 = vcmp.eq.s32.totalorder %v7048_v19, %v6949_v9  ;;  %vm287_vm1 = vcmp.eq.s32.totalorder %v7048_v19, %v6952_v10  ;;  %v7659_v45 = vperm.slane %v7397_v37, 7 }
  0x21   : > { %5788 = vmatpush.msk.msra.mxu0 %vm310_vm4, %v6888_v14  ;;  %5804 = vmatpush.msk.msra.mxu1 %vm311_vm5, %v6888_v14  ;;  %vm288_vm2 = vcmp.eq.s32.totalorder %v7048_v19, %v6955_v11  ;;  %vm289_vm3 = vcmp.eq.s32.totalorder %v7048_v19, %v6958_v12  ;;  %vm278_vm4 = vcmp.eq.s32.totalorder %v7063_v20, %v6949_v9  ;;  %v8081_v0 = vperm.slane %v8029_v60, 1 }
  0x22   : > { %5820 = vmatpush.msk.msra.mxu2 %vm312_vm6, %v6888_v14  ;;  %5836 = vmatpush.msk.msra.mxu3 %vm313_vm7, %v6888_v14  ;;  %vm279_vm5 = vcmp.eq.s32.totalorder %v7063_v20, %v6952_v10  ;;  %vm280_vm6 = vcmp.eq.s32.totalorder %v7063_v20, %v6955_v11  ;;  %vm281_vm7 = vcmp.eq.s32.totalorder %v7063_v20, %v6958_v12 }
  0x23   : > { %5789 = vmatpush.msk.msra.mxu0 %vm302_vm8, %v6888_v14  ;;  %5805 = vmatpush.msk.msra.mxu1 %vm303_vm9, %v6888_v14  ;;  %vm270_vm8 = vcmp.eq.s32.totalorder %v7078_v21, %v6949_v9  ;;  %vm271_vm9 = vcmp.eq.s32.totalorder %v7078_v21, %v6952_v10  ;;  %v7821_v48 = vor.u32 %v6044_v47, %v6043_v46 }
  0x24   : > { %5821 = vmatpush.msk.msra.mxu2 %vm304_vm10, %v6888_v14  ;;  %5837 = vmatpush.msk.msra.mxu3 %vm305_vm11, %v6888_v14  ;;  %vm272_vm10 = vcmp.eq.s32.totalorder %v7078_v21, %v6955_v11  ;;  %vm273_vm11 = vcmp.eq.s32.totalorder %v7078_v21, %v6958_v12 }
  0x25   : > { %5790 = vmatpush.msk.msra.mxu0 %vm294_vm12, %v6888_v14  ;;  %5806 = vmatpush.msk.msra.mxu1 %vm295_vm13, %v6888_v14  ;;  %vm262_vm12 = vcmp.eq.s32.totalorder %v7093_v22, %v6949_v9  ;;  %vm263_vm13 = vcmp.eq.s32.totalorder %v7093_v22, %v6952_v10  ;;  %v7844_v49 = vand.u32 127, %v7821_v48 }
  0x26   : > { %5822 = vmatpush.msk.msra.mxu2 %vm296_vm14, %v6888_v14  ;;  %5838 = vmatpush.msk.msra.mxu3 %vm297_vm15, %v6888_v14  ;;  %vm264_vm14 = vcmp.eq.s32.totalorder %v7093_v22, %v6955_v11  ;;  %vm265_vm15 = vcmp.eq.s32.totalorder %v7093_v22, %v6958_v12 }
  0x27   : > { %5791 = vmatpush.msk.msra.mxu0 %vm286_vm0, %v6888_v14  ;;  %5807 = vmatpush.msk.msra.mxu1 %vm287_vm1, %v6888_v14  ;;  %vm254_vm0 = vcmp.eq.s32.totalorder %v7108_v23, %v6949_v9  ;;  %vm255_vm1 = vcmp.eq.s32.totalorder %v7108_v23, %v6952_v10  ;;  %v7871_v50 = vperm.slane %v7844_v49, 2  ;;  %v7874_v51 = vperm.slane %v7844_v49, 0 }
  0x28   : > { %5823 = vmatpush.msk.msra.mxu2 %vm288_vm2, %v6888_v14  ;;  %5839 = vmatpush.msk.msra.mxu3 %vm289_vm3, %v6888_v14  ;;  %vm256_vm2 = vcmp.eq.s32.totalorder %v7108_v23, %v6955_v11  ;;  %vm257_vm3 = vcmp.eq.s32.totalorder %v7108_v23, %v6958_v12  ;;  %v7883_v52 = vperm.slane %v7844_v49, 1  ;;  %v7886_v53 = vperm.slane %v7844_v49, 3 }
  0x29   : > { %5792 = vmatpush.msk.msra.mxu0 %vm278_vm4, %v6888_v14  ;;  %5808 = vmatpush.msk.msra.mxu1 %vm279_vm5, %v6888_v14  ;;  %vm246_vm4 = vcmp.eq.s32.totalorder %v7123_v24, %v6949_v9  ;;  %vm247_vm5 = vcmp.eq.s32.totalorder %v7123_v24, %v6952_v10  ;;  %v8144_v4 = vperm.slane %v7844_v49, 6  ;;  %v8147_v6 = vperm.slane %v7844_v49, 4 }
  0x2a   : > { %5824 = vmatpush.msk.msra.mxu2 %vm280_vm6, %v6888_v14  ;;  %5840 = vmatpush.msk.msra.mxu3 %vm281_vm7, %v6888_v14  ;;  %vm248_vm6 = vcmp.eq.s32.totalorder %v7123_v24, %v6955_v11  ;;  %vm249_vm7 = vcmp.eq.s32.totalorder %v7123_v24, %v6958_v12 }
  0x2b   : > { %5793 = vmatpush.msk.msra.mxu0 %vm270_vm8, %v6888_v14  ;;  %5809 = vmatpush.msk.msra.mxu1 %vm271_vm9, %v6888_v14  ;;  %vm238_vm8 = vcmp.eq.s32.totalorder %v7138_v25, %v6949_v9  ;;  %vm239_vm9 = vcmp.eq.s32.totalorder %v7138_v25, %v6952_v10 }
  0x2c   : > { %5825 = vmatpush.msk.msra.mxu2 %vm272_vm10, %v6888_v14  ;;  %5841 = vmatpush.msk.msra.mxu3 %vm273_vm11, %v6888_v14  ;;  %vm240_vm10 = vcmp.eq.s32.totalorder %v7138_v25, %v6955_v11  ;;  %vm241_vm11 = vcmp.eq.s32.totalorder %v7138_v25, %v6958_v12 }
  0x2d   : > { %5794 = vmatpush.msk.msra.mxu0 %vm262_vm12, %v6888_v14  ;;  %5810 = vmatpush.msk.msra.mxu1 %vm263_vm13, %v6888_v14  ;;  %vm230_vm12 = vcmp.eq.s32.totalorder %v6930_v1, %v6949_v9  ;;  %vm231_vm13 = vcmp.eq.s32.totalorder %v6930_v1, %v6952_v10  ;;  %v8158_v9 = vperm.slane %v7844_v49, 5  ;;  %v8161_v10 = vperm.slane %v7844_v49, 7 }
  0x2e   : > { %5826 = vmatpush.msk.msra.mxu2 %vm264_vm14, %v6888_v14  ;;  %5842 = vmatpush.msk.msra.mxu3 %vm265_vm15, %v6888_v14  ;;  %vm232_vm14 = vcmp.eq.s32.totalorder %v6930_v1, %v6955_v11  ;;  %vm233_vm15 = vcmp.eq.s32.totalorder %v6930_v1, %v6958_v12  ;;  %v8176_v11 = vperm.slane %v8029_v60, 2  ;;  %v8179_v12 = vperm.slane %v8029_v60, 3 }
  0x2f   : > { %5795 = vmatpush.msk.msra.mxu0 %vm254_vm0, %v6888_v14  ;;  %5811 = vmatpush.msk.msra.mxu1 %vm255_vm1, %v6888_v14  ;;  %vm356_vm0 = vcmp.eq.s32.totalorder %v6937_v5, %v7177_v26  ;;  %vm354_vm1 = vcmp.eq.s32.totalorder %v6937_v5, %v7180_v27 }
  0x30   : > { %5827 = vmatpush.msk.msra.mxu2 %vm256_vm2, %v6888_v14  ;;  %5843 = vmatpush.msk.msra.mxu3 %vm257_vm3, %v6888_v14  ;;  %vm355_vm2 = vcmp.eq.s32.totalorder %v6937_v5, %v7189_v28  ;;  %vm357_vm3 = vcmp.eq.s32.totalorder %v6937_v5, %v7192_v29 }
  0x31   : > { %5796 = vmatpush.msk.msra.mxu0 %vm246_vm4, %v6888_v14  ;;  %5812 = vmatpush.msk.msra.mxu1 %vm247_vm5, %v6888_v14  ;;  %vm348_vm4 = vcmp.eq.s32.totalorder %v6943_v7, %v7177_v26  ;;  %vm346_vm5 = vcmp.eq.s32.totalorder %v6943_v7, %v7180_v27 }
  0x32   : > { %5828 = vmatpush.msk.msra.mxu2 %vm248_vm6, %v6888_v14  ;;  %5844 = vmatpush.msk.msra.mxu3 %vm249_vm7, %v6888_v14  ;;  %vm347_vm6 = vcmp.eq.s32.totalorder %v6943_v7, %v7189_v28  ;;  %vm349_vm7 = vcmp.eq.s32.totalorder %v6943_v7, %v7192_v29 }
  0x33   : > { %5797 = vmatpush.msk.msra.mxu0 %vm238_vm8, %v6888_v14  ;;  %5813 = vmatpush.msk.msra.mxu1 %vm239_vm9, %v6888_v14  ;;  %vm340_vm8 = vcmp.eq.s32.totalorder %v6946_v8, %v7177_v26  ;;  %vm338_vm9 = vcmp.eq.s32.totalorder %v6946_v8, %v7180_v27 }
  0x34   : > { %5829 = vmatpush.msk.msra.mxu2 %vm240_vm10, %v6888_v14  ;;  %5845 = vmatpush.msk.msra.mxu3 %vm241_vm11, %v6888_v14  ;;  %vm339_vm10 = vcmp.eq.s32.totalorder %v6946_v8, %v7189_v28  ;;  %vm341_vm11 = vcmp.eq.s32.totalorder %v6946_v8, %v7192_v29 }
  0x35   : > { %5798 = vmatpush.msk.msra.mxu0 %vm230_vm12, %v6888_v14  ;;  %5814 = vmatpush.msk.msra.mxu1 %vm231_vm13, %v6888_v14  ;;  %vm332_vm12 = vcmp.eq.s32.totalorder %v6961_v13, %v7177_v26  ;;  %vm330_vm13 = vcmp.eq.s32.totalorder %v6961_v13, %v7180_v27 }
  0x36   : > { %5830 = vmatpush.msk.msra.mxu2 %vm232_vm14, %v6888_v14  ;;  %5846 = vmatpush.msk.msra.mxu3 %vm233_vm15, %v6888_v14  ;;  %vm331_vm14 = vcmp.eq.s32.totalorder %v6961_v13, %v7189_v28  ;;  %vm333_vm15 = vcmp.eq.s32.totalorder %v6961_v13, %v7192_v29 }
  0x37   : > { %502 = vmatmul.f32.vlgmr.msra.gmra.mxu0 %v7199_v30  ;;  %531 = vmatmul.f32.vlgmr.msra.gmra.mxu1 %v7199_v30 }
  0x38   : > { %560 = vmatmul.f32.vlgmr.msra.gmra.mxu2 %v7199_v30  ;;  %589 = vmatmul.f32.vlgmr.msra.gmra.mxu3 %v7199_v30 }
  0x39   : > { %5879 = vmatpush.msk.msrb.mxu2 %vm356_vm0, %v6888_v14  ;;  %5847 = vmatpush.msk.msrb.mxu0 %vm354_vm1, %v6888_v14  ;;  %vm324_vm0 = vcmp.eq.s32.totalorder %v6988_v15, %v7177_v26  ;;  %vm322_vm1 = vcmp.eq.s32.totalorder %v6988_v15, %v7180_v27 }
  0x3a   : > { %5863 = vmatpush.msk.msrb.mxu1 %vm355_vm2, %v6888_v14  ;;  %5895 = vmatpush.msk.msrb.mxu3 %vm357_vm3, %v6888_v14  ;;  %vm323_vm2 = vcmp.eq.s32.totalorder %v6988_v15, %v7189_v28  ;;  %vm325_vm3 = vcmp.eq.s32.totalorder %v6988_v15, %v7192_v29 }
  0x3b   : > { %5880 = vmatpush.msk.msrb.mxu2 %vm348_vm4, %v6888_v14  ;;  %5848 = vmatpush.msk.msrb.mxu0 %vm346_vm5, %v6888_v14  ;;  %vm316_vm4 = vcmp.eq.s32.totalorder %v7003_v16, %v7177_v26  ;;  %vm314_vm5 = vcmp.eq.s32.totalorder %v7003_v16, %v7180_v27 }
  0x3c   : > { %5864 = vmatpush.msk.msrb.mxu1 %vm347_vm6, %v6888_v14  ;;  %5896 = vmatpush.msk.msrb.mxu3 %vm349_vm7, %v6888_v14  ;;  %vm315_vm6 = vcmp.eq.s32.totalorder %v7003_v16, %v7189_v28  ;;  %vm317_vm7 = vcmp.eq.s32.totalorder %v7003_v16, %v7192_v29 }
  0x3d   : > { %5881 = vmatpush.msk.msrb.mxu2 %vm340_vm8, %v6888_v14  ;;  %5849 = vmatpush.msk.msrb.mxu0 %vm338_vm9, %v6888_v14  ;;  %vm308_vm8 = vcmp.eq.s32.totalorder %v7018_v17, %v7177_v26  ;;  %vm306_vm9 = vcmp.eq.s32.totalorder %v7018_v17, %v7180_v27 }
  0x3e   : > { %5865 = vmatpush.msk.msrb.mxu1 %vm339_vm10, %v6888_v14  ;;  %5897 = vmatpush.msk.msrb.mxu3 %vm341_vm11, %v6888_v14  ;;  %vm307_vm10 = vcmp.eq.s32.totalorder %v7018_v17, %v7189_v28  ;;  %vm309_vm11 = vcmp.eq.s32.totalorder %v7018_v17, %v7192_v29 }
  0x3f   : > { %5882 = vmatpush.msk.msrb.mxu2 %vm332_vm12, %v6888_v14  ;;  %5850 = vmatpush.msk.msrb.mxu0 %vm330_vm13, %v6888_v14  ;;  %vm300_vm12 = vcmp.eq.s32.totalorder %v7033_v18, %v7177_v26  ;;  %vm298_vm13 = vcmp.eq.s32.totalorder %v7033_v18, %v7180_v27 }
  0x40   : > { %5866 = vmatpush.msk.msrb.mxu1 %vm331_vm14, %v6888_v14  ;;  %5898 = vmatpush.msk.msrb.mxu3 %vm333_vm15, %v6888_v14  ;;  %vm299_vm14 = vcmp.eq.s32.totalorder %v7033_v18, %v7189_v28  ;;  %vm301_vm15 = vcmp.eq.s32.totalorder %v7033_v18, %v7192_v29 }
  0x41   : > { %505 = vmatmul.f32.gmra.mxu0 %v7256_v31  ;;  %534 = vmatmul.f32.gmra.mxu1 %v7256_v31 }
  0x42   : > { %563 = vmatmul.f32.gmra.mxu2 %v7256_v31  ;;  %592 = vmatmul.f32.gmra.mxu3 %v7256_v31 }
  0x43   : > { %5883 = vmatpush.msk.msrb.mxu2 %vm324_vm0, %v6888_v14  ;;  %5851 = vmatpush.msk.msrb.mxu0 %vm322_vm1, %v6888_v14  ;;  %vm292_vm0 = vcmp.eq.s32.totalorder %v7048_v19, %v7177_v26  ;;  %vm290_vm1 = vcmp.eq.s32.totalorder %v7048_v19, %v7180_v27 }
  0x44   : > { %5867 = vmatpush.msk.msrb.mxu1 %vm323_vm2, %v6888_v14  ;;  %5899 = vmatpush.msk.msrb.mxu3 %vm325_vm3, %v6888_v14  ;;  %vm291_vm2 = vcmp.eq.s32.totalorder %v7048_v19, %v7189_v28  ;;  %vm293_vm3 = vcmp.eq.s32.totalorder %v7048_v19, %v7192_v29 }
  0x45   : > { %5884 = vmatpush.msk.msrb.mxu2 %vm316_vm4, %v6888_v14  ;;  %5852 = vmatpush.msk.msrb.mxu0 %vm314_vm5, %v6888_v14  ;;  %vm284_vm4 = vcmp.eq.s32.totalorder %v7063_v20, %v7177_v26  ;;  %vm282_vm5 = vcmp.eq.s32.totalorder %v7063_v20, %v7180_v27 }
  0x46   : > { %5868 = vmatpush.msk.msrb.mxu1 %vm315_vm6, %v6888_v14  ;;  %5900 = vmatpush.msk.msrb.mxu3 %vm317_vm7, %v6888_v14  ;;  %vm283_vm6 = vcmp.eq.s32.totalorder %v7063_v20, %v7189_v28  ;;  %vm285_vm7 = vcmp.eq.s32.totalorder %v7063_v20, %v7192_v29 }
  0x47   : > { %5885 = vmatpush.msk.msrb.mxu2 %vm308_vm8, %v6888_v14  ;;  %5853 = vmatpush.msk.msrb.mxu0 %vm306_vm9, %v6888_v14  ;;  %vm276_vm8 = vcmp.eq.s32.totalorder %v7078_v21, %v7177_v26  ;;  %vm274_vm9 = vcmp.eq.s32.totalorder %v7078_v21, %v7180_v27 }
  0x48   : > { %5869 = vmatpush.msk.msrb.mxu1 %vm307_vm10, %v6888_v14  ;;  %5901 = vmatpush.msk.msrb.mxu3 %vm309_vm11, %v6888_v14  ;;  %vm275_vm10 = vcmp.eq.s32.totalorder %v7078_v21, %v7189_v28  ;;  %vm277_vm11 = vcmp.eq.s32.totalorder %v7078_v21, %v7192_v29 }
  0x49   : > { %5886 = vmatpush.msk.msrb.mxu2 %vm300_vm12, %v6888_v14  ;;  %5854 = vmatpush.msk.msrb.mxu0 %vm298_vm13, %v6888_v14  ;;  %vm268_vm12 = vcmp.eq.s32.totalorder %v7093_v22, %v7177_v26  ;;  %vm266_vm13 = vcmp.eq.s32.totalorder %v7093_v22, %v7180_v27 }
  0x4a   : > { %5870 = vmatpush.msk.msrb.mxu1 %vm299_vm14, %v6888_v14  ;;  %5902 = vmatpush.msk.msrb.mxu3 %vm301_vm15, %v6888_v14  ;;  %vm267_vm14 = vcmp.eq.s32.totalorder %v7093_v22, %v7189_v28  ;;  %vm269_vm15 = vcmp.eq.s32.totalorder %v7093_v22, %v7192_v29 }
  0x4b   : > { %508 = vmatmul.f32.gmra.mxu0 %v7313_v32  ;;  %537 = vmatmul.f32.gmra.mxu1 %v7313_v32 }
  0x4c   : > { %566 = vmatmul.f32.gmra.mxu2 %v7313_v32  ;;  %595 = vmatmul.f32.gmra.mxu3 %v7313_v32 }
  0x4d   : > { %5887 = vmatpush.msk.msrb.mxu2 %vm292_vm0, %v6888_v14  ;;  %5855 = vmatpush.msk.msrb.mxu0 %vm290_vm1, %v6888_v14  ;;  %vm260_vm0 = vcmp.eq.s32.totalorder %v7108_v23, %v7177_v26  ;;  %vm258_vm1 = vcmp.eq.s32.totalorder %v7108_v23, %v7180_v27 }
  0x4e   : > { %5871 = vmatpush.msk.msrb.mxu1 %vm291_vm2, %v6888_v14  ;;  %5903 = vmatpush.msk.msrb.mxu3 %vm293_vm3, %v6888_v14  ;;  %vm259_vm2 = vcmp.eq.s32.totalorder %v7108_v23, %v7189_v28  ;;  %vm261_vm3 = vcmp.eq.s32.totalorder %v7108_v23, %v7192_v29 }
  0x4f   : > { %5888 = vmatpush.msk.msrb.mxu2 %vm284_vm4, %v6888_v14  ;;  %5856 = vmatpush.msk.msrb.mxu0 %vm282_vm5, %v6888_v14  ;;  %vm252_vm4 = vcmp.eq.s32.totalorder %v7123_v24, %v7177_v26  ;;  %vm250_vm5 = vcmp.eq.s32.totalorder %v7123_v24, %v7180_v27 }
  0x50   : > { %5872 = vmatpush.msk.msrb.mxu1 %vm283_vm6, %v6888_v14  ;;  %5904 = vmatpush.msk.msrb.mxu3 %vm285_vm7, %v6888_v14  ;;  %vm251_vm6 = vcmp.eq.s32.totalorder %v7123_v24, %v7189_v28  ;;  %vm253_vm7 = vcmp.eq.s32.totalorder %v7123_v24, %v7192_v29 }
  0x51   : > { %5889 = vmatpush.msk.msrb.mxu2 %vm276_vm8, %v6888_v14  ;;  %5857 = vmatpush.msk.msrb.mxu0 %vm274_vm9, %v6888_v14  ;;  %vm244_vm8 = vcmp.eq.s32.totalorder %v7138_v25, %v7177_v26  ;;  %vm242_vm9 = vcmp.eq.s32.totalorder %v7138_v25, %v7180_v27 }
  0x52   : > { %5873 = vmatpush.msk.msrb.mxu1 %vm275_vm10, %v6888_v14  ;;  %5905 = vmatpush.msk.msrb.mxu3 %vm277_vm11, %v6888_v14  ;;  %vm243_vm10 = vcmp.eq.s32.totalorder %v7138_v25, %v7189_v28  ;;  %vm245_vm11 = vcmp.eq.s32.totalorder %v7138_v25, %v7192_v29 }
  0x53   : > { %5890 = vmatpush.msk.msrb.mxu2 %vm268_vm12, %v6888_v14  ;;  %5858 = vmatpush.msk.msrb.mxu0 %vm266_vm13, %v6888_v14  ;;  %vm236_vm12 = vcmp.eq.s32.totalorder %v6930_v1, %v7177_v26  ;;  %vm234_vm13 = vcmp.eq.s32.totalorder %v6930_v1, %v7180_v27 }
  0x54   : > { %5874 = vmatpush.msk.msrb.mxu1 %vm267_vm14, %v6888_v14  ;;  %5906 = vmatpush.msk.msrb.mxu3 %vm269_vm15, %v6888_v14  ;;  %vm235_vm14 = vcmp.eq.s32.totalorder %v6930_v1, %v7189_v28  ;;  %vm237_vm15 = vcmp.eq.s32.totalorder %v6930_v1, %v7192_v29 }
  0x55   : > { %511 = vmatmul.f32.gmra.mxu0 %v7372_v35  ;;  %540 = vmatmul.f32.gmra.mxu1 %v7372_v35 }
  0x56   : > { %569 = vmatmul.f32.gmra.mxu2 %v7372_v35  ;;  %598 = vmatmul.f32.gmra.mxu3 %v7372_v35 }
  0x57   : > { %5891 = vmatpush.msk.msrb.mxu2 %vm260_vm0, %v6888_v14  ;;  %5859 = vmatpush.msk.msrb.mxu0 %vm258_vm1, %v6888_v14  ;;  %vm1039_vm0 = vcmp.eq.s32.totalorder %v6937_v5, %v7424_v38  ;;  %vm1037_vm1 = vcmp.eq.s32.totalorder %v6937_v5, %v7427_v39 }
  0x58   : > { %5875 = vmatpush.msk.msrb.mxu1 %vm259_vm2, %v6888_v14  ;;  %5907 = vmatpush.msk.msrb.mxu3 %vm261_vm3, %v6888_v14  ;;  %vm1038_vm2 = vcmp.eq.s32.totalorder %v6937_v5, %v7436_v40  ;;  %vm1040_vm3 = vcmp.eq.s32.totalorder %v6937_v5, %v7439_v41 }
  0x59   : > { %5892 = vmatpush.msk.msrb.mxu2 %vm252_vm4, %v6888_v14  ;;  %5860 = vmatpush.msk.msrb.mxu0 %vm250_vm5, %v6888_v14  ;;  %vm1031_vm4 = vcmp.eq.s32.totalorder %v6943_v7, %v7424_v38  ;;  %vm1029_vm5 = vcmp.eq.s32.totalorder %v6943_v7, %v7427_v39 }
  0x5a   : > { %5876 = vmatpush.msk.msrb.mxu1 %vm251_vm6, %v6888_v14  ;;  %5908 = vmatpush.msk.msrb.mxu3 %vm253_vm7, %v6888_v14  ;;  %vm1030_vm6 = vcmp.eq.s32.totalorder %v6943_v7, %v7436_v40  ;;  %vm1032_vm7 = vcmp.eq.s32.totalorder %v6943_v7, %v7439_v41 }
  0x5b   : > { %5893 = vmatpush.msk.msrb.mxu2 %vm244_vm8, %v6888_v14  ;;  %5861 = vmatpush.msk.msrb.mxu0 %vm242_vm9, %v6888_v14  ;;  %vm1023_vm8 = vcmp.eq.s32.totalorder %v6946_v8, %v7424_v38  ;;  %vm1021_vm9 = vcmp.eq.s32.totalorder %v6946_v8, %v7427_v39 }
  0x5c   : > { %5877 = vmatpush.msk.msrb.mxu1 %vm243_vm10, %v6888_v14  ;;  %5909 = vmatpush.msk.msrb.mxu3 %vm245_vm11, %v6888_v14  ;;  %vm1022_vm10 = vcmp.eq.s32.totalorder %v6946_v8, %v7436_v40  ;;  %vm1024_vm11 = vcmp.eq.s32.totalorder %v6946_v8, %v7439_v41 }
  0x5d   : > { %5894 = vmatpush.msk.msrb.mxu2 %vm236_vm12, %v6888_v14  ;;  %5862 = vmatpush.msk.msrb.mxu0 %vm234_vm13, %v6888_v14  ;;  %vm1015_vm12 = vcmp.eq.s32.totalorder %v6961_v13, %v7424_v38  ;;  %vm1013_vm13 = vcmp.eq.s32.totalorder %v6961_v13, %v7427_v39 }
  0x5e   : > { %5878 = vmatpush.msk.msrb.mxu1 %vm235_vm14, %v6888_v14  ;;  %5910 = vmatpush.msk.msrb.mxu3 %vm237_vm15, %v6888_v14  ;;  %vm1014_vm14 = vcmp.eq.s32.totalorder %v6961_v13, %v7436_v40  ;;  %vm1016_vm15 = vcmp.eq.s32.totalorder %v6961_v13, %v7439_v41 }
  0x5f   : > { %618 = vmatmul.f32.vlgmr.msrb.gmra.mxu0 %v7199_v30  ;;  %647 = vmatmul.f32.vlgmr.msrb.gmra.mxu1 %v7199_v30 }
  0x60   : > { %676 = vmatmul.f32.vlgmr.msrb.gmra.mxu2 %v7199_v30  ;;  %705 = vmatmul.f32.vlgmr.msrb.gmra.mxu3 %v7199_v30 }
  0x61   : > { %5947 = vmatpush.msk.msra.mxu2 %vm1039_vm0, %v6888_v14  ;;  %5915 = vmatpush.msk.msra.mxu0 %vm1037_vm1, %v6888_v14  ;;  %vm1007_vm0 = vcmp.eq.s32.totalorder %v6988_v15, %v7424_v38  ;;  %vm1005_vm1 = vcmp.eq.s32.totalorder %v6988_v15, %v7427_v39 }
  0x62   : > { %5931 = vmatpush.msk.msra.mxu1 %vm1038_vm2, %v6888_v14  ;;  %5963 = vmatpush.msk.msra.mxu3 %vm1040_vm3, %v6888_v14  ;;  %vm1006_vm2 = vcmp.eq.s32.totalorder %v6988_v15, %v7436_v40  ;;  %vm1008_vm3 = vcmp.eq.s32.totalorder %v6988_v15, %v7439_v41 }
  0x63   : > { %5948 = vmatpush.msk.msra.mxu2 %vm1031_vm4, %v6888_v14  ;;  %5916 = vmatpush.msk.msra.mxu0 %vm1029_vm5, %v6888_v14  ;;  %vm999_vm4 = vcmp.eq.s32.totalorder %v7003_v16, %v7424_v38  ;;  %vm997_vm5 = vcmp.eq.s32.totalorder %v7003_v16, %v7427_v39 }
  0x64   : > { %5932 = vmatpush.msk.msra.mxu1 %vm1030_vm6, %v6888_v14  ;;  %5964 = vmatpush.msk.msra.mxu3 %vm1032_vm7, %v6888_v14  ;;  %vm998_vm6 = vcmp.eq.s32.totalorder %v7003_v16, %v7436_v40  ;;  %vm1000_vm7 = vcmp.eq.s32.totalorder %v7003_v16, %v7439_v41 }
  0x65   : > { %5949 = vmatpush.msk.msra.mxu2 %vm1023_vm8, %v6888_v14  ;;  %5917 = vmatpush.msk.msra.mxu0 %vm1021_vm9, %v6888_v14  ;;  %vm991_vm8 = vcmp.eq.s32.totalorder %v7018_v17, %v7424_v38  ;;  %vm989_vm9 = vcmp.eq.s32.totalorder %v7018_v17, %v7427_v39 }
  0x66   : > { %5933 = vmatpush.msk.msra.mxu1 %vm1022_vm10, %v6888_v14  ;;  %5965 = vmatpush.msk.msra.mxu3 %vm1024_vm11, %v6888_v14  ;;  %vm990_vm10 = vcmp.eq.s32.totalorder %v7018_v17, %v7436_v40  ;;  %vm992_vm11 = vcmp.eq.s32.totalorder %v7018_v17, %v7439_v41 }
  0x67   : > { %5950 = vmatpush.msk.msra.mxu2 %vm1015_vm12, %v6888_v14  ;;  %5918 = vmatpush.msk.msra.mxu0 %vm1013_vm13, %v6888_v14  ;;  %vm983_vm12 = vcmp.eq.s32.totalorder %v7033_v18, %v7424_v38  ;;  %vm981_vm13 = vcmp.eq.s32.totalorder %v7033_v18, %v7427_v39 }
  0x68   : > { %5934 = vmatpush.msk.msra.mxu1 %vm1014_vm14, %v6888_v14  ;;  %5966 = vmatpush.msk.msra.mxu3 %vm1016_vm15, %v6888_v14  ;;  %vm982_vm14 = vcmp.eq.s32.totalorder %v7033_v18, %v7436_v40  ;;  %vm984_vm15 = vcmp.eq.s32.totalorder %v7033_v18, %v7439_v41 }
  0x69   : > { %621 = vmatmul.f32.gmra.mxu0 %v7256_v31  ;;  %650 = vmatmul.f32.gmra.mxu1 %v7256_v31 }
  0x6a   : > { %679 = vmatmul.f32.gmra.mxu2 %v7256_v31  ;;  %708 = vmatmul.f32.gmra.mxu3 %v7256_v31 }
  0x6b   : > { %5951 = vmatpush.msk.msra.mxu2 %vm1007_vm0, %v6888_v14  ;;  %5919 = vmatpush.msk.msra.mxu0 %vm1005_vm1, %v6888_v14  ;;  %vm975_vm0 = vcmp.eq.s32.totalorder %v7048_v19, %v7424_v38  ;;  %vm973_vm1 = vcmp.eq.s32.totalorder %v7048_v19, %v7427_v39 }
  0x6c   : > { %5935 = vmatpush.msk.msra.mxu1 %vm1006_vm2, %v6888_v14  ;;  %5967 = vmatpush.msk.msra.mxu3 %vm1008_vm3, %v6888_v14  ;;  %vm974_vm2 = vcmp.eq.s32.totalorder %v7048_v19, %v7436_v40  ;;  %vm976_vm3 = vcmp.eq.s32.totalorder %v7048_v19, %v7439_v41 }
  0x6d   : > { %5952 = vmatpush.msk.msra.mxu2 %vm999_vm4, %v6888_v14  ;;  %5920 = vmatpush.msk.msra.mxu0 %vm997_vm5, %v6888_v14  ;;  %vm967_vm4 = vcmp.eq.s32.totalorder %v7063_v20, %v7424_v38  ;;  %vm965_vm5 = vcmp.eq.s32.totalorder %v7063_v20, %v7427_v39 }
  0x6e   : > { %5936 = vmatpush.msk.msra.mxu1 %vm998_vm6, %v6888_v14  ;;  %5968 = vmatpush.msk.msra.mxu3 %vm1000_vm7, %v6888_v14  ;;  %vm966_vm6 = vcmp.eq.s32.totalorder %v7063_v20, %v7436_v40  ;;  %vm968_vm7 = vcmp.eq.s32.totalorder %v7063_v20, %v7439_v41 }
  0x6f   : > { %5953 = vmatpush.msk.msra.mxu2 %vm991_vm8, %v6888_v14  ;;  %5921 = vmatpush.msk.msra.mxu0 %vm989_vm9, %v6888_v14  ;;  %vm959_vm8 = vcmp.eq.s32.totalorder %v7078_v21, %v7424_v38  ;;  %vm957_vm9 = vcmp.eq.s32.totalorder %v7078_v21, %v7427_v39 }
  0x70   : > { %5937 = vmatpush.msk.msra.mxu1 %vm990_vm10, %v6888_v14  ;;  %5969 = vmatpush.msk.msra.mxu3 %vm992_vm11, %v6888_v14  ;;  %vm958_vm10 = vcmp.eq.s32.totalorder %v7078_v21, %v7436_v40  ;;  %vm960_vm11 = vcmp.eq.s32.totalorder %v7078_v21, %v7439_v41 }
  0x71   : > { %5954 = vmatpush.msk.msra.mxu2 %vm983_vm12, %v6888_v14  ;;  %5922 = vmatpush.msk.msra.mxu0 %vm981_vm13, %v6888_v14  ;;  %vm951_vm12 = vcmp.eq.s32.totalorder %v7093_v22, %v7424_v38  ;;  %vm949_vm13 = vcmp.eq.s32.totalorder %v7093_v22, %v7427_v39 }
  0x72   : > { %5938 = vmatpush.msk.msra.mxu1 %vm982_vm14, %v6888_v14  ;;  %5970 = vmatpush.msk.msra.mxu3 %vm984_vm15, %v6888_v14  ;;  %vm950_vm14 = vcmp.eq.s32.totalorder %v7093_v22, %v7436_v40  ;;  %vm952_vm15 = vcmp.eq.s32.totalorder %v7093_v22, %v7439_v41 }
  0x73   : > { %624 = vmatmul.f32.gmra.mxu0 %v7313_v32  ;;  %653 = vmatmul.f32.gmra.mxu1 %v7313_v32 }
  0x74   : > { %682 = vmatmul.f32.gmra.mxu2 %v7313_v32  ;;  %711 = vmatmul.f32.gmra.mxu3 %v7313_v32 }
  0x75   : > { %5955 = vmatpush.msk.msra.mxu2 %vm975_vm0, %v6888_v14  ;;  %5923 = vmatpush.msk.msra.mxu0 %vm973_vm1, %v6888_v14  ;;  %vm943_vm0 = vcmp.eq.s32.totalorder %v7108_v23, %v7424_v38  ;;  %vm941_vm1 = vcmp.eq.s32.totalorder %v7108_v23, %v7427_v39 }
  0x76   : > { %5939 = vmatpush.msk.msra.mxu1 %vm974_vm2, %v6888_v14  ;;  %5971 = vmatpush.msk.msra.mxu3 %vm976_vm3, %v6888_v14  ;;  %vm942_vm2 = vcmp.eq.s32.totalorder %v7108_v23, %v7436_v40  ;;  %vm944_vm3 = vcmp.eq.s32.totalorder %v7108_v23, %v7439_v41 }
  0x77   : > { %5956 = vmatpush.msk.msra.mxu2 %vm967_vm4, %v6888_v14  ;;  %5924 = vmatpush.msk.msra.mxu0 %vm965_vm5, %v6888_v14  ;;  %vm935_vm4 = vcmp.eq.s32.totalorder %v7123_v24, %v7424_v38  ;;  %vm933_vm5 = vcmp.eq.s32.totalorder %v7123_v24, %v7427_v39 }
  0x78   : > { %5940 = vmatpush.msk.msra.mxu1 %vm966_vm6, %v6888_v14  ;;  %5972 = vmatpush.msk.msra.mxu3 %vm968_vm7, %v6888_v14  ;;  %vm934_vm6 = vcmp.eq.s32.totalorder %v7123_v24, %v7436_v40  ;;  %vm936_vm7 = vcmp.eq.s32.totalorder %v7123_v24, %v7439_v41 }
  0x79   : > { %5957 = vmatpush.msk.msra.mxu2 %vm959_vm8, %v6888_v14  ;;  %5925 = vmatpush.msk.msra.mxu0 %vm957_vm9, %v6888_v14  ;;  %vm927_vm8 = vcmp.eq.s32.totalorder %v7138_v25, %v7424_v38  ;;  %vm925_vm9 = vcmp.eq.s32.totalorder %v7138_v25, %v7427_v39 }
  0x7a   : > { %5941 = vmatpush.msk.msra.mxu1 %vm958_vm10, %v6888_v14  ;;  %5973 = vmatpush.msk.msra.mxu3 %vm960_vm11, %v6888_v14  ;;  %vm926_vm10 = vcmp.eq.s32.totalorder %v7138_v25, %v7436_v40  ;;  %vm928_vm11 = vcmp.eq.s32.totalorder %v7138_v25, %v7439_v41 }
  0x7b   : > { %5958 = vmatpush.msk.msra.mxu2 %vm951_vm12, %v6888_v14  ;;  %5926 = vmatpush.msk.msra.mxu0 %vm949_vm13, %v6888_v14  ;;  %vm919_vm12 = vcmp.eq.s32.totalorder %v6930_v1, %v7424_v38  ;;  %vm917_vm13 = vcmp.eq.s32.totalorder %v6930_v1, %v7427_v39 }
  0x7c   : > { %5942 = vmatpush.msk.msra.mxu1 %vm950_vm14, %v6888_v14  ;;  %5974 = vmatpush.msk.msra.mxu3 %vm952_vm15, %v6888_v14  ;;  %vm918_vm14 = vcmp.eq.s32.totalorder %v6930_v1, %v7436_v40  ;;  %vm920_vm15 = vcmp.eq.s32.totalorder %v6930_v1, %v7439_v41 }
  0x7d   : > { %627 = vmatmul.f32.gmra.mxu0 %v7372_v35  ;;  %656 = vmatmul.f32.gmra.mxu1 %v7372_v35 }
  0x7e   : > { %685 = vmatmul.f32.gmra.mxu2 %v7372_v35  ;;  %714 = vmatmul.f32.gmra.mxu3 %v7372_v35 }
  0x7f   : > { %5959 = vmatpush.msk.msra.mxu2 %vm943_vm0, %v6888_v14  ;;  %5927 = vmatpush.msk.msra.mxu0 %vm941_vm1, %v6888_v14  ;;  %vm1043_vm0 = vcmp.eq.s32.totalorder %v6937_v5, %v7644_v42  ;;  %vm1041_vm1 = vcmp.eq.s32.totalorder %v6937_v5, %v7647_v43 }
  0x80   : > { %5943 = vmatpush.msk.msra.mxu1 %vm942_vm2, %v6888_v14  ;;  %5975 = vmatpush.msk.msra.mxu3 %vm944_vm3, %v6888_v14  ;;  %vm1042_vm2 = vcmp.eq.s32.totalorder %v6937_v5, %v7656_v44  ;;  %vm1044_vm3 = vcmp.eq.s32.totalorder %v6937_v5, %v7659_v45 }
  0x81   : > { %5960 = vmatpush.msk.msra.mxu2 %vm935_vm4, %v6888_v14  ;;  %5928 = vmatpush.msk.msra.mxu0 %vm933_vm5, %v6888_v14  ;;  %vm1035_vm4 = vcmp.eq.s32.totalorder %v6943_v7, %v7644_v42  ;;  %vm1033_vm5 = vcmp.eq.s32.totalorder %v6943_v7, %v7647_v43 }
  0x82   : > { %5944 = vmatpush.msk.msra.mxu1 %vm934_vm6, %v6888_v14  ;;  %5976 = vmatpush.msk.msra.mxu3 %vm936_vm7, %v6888_v14  ;;  %vm1034_vm6 = vcmp.eq.s32.totalorder %v6943_v7, %v7656_v44  ;;  %vm1036_vm7 = vcmp.eq.s32.totalorder %v6943_v7, %v7659_v45 }
  0x83   : > { %5961 = vmatpush.msk.msra.mxu2 %vm927_vm8, %v6888_v14  ;;  %5929 = vmatpush.msk.msra.mxu0 %vm925_vm9, %v6888_v14  ;;  %vm1027_vm8 = vcmp.eq.s32.totalorder %v6946_v8, %v7644_v42  ;;  %vm1025_vm9 = vcmp.eq.s32.totalorder %v6946_v8, %v7647_v43 }
  0x84   : > { %5945 = vmatpush.msk.msra.mxu1 %vm926_vm10, %v6888_v14  ;;  %5977 = vmatpush.msk.msra.mxu3 %vm928_vm11, %v6888_v14  ;;  %vm1026_vm10 = vcmp.eq.s32.totalorder %v6946_v8, %v7656_v44  ;;  %vm1028_vm11 = vcmp.eq.s32.totalorder %v6946_v8, %v7659_v45 }
  0x85   : > { %5962 = vmatpush.msk.msra.mxu2 %vm919_vm12, %v6888_v14  ;;  %5930 = vmatpush.msk.msra.mxu0 %vm917_vm13, %v6888_v14  ;;  %vm1019_vm12 = vcmp.eq.s32.totalorder %v6961_v13, %v7644_v42  ;;  %vm1017_vm13 = vcmp.eq.s32.totalorder %v6961_v13, %v7647_v43 }
  0x86   : > { %5946 = vmatpush.msk.msra.mxu1 %vm918_vm14, %v6888_v14  ;;  %5978 = vmatpush.msk.msra.mxu3 %vm920_vm15, %v6888_v14  ;;  %vm1018_vm14 = vcmp.eq.s32.totalorder %v6961_v13, %v7656_v44  ;;  %vm1020_vm15 = vcmp.eq.s32.totalorder %v6961_v13, %v7659_v45 }
  0x87   : > { %1189 = vmatmul.f32.vlgmr.msra.gmra.mxu0 %v7199_v30  ;;  %1218 = vmatmul.f32.vlgmr.msra.gmra.mxu1 %v7199_v30 }
  0x88   : > { %1247 = vmatmul.f32.vlgmr.msra.gmra.mxu2 %v7199_v30  ;;  %1276 = vmatmul.f32.vlgmr.msra.gmra.mxu3 %v7199_v30 }
  0x89   : > { %6011 = vmatpush.msk.msrb.mxu2 %vm1043_vm0, %v6888_v14  ;;  %5979 = vmatpush.msk.msrb.mxu0 %vm1041_vm1, %v6888_v14  ;;  %vm1011_vm0 = vcmp.eq.s32.totalorder %v6988_v15, %v7644_v42  ;;  %vm1009_vm1 = vcmp.eq.s32.totalorder %v6988_v15, %v7647_v43 }
  0x8a   : > { %5995 = vmatpush.msk.msrb.mxu1 %vm1042_vm2, %v6888_v14  ;;  %6027 = vmatpush.msk.msrb.mxu3 %vm1044_vm3, %v6888_v14  ;;  %vm1010_vm2 = vcmp.eq.s32.totalorder %v6988_v15, %v7656_v44  ;;  %vm1012_vm3 = vcmp.eq.s32.totalorder %v6988_v15, %v7659_v45 }
  0x8b   : > { %6012 = vmatpush.msk.msrb.mxu2 %vm1035_vm4, %v6888_v14  ;;  %5980 = vmatpush.msk.msrb.mxu0 %vm1033_vm5, %v6888_v14  ;;  %vm1003_vm4 = vcmp.eq.s32.totalorder %v7003_v16, %v7644_v42  ;;  %vm1001_vm5 = vcmp.eq.s32.totalorder %v7003_v16, %v7647_v43 }
  0x8c   : > { %5996 = vmatpush.msk.msrb.mxu1 %vm1034_vm6, %v6888_v14  ;;  %6028 = vmatpush.msk.msrb.mxu3 %vm1036_vm7, %v6888_v14  ;;  %vm1002_vm6 = vcmp.eq.s32.totalorder %v7003_v16, %v7656_v44  ;;  %vm1004_vm7 = vcmp.eq.s32.totalorder %v7003_v16, %v7659_v45 }
  0x8d   : > { %6013 = vmatpush.msk.msrb.mxu2 %vm1027_vm8, %v6888_v14  ;;  %5981 = vmatpush.msk.msrb.mxu0 %vm1025_vm9, %v6888_v14  ;;  %vm995_vm8 = vcmp.eq.s32.totalorder %v7018_v17, %v7644_v42  ;;  %vm993_vm9 = vcmp.eq.s32.totalorder %v7018_v17, %v7647_v43 }
  0x8e   : > { %5997 = vmatpush.msk.msrb.mxu1 %vm1026_vm10, %v6888_v14  ;;  %6029 = vmatpush.msk.msrb.mxu3 %vm1028_vm11, %v6888_v14  ;;  %vm994_vm10 = vcmp.eq.s32.totalorder %v7018_v17, %v7656_v44  ;;  %vm996_vm11 = vcmp.eq.s32.totalorder %v7018_v17, %v7659_v45 }
  0x8f   : > { %6014 = vmatpush.msk.msrb.mxu2 %vm1019_vm12, %v6888_v14  ;;  %5982 = vmatpush.msk.msrb.mxu0 %vm1017_vm13, %v6888_v14  ;;  %vm987_vm12 = vcmp.eq.s32.totalorder %v7033_v18, %v7644_v42  ;;  %vm985_vm13 = vcmp.eq.s32.totalorder %v7033_v18, %v7647_v43 }
  0x90   : > { %5998 = vmatpush.msk.msrb.mxu1 %vm1018_vm14, %v6888_v14  ;;  %6030 = vmatpush.msk.msrb.mxu3 %vm1020_vm15, %v6888_v14  ;;  %vm986_vm14 = vcmp.eq.s32.totalorder %v7033_v18, %v7656_v44  ;;  %vm988_vm15 = vcmp.eq.s32.totalorder %v7033_v18, %v7659_v45 }
  0x91   : > { %1192 = vmatmul.f32.gmra.mxu0 %v7256_v31  ;;  %1221 = vmatmul.f32.gmra.mxu1 %v7256_v31 }
  0x92   : > { %1250 = vmatmul.f32.gmra.mxu2 %v7256_v31  ;;  %1279 = vmatmul.f32.gmra.mxu3 %v7256_v31 }
  0x93   : > { %6015 = vmatpush.msk.msrb.mxu2 %vm1011_vm0, %v6888_v14  ;;  %5983 = vmatpush.msk.msrb.mxu0 %vm1009_vm1, %v6888_v14  ;;  %vm979_vm0 = vcmp.eq.s32.totalorder %v7048_v19, %v7644_v42  ;;  %vm977_vm1 = vcmp.eq.s32.totalorder %v7048_v19, %v7647_v43 }
  0x94   : > { %5999 = vmatpush.msk.msrb.mxu1 %vm1010_vm2, %v6888_v14  ;;  %6031 = vmatpush.msk.msrb.mxu3 %vm1012_vm3, %v6888_v14  ;;  %vm978_vm2 = vcmp.eq.s32.totalorder %v7048_v19, %v7656_v44  ;;  %vm980_vm3 = vcmp.eq.s32.totalorder %v7048_v19, %v7659_v45 }
  0x95   : > { %6016 = vmatpush.msk.msrb.mxu2 %vm1003_vm4, %v6888_v14  ;;  %5984 = vmatpush.msk.msrb.mxu0 %vm1001_vm5, %v6888_v14  ;;  %vm971_vm4 = vcmp.eq.s32.totalorder %v7063_v20, %v7644_v42  ;;  %vm969_vm5 = vcmp.eq.s32.totalorder %v7063_v20, %v7647_v43 }
  0x96   : > { %6000 = vmatpush.msk.msrb.mxu1 %vm1002_vm6, %v6888_v14  ;;  %6032 = vmatpush.msk.msrb.mxu3 %vm1004_vm7, %v6888_v14  ;;  %vm970_vm6 = vcmp.eq.s32.totalorder %v7063_v20, %v7656_v44  ;;  %vm972_vm7 = vcmp.eq.s32.totalorder %v7063_v20, %v7659_v45 }
  0x97   : > { %6017 = vmatpush.msk.msrb.mxu2 %vm995_vm8, %v6888_v14  ;;  %5985 = vmatpush.msk.msrb.mxu0 %vm993_vm9, %v6888_v14  ;;  %vm963_vm8 = vcmp.eq.s32.totalorder %v7078_v21, %v7644_v42  ;;  %vm961_vm9 = vcmp.eq.s32.totalorder %v7078_v21, %v7647_v43 }
  0x98   : > { %6001 = vmatpush.msk.msrb.mxu1 %vm994_vm10, %v6888_v14  ;;  %6033 = vmatpush.msk.msrb.mxu3 %vm996_vm11, %v6888_v14  ;;  %vm962_vm10 = vcmp.eq.s32.totalorder %v7078_v21, %v7656_v44  ;;  %vm964_vm11 = vcmp.eq.s32.totalorder %v7078_v21, %v7659_v45 }
  0x99   : > { %6018 = vmatpush.msk.msrb.mxu2 %vm987_vm12, %v6888_v14  ;;  %5986 = vmatpush.msk.msrb.mxu0 %vm985_vm13, %v6888_v14  ;;  %vm955_vm12 = vcmp.eq.s32.totalorder %v7093_v22, %v7644_v42  ;;  %vm953_vm13 = vcmp.eq.s32.totalorder %v7093_v22, %v7647_v43 }
  0x9a   : > { %6002 = vmatpush.msk.msrb.mxu1 %vm986_vm14, %v6888_v14  ;;  %6034 = vmatpush.msk.msrb.mxu3 %vm988_vm15, %v6888_v14  ;;  %vm954_vm14 = vcmp.eq.s32.totalorder %v7093_v22, %v7656_v44  ;;  %vm956_vm15 = vcmp.eq.s32.totalorder %v7093_v22, %v7659_v45 }
  0x9b   : > { %1195 = vmatmul.f32.gmra.mxu0 %v7313_v32  ;;  %1224 = vmatmul.f32.gmra.mxu1 %v7313_v32 }
  0x9c   : > { %1253 = vmatmul.f32.gmra.mxu2 %v7313_v32  ;;  %1282 = vmatmul.f32.gmra.mxu3 %v7313_v32 }
  0x9d   : > { %6019 = vmatpush.msk.msrb.mxu2 %vm979_vm0, %v6888_v14  ;;  %5987 = vmatpush.msk.msrb.mxu0 %vm977_vm1, %v6888_v14  ;;  %vm947_vm0 = vcmp.eq.s32.totalorder %v7108_v23, %v7644_v42  ;;  %vm945_vm1 = vcmp.eq.s32.totalorder %v7108_v23, %v7647_v43 }
  0x9e   : > { %6003 = vmatpush.msk.msrb.mxu1 %vm978_vm2, %v6888_v14  ;;  %6035 = vmatpush.msk.msrb.mxu3 %vm980_vm3, %v6888_v14  ;;  %vm946_vm2 = vcmp.eq.s32.totalorder %v7108_v23, %v7656_v44  ;;  %vm948_vm3 = vcmp.eq.s32.totalorder %v7108_v23, %v7659_v45 }
  0x9f   : > { %6020 = vmatpush.msk.msrb.mxu2 %vm971_vm4, %v6888_v14  ;;  %5988 = vmatpush.msk.msrb.mxu0 %vm969_vm5, %v6888_v14  ;;  %vm939_vm4 = vcmp.eq.s32.totalorder %v7123_v24, %v7644_v42  ;;  %vm937_vm5 = vcmp.eq.s32.totalorder %v7123_v24, %v7647_v43 }
  0xa0   : > { %6004 = vmatpush.msk.msrb.mxu1 %vm970_vm6, %v6888_v14  ;;  %6036 = vmatpush.msk.msrb.mxu3 %vm972_vm7, %v6888_v14  ;;  %vm938_vm6 = vcmp.eq.s32.totalorder %v7123_v24, %v7656_v44  ;;  %vm940_vm7 = vcmp.eq.s32.totalorder %v7123_v24, %v7659_v45 }
  0xa1   : > { %6021 = vmatpush.msk.msrb.mxu2 %vm963_vm8, %v6888_v14  ;;  %5989 = vmatpush.msk.msrb.mxu0 %vm961_vm9, %v6888_v14  ;;  %vm931_vm8 = vcmp.eq.s32.totalorder %v7138_v25, %v7644_v42  ;;  %vm929_vm9 = vcmp.eq.s32.totalorder %v7138_v25, %v7647_v43 }
  0xa2   : > { %6005 = vmatpush.msk.msrb.mxu1 %vm962_vm10, %v6888_v14  ;;  %6037 = vmatpush.msk.msrb.mxu3 %vm964_vm11, %v6888_v14  ;;  %vm930_vm10 = vcmp.eq.s32.totalorder %v7138_v25, %v7656_v44  ;;  %vm932_vm11 = vcmp.eq.s32.totalorder %v7138_v25, %v7659_v45 }
  0xa3   : > { %6022 = vmatpush.msk.msrb.mxu2 %vm955_vm12, %v6888_v14  ;;  %5990 = vmatpush.msk.msrb.mxu0 %vm953_vm13, %v6888_v14  ;;  %vm923_vm12 = vcmp.eq.s32.totalorder %v6930_v1, %v7644_v42  ;;  %vm921_vm13 = vcmp.eq.s32.totalorder %v6930_v1, %v7647_v43 }
  0xa4   : > { %6006 = vmatpush.msk.msrb.mxu1 %vm954_vm14, %v6888_v14  ;;  %6038 = vmatpush.msk.msrb.mxu3 %vm956_vm15, %v6888_v14  ;;  %vm922_vm14 = vcmp.eq.s32.totalorder %v6930_v1, %v7656_v44  ;;  %vm924_vm15 = vcmp.eq.s32.totalorder %v6930_v1, %v7659_v45 }
  0xa5   : > { %1198 = vmatmul.f32.gmra.mxu0 %v7372_v35  ;;  %1227 = vmatmul.f32.gmra.mxu1 %v7372_v35 }
  0xa6   : > { %1256 = vmatmul.f32.gmra.mxu2 %v7372_v35  ;;  %1285 = vmatmul.f32.gmra.mxu3 %v7372_v35 }
  0xa7   : > { %6023 = vmatpush.msk.msrb.mxu2 %vm947_vm0, %v6888_v14  ;;  %5991 = vmatpush.msk.msrb.mxu0 %vm945_vm1, %v6888_v14  ;;  %vm1726_vm0 = vcmp.eq.s32.totalorder %v6937_v5, %v7871_v50  ;;  %vm1724_vm1 = vcmp.eq.s32.totalorder %v6937_v5, %v7874_v51 }
  0xa8   : > { %6007 = vmatpush.msk.msrb.mxu1 %vm946_vm2, %v6888_v14  ;;  %6039 = vmatpush.msk.msrb.mxu3 %vm948_vm3, %v6888_v14  ;;  %vm1725_vm2 = vcmp.eq.s32.totalorder %v6937_v5, %v7883_v52  ;;  %vm1727_vm3 = vcmp.eq.s32.totalorder %v6937_v5, %v7886_v53 }
  0xa9   : > { %6024 = vmatpush.msk.msrb.mxu2 %vm939_vm4, %v6888_v14  ;;  %5992 = vmatpush.msk.msrb.mxu0 %vm937_vm5, %v6888_v14  ;;  %vm1718_vm4 = vcmp.eq.s32.totalorder %v6943_v7, %v7871_v50  ;;  %vm1716_vm5 = vcmp.eq.s32.totalorder %v6943_v7, %v7874_v51 }
  0xaa   : > { %6008 = vmatpush.msk.msrb.mxu1 %vm938_vm6, %v6888_v14  ;;  %6040 = vmatpush.msk.msrb.mxu3 %vm940_vm7, %v6888_v14  ;;  %vm1717_vm6 = vcmp.eq.s32.totalorder %v6943_v7, %v7883_v52  ;;  %vm1719_vm7 = vcmp.eq.s32.totalorder %v6943_v7, %v7886_v53 }
  0xab   : > { %6025 = vmatpush.msk.msrb.mxu2 %vm931_vm8, %v6888_v14  ;;  %5993 = vmatpush.msk.msrb.mxu0 %vm929_vm9, %v6888_v14  ;;  %vm1710_vm8 = vcmp.eq.s32.totalorder %v6946_v8, %v7871_v50  ;;  %vm1708_vm9 = vcmp.eq.s32.totalorder %v6946_v8, %v7874_v51 }
  0xac   : > { %6009 = vmatpush.msk.msrb.mxu1 %vm930_vm10, %v6888_v14  ;;  %6041 = vmatpush.msk.msrb.mxu3 %vm932_vm11, %v6888_v14  ;;  %vm1709_vm10 = vcmp.eq.s32.totalorder %v6946_v8, %v7883_v52  ;;  %vm1711_vm11 = vcmp.eq.s32.totalorder %v6946_v8, %v7886_v53 }
  0xad   : > { %6026 = vmatpush.msk.msrb.mxu2 %vm923_vm12, %v6888_v14  ;;  %5994 = vmatpush.msk.msrb.mxu0 %vm921_vm13, %v6888_v14  ;;  %vm1702_vm12 = vcmp.eq.s32.totalorder %v6961_v13, %v7871_v50  ;;  %vm1700_vm13 = vcmp.eq.s32.totalorder %v6961_v13, %v7874_v51 }
  0xae   : > { %6010 = vmatpush.msk.msrb.mxu1 %vm922_vm14, %v6888_v14  ;;  %6042 = vmatpush.msk.msrb.mxu3 %vm924_vm15, %v6888_v14  ;;  %vm1701_vm14 = vcmp.eq.s32.totalorder %v6961_v13, %v7883_v52  ;;  %vm1703_vm15 = vcmp.eq.s32.totalorder %v6961_v13, %v7886_v53 }
  0xaf   : > { %1305 = vmatmul.f32.vlgmr.msrb.gmra.mxu0 %v7199_v30  ;;  %1334 = vmatmul.f32.vlgmr.msrb.gmra.mxu1 %v7199_v30 }
  0xb0   : > { %1363 = vmatmul.f32.vlgmr.msrb.gmra.mxu2 %v7199_v30  ;;  %1392 = vmatmul.f32.vlgmr.msrb.gmra.mxu3 %v7199_v30 }
  0xb1   : > { %6079 = vmatpush.msk.msra.mxu2 %vm1726_vm0, %v6888_v14  ;;  %6047 = vmatpush.msk.msra.mxu0 %vm1724_vm1, %v6888_v14  ;;  %vm1694_vm0 = vcmp.eq.s32.totalorder %v6988_v15, %v7871_v50  ;;  %vm1692_vm1 = vcmp.eq.s32.totalorder %v6988_v15, %v7874_v51 }
  0xb2   : > { %6063 = vmatpush.msk.msra.mxu1 %vm1725_vm2, %v6888_v14  ;;  %6095 = vmatpush.msk.msra.mxu3 %vm1727_vm3, %v6888_v14  ;;  %vm1693_vm2 = vcmp.eq.s32.totalorder %v6988_v15, %v7883_v52  ;;  %vm1695_vm3 = vcmp.eq.s32.totalorder %v6988_v15, %v7886_v53 }
  0xb3   : > { %6080 = vmatpush.msk.msra.mxu2 %vm1718_vm4, %v6888_v14  ;;  %6048 = vmatpush.msk.msra.mxu0 %vm1716_vm5, %v6888_v14  ;;  %vm1686_vm4 = vcmp.eq.s32.totalorder %v7003_v16, %v7871_v50  ;;  %vm1684_vm5 = vcmp.eq.s32.totalorder %v7003_v16, %v7874_v51 }
  0xb4   : > { %6064 = vmatpush.msk.msra.mxu1 %vm1717_vm6, %v6888_v14  ;;  %6096 = vmatpush.msk.msra.mxu3 %vm1719_vm7, %v6888_v14  ;;  %v7934_v54 = vpop.f32.mrf.mxu0  ;;  %v7936_v55 = vpop.f32.mrf.mxu1  ;;  %vm1685_vm6 = vcmp.eq.s32.totalorder %v7003_v16, %v7883_v52  ;;  %vm1687_vm7 = vcmp.eq.s32.totalorder %v7003_v16, %v7886_v53 }
  0xb5   : > { %6081 = vmatpush.msk.msra.mxu2 %vm1710_vm8, %v6888_v14  ;;  %6049 = vmatpush.msk.msra.mxu0 %vm1708_vm9, %v6888_v14  ;;  %vm1678_vm8 = vcmp.eq.s32.totalorder %v7018_v17, %v7871_v50  ;;  %vm1676_vm9 = vcmp.eq.s32.totalorder %v7018_v17, %v7874_v51 }
  0xb6   : > { %6065 = vmatpush.msk.msra.mxu1 %vm1709_vm10, %v6888_v14  ;;  %6097 = vmatpush.msk.msra.mxu3 %vm1711_vm11, %v6888_v14  ;;  %vm1677_vm10 = vcmp.eq.s32.totalorder %v7018_v17, %v7883_v52  ;;  %vm1679_vm11 = vcmp.eq.s32.totalorder %v7018_v17, %v7886_v53 }
  0xb7   : > { %6082 = vmatpush.msk.msra.mxu2 %vm1702_vm12, %v6888_v14  ;;  %6050 = vmatpush.msk.msra.mxu0 %vm1700_vm13, %v6888_v14  ;;  %vm1670_vm12 = vcmp.eq.s32.totalorder %v7033_v18, %v7871_v50  ;;  %vm1668_vm13 = vcmp.eq.s32.totalorder %v7033_v18, %v7874_v51 }
  0xb8   : > { %6066 = vmatpush.msk.msra.mxu1 %vm1701_vm14, %v6888_v14  ;;  %6098 = vmatpush.msk.msra.mxu3 %vm1703_vm15, %v6888_v14  ;;  %vm1669_vm14 = vcmp.eq.s32.totalorder %v7033_v18, %v7883_v52  ;;  %vm1671_vm15 = vcmp.eq.s32.totalorder %v7033_v18, %v7886_v53 }
  0xb9   : > { %1308 = vmatmul.f32.gmra.mxu0 %v7256_v31  ;;  %1337 = vmatmul.f32.gmra.mxu1 %v7256_v31 }
  0xba   : > { %1366 = vmatmul.f32.gmra.mxu2 %v7256_v31  ;;  %1395 = vmatmul.f32.gmra.mxu3 %v7256_v31 }
  0xbb   : > { %6083 = vmatpush.msk.msra.mxu2 %vm1694_vm0, %v6888_v14  ;;  %6051 = vmatpush.msk.msra.mxu0 %vm1692_vm1, %v6888_v14  ;;  %v7972_v56 = vpop.f32.mrf.mxu2  ;;  %v7974_v57 = vpop.f32.mrf.mxu3  ;;  %vm1662_vm0 = vcmp.eq.s32.totalorder %v7048_v19, %v7871_v50  ;;  %vm1660_vm1 = vcmp.eq.s32.totalorder %v7048_v19, %v7874_v51 }
  0xbc   : > { %6067 = vmatpush.msk.msra.mxu1 %vm1693_vm2, %v6888_v14  ;;  %6099 = vmatpush.msk.msra.mxu3 %vm1695_vm3, %v6888_v14  ;;  %vm1661_vm2 = vcmp.eq.s32.totalorder %v7048_v19, %v7883_v52  ;;  %vm1663_vm3 = vcmp.eq.s32.totalorder %v7048_v19, %v7886_v53 }
  0xbd   : > { %6084 = vmatpush.msk.msra.mxu2 %vm1686_vm4, %v6888_v14  ;;  %6052 = vmatpush.msk.msra.mxu0 %vm1684_vm5, %v6888_v14  ;;  %vm1654_vm4 = vcmp.eq.s32.totalorder %v7063_v20, %v7871_v50  ;;  %vm1652_vm5 = vcmp.eq.s32.totalorder %v7063_v20, %v7874_v51 }
  0xbe   : > { %6068 = vmatpush.msk.msra.mxu1 %vm1685_vm6, %v6888_v14  ;;  %6100 = vmatpush.msk.msra.mxu3 %vm1687_vm7, %v6888_v14  ;;  %v7994_v58 = vpop.f32.mrf.mxu0  ;;  %v7996_v59 = vpop.f32.mrf.mxu1  ;;  %vm1653_vm6 = vcmp.eq.s32.totalorder %v7063_v20, %v7883_v52  ;;  %vm1655_vm7 = vcmp.eq.s32.totalorder %v7063_v20, %v7886_v53 }
  0xbf   : > { %6085 = vmatpush.msk.msra.mxu2 %vm1678_vm8, %v6888_v14  ;;  %6053 = vmatpush.msk.msra.mxu0 %vm1676_vm9, %v6888_v14  ;;  %vm1646_vm8 = vcmp.eq.s32.totalorder %v7078_v21, %v7871_v50  ;;  %vm1644_vm9 = vcmp.eq.s32.totalorder %v7078_v21, %v7874_v51 }
  0xc0   : > { %6069 = vmatpush.msk.msra.mxu1 %vm1677_vm10, %v6888_v14  ;;  %6101 = vmatpush.msk.msra.mxu3 %vm1679_vm11, %v6888_v14  ;;  %vm1645_vm10 = vcmp.eq.s32.totalorder %v7078_v21, %v7883_v52  ;;  %vm1647_vm11 = vcmp.eq.s32.totalorder %v7078_v21, %v7886_v53 }
  0xc1   : > { %6086 = vmatpush.msk.msra.mxu2 %vm1670_vm12, %v6888_v14  ;;  %6054 = vmatpush.msk.msra.mxu0 %vm1668_vm13, %v6888_v14  ;;  %vm1630_vm12 = vcmp.eq.s32.totalorder %v7108_v23, %v7871_v50  ;;  %vm1628_vm13 = vcmp.eq.s32.totalorder %v7108_v23, %v7874_v51 }
  0xc2   : > { %6070 = vmatpush.msk.msra.mxu1 %vm1669_vm14, %v6888_v14  ;;  %6102 = vmatpush.msk.msra.mxu3 %vm1671_vm15, %v6888_v14  ;;  %vm1637_vm14 = vcmp.eq.s32.totalorder %v7093_v22, %v7883_v52  ;;  %vm1639_vm15 = vcmp.eq.s32.totalorder %v7093_v22, %v7886_v53 }
  0xc3   : > { %1311 = vmatmul.f32.gmra.mxu0 %v7313_v32  ;;  %1340 = vmatmul.f32.gmra.mxu1 %v7313_v32 }
  0xc4   : > { %1369 = vmatmul.f32.gmra.mxu2 %v7313_v32  ;;  %1398 = vmatmul.f32.gmra.mxu3 %v7313_v32 }
  0xc5   : > { %6087 = vmatpush.msk.msra.mxu2 %vm1662_vm0, %v6888_v14  ;;  %6055 = vmatpush.msk.msra.mxu0 %vm1660_vm1, %v6888_v14  ;;  %v8061_v61 = vpop.f32.mrf.mxu2  ;;  %v8063_v62 = vpop.f32.mrf.mxu3  ;;  %vm1629_vm0 = vcmp.eq.s32.totalorder %v7108_v23, %v7883_v52  ;;  %vm1621_vm1 = vcmp.eq.s32.totalorder %v7123_v24, %v7883_v52 }
  0xc6   : > { %6071 = vmatpush.msk.msra.mxu1 %vm1661_vm2, %v6888_v14  ;;  %6103 = vmatpush.msk.msra.mxu3 %vm1663_vm3, %v6888_v14  ;;  %vm1622_vm2 = vcmp.eq.s32.totalorder %v7123_v24, %v7871_v50  ;;  %vm734_vm3 = vcmp.eq.s32.totalorder %v7138_v25, %v8078_v63 }
  0xc7   : > { %6088 = vmatpush.msk.msra.mxu2 %vm1654_vm4, %v6888_v14  ;;  %6056 = vmatpush.msk.msra.mxu0 %vm1652_vm5, %v6888_v14  ;;  %vm1623_vm4 = vcmp.eq.s32.totalorder %v7123_v24, %v7886_v53  ;;  %vm735_vm5 = vcmp.eq.s32.totalorder %v7138_v25, %v8081_v0  ;;  %v766_v26 = vsel %vm734_vm3, %v7994_v58, 0.0  ;;  %vm1730_vm3 = vcmp.eq.s32.totalorder %v6937_v5, %v8144_v4 }
  0xc8   : > { %6072 = vmatpush.msk.msra.mxu1 %vm1653_vm6, %v6888_v14  ;;  %6104 = vmatpush.msk.msra.mxu3 %vm1655_vm7, %v6888_v14  ;;  %v509_v2 = vpop.f32.mrf.mxu0  ;;  %v538_v3 = vpop.f32.mrf.mxu1  ;;  %vm742_vm6 = vcmp.eq.s32.totalorder %v7123_v24, %v8078_v63  ;;  %vm743_vm7 = vcmp.eq.s32.totalorder %v7123_v24, %v8081_v0  ;;  %v767_v27 = vsel %vm735_vm5, %v7996_v59, 0.0  ;;  %vm1728_vm5 = vcmp.eq.s32.totalorder %v6937_v5, %v8147_v6 }
  0xc9   : > { %6089 = vmatpush.msk.msra.mxu2 %vm1646_vm8, %v6888_v14  ;;  %6057 = vmatpush.msk.msra.mxu0 %vm1644_vm9, %v6888_v14  ;;  %vm726_vm8 = vcmp.eq.s32.totalorder %v6930_v1, %v8078_v63  ;;  %vm727_vm9 = vcmp.eq.s32.totalorder %v6930_v1, %v8081_v0  ;;  %v774_v30 = vsel %vm742_vm6, %v509_v2, 0.0  ;;  %v775_v31 = vsel %vm743_vm7, %v538_v3, 0.0 }
  0xca   : > { %6073 = vmatpush.msk.msra.mxu1 %vm1645_vm10, %v6888_v14  ;;  %6105 = vmatpush.msk.msra.mxu3 %vm1647_vm11, %v6888_v14  ;;  %vm14573_vm10 = vcmp.eq.s32.totalorder %v7093_v22, %v7871_v50  ;;  %vm14574_vm11 = vcmp.eq.s32.totalorder %v7093_v22, %v7874_v51  ;;  %v758_v28 = vsel %vm726_vm8, %v7934_v54, 0.0  ;;  %v759_v29 = vsel %vm727_vm9, %v7936_v55, 0.0 }
  0xcb   : > { %6090 = vmatpush.msk.msra.mxu2 %vm14573_vm10, %v6888_v14  ;;  %6058 = vmatpush.msk.msra.mxu0 %vm14574_vm11, %v6888_v14  ;;  %vm1729_vm8 = vcmp.eq.s32.totalorder %v6937_v5, %v8158_v9  ;;  %v790_v32 = vadd.f32 %v766_v26, %v758_v28  ;;  %v799_v33 = vadd.f32 %v767_v27, %v759_v29 }
  0xcc   : > { %6074 = vmatpush.msk.msra.mxu1 %vm1637_vm14, %v6888_v14  ;;  %6106 = vmatpush.msk.msra.mxu3 %vm1639_vm15, %v6888_v14  ;;  %vm1605_vm14 = vcmp.eq.s32.totalorder %v6930_v1, %v7883_v52  ;;  %vm1607_vm15 = vcmp.eq.s32.totalorder %v6930_v1, %v7886_v53  ;;  %vm728_vm7 = vcmp.eq.s32.totalorder %v6930_v1, %v8176_v11 }
  0xcd   : > { %1314 = vmatmul.f32.gmra.mxu0 %v7372_v35  ;;  %1343 = vmatmul.f32.gmra.mxu1 %v7372_v35  ;;  %vm729_vm9 = vcmp.eq.s32.totalorder %v6930_v1, %v8179_v12  ;;  %vm14576_vm11 = vcmp.eq.s32.totalorder %v7123_v24, %v7874_v51  ;;  %v791_v37 = vadd.f32 %v790_v32, %v774_v30  ;;  %v760_v47 = vsel %vm728_vm7, %v7972_v56, 0.0  ;;  %v8451_v32 = vld [vmem:[%s14569_s0 + $0x8] sm:$0xff] }
  0xce   : > { %1372 = vmatmul.f32.gmra.mxu2 %v7372_v35  ;;  %1401 = vmatmul.f32.gmra.mxu3 %v7372_v35  ;;  %v800_v38 = vadd.f32 %v799_v33, %v775_v31  ;;  %vm751_vm10 = vcmp.eq.s32.totalorder %v7108_v23, %v8081_v0  ;;  %vm14579_vm6 = vcmp.eq.s32.totalorder %v7138_v25, %v7883_v52  ;;  %v761_v49 = vsel %vm729_vm9, %v7974_v57, 0.0  ;;  %v8329_v57 = vld [vmem:[%s14569_s0] sm:$0xff] }
  0xcf   : > { %6091 = vmatpush.msk.msra.mxu2 %vm1630_vm12, %v6888_v14  ;;  %6059 = vmatpush.msk.msra.mxu0 %vm1628_vm13, %v6888_v14  ;;  %v567_v34 = vpop.f32.mrf.mxu2  ;;  %v596_v35 = vpop.f32.mrf.mxu3  ;;  %vm14575_vm12 = vcmp.eq.s32.totalorder %v7108_v23, %v7886_v53  ;;  %vm745_vm13 = vcmp.eq.s32.totalorder %v7123_v24, %v8179_v12  ;;  %vm1715_vm7 = vcmp.eq.s32.totalorder %v6946_v8, %v8161_v10 }
  0xd0   : > { %6075 = vmatpush.msk.msra.mxu1 %vm1629_vm0, %v6888_v14  ;;  %6107 = vmatpush.msk.msra.mxu3 %vm14575_vm12, %v6888_v14  ;;  %vm736_vm0 = vcmp.eq.s32.totalorder %v7138_v25, %v8176_v11  ;;  %vm737_vm12 = vcmp.eq.s32.totalorder %v7138_v25, %v8179_v12  ;;  %v777_v54 = vsel %vm745_vm13, %v596_v35, 0.0  ;;  %vm1713_vm13 = vcmp.eq.s32.totalorder %v6946_v8, %v8158_v9  ;;  %v217_v35 = vld [vmem:[%s8432_s4] ss:$8 sm:$0xf] }
  0xd1   : > { %6092 = vmatpush.msk.msra.mxu2 %vm1622_vm2, %v6888_v14  ;;  %6060 = vmatpush.msk.msra.mxu0 %vm14576_vm11, %v6888_v14  ;;  %vm744_vm2 = vcmp.eq.s32.totalorder %v7123_v24, %v8176_v11  ;;  %vm750_vm11 = vcmp.eq.s32.totalorder %v7108_v23, %v8078_v63  ;;  %v768_v41 = vsel %vm736_vm0, %v8061_v61, 0.0  ;;  %v769_v44 = vsel %vm737_vm12, %v8063_v62, 0.0 }
  0xd2   : > { %6076 = vmatpush.msk.msra.mxu1 %vm1621_vm1, %v6888_v14  ;;  %6108 = vmatpush.msk.msra.mxu3 %vm1623_vm4, %v6888_v14  ;;  %v512_v39 = vpop.f32.mrf.mxu0  ;;  %v541_v40 = vpop.f32.mrf.mxu1  ;;  %vm14577_vm1 = vcmp.eq.s32.totalorder %v7138_v25, %v7871_v50  ;;  %vm14578_vm4 = vcmp.eq.s32.totalorder %v7138_v25, %v7874_v51  ;;  %vm1723_vm0 = vcmp.eq.s32.totalorder %v6943_v7, %v8161_v10 }
  0xd3   : > { %6093 = vmatpush.msk.msra.mxu2 %vm14577_vm1, %v6888_v14  ;;  %6061 = vmatpush.msk.msra.mxu0 %vm14578_vm4, %v6888_v14  ;;  %v782_v42 = vsel %vm750_vm11, %v512_v39, 0.0  ;;  %v783_v43 = vsel %vm751_vm10, %v541_v40, 0.0  ;;  %vm14580_vm1 = vcmp.eq.s32.totalorder %v7138_v25, %v7886_v53  ;;  %vm1721_vm4 = vcmp.eq.s32.totalorder %v6943_v7, %v8158_v9 }
  0xd4   : > { %6077 = vmatpush.msk.msra.mxu1 %vm14579_vm6, %v6888_v14  ;;  %6109 = vmatpush.msk.msra.mxu3 %vm14580_vm1, %v6888_v14  ;;  %v792_v45 = vadd.f32 %v791_v37, %v782_v42  ;;  %v801_v46 = vadd.f32 %v800_v38, %v783_v43  ;;  %vm14581_vm10 = vcmp.eq.s32.totalorder %v6930_v1, %v7871_v50  ;;  %v776_v50 = vsel %vm744_vm2, %v567_v34, 0.0  ;;  %v218_v37 = vld [vmem:[%s8432_s4] ss:$8 sm:$0xf0] }
  0xd5   : > { %6094 = vmatpush.msk.msra.mxu2 %vm14581_vm10, %v6888_v14  ;;  %vm14582_vm6 = vcmp.eq.s32.totalorder %v6930_v1, %v7874_v51  ;;  %v808_v51 = vadd.f32 %v768_v41, %v760_v47  ;;  %v817_v52 = vadd.f32 %v769_v44, %v761_v49  ;;  %vm752_vm9 = vcmp.eq.s32.totalorder %v7108_v23, %v8176_v11 }
  0xd6   : > { %6062 = vmatpush.msk.msra.mxu0 %vm14582_vm6, %v6888_v14  ;;  %6078 = vmatpush.msk.msra.mxu1 %vm1605_vm14, %v6888_v14  ;;  %v793_v55 = vrot.slane %v792_v45, 4  ;;  %v802_v56 = vrot.slane %v801_v46, 4  ;;  %vm1714_vm14 = vcmp.eq.s32.totalorder %v6946_v8, %v8144_v4  ;;  %vm753_vm12 = vcmp.eq.s32.totalorder %v7108_v23, %v8179_v12 }
  0xd7   : > { %6110 = vmatpush.msk.msra.mxu3 %vm1607_vm15, %v6888_v14  ;;  %1876 = vmatmul.f32.vlgmr.msra.gmra.mxu0 %v8329_v57  ;;  %vm1712_vm15 = vcmp.eq.s32.totalorder %v6946_v8, %v8147_v6  ;;  %v809_v53 = vadd.f32 %v808_v51, %v776_v50  ;;  %v818_v58 = vadd.f32 %v817_v52, %v777_v54  ;;  %v6175_v50 = vld [vmem:[%s6928_s18 + $0x3] ss:$8 sm:$0xf] }
  0xd8   : > { %1905 = vmatmul.f32.vlgmr.msra.gmra.mxu1 %v8329_v57  ;;  %1934 = vmatmul.f32.vlgmr.msra.gmra.mxu2 %v8329_v57  ;;  %v794_v62 = vadd.f32 %v793_v55, %v792_v45  ;;  %v803_v63 = vadd.f32 %v802_v56, %v801_v46  ;;  %vm14585_vm2 = vcmp.eq.s32.totalorder %v6943_v7, %v8147_v6  ;;  %v6176_v51 = vld [vmem:[%s6928_s18 + $0x3] ss:$8 sm:$0xf0] }
  0xd9   : > { %1963 = vmatmul.f32.vlgmr.msra.gmra.mxu3 %v8329_v57  ;;  %6143 = vmatpush.msk.msrb.mxu2 %vm1730_vm3, %v6888_v14  ;;  %v570_v59 = vpop.f32.mrf.mxu2  ;;  %v599_v61 = vpop.f32.mrf.mxu3  ;;  %vm14583_vm3 = vcmp.eq.s32.totalorder %v6937_v5, %v8161_v10  ;;  %vm1704_vm11 = vcmp.eq.s32.totalorder %v6961_v13, %v8147_v6  ;;  %vm1705_vm1 = vcmp.eq.s32.totalorder %v6961_v13, %v8158_v9 }
  0xda   : > { %6111 = vmatpush.msk.msrb.mxu0 %vm1728_vm5, %v6888_v14  ;;  %6127 = vmatpush.msk.msrb.mxu1 %vm1729_vm8, %v6888_v14  ;;  %v784_v0 = vsel %vm752_vm9, %v570_v59, 0.0  ;;  %v785_v2 = vsel %vm753_vm12, %v599_v61, 0.0  ;;  %vm14584_vm5 = vcmp.eq.s32.totalorder %v6943_v7, %v8144_v4  ;;  %vm1706_vm8 = vcmp.eq.s32.totalorder %v6961_v13, %v8144_v4  ;;  %v8582_v61 = vld [vmem:[%s14569_s0 + $0x10] sm:$0xff] }
  0xdb   : > { %6159 = vmatpush.msk.msrb.mxu3 %vm14583_vm3, %v6888_v14  ;;  %6144 = vmatpush.msk.msrb.mxu2 %vm14584_vm5, %v6888_v14  ;;  %v810_v3 = vadd.f32 %v809_v53, %v784_v0  ;;  %v819_v11 = vadd.f32 %v818_v58, %v785_v2  ;;  %vm1707_vm10 = vcmp.eq.s32.totalorder %v6961_v13, %v8161_v10  ;;  %v795_v29 = vrot.slane %v794_v62, 2 }
  0xdc   : > { %6112 = vmatpush.msk.msrb.mxu0 %vm14585_vm2, %v6888_v14  ;;  %6128 = vmatpush.msk.msrb.mxu1 %vm1721_vm4, %v6888_v14  ;;  %v8387_v12 = vpop.f32.mrf.mxu0  ;;  %v8389_v26 = vpop.f32.mrf.mxu1  ;;  %vm1698_vm4 = vcmp.eq.s32.totalorder %v6988_v15, %v8144_v4  ;;  %vm1696_vm6 = vcmp.eq.s32.totalorder %v6988_v15, %v8147_v6  ;;  %v804_v30 = vrot.slane %v803_v63, 2  ;;  %vm1691_vm9 = vcmp.eq.s32.totalorder %v7003_v16, %v8161_v10 }
  0xdd   : > { %6160 = vmatpush.msk.msrb.mxu3 %vm1723_vm0, %v6888_v14  ;;  %6145 = vmatpush.msk.msrb.mxu2 %vm1714_vm14, %v6888_v14  ;;  %v811_v27 = vrot.slane %v810_v3, 4  ;;  %v820_v28 = vrot.slane %v819_v11, 4  ;;  %vm1697_vm0 = vcmp.eq.s32.totalorder %v6988_v15, %v8158_v9  ;;  %vm1699_vm14 = vcmp.eq.s32.totalorder %v6988_v15, %v8161_v10 }
  0xde   : > { %6113 = vmatpush.msk.msrb.mxu0 %vm1712_vm15, %v6888_v14  ;;  %6129 = vmatpush.msk.msrb.mxu1 %vm1713_vm13, %v6888_v14  ;;  %vm1690_vm15 = vcmp.eq.s32.totalorder %v7003_v16, %v8144_v4  ;;  %vm1688_vm13 = vcmp.eq.s32.totalorder %v7003_v16, %v8147_v6  ;;  %vm1682_vm12 = vcmp.eq.s32.totalorder %v7018_v17, %v8144_v4  ;;  %v8601_v2 = vperm.slane %v8029_v60, 5 }
  0xdf   : > { %6161 = vmatpush.msk.msrb.mxu3 %vm1715_vm7, %v6888_v14  ;;  %6146 = vmatpush.msk.msrb.mxu2 %vm1706_vm8, %v6888_v14  ;;  %v812_v31 = vadd.f32 %v811_v27, %v810_v3  ;;  %vm1689_vm7 = vcmp.eq.s32.totalorder %v7003_v16, %v8158_v9  ;;  %vm1680_vm3 = vcmp.eq.s32.totalorder %v7018_v17, %v8147_v6 }
  0xe0   : > { %6114 = vmatpush.msk.msrb.mxu0 %vm1704_vm11, %v6888_v14  ;;  %6130 = vmatpush.msk.msrb.mxu1 %vm1705_vm1, %v6888_v14  ;;  %vm1681_vm5 = vcmp.eq.s32.totalorder %v7018_v17, %v8158_v9  ;;  %v821_v34 = vadd.f32 %v820_v28, %v819_v11  ;;  %vm1683_vm2 = vcmp.eq.s32.totalorder %v7018_v17, %v8161_v10 }
  0xe1   : > { %6162 = vmatpush.msk.msrb.mxu3 %vm1707_vm10, %v6888_v14  ;;  %1879 = vmatmul.f32.gmra.mxu0 %v8451_v32  ;;  %v813_v33 = vrot.slane %v812_v31, 2  ;;  %v796_v38 = vadd.f32 %v795_v29, %v794_v62  ;;  %v805_v39 = vadd.f32 %v804_v30, %v803_v63  ;;  %vm1674_vm8 = vcmp.eq.s32.totalorder %v7033_v18, %v8144_v4 }
  0xe2   : > { %1908 = vmatmul.f32.gmra.mxu1 %v8451_v32  ;;  %1937 = vmatmul.f32.gmra.mxu2 %v8451_v32  ;;  %vm1672_vm11 = vcmp.eq.s32.totalorder %v7033_v18, %v8147_v6  ;;  %vm1673_vm1 = vcmp.eq.s32.totalorder %v7033_v18, %v8158_v9  ;;  %vm1675_vm10 = vcmp.eq.s32.totalorder %v7033_v18, %v8161_v10  ;;  %v822_v44 = vrot.slane %v821_v34, 2 }
  0xe3   : > { %1966 = vmatmul.f32.gmra.mxu3 %v8451_v32  ;;  %6147 = vmatpush.msk.msrb.mxu2 %vm1698_vm4, %v6888_v14  ;;  %vm1666_vm4 = vcmp.eq.s32.totalorder %v7048_v19, %v8144_v4  ;;  %v814_v40 = vadd.f32 %v813_v33, %v812_v31  ;;  %v8491_v41 = vpop.f32.mrf.mxu2  ;;  %v8493_v42 = vpop.f32.mrf.mxu3  ;;  %v8507_v43 = vor.u32 %v218_v37, %v217_v35  ;;  %v797_v45 = vrot.slane %v796_v38, 1 }
  0xe4   : > { %6115 = vmatpush.msk.msrb.mxu0 %vm1696_vm6, %v6888_v14  ;;  %6131 = vmatpush.msk.msrb.mxu1 %vm1697_vm0, %v6888_v14  ;;  %vm1664_vm6 = vcmp.eq.s32.totalorder %v7048_v19, %v8147_v6  ;;  %vm1665_vm0 = vcmp.eq.s32.totalorder %v7048_v19, %v8158_v9  ;;  %v806_v46 = vrot.slane %v805_v39, 1  ;;  %v823_v56 = vadd.f32 %v822_v44, %v821_v34 }
  0xe5   : > { %6163 = vmatpush.msk.msrb.mxu3 %vm1699_vm14, %v6888_v14  ;;  %6148 = vmatpush.msk.msrb.mxu2 %vm1690_vm15, %v6888_v14  ;;  %vm1667_vm14 = vcmp.eq.s32.totalorder %v7048_v19, %v8161_v10  ;;  %vm1658_vm15 = vcmp.eq.s32.totalorder %v7063_v20, %v8144_v4  ;;  %v815_v54 = vrot.slane %v814_v40, 1  ;;  %v863_v55 = vperm.slane %v8507_v43, 0 }
  0xe6   : > { %6116 = vmatpush.msk.msrb.mxu0 %vm1688_vm13, %v6888_v14  ;;  %6132 = vmatpush.msk.msrb.mxu1 %vm1689_vm7, %v6888_v14  ;;  %v8521_v47 = vpop.f32.mrf.mxu0  ;;  %v8523_v49 = vpop.f32.mrf.mxu1  ;;  %vm1656_vm13 = vcmp.eq.s32.totalorder %v7063_v20, %v8147_v6  ;;  %vm1657_vm7 = vcmp.eq.s32.totalorder %v7063_v20, %v8158_v9  ;;  %v798_v52 = vadd.f32 %v797_v45, %v796_v38  ;;  %v864_v58 = vperm.slane %v8507_v43, 1 }
  0xe7   : > { %6164 = vmatpush.msk.msrb.mxu3 %vm1691_vm9, %v6888_v14  ;;  %6149 = vmatpush.msk.msrb.mxu2 %vm1682_vm12, %v6888_v14  ;;  %vm1650_vm12 = vcmp.eq.s32.totalorder %v7078_v21, %v8144_v4  ;;  %vm1649_vm9 = vcmp.eq.s32.totalorder %v7078_v21, %v8158_v9  ;;  %v807_v53 = vadd.f32 %v806_v46, %v805_v39  ;;  %v8593_v62 = vperm.slane %v8029_v60, 4 }
  0xe8   : > { %6117 = vmatpush.msk.msrb.mxu0 %vm1680_vm3, %v6888_v14  ;;  %6133 = vmatpush.msk.msrb.mxu1 %vm1681_vm5, %v6888_v14  ;;  %vm1648_vm3 = vcmp.eq.s32.totalorder %v7078_v21, %v8147_v6  ;;  %vm1651_vm5 = vcmp.eq.s32.totalorder %v7078_v21, %v8161_v10  ;;  %v8577_v59 = vor.u32 %v6176_v51, %v6175_v50  ;;  %v865_v0 = vperm.slane %v8507_v43, 2 }
  0xe9   : > { %6165 = vmatpush.msk.msrb.mxu3 %vm1683_vm2, %v6888_v14  ;;  %6150 = vmatpush.msk.msrb.mxu2 %vm1674_vm8, %v6888_v14  ;;  %vm1642_vm2 = vcmp.eq.s32.totalorder %v7093_v22, %v8144_v4  ;;  %vm1640_vm8 = vcmp.eq.s32.totalorder %v7093_v22, %v8147_v6  ;;  %v816_v63 = vadd.f32 %v815_v54, %v814_v40  ;;  %v824_v3 = vrot.slane %v823_v56, 1 }
  0xea   : > { %6118 = vmatpush.msk.msrb.mxu0 %vm1672_vm11, %v6888_v14  ;;  %6134 = vmatpush.msk.msrb.mxu1 %vm1673_vm1, %v6888_v14  ;;  %vm1632_vm1 = vcmp.eq.s32.totalorder %v7108_v23, %v8147_v6  ;;  %vm1635_vm11 = vcmp.eq.s32.totalorder %v7108_v23, %v8161_v10  ;;  %v879_v11 = vmul.f32 %v863_v55, %v798_v52  ;;  %v8630_v28 = vand.u32 127, %v8577_v59 }
  0xeb   : > { %6166 = vmatpush.msk.msrb.mxu3 %vm1675_vm10, %v6888_v14  ;;  %1882 = vmatmul.f32.gmra.mxu0 %v8582_v61  ;;  %vm1633_vm10 = vcmp.eq.s32.totalorder %v7108_v23, %v8158_v9  ;;  %v880_v27 = vmul.f32 %v864_v58, %v807_v53  ;;  %v881_v31 = vmul.f32 %v865_v0, %v816_v63  ;;  %v866_v33 = vperm.slane %v8507_v43, 3 }
  0xec   : > { %1911 = vmatmul.f32.gmra.mxu1 %v8582_v61  ;;  %1940 = vmatmul.f32.gmra.mxu2 %v8582_v61  ;;  %v825_v37 = vadd.f32 %v824_v3, %v823_v56  ;;  %v8680_v38 = vperm.slane %v8029_v60, 6  ;;  %v8683_v39 = vperm.slane %v8029_v60, 7  ;;  %v8696_v44 = vperm.slane %v8630_v28, 2 }
  0xed   : > { %1969 = vmatmul.f32.gmra.mxu3 %v8582_v61  ;;  %6151 = vmatpush.msk.msrb.mxu2 %vm1666_vm4, %v6888_v14  ;;  %vm1626_vm4 = vcmp.eq.s32.totalorder %v7123_v24, %v8144_v4  ;;  %v8632_v29 = vpop.f32.mrf.mxu2  ;;  %v8634_v30 = vpop.f32.mrf.mxu3  ;;  %v887_v40 = vadd.f32 %v880_v27, %v879_v11  ;;  %v8699_v60 = vperm.slane %v8630_v28, 0  ;;  %v8714_v45 = vperm.slane %v8630_v28, 1 }
  0xee   : > { %6119 = vmatpush.msk.msrb.mxu0 %vm1664_vm6, %v6888_v14  ;;  %6135 = vmatpush.msk.msrb.mxu1 %vm1665_vm0, %v6888_v14  ;;  %vm730_vm6 = vcmp.eq.s32.totalorder %v6930_v1, %v8593_v62  ;;  %vm1619_vm0 = vcmp.eq.s32.totalorder %v7138_v25, %v8161_v10  ;;  %v8731_v51 = vperm.slane %v8630_v28, 3  ;;  %v882_v54 = vmul.f32 %v866_v33, %v825_v37 }
  0xef   : > { %6167 = vmatpush.msk.msrb.mxu3 %vm1667_vm14, %v6888_v14  ;;  %6152 = vmatpush.msk.msrb.mxu2 %vm1658_vm15, %v6888_v14  ;;  %vm14586_vm15 = vcmp.eq.s32.totalorder %v7063_v20, %v8161_v10  ;;  %vm731_vm14 = vcmp.eq.s32.totalorder %v6930_v1, %v8601_v2  ;;  %v888_v50 = vadd.f32 %v887_v40, %v881_v31  ;;  %v762_v55 = vsel %vm730_vm6, %v8387_v12, 0.0 }
  0xf0   : > { %6120 = vmatpush.msk.msrb.mxu0 %vm1656_vm13, %v6888_v14  ;;  %6136 = vmatpush.msk.msrb.mxu1 %vm1657_vm7, %v6888_v14  ;;  %vm1618_vm13 = vcmp.eq.s32.totalorder %v7138_v25, %v8144_v4  ;;  %vm738_vm7 = vcmp.eq.s32.totalorder %v7138_v25, %v8593_v62  ;;  %v625_v34 = vpop.f32.mrf.mxu0  ;;  %v654_v35 = vpop.f32.mrf.mxu1  ;;  %vm14589_vm6 = vcmp.eq.s32.totalorder %v7108_v23, %v8144_v4  ;;  %v763_v58 = vsel %vm731_vm14, %v8389_v26, 0.0 }
  0xf1   : > { %6168 = vmatpush.msk.msrb.mxu3 %vm14586_vm15, %v6888_v14  ;;  %6153 = vmatpush.msk.msrb.mxu2 %vm1650_vm12, %v6888_v14  ;;  %vm1617_vm15 = vcmp.eq.s32.totalorder %v7138_v25, %v8158_v9  ;;  %vm1610_vm12 = vcmp.eq.s32.totalorder %v6930_v1, %v8144_v4  ;;  %v770_v46 = vsel %vm738_vm7, %v8521_v47, 0.0  ;;  %vm739_vm7 = vcmp.eq.s32.totalorder %v7138_v25, %v8601_v2  ;;  %v8738_v47 = vld [vmem:[%s14569_s0 + $0x18] sm:$0xff] }
  0xf2   : > { %6121 = vmatpush.msk.msrb.mxu0 %vm1648_vm3, %v6888_v14  ;;  %6137 = vmatpush.msk.msrb.mxu1 %vm1649_vm9, %v6888_v14  ;;  %vm1608_vm9 = vcmp.eq.s32.totalorder %v6930_v1, %v8147_v6  ;;  %v826_v56 = vadd.f32 %v770_v46, %v762_v55  ;;  %v771_v12 = vsel %vm739_vm7, %v8523_v49, 0.0  ;;  %vm746_vm3 = vcmp.eq.s32.totalorder %v7123_v24, %v8593_v62 }
  0xf3   : > { %6169 = vmatpush.msk.msrb.mxu3 %vm1651_vm5, %v6888_v14  ;;  %6154 = vmatpush.msk.msrb.mxu2 %vm1642_vm2, %v6888_v14  ;;  %vm14587_vm5 = vcmp.eq.s32.totalorder %v7093_v22, %v8158_v9  ;;  %vm14588_vm2 = vcmp.eq.s32.totalorder %v7093_v22, %v8161_v10  ;;  %v8782_v52 = vadd.f32 %v888_v50, %v882_v54  ;;  %v778_v63 = vsel %vm746_vm3, %v625_v34, 0.0 }
  0xf4   : > { %6122 = vmatpush.msk.msrb.mxu0 %vm1640_vm8, %v6888_v14  ;;  %6138 = vmatpush.msk.msrb.mxu1 %vm14587_vm5, %v6888_v14  ;;  %vm732_vm5 = vcmp.eq.s32.totalorder %v6930_v1, %v8680_v38  ;;  %vm747_vm8 = vcmp.eq.s32.totalorder %v7123_v24, %v8601_v2  ;;  %vm2406_vm7 = vcmp.eq.s32.totalorder %v6943_v7, %v8731_v51 }
  0xf5   : > { %6170 = vmatpush.msk.msrb.mxu3 %vm14588_vm2, %v6888_v14  ;;  %1885 = vmatmul.f32.gmra.mxu0 %v8738_v47  ;;  %vm2412_vm2 = vcmp.eq.s32.totalorder %v6937_v5, %v8714_v45  ;;  %vm2397_vm14 = vcmp.eq.s32.totalorder %v6946_v8, %v8696_v44  ;;  %v835_v26 = vadd.f32 %v771_v12, %v763_v58  ;;  %v779_v0 = vsel %vm747_vm8, %v654_v35, 0.0 }
  0xf6   : > { %1914 = vmatmul.f32.gmra.mxu1 %v8738_v47  ;;  %1943 = vmatmul.f32.gmra.mxu2 %v8738_v47  ;;  %vm2398_vm8 = vcmp.eq.s32.totalorder %v6946_v8, %v8731_v51  ;;  %vm740_vm3 = vcmp.eq.s32.totalorder %v7138_v25, %v8680_v38  ;;  %v764_v27 = vsel %vm732_vm5, %v8491_v41, 0.0  ;;  %v827_v4 = vadd.f32 %v826_v56, %v778_v63 }
  0xf7   : > { %1972 = vmatmul.f32.gmra.mxu3 %v8738_v47  ;;  %6155 = vmatpush.msk.msrb.mxu2 %vm14589_vm6, %v6888_v14  ;;  %v683_v49 = vpop.f32.mrf.mxu2  ;;  %v712_v53 = vpop.f32.mrf.mxu3  ;;  %vm2404_vm6 = vcmp.eq.s32.totalorder %v6943_v7, %v8714_v45  ;;  %v836_v31 = vadd.f32 %v835_v26, %v779_v0  ;;  %vm14596_vm5 = vcmp.eq.s32.totalorder %v6930_v1, %v8683_v39 }
  0xf8   : > { %6123 = vmatpush.msk.msrb.mxu0 %vm1632_vm1, %v6888_v14  ;;  %6139 = vmatpush.msk.msrb.mxu1 %vm1633_vm10, %v6888_v14  ;;  %vm2414_vm1 = vcmp.eq.s32.totalorder %v6937_v5, %v8731_v51  ;;  %vm14590_vm10 = vcmp.eq.s32.totalorder %v7123_v24, %v8147_v6 }
  0xf9   : > { %6171 = vmatpush.msk.msrb.mxu3 %vm1635_vm11, %v6888_v14  ;;  %6156 = vmatpush.msk.msrb.mxu2 %vm1626_vm4, %v6888_v14  ;;  %vm2403_vm11 = vcmp.eq.s32.totalorder %v6943_v7, %v8699_v60  ;;  %vm14591_vm4 = vcmp.eq.s32.totalorder %v7123_v24, %v8158_v9 }
  0xfa   : > { %6124 = vmatpush.msk.msrb.mxu0 %vm14590_vm10, %v6888_v14  ;;  %6140 = vmatpush.msk.msrb.mxu1 %vm14591_vm4, %v6888_v14  ;;  %vm14592_vm10 = vcmp.eq.s32.totalorder %v7123_v24, %v8161_v10  ;;  %v628_v3 = vpop.f32.mrf.mxu0  ;;  %v657_v11 = vpop.f32.mrf.mxu1  ;;  %vm14593_vm4 = vcmp.eq.s32.totalorder %v7138_v25, %v8147_v6  ;;  %v765_v6 = vsel %vm14596_vm5, %v8493_v42, 0.0  ;;  %vm2380_vm5 = vcmp.eq.s32.totalorder %v6988_v15, %v8714_v45 }
  0xfb   : > { %6172 = vmatpush.msk.msrb.mxu3 %vm14592_vm10, %v6888_v14  ;;  %6157 = vmatpush.msk.msrb.mxu2 %vm1618_vm13, %v6888_v14  ;;  %vm2395_vm10 = vcmp.eq.s32.totalorder %v6946_v8, %v8699_v60  ;;  %vm755_vm13 = vcmp.eq.s32.totalorder %v7108_v23, %v8601_v2 }
  0xfc   : > { %6125 = vmatpush.msk.msrb.mxu0 %vm14593_vm4, %v6888_v14  ;;  %6141 = vmatpush.msk.msrb.mxu1 %vm1617_vm15, %v6888_v14  ;;  %vm741_vm4 = vcmp.eq.s32.totalorder %v7138_v25, %v8683_v39  ;;  %vm748_vm15 = vcmp.eq.s32.totalorder %v7123_v24, %v8680_v38  ;;  %v787_v41 = vsel %vm755_vm13, %v657_v11, 0.0  ;;  %vm14598_vm13 = vcmp.eq.s32.totalorder %v6937_v5, %v8699_v60 }
  0xfd   : > { %6173 = vmatpush.msk.msrb.mxu3 %vm1619_vm0, %v6888_v14  ;;  %6158 = vmatpush.msk.msrb.mxu2 %vm1610_vm12, %v6888_v14  ;;  %vm14594_vm12 = vcmp.eq.s32.totalorder %v6930_v1, %v8158_v9  ;;  %vm754_vm0 = vcmp.eq.s32.totalorder %v7108_v23, %v8593_v62  ;;  %v772_v9 = vsel %vm740_vm3, %v8632_v29, 0.0  ;;  %v773_v42 = vsel %vm741_vm4, %v8634_v30, 0.0 }
  0xfe   : > { %6126 = vmatpush.msk.msrb.mxu0 %vm1608_vm9, %v6888_v14  ;;  %6142 = vmatpush.msk.msrb.mxu1 %vm14594_vm12, %v6888_v14  ;;  %vm14595_vm9 = vcmp.eq.s32.totalorder %v6930_v1, %v8161_v10  ;;  %vm749_vm12 = vcmp.eq.s32.totalorder %v7123_v24, %v8683_v39  ;;  %v786_v10 = vsel %vm754_vm0, %v628_v3, 0.0  ;;  %v837_v2 = vadd.f32 %v836_v31, %v787_v41 }
  0xff   : > { %6174 = vmatpush.msk.msrb.mxu3 %vm14595_vm9, %v6888_v14  ;;  %1992 = vmatmul.f32.vlgmr.msrb.gmra.mxu0 %v8329_v57  ;;  %vm2381_vm9 = vcmp.eq.s32.totalorder %v6988_v15, %v8696_v44  ;;  %v828_v62 = vadd.f32 %v827_v4, %v786_v10  ;;  %vm14597_vm3 = vcmp.eq.s32.totalorder %v6937_v5, %v8696_v44  ;;  %v780_v29 = vsel %vm748_vm15, %v683_v49, 0.0 }
 0x100   : > { %2021 = vmatmul.f32.vlgmr.msrb.gmra.mxu1 %v8329_v57  ;;  %2050 = vmatmul.f32.vlgmr.msrb.gmra.mxu2 %v8329_v57  ;;  %vm2379_vm0 = vcmp.eq.s32.totalorder %v6988_v15, %v8699_v60  ;;  %vm2382_vm4 = vcmp.eq.s32.totalorder %v6988_v15, %v8731_v51  ;;  %v844_v30 = vadd.f32 %v772_v9, %v764_v27  ;;  %v781_v33 = vsel %vm749_vm12, %v712_v53, 0.0 }
 0x101   : > { %2079 = vmatmul.f32.vlgmr.msrb.gmra.mxu3 %v8329_v57  ;;  %6211 = vmatpush.msk.msra.mxu2 %vm14597_vm3, %v6888_v14  ;;  %vm2373_vm3 = vcmp.eq.s32.totalorder %v7003_v16, %v8696_v44  ;;  %v829_v34 = vrot.slane %v828_v62, 4  ;;  %v838_v35 = vrot.slane %v837_v2, 4  ;;  %v686_v37 = vpop.f32.mrf.mxu2  ;;  %v715_v40 = vpop.f32.mrf.mxu3  ;;  %v853_v46 = vadd.f32 %v773_v42, %v765_v6 }
 0x102   : > { %6179 = vmatpush.msk.msra.mxu0 %vm14598_vm13, %v6888_v14  ;;  %6195 = vmatpush.msk.msra.mxu1 %vm2412_vm2, %v6888_v14  ;;  %vm2371_vm13 = vcmp.eq.s32.totalorder %v7003_v16, %v8699_v60  ;;  %vm14599_vm2 = vcmp.eq.s32.totalorder %v6943_v7, %v8696_v44  ;;  %vm2374_vm15 = vcmp.eq.s32.totalorder %v7003_v16, %v8731_v51  ;;  %v867_v31 = vperm.slane %v8507_v43, 4 }
 0x103   : > { %6227 = vmatpush.msk.msra.mxu3 %vm2414_vm1, %v6888_v14  ;;  %6212 = vmatpush.msk.msra.mxu2 %vm14599_vm2, %v6888_v14  ;;  %vm2372_vm1 = vcmp.eq.s32.totalorder %v7003_v16, %v8714_v45  ;;  %vm2363_vm12 = vcmp.eq.s32.totalorder %v7018_v17, %v8699_v60  ;;  %v845_v50 = vadd.f32 %v844_v30, %v780_v29 }
 0x104   : > { %6180 = vmatpush.msk.msra.mxu0 %vm2403_vm11, %v6888_v14  ;;  %6196 = vmatpush.msk.msra.mxu1 %vm2404_vm6, %v6888_v14  ;;  %vm2365_vm11 = vcmp.eq.s32.totalorder %v7018_v17, %v8696_v44  ;;  %v830_v54 = vadd.f32 %v829_v34, %v828_v62  ;;  %v839_v55 = vadd.f32 %v838_v35, %v837_v2  ;;  %v8958_v56 = vpop.f32.mrf.mxu0  ;;  %v8960_v12 = vpop.f32.mrf.mxu1 }
 0x105   : > { %6228 = vmatpush.msk.msra.mxu3 %vm2406_vm7, %v6888_v14  ;;  %6213 = vmatpush.msk.msra.mxu2 %vm2397_vm14, %v6888_v14  ;;  %v854_v49 = vadd.f32 %v853_v46, %v781_v33  ;;  %vm756_vm7 = vcmp.eq.s32.totalorder %v7108_v23, %v8680_v38  ;;  %vm757_vm6 = vcmp.eq.s32.totalorder %v7108_v23, %v8683_v39 }
 0x106   : > { %6181 = vmatpush.msk.msra.mxu0 %vm2395_vm10, %v6888_v14  ;;  %vm14600_vm2 = vcmp.eq.s32.totalorder %v6946_v8, %v8714_v45  ;;  %v831_v53 = vrot.slane %v830_v54, 2  ;;  %v840_v58 = vrot.slane %v839_v55, 2  ;;  %v788_v26 = vsel %vm756_vm7, %v686_v37, 0.0 }
 0x107   : > { %6197 = vmatpush.msk.msra.mxu1 %vm14600_vm2, %v6888_v14  ;;  %6229 = vmatpush.msk.msra.mxu3 %vm2398_vm8, %v6888_v14  ;;  %v789_v63 = vsel %vm757_vm6, %v715_v40, 0.0  ;;  %vm14601_vm14 = vcmp.eq.s32.totalorder %v6961_v13, %v8696_v44  ;;  %vm14602_vm10 = vcmp.eq.s32.totalorder %v6961_v13, %v8699_v60  ;;  %vm2364_vm2 = vcmp.eq.s32.totalorder %v7018_v17, %v8714_v45 }
 0x108   : > { %6214 = vmatpush.msk.msra.mxu2 %vm14601_vm14, %v6888_v14  ;;  %6182 = vmatpush.msk.msra.mxu0 %vm14602_vm10, %v6888_v14  ;;  %v846_v38 = vadd.f32 %v845_v50, %v788_v26  ;;  %v855_v39 = vadd.f32 %v854_v49, %v789_v63  ;;  %vm14603_vm8 = vcmp.eq.s32.totalorder %v6961_v13, %v8714_v45  ;;  %v868_v37 = vperm.slane %v8507_v43, 5 }
 0x109   : > { %6198 = vmatpush.msk.msra.mxu1 %vm14603_vm8, %v6888_v14  ;;  %vm14604_vm7 = vcmp.eq.s32.totalorder %v6961_v13, %v8731_v51  ;;  %vm2366_vm6 = vcmp.eq.s32.totalorder %v7018_v17, %v8731_v51  ;;  %v832_v0 = vadd.f32 %v831_v53, %v830_v54  ;;  %v841_v3 = vadd.f32 %v840_v58, %v839_v55 }
 0x10a   : > { %6230 = vmatpush.msk.msra.mxu3 %vm14604_vm7, %v6888_v14  ;;  %1995 = vmatmul.f32.gmra.mxu0 %v8451_v32  ;;  %vm2357_vm14 = vcmp.eq.s32.totalorder %v7033_v18, %v8696_v44  ;;  %v847_v11 = vrot.slane %v846_v38, 4  ;;  %v856_v27 = vrot.slane %v855_v39, 4  ;;  %vm2356_vm8 = vcmp.eq.s32.totalorder %v7033_v18, %v8714_v45 }
 0x10b   : > { %2024 = vmatmul.f32.gmra.mxu1 %v8451_v32  ;;  %2053 = vmatmul.f32.gmra.mxu2 %v8451_v32  ;;  %vm2358_vm7 = vcmp.eq.s32.totalorder %v7033_v18, %v8731_v51  ;;  %v833_v4 = vrot.slane %v832_v0, 1  ;;  %vm2349_vm10 = vcmp.eq.s32.totalorder %v7048_v19, %v8696_v44  ;;  %v842_v6 = vrot.slane %v841_v3, 1  ;;  %v9037_v42 = vpop.f32.mrf.mxu2  ;;  %v9039_v62 = vpop.f32.mrf.mxu3 }
 0x10c   : > { %2082 = vmatmul.f32.gmra.mxu3 %v8451_v32  ;;  %6215 = vmatpush.msk.msra.mxu2 %vm2381_vm9, %v6888_v14  ;;  %v848_v9 = vadd.f32 %v847_v11, %v846_v38  ;;  %v857_v10 = vadd.f32 %v856_v27, %v855_v39  ;;  %vm2347_vm9 = vcmp.eq.s32.totalorder %v7048_v19, %v8699_v60  ;;  %v869_v55 = vperm.slane %v8507_v43, 6 }
 0x10d   : > { %6183 = vmatpush.msk.msra.mxu0 %vm2379_vm0, %v6888_v14  ;;  %6199 = vmatpush.msk.msra.mxu1 %vm2380_vm5, %v6888_v14  ;;  %vm2348_vm0 = vcmp.eq.s32.totalorder %v7048_v19, %v8714_v45  ;;  %v834_v41 = vadd.f32 %v833_v4, %v832_v0  ;;  %vm2350_vm5 = vcmp.eq.s32.totalorder %v7048_v19, %v8731_v51  ;;  %v870_v63 = vperm.slane %v8507_v43, 7 }
 0x10e   : > { %6231 = vmatpush.msk.msra.mxu3 %vm2382_vm4, %v6888_v14  ;;  %6216 = vmatpush.msk.msra.mxu2 %vm2373_vm3, %v6888_v14  ;;  %vm2341_vm4 = vcmp.eq.s32.totalorder %v7063_v20, %v8696_v44  ;;  %v849_v2 = vrot.slane %v848_v9, 2  ;;  %v858_v29 = vrot.slane %v857_v10, 2  ;;  %vm2339_vm3 = vcmp.eq.s32.totalorder %v7063_v20, %v8699_v60  ;;  %v9065_v33 = vpop.f32.mrf.mxu0  ;;  %v9067_v34 = vpop.f32.mrf.mxu1 }
 0x10f   : > { %6184 = vmatpush.msk.msra.mxu0 %vm2371_vm13, %v6888_v14  ;;  %6200 = vmatpush.msk.msra.mxu1 %vm2372_vm1, %v6888_v14  ;;  %vm2340_vm13 = vcmp.eq.s32.totalorder %v7063_v20, %v8714_v45  ;;  %v883_v30 = vmul.f32 %v867_v31, %v834_v41  ;;  %v843_v35 = vadd.f32 %v842_v6, %v841_v3  ;;  %v9232_v41 = vperm.slane %v8630_v28, 4 }
 0x110   : > { %6232 = vmatpush.msk.msra.mxu3 %vm2374_vm15, %v6888_v14  ;;  %6217 = vmatpush.msk.msra.mxu2 %vm2365_vm11, %v6888_v14  ;;  %v850_v40 = vadd.f32 %v849_v2, %v848_v9  ;;  %v859_v46 = vadd.f32 %v858_v29, %v857_v10  ;;  %vm2342_vm1 = vcmp.eq.s32.totalorder %v7063_v20, %v8731_v51  ;;  %v9229_v10 = vperm.slane %v8630_v28, 6 }
 0x111   : > { %6185 = vmatpush.msk.msra.mxu0 %vm2363_vm12, %v6888_v14  ;;  %6201 = vmatpush.msk.msra.mxu1 %vm2364_vm2, %v6888_v14  ;;  %vm2333_vm15 = vcmp.eq.s32.totalorder %v7078_v21, %v8696_v44  ;;  %vm2331_vm11 = vcmp.eq.s32.totalorder %v7078_v21, %v8699_v60  ;;  %vm14605_vm12 = vcmp.eq.s32.totalorder %v7033_v18, %v8699_v60  ;;  %v9235_v2 = vperm.slane %v8630_v28, 5 }
 0x112   : > { %6233 = vmatpush.msk.msra.mxu3 %vm2366_vm6, %v6888_v14  ;;  %6218 = vmatpush.msk.msra.mxu2 %vm2357_vm14, %v6888_v14  ;;  %v890_v50 = vadd.f32 %v8782_v52, %v883_v30  ;;  %v851_v54 = vrot.slane %v850_v40, 1  ;;  %v860_v49 = vrot.slane %v859_v46, 1  ;;  %vm2332_vm2 = vcmp.eq.s32.totalorder %v7078_v21, %v8714_v45 }
 0x113   : > { %6186 = vmatpush.msk.msra.mxu0 %vm14605_vm12, %v6888_v14  ;;  %6202 = vmatpush.msk.msra.mxu1 %vm2356_vm8, %v6888_v14  ;;  %vm2334_vm6 = vcmp.eq.s32.totalorder %v7078_v21, %v8731_v51  ;;  %vm2325_vm14 = vcmp.eq.s32.totalorder %v7093_v22, %v8696_v44  ;;  %v9117_v52 = vshra.s32 %v7374_v36, 7  ;;  %v884_v53 = vmul.f32 %v868_v37, %v843_v35 }
 0x114   : > { %6234 = vmatpush.msk.msra.mxu3 %vm2358_vm7, %v6888_v14  ;;  %1998 = vmatmul.f32.gmra.mxu0 %v8582_v61  ;;  %v852_v58 = vadd.f32 %v851_v54, %v850_v40  ;;  %v861_v26 = vadd.f32 %v860_v49, %v859_v46  ;;  %vm2324_vm7 = vcmp.eq.s32.totalorder %v7093_v22, %v8714_v45  ;;  %v9257_v29 = vperm.slane %v8630_v28, 7 }
 0x115   : > { %2027 = vmatmul.f32.gmra.mxu1 %v8582_v61  ;;  %2056 = vmatmul.f32.gmra.mxu2 %v8582_v61  ;;  %vm2326_vm12 = vcmp.eq.s32.totalorder %v7093_v22, %v8731_v51  ;;  %v891_v36 = vadd.f32 %v890_v50, %v884_v53  ;;  %vm2317_vm8 = vcmp.eq.s32.totalorder %v7108_v23, %v8696_v44  ;;  %v9153_v38 = vperm.slane %v9117_v52, 0  ;;  %v9158_v0 = vpop.f32.mrf.mxu2  ;;  %v9160_v3 = vpop.f32.mrf.mxu3 }
 0x116   : > { %2085 = vmatmul.f32.gmra.mxu3 %v8582_v61  ;;  %6219 = vmatpush.msk.msra.mxu2 %vm2349_vm10, %v6888_v14  ;;  %v885_v43 = vmul.f32 %v869_v55, %v852_v58  ;;  %vm2315_vm10 = vcmp.eq.s32.totalorder %v7108_v23, %v8699_v60  ;;  %v9156_v39 = vperm.slane %v9117_v52, 1  ;;  %v886_v27 = vmul.f32 %v870_v63, %v861_v26 }
 0x117   : > { %6187 = vmatpush.msk.msra.mxu0 %vm2347_vm9, %v6888_v14  ;;  %6203 = vmatpush.msk.msra.mxu1 %vm2348_vm0, %v6888_v14  ;;  %vm2316_vm9 = vcmp.eq.s32.totalorder %v7108_v23, %v8714_v45  ;;  %vm2318_vm0 = vcmp.eq.s32.totalorder %v7108_v23, %v8731_v51  ;;  %v9264_v35 = vperm.slane %v9117_v52, 2  ;;  %v9275_v28 = vperm.slane %v9117_v52, 3 }
 0x118   : > { %6235 = vmatpush.msk.msra.mxu3 %vm2350_vm5, %v6888_v14  ;;  %6220 = vmatpush.msk.msra.mxu2 %vm2341_vm4, %v6888_v14  ;;  %v892_v11 = vadd.f32 %v891_v36, %v885_v43  ;;  %vm2309_vm5 = vcmp.eq.s32.totalorder %v7123_v24, %v8696_v44  ;;  %vm2307_vm4 = vcmp.eq.s32.totalorder %v7123_v24, %v8699_v60  ;;  %v9187_v4 = vpop.f32.mrf.mxu0  ;;  %v9189_v31 = vpop.f32.mrf.mxu1 }
 0x119   : > { %6188 = vmatpush.msk.msra.mxu0 %vm2339_vm3, %v6888_v14  ;;  %6204 = vmatpush.msk.msra.mxu1 %vm2340_vm13, %v6888_v14  ;;  %vm2308_vm3 = vcmp.eq.s32.totalorder %v7123_v24, %v8714_v45  ;;  %vm2299_vm13 = vcmp.eq.s32.totalorder %v7138_v25, %v8699_v60 }
 0x11a   : > { %6236 = vmatpush.msk.msra.mxu3 %vm2342_vm1, %v6888_v14  ;;  %6221 = vmatpush.msk.msra.mxu2 %vm2333_vm15, %v6888_v14  ;;  %v9199_v6 = vadd.f32 %v892_v11, %v886_v27  ;;  %vm2301_vm1 = vcmp.eq.s32.totalorder %v7138_v25, %v8696_v44  ;;  %vm1413_vm15 = vcmp.eq.s32.totalorder %v6930_v1, %v9153_v38 }
 0x11b   : > { %6189 = vmatpush.msk.msra.mxu0 %vm2331_vm11, %v6888_v14  ;;  %6205 = vmatpush.msk.msra.mxu1 %vm2332_vm2, %v6888_v14  ;;  %vm1414_vm11 = vcmp.eq.s32.totalorder %v6930_v1, %v9156_v39  ;;  %vm14606_vm2 = vcmp.eq.s32.totalorder %v7093_v22, %v8699_v60 }
 0x11c   : > { %6237 = vmatpush.msk.msra.mxu3 %vm2334_vm6, %v6888_v14  ;;  %6222 = vmatpush.msk.msra.mxu2 %vm2325_vm14, %v6888_v14  ;;  %v895_v9 = vsub.f32 0.0, %v9199_v6  ;;  %vm2417_vm14 = vcmp.eq.s32.totalorder %v6937_v5, %v9229_v10  ;;  %vm2410_vm6 = vcmp.eq.s32.totalorder %v6943_v7, %v9257_v29 }
 0x11d   : > { %6190 = vmatpush.msk.msra.mxu0 %vm14606_vm2, %v6888_v14  ;;  %6206 = vmatpush.msk.msra.mxu1 %vm2324_vm7, %v6888_v14  ;;  %vm1422_vm7 = vcmp.eq.s32.totalorder %v7138_v25, %v9156_v39  ;;  %vm2415_vm2 = vcmp.eq.s32.totalorder %v6937_v5, %v9232_v41 }
 0x11e   : > { %6238 = vmatpush.msk.msra.mxu3 %vm2326_vm12, %v6888_v14  ;;  %2001 = vmatmul.f32.gmra.mxu0 %v8738_v47  ;;  %v896_v30 = vmul.f32 1.442695, %v895_v9  ;;  %vm1421_vm12 = vcmp.eq.s32.totalorder %v7138_v25, %v9153_v38 }
 0x11f   : > { %2030 = vmatmul.f32.gmra.mxu1 %v8738_v47  ;;  %2059 = vmatmul.f32.gmra.mxu2 %v8738_v47  ;;  %v1453_v37 = vsel %vm1421_vm12, %v9065_v33, 0.0  ;;  %v9312_v40 = vpop.f32.mrf.mxu2  ;;  %v9314_v46 = vpop.f32.mrf.mxu3  ;;  %v1454_v33 = vsel %vm1422_vm7, %v9067_v34, 0.0  ;;  %vm1430_vm12 = vcmp.eq.s32.totalorder %v7123_v24, %v9156_v39  ;;  %v1445_v34 = vsel %vm1413_vm15, %v8958_v56, 0.0 }
 0x120   : > { %2088 = vmatmul.f32.gmra.mxu3 %v8738_v47  ;;  %6223 = vmatpush.msk.msra.mxu2 %vm2317_vm8, %v6888_v14  ;;  %6846 = vpow2.f32 %v896_v30  ;;  %vm2418_vm8 = vcmp.eq.s32.totalorder %v6937_v5, %v9257_v29  ;;  %vm2408_vm7 = vcmp.eq.s32.totalorder %v6943_v7, %v9235_v2  ;;  %v1446_v56 = vsel %vm1414_vm11, %v8960_v12, 0.0 }
 0x121   : > { %6191 = vmatpush.msk.msra.mxu0 %vm2315_vm10, %v6888_v14  ;;  %6207 = vmatpush.msk.msra.mxu1 %vm2316_vm9, %v6888_v14  ;;  %vm2409_vm10 = vcmp.eq.s32.totalorder %v6943_v7, %v9229_v10  ;;  %vm1415_vm9 = vcmp.eq.s32.totalorder %v6930_v1, %v9264_v35  ;;  %v1477_v55 = vadd.f32 %v1453_v37, %v1445_v34  ;;  %v1462_v53 = vsel %vm1430_vm12, %v9189_v31, 0.0 }
 0x122   : > { %6239 = vmatpush.msk.msra.mxu3 %vm2318_vm0, %v6888_v14  ;;  %6224 = vmatpush.msk.msra.mxu2 %vm2309_vm5, %v6888_v14  ;;  %vm1429_vm0 = vcmp.eq.s32.totalorder %v7123_v24, %v9153_v38  ;;  %vm14607_vm5 = vcmp.eq.s32.totalorder %v7123_v24, %v8731_v51  ;;  %v1199_v50 = vpop.f32.mrf.mxu0  ;;  %v1228_v54 = vpop.f32.mrf.mxu1  ;;  %vm2399_vm15 = vcmp.eq.s32.totalorder %v6946_v8, %v9232_v41  ;;  %v1447_v26 = vsel %vm1415_vm9, %v9037_v42, 0.0 }
 0x123   : > { %6192 = vmatpush.msk.msra.mxu0 %vm2307_vm4, %v6888_v14  ;;  %6208 = vmatpush.msk.msra.mxu1 %vm2308_vm3, %v6888_v14  ;;  %vm1416_vm4 = vcmp.eq.s32.totalorder %v6930_v1, %v9275_v28  ;;  %vm2401_vm3 = vcmp.eq.s32.totalorder %v6946_v8, %v9229_v10  ;;  %vm14609_vm11 = vcmp.eq.s32.totalorder %v7138_v25, %v8731_v51  ;;  %v1461_v49 = vsel %vm1429_vm0, %v9187_v4, 0.0 }
 0x124   : > { %6240 = vmatpush.msk.msra.mxu3 %vm14607_vm5, %v6888_v14  ;;  %6225 = vmatpush.msk.msra.mxu2 %vm2301_vm1, %v6888_v14  ;;  %vm14608_vm1 = vcmp.eq.s32.totalorder %v7138_v25, %v8714_v45  ;;  %v1486_v12 = vadd.f32 %v1454_v33, %v1446_v56  ;;  %vm14610_vm5 = vcmp.eq.s32.totalorder %v6930_v1, %v8696_v44  ;;  %v1448_v44 = vsel %vm1416_vm4, %v9039_v62, 0.0  ;;  %v9557_v56 = vld [vmem:[%s14569_s0 + $0x8] sm:$0xff] }
 0x125   : > { %6193 = vmatpush.msk.msra.mxu0 %vm2299_vm13, %v6888_v14  ;;  %6209 = vmatpush.msk.msra.mxu1 %vm14608_vm1, %v6888_v14  ;;  %vm2400_vm13 = vcmp.eq.s32.totalorder %v6946_v8, %v9235_v2  ;;  %vm14611_vm1 = vcmp.eq.s32.totalorder %v6930_v1, %v8699_v60  ;;  %v1478_v60 = vadd.f32 %v1477_v55, %v1461_v49  ;;  %v5914_v55 = vld [vmem:[%s8432_s4 + $0x1] ss:$8 sm:$0xf0] }
 0x126   : > { %6241 = vmatpush.msk.msra.mxu3 %vm14609_vm11, %v6888_v14  ;;  %v6847_v58 = vpop.eup %6846  ;;  %6226 = vmatpush.msk.msra.mxu2 %vm14610_vm5, %v6888_v14  ;;  %vm1423_vm11 = vcmp.eq.s32.totalorder %v7138_v25, %v9264_v35  ;;  %vm14612_vm5 = vcmp.eq.s32.totalorder %v6930_v1, %v8714_v45  ;;  %v1487_v45 = vadd.f32 %v1486_v12, %v1462_v53 }
 0x127   : > { %6194 = vmatpush.msk.msra.mxu0 %vm14611_vm1, %v6888_v14  ;;  %898 = vst [vmem:[%s9355_s15] sm:$0x1] %v6847_v58  ;;  %6210 = vmatpush.msk.msra.mxu1 %vm14612_vm5, %v6888_v14  ;;  %vm14613_vm1 = vcmp.eq.s32.totalorder %v6930_v1, %v8731_v51  ;;  %vm1424_vm5 = vcmp.eq.s32.totalorder %v7138_v25, %v9275_v28  ;;  %v1455_v51 = vsel %vm1423_vm11, %v9158_v0, 0.0 }
 0x128   : > { %6242 = vmatpush.msk.msra.mxu3 %vm14613_vm1, %v6888_v14  ;;  %2563 = vmatmul.f32.vlgmr.msra.gmra.mxu0 %v8329_v57  ;;  %vm1431_vm4 = vcmp.eq.s32.totalorder %v7123_v24, %v9264_v35  ;;  %vm1437_vm12 = vcmp.eq.s32.totalorder %v7108_v23, %v9153_v38  ;;  %vm1438_vm9 = vcmp.eq.s32.totalorder %v7108_v23, %v9156_v39  ;;  %v1456_v62 = vsel %vm1424_vm5, %v9160_v3, 0.0 }
 0x129   : > { %2592 = vmatmul.f32.vlgmr.msra.gmra.mxu1 %v8329_v57  ;;  %2621 = vmatmul.f32.vlgmr.msra.gmra.mxu2 %v8329_v57  ;;  %vm2384_vm11 = vcmp.eq.s32.totalorder %v6988_v15, %v9235_v2  ;;  %vm1432_vm0 = vcmp.eq.s32.totalorder %v7123_v24, %v9275_v28  ;;  %v1470_v42 = vsel %vm1438_vm9, %v1228_v54, 0.0  ;;  %vm14614_vm1 = vcmp.eq.s32.totalorder %v6937_v5, %v9235_v2  ;;  %v1257_v43 = vpop.f32.mrf.mxu2  ;;  %v1286_v38 = vpop.f32.mrf.mxu3 }
 0x12a   : > { %2650 = vmatmul.f32.vlgmr.msra.gmra.mxu3 %v8329_v57  ;;  %6275 = vmatpush.msk.msrb.mxu2 %vm2417_vm14, %v6888_v14  ;;  %v1469_v57 = vsel %vm1437_vm12, %v1199_v50, 0.0  ;;  %vm2386_vm14 = vcmp.eq.s32.totalorder %v6988_v15, %v9257_v29  ;;  %v1488_v36 = vadd.f32 %v1487_v45, %v1470_v42  ;;  %v1495_v39 = vadd.f32 %v1455_v51, %v1447_v26 }
 0x12b   : > { %6243 = vmatpush.msk.msrb.mxu0 %vm2415_vm2, %v6888_v14  ;;  %6259 = vmatpush.msk.msrb.mxu1 %vm14614_vm1, %v6888_v14  ;;  %v1479_v63 = vadd.f32 %v1478_v60, %v1469_v57  ;;  %vm14615_vm2 = vcmp.eq.s32.totalorder %v6943_v7, %v9232_v41  ;;  %vm2375_vm12 = vcmp.eq.s32.totalorder %v7003_v16, %v9232_v41  ;;  %v1463_v0 = vsel %vm1431_vm4, %v9312_v40, 0.0 }
 0x12c   : > { %6291 = vmatpush.msk.msrb.mxu3 %vm2418_vm8, %v6888_v14  ;;  %6276 = vmatpush.msk.msrb.mxu2 %vm2409_vm10, %v6888_v14  ;;  %vm2377_vm8 = vcmp.eq.s32.totalorder %v7003_v16, %v9229_v10  ;;  %vm2376_vm10 = vcmp.eq.s32.totalorder %v7003_v16, %v9235_v2  ;;  %v1464_v3 = vsel %vm1432_vm0, %v9314_v46, 0.0  ;;  %v1489_v27 = vrot.slane %v1488_v36, 4  ;;  %v9504_v4 = vpop.f32.mrf.mxu0  ;;  %v9506_v31 = vpop.f32.mrf.mxu1 }
 0x12d   : > { %6244 = vmatpush.msk.msrb.mxu0 %vm14615_vm2, %v6888_v14  ;;  %6260 = vmatpush.msk.msrb.mxu1 %vm2408_vm7, %v6888_v14  ;;  %v1480_v11 = vrot.slane %v1479_v63, 4  ;;  %v1504_v9 = vadd.f32 %v1456_v62, %v1448_v44  ;;  %vm2369_vm7 = vcmp.eq.s32.totalorder %v7018_v17, %v9229_v10  ;;  %v1496_v30 = vadd.f32 %v1495_v39, %v1463_v0 }
 0x12e   : > { %6292 = vmatpush.msk.msrb.mxu3 %vm2410_vm6, %v6888_v14  ;;  %6277 = vmatpush.msk.msrb.mxu2 %vm2401_vm3, %v6888_v14  ;;  %vm2378_vm6 = vcmp.eq.s32.totalorder %v7003_v16, %v9257_v29  ;;  %vm14616_vm3 = vcmp.eq.s32.totalorder %v6946_v8, %v9257_v29  ;;  %v1490_v40 = vadd.f32 %v1489_v27, %v1488_v36  ;;  %v6308_v27 = vld [vmem:[%s6928_s18 + $0x4] ss:$8 sm:$0xf0] }
 0x12f   : > { %6245 = vmatpush.msk.msrb.mxu0 %vm2399_vm15, %v6888_v14  ;;  %6261 = vmatpush.msk.msrb.mxu1 %vm2400_vm13, %v6888_v14  ;;  %v1481_v37 = vadd.f32 %v1480_v11, %v1479_v63  ;;  %vm14617_vm15 = vcmp.eq.s32.totalorder %v6961_v13, %v9229_v10  ;;  %vm14618_vm0 = vcmp.eq.s32.totalorder %v6961_v13, %v9232_v41 }
 0x130   : > { %6293 = vmatpush.msk.msrb.mxu3 %vm14616_vm3, %v6888_v14  ;;  %6278 = vmatpush.msk.msrb.mxu2 %vm14617_vm15, %v6888_v14  ;;  %v1505_v46 = vadd.f32 %v1504_v9, %v1464_v3  ;;  %vm1439_vm13 = vcmp.eq.s32.totalorder %v7108_v23, %v9264_v35  ;;  %vm1440_vm9 = vcmp.eq.s32.totalorder %v7108_v23, %v9275_v28  ;;  %v1491_v28 = vrot.slane %v1490_v40, 2  ;;  %v6307_v3 = vld [vmem:[%s6928_s18 + $0x4] ss:$8 sm:$0xf] }
 0x131   : > { %6246 = vmatpush.msk.msrb.mxu0 %vm14618_vm0, %v6888_v14  ;;  %vm14619_vm5 = vcmp.eq.s32.totalorder %v6961_v13, %v9235_v2  ;;  %vm14620_vm1 = vcmp.eq.s32.totalorder %v6961_v13, %v9257_v29  ;;  %vm2367_vm4 = vcmp.eq.s32.totalorder %v7018_v17, %v9232_v41  ;;  %v1482_v33 = vrot.slane %v1481_v37, 2  ;;  %2595 = vmatmul.f32.gmra.mxu1 %v8451_v32  ;;  %v9686_v9 = vld [vmem:[%s14569_s0 + $0x10] sm:$0xff] }
 0x132   : > { %6262 = vmatpush.msk.msrb.mxu1 %vm14619_vm5, %v6888_v14  ;;  %6294 = vmatpush.msk.msrb.mxu3 %vm14620_vm1, %v6888_v14  ;;  %v1471_v34 = vsel %vm1439_vm13, %v1257_v43, 0.0  ;;  %v1472_v35 = vsel %vm1440_vm9, %v1286_v38, 0.0  ;;  %vm2368_vm2 = vcmp.eq.s32.totalorder %v7018_v17, %v9235_v2  ;;  %vm2370_vm3 = vcmp.eq.s32.totalorder %v7018_v17, %v9257_v29 }
 0x133   : > { %2566 = vmatmul.f32.gmra.mxu0 %v8451_v32  ;;  %v1497_v50 = vadd.f32 %v1496_v30, %v1471_v34  ;;  %v1506_v54 = vadd.f32 %v1505_v46, %v1472_v35  ;;  %2624 = vmatmul.f32.gmra.mxu2 %v9557_v56  ;;  %vm2361_vm15 = vcmp.eq.s32.totalorder %v7033_v18, %v9229_v10  ;;  %v5913_v32 = vld [vmem:[%s8432_s4 + $0x1] ss:$8 sm:$0xf]  ;;  %v9593_v58 = vpop.f32.mrf.mxu2  ;;  %v9595_v26 = vpop.f32.mrf.mxu3 }
 0x134   : > { %2653 = vmatmul.f32.gmra.mxu3 %v9557_v56  ;;  %vm2359_vm0 = vcmp.eq.s32.totalorder %v7033_v18, %v9232_v41  ;;  %vm14621_vm13 = vcmp.eq.s32.totalorder %v6988_v15, %v9229_v10  ;;  %vm14622_vm9 = vcmp.eq.s32.totalorder %v6988_v15, %v9232_v41  ;;  %vm2360_vm5 = vcmp.eq.s32.totalorder %v7033_v18, %v9235_v2 }
 0x135   : > { %6279 = vmatpush.msk.msrb.mxu2 %vm14621_vm13, %v6888_v14  ;;  %6247 = vmatpush.msk.msrb.mxu0 %vm14622_vm9, %v6888_v14  ;;  %vm2362_vm1 = vcmp.eq.s32.totalorder %v7033_v18, %v9257_v29  ;;  %v1498_v12 = vrot.slane %v1497_v50, 4  ;;  %v1507_v49 = vrot.slane %v1506_v54, 4  ;;  %vm2353_vm13 = vcmp.eq.s32.totalorder %v7048_v19, %v9229_v10 }
 0x136   : > { %6263 = vmatpush.msk.msrb.mxu1 %vm2384_vm11, %v6888_v14  ;;  %6295 = vmatpush.msk.msrb.mxu3 %vm2386_vm14, %v6888_v14  ;;  %vm2351_vm9 = vcmp.eq.s32.totalorder %v7048_v19, %v9232_v41  ;;  %v1483_v53 = vadd.f32 %v1482_v33, %v1481_v37  ;;  %v1492_v44 = vadd.f32 %v1491_v28, %v1490_v40  ;;  %v9619_v57 = vpop.f32.mrf.mxu0  ;;  %v9621_v42 = vpop.f32.mrf.mxu1  ;;  %v9721_v33 = vperm.slane %v9117_v52, 5 }
 0x137   : > { %6280 = vmatpush.msk.msrb.mxu2 %vm2377_vm8, %v6888_v14  ;;  %6248 = vmatpush.msk.msrb.mxu0 %vm2375_vm12, %v6888_v14  ;;  %v1499_v60 = vadd.f32 %v1498_v12, %v1497_v50  ;;  %v1508_v45 = vadd.f32 %v1507_v49, %v1506_v54  ;;  %vm2352_vm11 = vcmp.eq.s32.totalorder %v7048_v19, %v9235_v2 }
 0x138   : > { %6264 = vmatpush.msk.msrb.mxu1 %vm2376_vm10, %v6888_v14  ;;  %6296 = vmatpush.msk.msrb.mxu3 %vm2378_vm6, %v6888_v14  ;;  %vm2354_vm14 = vcmp.eq.s32.totalorder %v7048_v19, %v9257_v29  ;;  %v9617_v51 = vor.u32 %v5914_v55, %v5913_v32  ;;  %vm2345_vm8 = vcmp.eq.s32.totalorder %v7063_v20, %v9229_v10  ;;  %v1484_v63 = vrot.slane %v1483_v53, 1 }
 0x139   : > { %6281 = vmatpush.msk.msrb.mxu2 %vm2369_vm7, %v6888_v14  ;;  %6249 = vmatpush.msk.msrb.mxu0 %vm2367_vm4, %v6888_v14  ;;  %vm2343_vm12 = vcmp.eq.s32.totalorder %v7063_v20, %v9232_v41  ;;  %vm2344_vm10 = vcmp.eq.s32.totalorder %v7063_v20, %v9235_v2  ;;  %v1500_v62 = vrot.slane %v1499_v60, 2  ;;  %vm2346_vm6 = vcmp.eq.s32.totalorder %v7063_v20, %v9257_v29 }
 0x13a   : > { %6265 = vmatpush.msk.msrb.mxu1 %vm2368_vm2, %v6888_v14  ;;  %6297 = vmatpush.msk.msrb.mxu3 %vm2370_vm3, %v6888_v14  ;;  %vm2337_vm7 = vcmp.eq.s32.totalorder %v7078_v21, %v9229_v10  ;;  %vm2335_vm4 = vcmp.eq.s32.totalorder %v7078_v21, %v9232_v41  ;;  %v1493_v36 = vrot.slane %v1492_v44, 1  ;;  %v1509_v38 = vrot.slane %v1508_v45, 2 }
 0x13b   : > { %6282 = vmatpush.msk.msrb.mxu2 %vm2361_vm15, %v6888_v14  ;;  %6250 = vmatpush.msk.msrb.mxu0 %vm2359_vm0, %v6888_v14  ;;  %v1501_v43 = vadd.f32 %v1500_v62, %v1499_v60  ;;  %v1550_v39 = vperm.slane %v9617_v51, 0  ;;  %v1551_v0 = vperm.slane %v9617_v51, 1  ;;  %vm2336_vm2 = vcmp.eq.s32.totalorder %v7078_v21, %v9235_v2 }
 0x13c   : > { %6266 = vmatpush.msk.msrb.mxu1 %vm2360_vm5, %v6888_v14  ;;  %6298 = vmatpush.msk.msrb.mxu3 %vm2362_vm1, %v6888_v14  ;;  %vm2338_vm3 = vcmp.eq.s32.totalorder %v7078_v21, %v9257_v29  ;;  %vm2329_vm15 = vcmp.eq.s32.totalorder %v7093_v22, %v9229_v10  ;;  %vm2330_vm1 = vcmp.eq.s32.totalorder %v7093_v22, %v9257_v29  ;;  %v1552_v40 = vperm.slane %v9617_v51, 2 }
 0x13d   : > { %2569 = vmatmul.f32.gmra.mxu0 %v8582_v61  ;;  %2598 = vmatmul.f32.gmra.mxu1 %v8582_v61  ;;  %v1502_v11 = vrot.slane %v1501_v43, 1  ;;  %vm2321_vm0 = vcmp.eq.s32.totalorder %v7108_v23, %v9229_v10  ;;  %vm2319_vm5 = vcmp.eq.s32.totalorder %v7108_v23, %v9232_v41  ;;  %v9697_v61 = vperm.slane %v9117_v52, 4  ;;  %v9725_v35 = vpop.f32.mrf.mxu2  ;;  %v9727_v28 = vpop.f32.mrf.mxu3 }
 0x13e   : > { %2627 = vmatmul.f32.gmra.mxu2 %v9686_v9  ;;  %2656 = vmatmul.f32.gmra.mxu3 %v9686_v9  ;;  %v1485_v30 = vadd.f32 %v1484_v63, %v1483_v53  ;;  %v1494_v37 = vadd.f32 %v1493_v36, %v1492_v44  ;;  %v1510_v46 = vadd.f32 %v1509_v38, %v1508_v45  ;;  %v1553_v54 = vperm.slane %v9617_v51, 3 }
 0x13f   : > { %6283 = vmatpush.msk.msrb.mxu2 %vm2353_vm13, %v6888_v14  ;;  %6251 = vmatpush.msk.msrb.mxu0 %vm2351_vm9, %v6888_v14  ;;  %vm2320_vm13 = vcmp.eq.s32.totalorder %v7108_v23, %v9235_v2  ;;  %vm2322_vm9 = vcmp.eq.s32.totalorder %v7108_v23, %v9257_v29  ;;  %v9723_v34 = vor.u32 %v6308_v27, %v6307_v3  ;;  %v9757_v32 = vperm.slane %v9117_v52, 6 }
 0x140   : > { %6267 = vmatpush.msk.msrb.mxu1 %vm2352_vm11, %v6888_v14  ;;  %6299 = vmatpush.msk.msrb.mxu3 %vm2354_vm14, %v6888_v14  ;;  %v1503_v50 = vadd.f32 %v1502_v11, %v1501_v43  ;;  %vm2311_vm14 = vcmp.eq.s32.totalorder %v7123_v24, %v9232_v41  ;;  %vm1417_vm11 = vcmp.eq.s32.totalorder %v6930_v1, %v9697_v61  ;;  %v9759_v55 = vpop.f32.mrf.mxu0  ;;  %v9761_v12 = vpop.f32.mrf.mxu1  ;;  %v1511_v44 = vrot.slane %v1510_v46, 1 }
 0x141   : > { %6284 = vmatpush.msk.msrb.mxu2 %vm2345_vm8, %v6888_v14  ;;  %6252 = vmatpush.msk.msrb.mxu0 %vm2343_vm12, %v6888_v14  ;;  %vm2312_vm8 = vcmp.eq.s32.totalorder %v7123_v24, %v9235_v2  ;;  %vm2314_vm12 = vcmp.eq.s32.totalorder %v7123_v24, %v9257_v29  ;;  %v1566_v49 = vmul.f32 %v1550_v39, %v1485_v30  ;;  %v9786_v60 = vand.u32 127, %v9723_v34 }
 0x142   : > { %6268 = vmatpush.msk.msrb.mxu1 %vm2344_vm10, %v6888_v14  ;;  %6300 = vmatpush.msk.msrb.mxu3 %vm2346_vm6, %v6888_v14  ;;  %v1567_v53 = vmul.f32 %v1551_v0, %v1494_v37  ;;  %vm2305_vm10 = vcmp.eq.s32.totalorder %v7138_v25, %v9229_v10  ;;  %vm1418_vm6 = vcmp.eq.s32.totalorder %v6930_v1, %v9721_v33  ;;  %v1449_v62 = vsel %vm1417_vm11, %v9504_v4, 0.0 }
 0x143   : > { %6285 = vmatpush.msk.msrb.mxu2 %vm2337_vm7, %v6888_v14  ;;  %6253 = vmatpush.msk.msrb.mxu0 %vm2335_vm4, %v6888_v14  ;;  %vm1425_vm4 = vcmp.eq.s32.totalorder %v7138_v25, %v9697_v61  ;;  %v1568_v45 = vmul.f32 %v1552_v40, %v1503_v50  ;;  %vm1426_vm7 = vcmp.eq.s32.totalorder %v7138_v25, %v9721_v33  ;;  %v9821_v4 = vperm.slane %v9117_v52, 7 }
 0x144   : > { %6269 = vmatpush.msk.msrb.mxu1 %vm2336_vm2, %v6888_v14  ;;  %6301 = vmatpush.msk.msrb.mxu3 %vm2338_vm3, %v6888_v14  ;;  %vm14623_vm2 = vcmp.eq.s32.totalorder %v7093_v22, %v9232_v41  ;;  %vm2297_vm11 = vcmp.eq.s32.totalorder %v6930_v1, %v9229_v10  ;;  %vm2295_vm3 = vcmp.eq.s32.totalorder %v6930_v1, %v9232_v41  ;;  %v1457_v43 = vsel %vm1425_vm4, %v9619_v57, 0.0 }
 0x145   : > { %6286 = vmatpush.msk.msrb.mxu2 %vm2329_vm15, %v6888_v14  ;;  %6254 = vmatpush.msk.msrb.mxu0 %vm14623_vm2, %v6888_v14  ;;  %vm14624_vm15 = vcmp.eq.s32.totalorder %v7093_v22, %v9235_v2  ;;  %vm2306_vm2 = vcmp.eq.s32.totalorder %v7138_v25, %v9257_v29  ;;  %v1574_v63 = vadd.f32 %v1567_v53, %v1566_v49  ;;  %v9834_v52 = vperm.slane %v9786_v60, 2 }
 0x146   : > { %6270 = vmatpush.msk.msrb.mxu1 %vm14624_vm15, %v6888_v14  ;;  %6302 = vmatpush.msk.msrb.mxu3 %vm2330_vm1, %v6888_v14  ;;  %v1512_v36 = vadd.f32 %v1511_v44, %v1510_v46  ;;  %vm2296_vm1 = vcmp.eq.s32.totalorder %v6930_v1, %v9235_v2  ;;  %v9837_v38 = vperm.slane %v9786_v60, 0  ;;  %v9840_v39 = vperm.slane %v9786_v60, 1 }
 0x147   : > { %2572 = vmatmul.f32.gmra.mxu0 %v8738_v47  ;;  %2601 = vmatmul.f32.gmra.mxu1 %v8738_v47  ;;  %v1458_v0 = vsel %vm1426_vm7, %v9621_v42, 0.0  ;;  %vm2298_vm4 = vcmp.eq.s32.totalorder %v6930_v1, %v9257_v29  ;;  %v9857_v57 = vperm.slane %v9786_v60, 3  ;;  %vm1419_vm7 = vcmp.eq.s32.totalorder %v6930_v1, %v9757_v32  ;;  %v9879_v3 = vpop.f32.mrf.mxu2  ;;  %v9881_v11 = vpop.f32.mrf.mxu3 }
 0x148   : > { %2630 = vmatmul.f32.gmra.mxu2 %v8738_v47  ;;  %2659 = vmatmul.f32.gmra.mxu3 %v8738_v47  ;;  %v1575_v47 = vadd.f32 %v1574_v63, %v1568_v45  ;;  %v1450_v42 = vsel %vm1418_vm6, %v9506_v31, 0.0  ;;  %vm1428_vm15 = vcmp.eq.s32.totalorder %v7138_v25, %v9821_v4  ;;  %v1569_v27 = vmul.f32 %v1553_v54, %v1512_v36 }
 0x149   : > { %6287 = vmatpush.msk.msrb.mxu2 %vm2321_vm0, %v6888_v14  ;;  %6255 = vmatpush.msk.msrb.mxu0 %vm2319_vm5, %v6888_v14  ;;  %vm1420_vm0 = vcmp.eq.s32.totalorder %v6930_v1, %v9821_v4  ;;  %vm1427_vm5 = vcmp.eq.s32.totalorder %v7138_v25, %v9757_v32  ;;  %v1513_v31 = vadd.f32 %v1457_v43, %v1449_v62  ;;  %v1451_v50 = vsel %vm1419_vm7, %v9593_v58, 0.0 }
 0x14a   : > { %6271 = vmatpush.msk.msrb.mxu1 %vm2320_vm13, %v6888_v14  ;;  %6303 = vmatpush.msk.msrb.mxu3 %vm2322_vm9, %v6888_v14  ;;  %vm14625_vm13 = vcmp.eq.s32.totalorder %v7123_v24, %v9229_v10  ;;  %v1522_v30 = vadd.f32 %v1458_v0, %v1450_v42  ;;  %vm3100_vm9 = vcmp.eq.s32.totalorder %v6937_v5, %v9834_v52  ;;  %v1315_v37 = vpop.f32.mrf.mxu0  ;;  %v1344_v40 = vpop.f32.mrf.mxu1  ;;  %v1459_v58 = vsel %vm1427_vm5, %v9725_v35, 0.0 }
 0x14b   : > { %6288 = vmatpush.msk.msrb.mxu2 %vm14625_vm13, %v6888_v14  ;;  %6256 = vmatpush.msk.msrb.mxu0 %vm2311_vm14, %v6888_v14  ;;  %vm3098_vm6 = vcmp.eq.s32.totalorder %v6937_v5, %v9837_v38  ;;  %v9905_v46 = vadd.f32 %v1575_v47, %v1569_v27  ;;  %vm14627_vm14 = vcmp.eq.s32.totalorder %v7138_v25, %v9235_v2  ;;  %v1460_v10 = vsel %vm1428_vm15, %v9727_v28, 0.0 }
 0x14c   : > { %6272 = vmatpush.msk.msrb.mxu1 %vm2312_vm8, %v6888_v14  ;;  %6304 = vmatpush.msk.msrb.mxu3 %vm2314_vm12, %v6888_v14  ;;  %vm14626_vm8 = vcmp.eq.s32.totalorder %v7138_v25, %v9232_v41  ;;  %vm3101_vm12 = vcmp.eq.s32.totalorder %v6937_v5, %v9857_v57  ;;  %vm1433_vm13 = vcmp.eq.s32.totalorder %v7123_v24, %v9697_v61  ;;  %v9976_v41 = vld [vmem:[%s14569_s0] sm:$0xff]  ;;  %v1452_v35 = vsel %vm1420_vm0, %v9595_v26, 0.0 }
 0x14d   : > { %6289 = vmatpush.msk.msrb.mxu2 %vm2305_vm10, %v6888_v14  ;;  %6257 = vmatpush.msk.msrb.mxu0 %vm14626_vm8, %v6888_v14  ;;  %vm3090_vm10 = vcmp.eq.s32.totalorder %v6943_v7, %v9837_v38  ;;  %vm3091_vm8 = vcmp.eq.s32.totalorder %v6943_v7, %v9840_v39  ;;  %vm3084_vm7 = vcmp.eq.s32.totalorder %v6946_v8, %v9834_v52  ;;  %v1465_v2 = vsel %vm1433_vm13, %v9759_v55, 0.0 }
 0x14e   : > { %6273 = vmatpush.msk.msrb.mxu1 %vm14627_vm14, %v6888_v14  ;;  %6305 = vmatpush.msk.msrb.mxu3 %vm2306_vm2, %v6888_v14  ;;  %vm3093_vm2 = vcmp.eq.s32.totalorder %v6943_v7, %v9857_v57  ;;  %vm1434_vm14 = vcmp.eq.s32.totalorder %v7123_v24, %v9721_v33  ;;  %vm3075_vm5 = vcmp.eq.s32.totalorder %v6961_v13, %v9840_v39 }
 0x14f   : > { %6290 = vmatpush.msk.msrb.mxu2 %vm2297_vm11, %v6888_v14  ;;  %6258 = vmatpush.msk.msrb.mxu0 %vm2295_vm3, %v6888_v14  ;;  %vm3082_vm3 = vcmp.eq.s32.totalorder %v6946_v8, %v9837_v38  ;;  %vm3083_vm11 = vcmp.eq.s32.totalorder %v6946_v8, %v9840_v39  ;;  %vm3077_vm15 = vcmp.eq.s32.totalorder %v6961_v13, %v9857_v57  ;;  %v1466_v29 = vsel %vm1434_vm14, %v9761_v12, 0.0 }
 0x150   : > { %6274 = vmatpush.msk.msrb.mxu1 %vm2296_vm1, %v6888_v14  ;;  %6306 = vmatpush.msk.msrb.mxu3 %vm2298_vm4, %v6888_v14  ;;  %vm3068_vm1 = vcmp.eq.s32.totalorder %v6988_v15, %v9834_v52  ;;  %vm3066_vm4 = vcmp.eq.s32.totalorder %v6988_v15, %v9837_v38  ;;  %vm3067_vm13 = vcmp.eq.s32.totalorder %v6988_v15, %v9840_v39 }
 0x151   : > { %2679 = vmatmul.f32.vlgmr.msrb.gmra.mxu0 %v9976_v41  ;;  %2708 = vmatmul.f32.vlgmr.msrb.gmra.mxu1 %v9976_v41  ;;  %v1531_v28 = vadd.f32 %v1459_v58, %v1451_v50  ;;  %vm3060_vm0 = vcmp.eq.s32.totalorder %v7003_v16, %v9834_v52  ;;  %v1540_v26 = vadd.f32 %v1460_v10, %v1452_v35  ;;  %v1373_v55 = vpop.f32.mrf.mxu2  ;;  %v1402_v12 = vpop.f32.mrf.mxu3 }
 0x152   : > { %2737 = vmatmul.f32.vlgmr.msrb.gmra.mxu2 %v9976_v41  ;;  %2766 = vmatmul.f32.vlgmr.msrb.gmra.mxu3 %v9976_v41  ;;  %v1514_v54 = vadd.f32 %v1513_v31, %v1465_v2  ;;  %vm14629_vm14 = vcmp.eq.s32.totalorder %v6943_v7, %v9834_v52  ;;  %v1523_v49 = vadd.f32 %v1522_v30, %v1466_v29 }
 0x153   : > { %6343 = vmatpush.msk.msra.mxu2 %vm3100_vm9, %v6888_v14  ;;  %6311 = vmatpush.msk.msra.mxu0 %vm3098_vm6, %v6888_v14  ;;  %vm14628_vm9 = vcmp.eq.s32.totalorder %v6937_v5, %v9840_v39  ;;  %vm1435_vm6 = vcmp.eq.s32.totalorder %v7123_v24, %v9757_v32 }
 0x154   : > { %6327 = vmatpush.msk.msra.mxu1 %vm14628_vm9, %v6888_v14  ;;  %6359 = vmatpush.msk.msra.mxu3 %vm3101_vm12, %v6888_v14  ;;  %vm1441_vm12 = vcmp.eq.s32.totalorder %v7108_v23, %v9697_v61  ;;  %vm1442_vm9 = vcmp.eq.s32.totalorder %v7108_v23, %v9721_v33  ;;  %v10054_v44 = vpop.f32.mrf.mxu0  ;;  %v1467_v45 = vsel %vm1435_vm6, %v9879_v3, 0.0  ;;  %vm3050_vm6 = vcmp.eq.s32.totalorder %v7018_v17, %v9837_v38 }
 0x155   : > { %6344 = vmatpush.msk.msra.mxu2 %vm14629_vm14, %v6888_v14  ;;  %6312 = vmatpush.msk.msra.mxu0 %vm3090_vm10, %v6888_v14  ;;  %vm3058_vm10 = vcmp.eq.s32.totalorder %v7003_v16, %v9837_v38  ;;  %vm1436_vm14 = vcmp.eq.s32.totalorder %v7123_v24, %v9821_v4  ;;  %v1473_v61 = vsel %vm1441_vm12, %v1315_v37, 0.0  ;;  %v1474_v53 = vsel %vm1442_vm9, %v1344_v40, 0.0  ;;  %v10056_v33 = vpop.f32.mrf.mxu1 }
 0x156   : > { %6328 = vmatpush.msk.msra.mxu1 %vm3091_vm8, %v6888_v14  ;;  %6360 = vmatpush.msk.msra.mxu3 %vm3093_vm2, %v6888_v14  ;;  %vm3059_vm8 = vcmp.eq.s32.totalorder %v7003_v16, %v9840_v39  ;;  %v1515_v62 = vadd.f32 %v1514_v54, %v1473_v61  ;;  %v1524_v63 = vadd.f32 %v1523_v49, %v1474_v53  ;;  %v1468_v36 = vsel %vm1436_vm14, %v9881_v11, 0.0 }
 0x157   : > { %6345 = vmatpush.msk.msra.mxu2 %vm3084_vm7, %v6888_v14  ;;  %6313 = vmatpush.msk.msra.mxu0 %vm3082_vm3, %v6888_v14  ;;  %vm14630_vm2 = vcmp.eq.s32.totalorder %v6946_v8, %v9857_v57  ;;  %vm3061_vm7 = vcmp.eq.s32.totalorder %v7003_v16, %v9857_v57  ;;  %vm3052_vm3 = vcmp.eq.s32.totalorder %v7018_v17, %v9834_v52  ;;  %v1555_v49 = vperm.slane %v9617_v51, 5 }
 0x158   : > { %6329 = vmatpush.msk.msra.mxu1 %vm3083_vm11, %v6888_v14  ;;  %6361 = vmatpush.msk.msra.mxu3 %vm14630_vm2, %v6888_v14  ;;  %vm14631_vm12 = vcmp.eq.s32.totalorder %v6961_v13, %v9834_v52  ;;  %vm14632_vm11 = vcmp.eq.s32.totalorder %v6961_v13, %v9837_v38  ;;  %vm3051_vm9 = vcmp.eq.s32.totalorder %v7018_v17, %v9840_v39  ;;  %v1516_v43 = vrot.slane %v1515_v62, 4 }
 0x159   : > { %6346 = vmatpush.msk.msra.mxu2 %vm14631_vm12, %v6888_v14  ;;  %6314 = vmatpush.msk.msra.mxu0 %vm14632_vm11, %v6888_v14  ;;  %v1525_v0 = vrot.slane %v1524_v63, 4  ;;  %vm3053_vm2 = vcmp.eq.s32.totalorder %v7018_v17, %v9857_v57  ;;  %vm3044_vm12 = vcmp.eq.s32.totalorder %v7033_v18, %v9834_v52  ;;  %v1532_v47 = vadd.f32 %v1531_v28, %v1467_v45 }
 0x15a   : > { %6330 = vmatpush.msk.msra.mxu1 %vm3075_vm5, %v6888_v14  ;;  %6362 = vmatpush.msk.msra.mxu3 %vm3077_vm15, %v6888_v14  ;;  %v1517_v42 = vadd.f32 %v1516_v43, %v1515_v62  ;;  %vm1443_vm5 = vcmp.eq.s32.totalorder %v7108_v23, %v9757_v32  ;;  %vm3042_vm15 = vcmp.eq.s32.totalorder %v7033_v18, %v9837_v38  ;;  %v1556_v62 = vperm.slane %v9617_v51, 6 }
 0x15b   : > { %2682 = vmatmul.f32.gmra.mxu0 %v9557_v56  ;;  %2711 = vmatmul.f32.gmra.mxu1 %v9557_v56  ;;  %v1526_v3 = vadd.f32 %v1525_v0, %v1524_v63  ;;  %v1541_v11 = vadd.f32 %v1540_v26, %v1468_v36  ;;  %v1475_v27 = vsel %vm1443_vm5, %v1373_v55, 0.0  ;;  %vm1444_vm14 = vcmp.eq.s32.totalorder %v7108_v23, %v9821_v4  ;;  %v10143_v50 = vpop.f32.mrf.mxu2 }
 0x15c   : > { %2740 = vmatmul.f32.gmra.mxu2 %v9557_v56  ;;  %2769 = vmatmul.f32.gmra.mxu3 %v9557_v56  ;;  %v1518_v32 = vrot.slane %v1517_v42, 2  ;;  %v1533_v30 = vadd.f32 %v1532_v47, %v1475_v27  ;;  %v1476_v37 = vsel %vm1444_vm14, %v1402_v12, 0.0  ;;  %vm14633_vm11 = vcmp.eq.s32.totalorder %v6988_v15, %v9857_v57  ;;  %v10145_v58 = vpop.f32.mrf.mxu3 }
 0x15d   : > { %6347 = vmatpush.msk.msra.mxu2 %vm3068_vm1, %v6888_v14  ;;  %6315 = vmatpush.msk.msra.mxu0 %vm3066_vm4, %v6888_v14  ;;  %v1527_v31 = vrot.slane %v1526_v3, 2  ;;  %vm3043_vm1 = vcmp.eq.s32.totalorder %v7033_v18, %v9840_v39  ;;  %vm3045_vm4 = vcmp.eq.s32.totalorder %v7033_v18, %v9857_v57  ;;  %v1554_v4 = vperm.slane %v9617_v51, 4 }
 0x15e   : > { %6331 = vmatpush.msk.msra.mxu1 %vm3067_vm13, %v6888_v14  ;;  %6363 = vmatpush.msk.msra.mxu3 %vm14633_vm11, %v6888_v14  ;;  %v1542_v40 = vadd.f32 %v1541_v11, %v1476_v37  ;;  %vm3036_vm13 = vcmp.eq.s32.totalorder %v7048_v19, %v9834_v52  ;;  %v1519_v10 = vadd.f32 %v1518_v32, %v1517_v42  ;;  %v1534_v29 = vrot.slane %v1533_v30, 4  ;;  %v10171_v28 = vpop.f32.mrf.mxu0 }
 0x15f   : > { %6348 = vmatpush.msk.msra.mxu2 %vm3060_vm0, %v6888_v14  ;;  %6316 = vmatpush.msk.msra.mxu0 %vm3058_vm10, %v6888_v14  ;;  %v1528_v2 = vadd.f32 %v1527_v31, %v1526_v3  ;;  %vm3034_vm0 = vcmp.eq.s32.totalorder %v7048_v19, %v9837_v38  ;;  %vm3035_vm10 = vcmp.eq.s32.totalorder %v7048_v19, %v9840_v39  ;;  %v10173_v26 = vpop.f32.mrf.mxu1  ;;  %v10226_v47 = vshra.s32 %v7821_v48, 7 }
 0x160   : > { %6332 = vmatpush.msk.msra.mxu1 %vm3059_vm8, %v6888_v14  ;;  %6364 = vmatpush.msk.msra.mxu3 %vm3061_vm7, %v6888_v14  ;;  %vm3037_vm5 = vcmp.eq.s32.totalorder %v7048_v19, %v9857_v57  ;;  %v1543_v35 = vrot.slane %v1542_v40, 4  ;;  %vm3028_vm8 = vcmp.eq.s32.totalorder %v7063_v20, %v9834_v52  ;;  %v1520_v54 = vrot.slane %v1519_v10, 1 }
 0x161   : > { %6349 = vmatpush.msk.msra.mxu2 %vm3052_vm3, %v6888_v14  ;;  %6317 = vmatpush.msk.msra.mxu0 %vm3050_vm6, %v6888_v14  ;;  %v1529_v55 = vrot.slane %v1528_v2, 1  ;;  %v1535_v12 = vadd.f32 %v1534_v29, %v1533_v30  ;;  %vm3026_vm7 = vcmp.eq.s32.totalorder %v7063_v20, %v9837_v38  ;;  %vm3027_vm3 = vcmp.eq.s32.totalorder %v7063_v20, %v9840_v39 }
 0x162   : > { %6333 = vmatpush.msk.msra.mxu1 %vm3051_vm9, %v6888_v14  ;;  %6365 = vmatpush.msk.msra.mxu3 %vm3053_vm2, %v6888_v14  ;;  %v1544_v61 = vadd.f32 %v1543_v35, %v1542_v40  ;;  %vm3029_vm6 = vcmp.eq.s32.totalorder %v7063_v20, %v9857_v57  ;;  %vm3020_vm9 = vcmp.eq.s32.totalorder %v7078_v21, %v9834_v52  ;;  %v1557_v3 = vperm.slane %v9617_v51, 7 }
 0x163   : > { %6350 = vmatpush.msk.msra.mxu2 %vm3044_vm12, %v6888_v14  ;;  %6318 = vmatpush.msk.msra.mxu0 %vm3042_vm15, %v6888_v14  ;;  %v1521_v53 = vadd.f32 %v1520_v54, %v1519_v10  ;;  %v1536_v45 = vrot.slane %v1535_v12, 2  ;;  %vm3018_vm2 = vcmp.eq.s32.totalorder %v7078_v21, %v9837_v38  ;;  %vm3019_vm12 = vcmp.eq.s32.totalorder %v7078_v21, %v9840_v39 }
 0x164   : > { %6334 = vmatpush.msk.msra.mxu1 %vm3043_vm1, %v6888_v14  ;;  %6366 = vmatpush.msk.msra.mxu3 %vm3045_vm4, %v6888_v14  ;;  %v1545_v63 = vrot.slane %v1544_v61, 2  ;;  %v1530_v43 = vadd.f32 %v1529_v55, %v1528_v2  ;;  %vm3021_vm15 = vcmp.eq.s32.totalorder %v7078_v21, %v9857_v57  ;;  %vm3012_vm14 = vcmp.eq.s32.totalorder %v7093_v22, %v9834_v52 }
 0x165   : > { %2685 = vmatmul.f32.gmra.mxu0 %v9686_v9  ;;  %2714 = vmatmul.f32.gmra.mxu1 %v9686_v9  ;;  %v1570_v36 = vmul.f32 %v1554_v4, %v1521_v53  ;;  %v1537_v0 = vadd.f32 %v1536_v45, %v1535_v12  ;;  %vm3010_vm11 = vcmp.eq.s32.totalorder %v7093_v22, %v9837_v38  ;;  %v10277_v30 = vperm.slane %v10226_v47, 0 }
 0x166   : > { %2743 = vmatmul.f32.gmra.mxu2 %v9686_v9  ;;  %2772 = vmatmul.f32.gmra.mxu3 %v9686_v9  ;;  %v1546_v42 = vadd.f32 %v1545_v63, %v1544_v61  ;;  %vm3011_vm1 = vcmp.eq.s32.totalorder %v7093_v22, %v9840_v39  ;;  %vm3013_vm4 = vcmp.eq.s32.totalorder %v7093_v22, %v9857_v57  ;;  %v10264_v27 = vpop.f32.mrf.mxu3  ;;  %v10292_v4 = vperm.slane %v10226_v47, 1 }
 0x167   : > { %6351 = vmatpush.msk.msra.mxu2 %vm3036_vm13, %v6888_v14  ;;  %6319 = vmatpush.msk.msra.mxu0 %vm3034_vm0, %v6888_v14  ;;  %v1577_v48 = vadd.f32 %v9905_v46, %v1570_v36  ;;  %v1538_v11 = vrot.slane %v1537_v0, 1  ;;  %vm3004_vm13 = vcmp.eq.s32.totalorder %v7108_v23, %v9834_v52  ;;  %vm3002_vm0 = vcmp.eq.s32.totalorder %v7108_v23, %v9837_v38  ;;  %v10262_v46 = vpop.f32.mrf.mxu2 }
 0x168   : > { %6335 = vmatpush.msk.msra.mxu1 %vm3035_vm10, %v6888_v14  ;;  %6367 = vmatpush.msk.msra.mxu3 %vm3037_vm5, %v6888_v14  ;;  %v1547_v51 = vrot.slane %v1546_v42, 1  ;;  %v1571_v32 = vmul.f32 %v1555_v49, %v1530_v43  ;;  %vm3003_vm10 = vcmp.eq.s32.totalorder %v7108_v23, %v9840_v39  ;;  %vm3005_vm5 = vcmp.eq.s32.totalorder %v7108_v23, %v9857_v57  ;;  %v10294_v40 = vpop.f32.mrf.mxu0  ;;  %v10355_v49 = vld [vmem:[%s14569_s0 + $0x18] sm:$0xff] }
 0x169   : > { %6352 = vmatpush.msk.msra.mxu2 %vm3028_vm8, %v6888_v14  ;;  %6320 = vmatpush.msk.msra.mxu0 %vm3026_vm7, %v6888_v14  ;;  %v1539_v31 = vadd.f32 %v1538_v11, %v1537_v0  ;;  %vm2996_vm8 = vcmp.eq.s32.totalorder %v7123_v24, %v9834_v52  ;;  %v10296_v10 = vpop.f32.mrf.mxu1  ;;  %vm2994_vm7 = vcmp.eq.s32.totalorder %v7123_v24, %v9837_v38  ;;  %v10333_v55 = vperm.slane %v9786_v60, 6 }
 0x16a   : > { %6336 = vmatpush.msk.msra.mxu1 %vm3027_vm3, %v6888_v14  ;;  %6368 = vmatpush.msk.msra.mxu3 %vm3029_vm6, %v6888_v14  ;;  %v1548_v37 = vadd.f32 %v1547_v51, %v1546_v42  ;;  %v1578_v2 = vadd.f32 %v1577_v48, %v1571_v32  ;;  %vm2995_vm3 = vcmp.eq.s32.totalorder %v7123_v24, %v9840_v39  ;;  %v10350_v12 = vperm.slane %v9786_v60, 4 }
 0x16b   : > { %6353 = vmatpush.msk.msra.mxu2 %vm3020_vm9, %v6888_v14  ;;  %6321 = vmatpush.msk.msra.mxu0 %vm3018_vm2, %v6888_v14  ;;  %v1572_v29 = vmul.f32 %v1556_v62, %v1539_v31  ;;  %vm2997_vm6 = vcmp.eq.s32.totalorder %v7123_v24, %v9857_v57  ;;  %vm2988_vm9 = vcmp.eq.s32.totalorder %v7138_v25, %v9834_v52  ;;  %v10362_v53 = vperm.slane %v9786_v60, 5 }
 0x16c   : > { %6337 = vmatpush.msk.msra.mxu1 %vm3019_vm12, %v6888_v14  ;;  %6369 = vmatpush.msk.msra.mxu3 %vm3021_vm15, %v6888_v14  ;;  %v1573_v54 = vmul.f32 %v1557_v3, %v1548_v37  ;;  %vm2100_vm2 = vcmp.eq.s32.totalorder %v6930_v1, %v10277_v30  ;;  %vm2101_vm12 = vcmp.eq.s32.totalorder %v6930_v1, %v10292_v4  ;;  %v10365_v45 = vperm.slane %v9786_v60, 7 }
 0x16d   : > { %6354 = vmatpush.msk.msra.mxu2 %vm3012_vm14, %v6888_v14  ;;  %6322 = vmatpush.msk.msra.mxu0 %vm3010_vm11, %v6888_v14  ;;  %v1579_v35 = vadd.f32 %v1578_v2, %v1572_v29  ;;  %vm2986_vm15 = vcmp.eq.s32.totalorder %v7138_v25, %v9837_v38  ;;  %vm2987_vm14 = vcmp.eq.s32.totalorder %v7138_v25, %v9840_v39  ;;  %v10374_v62 = vperm.slane %v10226_v47, 2 }
 0x16e   : > { %6338 = vmatpush.msk.msra.mxu1 %vm3011_vm1, %v6888_v14  ;;  %6370 = vmatpush.msk.msra.mxu3 %vm3013_vm4, %v6888_v14  ;;  %vm2108_vm11 = vcmp.eq.s32.totalorder %v7138_v25, %v10277_v30  ;;  %v10392_v63 = vperm.slane %v10226_v47, 3  ;;  %vm2109_vm1 = vcmp.eq.s32.totalorder %v7138_v25, %v10292_v4  ;;  %vm3102_vm4 = vcmp.eq.s32.totalorder %v6937_v5, %v10350_v12 }
 0x16f   : > { %2688 = vmatmul.f32.gmra.mxu0 %v10355_v49  ;;  %2717 = vmatmul.f32.gmra.mxu1 %v10355_v49  ;;  %v1580_v61 = vadd.f32 %v1579_v35, %v1573_v54  ;;  %v10414_v36 = vpop.f32.mrf.mxu2  ;;  %v2140_v0 = vsel %vm2108_vm11, %v10171_v28, 0.0  ;;  %v2141_v28 = vsel %vm2109_vm1, %v10173_v26, 0.0  ;;  %v2133_v26 = vsel %vm2101_vm12, %v10056_v33, 0.0 }
 0x170   : > { %2746 = vmatmul.f32.gmra.mxu2 %v10355_v49  ;;  %2775 = vmatmul.f32.gmra.mxu3 %v10355_v49  ;;  %v10416_v43 = vpop.f32.mrf.mxu3  ;;  %vm14635_vm12 = vcmp.eq.s32.totalorder %v6930_v1, %v9834_v52  ;;  %v2173_v33 = vadd.f32 %v2141_v28, %v2133_v26  ;;  %vm14637_vm1 = vcmp.eq.s32.totalorder %v6930_v1, %v9840_v39 }
 0x171   : > { %6355 = vmatpush.msk.msra.mxu2 %vm3004_vm13, %v6888_v14  ;;  %6323 = vmatpush.msk.msra.mxu0 %vm3002_vm0, %v6888_v14  ;;  %v10387_v60 = vadd.f32 %v1580_v61, %v9199_v6  ;;  %v2132_v6 = vsel %vm2100_vm2, %v10054_v44, 0.0  ;;  %vm2981_vm13 = vcmp.eq.s32.totalorder %v6930_v1, %v9857_v57  ;;  %vm3104_vm0 = vcmp.eq.s32.totalorder %v6937_v5, %v10333_v55 }
 0x172   : > { %6339 = vmatpush.msk.msra.mxu1 %vm3003_vm10, %v6888_v14  ;;  %6371 = vmatpush.msk.msra.mxu3 %vm3005_vm5, %v6888_v14  ;;  %vm3103_vm10 = vcmp.eq.s32.totalorder %v6937_v5, %v10362_v53  ;;  %vm3105_vm5 = vcmp.eq.s32.totalorder %v6937_v5, %v10365_v45  ;;  %vm3094_vm2 = vcmp.eq.s32.totalorder %v6943_v7, %v10350_v12  ;;  %v10453_v42 = vpop.f32.mrf.mxu0 }
 0x173   : > { %6356 = vmatpush.msk.msra.mxu2 %vm2996_vm8, %v6888_v14  ;;  %v1582_v44 = vsub.f32 0.0, %v10387_v60  ;;  %6324 = vmatpush.msk.msra.mxu0 %vm2994_vm7, %v6888_v14  ;;  %vm3096_vm8 = vcmp.eq.s32.totalorder %v6943_v7, %v10333_v55  ;;  %vm2102_vm7 = vcmp.eq.s32.totalorder %v6930_v1, %v10374_v62  ;;  %v10455_v3 = vpop.f32.mrf.mxu1  ;;  %v2164_v11 = vadd.f32 %v2140_v0, %v2132_v6 }
 0x174   : > { %6340 = vmatpush.msk.msra.mxu1 %vm2995_vm3, %v6888_v14  ;;  %6372 = vmatpush.msk.msra.mxu3 %vm2997_vm6, %v6888_v14  ;;  %vm3081_vm3 = vcmp.eq.s32.totalorder %v6961_v13, %v10365_v45  ;;  %vm3072_vm11 = vcmp.eq.s32.totalorder %v6988_v15, %v10333_v55  ;;  %vm2111_vm6 = vcmp.eq.s32.totalorder %v7138_v25, %v10392_v63 }
 0x175   : > { %v1583_v48 = vmul.f32 1.442695, %v1582_v44  ;;  %6357 = vmatpush.msk.msra.mxu2 %vm2988_vm9, %v6888_v14  ;;  %6325 = vmatpush.msk.msra.mxu0 %vm2986_vm15, %v6888_v14  ;;  %vm14634_vm9 = vcmp.eq.s32.totalorder %v7138_v25, %v9857_v57  ;;  %vm3078_vm15 = vcmp.eq.s32.totalorder %v6961_v13, %v10350_v12  ;;  %v2134_v57 = vsel %vm2102_vm7, %v10143_v50, 0.0 }
 0x176   : > { %6341 = vmatpush.msk.msra.mxu1 %vm2987_vm14, %v6888_v14  ;;  %6373 = vmatpush.msk.msra.mxu3 %vm14634_vm9, %v6888_v14  ;;  %vm14636_vm14 = vcmp.eq.s32.totalorder %v6930_v1, %v9837_v38  ;;  %vm2117_vm9 = vcmp.eq.s32.totalorder %v7123_v24, %v10292_v4  ;;  %v2143_v50 = vsel %vm2111_vm6, %v10264_v27, 0.0  ;;  %vm14640_vm6 = vcmp.eq.s32.totalorder %v6930_v1, %v10392_v63 }
 0x177   : > { %6848 = vpow2.f32 %v1583_v48  ;;  %6358 = vmatpush.msk.msra.mxu2 %vm14635_vm12, %v6888_v14  ;;  %6326 = vmatpush.msk.msra.mxu0 %vm14636_vm14, %v6888_v14  ;;  %vm2110_vm12 = vcmp.eq.s32.totalorder %v7138_v25, %v10374_v62  ;;  %vm2116_vm14 = vcmp.eq.s32.totalorder %v7123_v24, %v10277_v30  ;;  %v2149_v39 = vsel %vm2117_vm9, %v10296_v10, 0.0 }
 0x178   : > { %6342 = vmatpush.msk.msra.mxu1 %vm14637_vm1, %v6888_v14  ;;  %6374 = vmatpush.msk.msra.mxu3 %vm2981_vm13, %v6888_v14  ;;  %vm3080_vm1 = vcmp.eq.s32.totalorder %v6961_v13, %v10333_v55  ;;  %vm3070_vm13 = vcmp.eq.s32.totalorder %v6988_v15, %v10350_v12  ;;  %v2142_v52 = vsel %vm2110_vm12, %v10262_v46, 0.0  ;;  %v2148_v38 = vsel %vm2116_vm14, %v10294_v40, 0.0 }
 0x179   : > { %3250 = vmatmul.f32.vlgmr.msra.gmra.mxu0 %v9976_v41  ;;  %3279 = vmatmul.f32.vlgmr.msra.gmra.mxu1 %v9976_v41  ;;  %vm3064_vm9 = vcmp.eq.s32.totalorder %v7003_v16, %v10333_v55  ;;  %v10569_v51 = vpop.f32.mrf.mxu2  ;;  %v2182_v27 = vadd.f32 %v2142_v52, %v2134_v57  ;;  %v2165_v31 = vadd.f32 %v2164_v11, %v2148_v38  ;;  %v2135_v2 = vsel %vm14640_vm6, %v10145_v58, 0.0  ;;  %v6045_v38 = vld [vmem:[%s8432_s4 + $0x2] ss:$8 sm:$0xf] }
 0x17a   : > { %3308 = vmatmul.f32.vlgmr.msra.gmra.mxu2 %v9976_v41  ;;  %3337 = vmatmul.f32.vlgmr.msra.gmra.mxu3 %v9976_v41  ;;  %v10571_v46 = vpop.f32.mrf.mxu3  ;;  %v2174_v37 = vadd.f32 %v2173_v33, %v2149_v39  ;;  %vm14641_vm12 = vcmp.eq.s32.totalorder %v6946_v8, %v10333_v55  ;;  %vm14642_vm14 = vcmp.eq.s32.totalorder %v6946_v8, %v10350_v12  ;;  %v6046_v39 = vld [vmem:[%s8432_s4 + $0x2] ss:$8 sm:$0xf0] }
 0x17b   : > { %6407 = vmatpush.msk.msrb.mxu2 %vm3104_vm0, %v6888_v14  ;;  %6375 = vmatpush.msk.msrb.mxu0 %vm3102_vm4, %v6888_v14  ;;  %vm3071_vm4 = vcmp.eq.s32.totalorder %v6988_v15, %v10362_v53  ;;  %vm3073_vm0 = vcmp.eq.s32.totalorder %v6988_v15, %v10365_v45  ;;  %vm2125_vm7 = vcmp.eq.s32.totalorder %v7108_v23, %v10292_v4 }
 0x17c   : > { %6391 = vmatpush.msk.msrb.mxu1 %vm3103_vm10, %v6888_v14  ;;  %6423 = vmatpush.msk.msrb.mxu3 %vm3105_vm5, %v6888_v14  ;;  %vm3062_vm10 = vcmp.eq.s32.totalorder %v7003_v16, %v10350_v12  ;;  %vm3063_vm5 = vcmp.eq.s32.totalorder %v7003_v16, %v10362_v53  ;;  %v10600_v40 = vpop.f32.mrf.mxu0  ;;  %vm14643_vm6 = vcmp.eq.s32.totalorder %v6946_v8, %v10362_v53 }
 0x17d   : > { %v6849_v32 = vpop.eup %6848  ;;  %6408 = vmatpush.msk.msrb.mxu2 %vm3096_vm8, %v6888_v14  ;;  %6376 = vmatpush.msk.msrb.mxu0 %vm3094_vm2, %v6888_v14  ;;  %vm14638_vm8 = vcmp.eq.s32.totalorder %v6943_v7, %v10362_v53  ;;  %vm14639_vm2 = vcmp.eq.s32.totalorder %v6943_v7, %v10365_v45  ;;  %v10602_v10 = vpop.f32.mrf.mxu1  ;;  %v2191_v58 = vadd.f32 %v2143_v50, %v2135_v2 }
 0x17e   : > { %1585 = vst [vmem:[%s9355_s15 + $0x1] sm:$0x1] %v6849_v32  ;;  %6392 = vmatpush.msk.msrb.mxu1 %vm14638_vm8, %v6888_v14  ;;  %6424 = vmatpush.msk.msrb.mxu3 %vm14639_vm2, %v6888_v14  ;;  %vm2118_vm8 = vcmp.eq.s32.totalorder %v7123_v24, %v10374_v62  ;;  %vm2124_vm2 = vcmp.eq.s32.totalorder %v7108_v23, %v10277_v30  ;;  %v2157_v30 = vsel %vm2125_vm7, %v10455_v3, 0.0 }
 0x17f   : > { %6409 = vmatpush.msk.msrb.mxu2 %vm14641_vm12, %v6888_v14  ;;  %6377 = vmatpush.msk.msrb.mxu0 %vm14642_vm14, %v6888_v14  ;;  %vm14644_vm12 = vcmp.eq.s32.totalorder %v6946_v8, %v10365_v45  ;;  %vm2119_vm14 = vcmp.eq.s32.totalorder %v7123_v24, %v10392_v63  ;;  %v2156_v29 = vsel %vm2124_vm2, %v10453_v42, 0.0  ;;  %v2175_v35 = vadd.f32 %v2174_v37, %v2157_v30  ;;  %v6439_v30 = vld [vmem:[%s6928_s18 + $0x5] ss:$8 sm:$0xf] }
 0x180   : > { %6393 = vmatpush.msk.msrb.mxu1 %vm14643_vm6, %v6888_v14  ;;  %6425 = vmatpush.msk.msrb.mxu3 %vm14644_vm12, %v6888_v14  ;;  %vm3056_vm6 = vcmp.eq.s32.totalorder %v7018_v17, %v10333_v55  ;;  %v2166_v4 = vadd.f32 %v2165_v31, %v2156_v29  ;;  %vm14645_vm2 = vcmp.eq.s32.totalorder %v6961_v13, %v10362_v53  ;;  %v2150_v54 = vsel %vm2118_vm8, %v10414_v36, 0.0 }
 0x181   : > { %6410 = vmatpush.msk.msrb.mxu2 %vm3080_vm1, %v6888_v14  ;;  %6378 = vmatpush.msk.msrb.mxu0 %vm3078_vm15, %v6888_v14  ;;  %vm3054_vm1 = vcmp.eq.s32.totalorder %v7018_v17, %v10350_v12  ;;  %vm3055_vm15 = vcmp.eq.s32.totalorder %v7018_v17, %v10362_v53  ;;  %vm3057_vm7 = vcmp.eq.s32.totalorder %v7018_v17, %v10365_v45  ;;  %v2151_v61 = vsel %vm2119_vm14, %v10416_v43, 0.0 }
 0x182   : > { %6394 = vmatpush.msk.msrb.mxu1 %vm14645_vm2, %v6888_v14  ;;  %6426 = vmatpush.msk.msrb.mxu3 %vm3081_vm3, %v6888_v14  ;;  %vm3048_vm3 = vcmp.eq.s32.totalorder %v7033_v18, %v10333_v55  ;;  %v2167_v6 = vrot.slane %v2166_v4, 4  ;;  %v2176_v44 = vrot.slane %v2175_v35, 4  ;;  %vm3046_vm8 = vcmp.eq.s32.totalorder %v7033_v18, %v10350_v12 }
 0x183   : > { %3253 = vmatmul.f32.gmra.mxu0 %v9557_v56  ;;  %3282 = vmatmul.f32.gmra.mxu1 %v9557_v56  ;;  %vm3047_vm12 = vcmp.eq.s32.totalorder %v7033_v18, %v10362_v53  ;;  %vm3049_vm2 = vcmp.eq.s32.totalorder %v7033_v18, %v10365_v45  ;;  %v2192_v0 = vadd.f32 %v2191_v58, %v2151_v61  ;;  %v10698_v28 = vpop.f32.mrf.mxu2 }
 0x184   : > { %3311 = vmatmul.f32.gmra.mxu2 %v9557_v56  ;;  %3340 = vmatmul.f32.gmra.mxu3 %v9557_v56  ;;  %v2183_v56 = vadd.f32 %v2182_v27, %v2150_v54  ;;  %v2168_v36 = vadd.f32 %v2167_v6, %v2166_v4  ;;  %v2177_v43 = vadd.f32 %v2176_v44, %v2175_v35  ;;  %v10700_v42 = vpop.f32.mrf.mxu3  ;;  %v6440_v54 = vld [vmem:[%s6928_s18 + $0x5] ss:$8 sm:$0xf0] }
 0x185   : > { %6411 = vmatpush.msk.msrb.mxu2 %vm3072_vm11, %v6888_v14  ;;  %6379 = vmatpush.msk.msrb.mxu0 %vm3070_vm13, %v6888_v14  ;;  %vm2126_vm11 = vcmp.eq.s32.totalorder %v7108_v23, %v10374_v62  ;;  %vm2127_vm13 = vcmp.eq.s32.totalorder %v7108_v23, %v10392_v63  ;;  %vm3032_vm14 = vcmp.eq.s32.totalorder %v7063_v20, %v10333_v55 }
 0x186   : > { %6395 = vmatpush.msk.msrb.mxu1 %vm3071_vm4, %v6888_v14  ;;  %6427 = vmatpush.msk.msrb.mxu3 %vm3073_vm0, %v6888_v14  ;;  %v2169_v3 = vrot.slane %v2168_v36, 2  ;;  %v2178_v62 = vrot.slane %v2177_v43, 2  ;;  %v2158_v63 = vsel %vm2126_vm11, %v10569_v51, 0.0  ;;  %v2159_v48 = vsel %vm2127_vm13, %v10571_v46, 0.0 }
 0x187   : > { %6412 = vmatpush.msk.msrb.mxu2 %vm3064_vm9, %v6888_v14  ;;  %6380 = vmatpush.msk.msrb.mxu0 %vm3062_vm10, %v6888_v14  ;;  %vm14646_vm4 = vcmp.eq.s32.totalorder %v7003_v16, %v10365_v45  ;;  %vm3040_vm0 = vcmp.eq.s32.totalorder %v7048_v19, %v10333_v55  ;;  %v2184_v26 = vadd.f32 %v2183_v56, %v2158_v63  ;;  %v10722_v33 = vpop.f32.mrf.mxu0  ;;  %v10860_v63 = vperm.slane %v10226_v47, 5 }
 0x188   : > { %6396 = vmatpush.msk.msrb.mxu1 %vm3063_vm5, %v6888_v14  ;;  %6428 = vmatpush.msk.msrb.mxu3 %vm14646_vm4, %v6888_v14  ;;  %v2193_v11 = vadd.f32 %v2192_v0, %v2159_v48  ;;  %v10724_v52 = vpop.f32.mrf.mxu1  ;;  %vm3038_vm9 = vcmp.eq.s32.totalorder %v7048_v19, %v10350_v12  ;;  %vm3039_vm10 = vcmp.eq.s32.totalorder %v7048_v19, %v10362_v53 }
 0x189   : > { %6413 = vmatpush.msk.msrb.mxu2 %vm3056_vm6, %v6888_v14  ;;  %6381 = vmatpush.msk.msrb.mxu0 %vm3054_vm1, %v6888_v14  ;;  %vm3041_vm5 = vcmp.eq.s32.totalorder %v7048_v19, %v10365_v45  ;;  %v2170_v57 = vadd.f32 %v2169_v3, %v2168_v36  ;;  %v2179_v51 = vadd.f32 %v2178_v62, %v2177_v43  ;;  %v2185_v46 = vrot.slane %v2184_v26, 4 }
 0x18a   : > { %6397 = vmatpush.msk.msrb.mxu1 %vm3055_vm15, %v6888_v14  ;;  %6429 = vmatpush.msk.msrb.mxu3 %vm3057_vm7, %v6888_v14  ;;  %v2194_v32 = vrot.slane %v2193_v11, 4  ;;  %vm3030_vm6 = vcmp.eq.s32.totalorder %v7063_v20, %v10350_v12  ;;  %vm3031_vm1 = vcmp.eq.s32.totalorder %v7063_v20, %v10362_v53  ;;  %v10772_v50 = vor.u32 %v6046_v39, %v6045_v38 }
 0x18b   : > { %6414 = vmatpush.msk.msrb.mxu2 %vm3048_vm3, %v6888_v14  ;;  %6382 = vmatpush.msk.msrb.mxu0 %vm3046_vm8, %v6888_v14  ;;  %v2186_v27 = vadd.f32 %v2185_v46, %v2184_v26  ;;  %vm3033_vm15 = vcmp.eq.s32.totalorder %v7063_v20, %v10365_v45  ;;  %vm3024_vm7 = vcmp.eq.s32.totalorder %v7078_v21, %v10333_v55  ;;  %v2171_v37 = vrot.slane %v2170_v57, 1 }
 0x18c   : > { %6398 = vmatpush.msk.msrb.mxu1 %vm3047_vm12, %v6888_v14  ;;  %6430 = vmatpush.msk.msrb.mxu3 %vm3049_vm2, %v6888_v14  ;;  %v2195_v31 = vadd.f32 %v2194_v32, %v2193_v11  ;;  %vm3022_vm3 = vcmp.eq.s32.totalorder %v7078_v21, %v10350_v12  ;;  %v2180_v2 = vrot.slane %v2179_v51, 1  ;;  %vm3023_vm8 = vcmp.eq.s32.totalorder %v7078_v21, %v10362_v53 }
 0x18d   : > { %3256 = vmatmul.f32.gmra.mxu0 %v9686_v9  ;;  %3285 = vmatmul.f32.gmra.mxu1 %v9686_v9  ;;  %v2187_v58 = vrot.slane %v2186_v27, 2  ;;  %vm3025_vm12 = vcmp.eq.s32.totalorder %v7078_v21, %v10365_v45  ;;  %vm3016_vm2 = vcmp.eq.s32.totalorder %v7093_v22, %v10333_v55  ;;  %v2237_v4 = vperm.slane %v10772_v50, 0 }
 0x18e   : > { %3314 = vmatmul.f32.gmra.mxu2 %v9686_v9  ;;  %3343 = vmatmul.f32.gmra.mxu3 %v9686_v9  ;;  %v2196_v29 = vrot.slane %v2195_v31, 2  ;;  %v10799_v9 = vperm.slane %v10226_v47, 4  ;;  %vm3014_vm11 = vcmp.eq.s32.totalorder %v7093_v22, %v10350_v12  ;;  %vm3015_vm13 = vcmp.eq.s32.totalorder %v7093_v22, %v10362_v53  ;;  %v10816_v61 = vpop.f32.mrf.mxu2 }
 0x18f   : > { %6415 = vmatpush.msk.msrb.mxu2 %vm3040_vm0, %v6888_v14  ;;  %6383 = vmatpush.msk.msrb.mxu0 %vm3038_vm9, %v6888_v14  ;;  %v2188_v35 = vadd.f32 %v2187_v58, %v2186_v27  ;;  %v10818_v6 = vpop.f32.mrf.mxu3  ;;  %v2238_v44 = vperm.slane %v10772_v50, 1  ;;  %vm3017_vm4 = vcmp.eq.s32.totalorder %v7093_v22, %v10365_v45  ;;  %vm3008_vm0 = vcmp.eq.s32.totalorder %v7108_v23, %v10333_v55 }
 0x190   : > { %6399 = vmatpush.msk.msrb.mxu1 %vm3039_vm10, %v6888_v14  ;;  %6431 = vmatpush.msk.msrb.mxu3 %vm3041_vm5, %v6888_v14  ;;  %vm3006_vm9 = vcmp.eq.s32.totalorder %v7108_v23, %v10350_v12  ;;  %v2172_v56 = vadd.f32 %v2171_v37, %v2170_v57  ;;  %v2181_v36 = vadd.f32 %v2180_v2, %v2179_v51  ;;  %v2239_v11 = vperm.slane %v10772_v50, 2 }
 0x191   : > { %6416 = vmatpush.msk.msrb.mxu2 %vm3032_vm14, %v6888_v14  ;;  %6384 = vmatpush.msk.msrb.mxu0 %vm3030_vm6, %v6888_v14  ;;  %v2189_v43 = vrot.slane %v2188_v35, 1  ;;  %v2197_v0 = vadd.f32 %v2196_v29, %v2195_v31  ;;  %v10843_v3 = vpop.f32.mrf.mxu0  ;;  %vm3007_vm10 = vcmp.eq.s32.totalorder %v7108_v23, %v10362_v53  ;;  %vm3009_vm5 = vcmp.eq.s32.totalorder %v7108_v23, %v10365_v45 }
 0x192   : > { %6400 = vmatpush.msk.msrb.mxu1 %vm3031_vm1, %v6888_v14  ;;  %6432 = vmatpush.msk.msrb.mxu3 %vm3033_vm15, %v6888_v14  ;;  %v10845_v62 = vpop.f32.mrf.mxu1  ;;  %v10862_v48 = vor.u32 %v6440_v54, %v6439_v30  ;;  %vm3000_vm14 = vcmp.eq.s32.totalorder %v7123_v24, %v10333_v55  ;;  %vm2998_vm6 = vcmp.eq.s32.totalorder %v7123_v24, %v10350_v12  ;;  %v10919_v46 = vperm.slane %v10226_v47, 6 }
 0x193   : > { %6417 = vmatpush.msk.msrb.mxu2 %vm3024_vm7, %v6888_v14  ;;  %6385 = vmatpush.msk.msrb.mxu0 %vm3022_vm3, %v6888_v14  ;;  %vm2999_vm1 = vcmp.eq.s32.totalorder %v7123_v24, %v10362_v53  ;;  %v2190_v26 = vadd.f32 %v2189_v43, %v2188_v35  ;;  %vm3001_vm15 = vcmp.eq.s32.totalorder %v7123_v24, %v10365_v45  ;;  %v2198_v57 = vrot.slane %v2197_v0, 1 }
 0x194   : > { %6401 = vmatpush.msk.msrb.mxu1 %vm3023_vm8, %v6888_v14  ;;  %6433 = vmatpush.msk.msrb.mxu3 %vm3025_vm12, %v6888_v14  ;;  %vm2992_vm7 = vcmp.eq.s32.totalorder %v7138_v25, %v10333_v55  ;;  %v2253_v38 = vmul.f32 %v2237_v4, %v2172_v56  ;;  %v2254_v39 = vmul.f32 %v2238_v44, %v2181_v36  ;;  %v10910_v51 = vand.u32 127, %v10862_v48 }
 0x195   : > { %6418 = vmatpush.msk.msrb.mxu2 %vm3016_vm2, %v6888_v14  ;;  %6386 = vmatpush.msk.msrb.mxu0 %vm3014_vm11, %v6888_v14  ;;  %vm2104_vm3 = vcmp.eq.s32.totalorder %v6930_v1, %v10799_v9  ;;  %vm2105_vm8 = vcmp.eq.s32.totalorder %v6930_v1, %v10860_v63  ;;  %vm2990_vm12 = vcmp.eq.s32.totalorder %v7138_v25, %v10350_v12  ;;  %v10934_v27 = vperm.slane %v10226_v47, 7 }
 0x196   : > { %6402 = vmatpush.msk.msrb.mxu1 %vm3015_vm13, %v6888_v14  ;;  %6434 = vmatpush.msk.msrb.mxu3 %vm3017_vm4, %v6888_v14  ;;  %vm2991_vm2 = vcmp.eq.s32.totalorder %v7138_v25, %v10362_v53  ;;  %vm2112_vm4 = vcmp.eq.s32.totalorder %v7138_v25, %v10799_v9  ;;  %v2255_v32 = vmul.f32 %v2239_v11, %v2190_v26  ;;  %v2240_v2 = vperm.slane %v10772_v50, 3 }
 0x197   : > { %3259 = vmatmul.f32.gmra.mxu0 %v10355_v49  ;;  %3288 = vmatmul.f32.gmra.mxu1 %v10355_v49  ;;  %vm2982_vm13 = vcmp.eq.s32.totalorder %v6930_v1, %v10350_v12  ;;  %vm2113_vm11 = vcmp.eq.s32.totalorder %v7138_v25, %v10860_v63  ;;  %v2261_v31 = vadd.f32 %v2254_v39, %v2253_v38  ;;  %v10964_v29 = vperm.slane %v10910_v51, 2 }
 0x198   : > { %3317 = vmatmul.f32.gmra.mxu2 %v10355_v49  ;;  %3346 = vmatmul.f32.gmra.mxu3 %v10355_v49  ;;  %v2199_v37 = vadd.f32 %v2198_v57, %v2197_v0  ;;  %v10949_v47 = vpop.f32.mrf.mxu2  ;;  %v10967_v30 = vperm.slane %v10910_v51, 0  ;;  %v2144_v4 = vsel %vm2112_vm4, %v10722_v33, 0.0  ;;  %v10982_v35 = vperm.slane %v10910_v51, 1  ;;  %v11214_v57 = vld [vmem:[%s14569_s0 + $0x8] sm:$0xff] }
 0x199   : > { %6419 = vmatpush.msk.msrb.mxu2 %vm3008_vm0, %v6888_v14  ;;  %6387 = vmatpush.msk.msrb.mxu0 %vm3006_vm9, %v6888_v14  ;;  %vm2983_vm0 = vcmp.eq.s32.totalorder %v6930_v1, %v10362_v53  ;;  %v10951_v58 = vpop.f32.mrf.mxu3  ;;  %vm2985_vm9 = vcmp.eq.s32.totalorder %v6930_v1, %v10365_v45  ;;  %v10985_v54 = vperm.slane %v10910_v51, 3  ;;  %v2145_v33 = vsel %vm2113_vm11, %v10724_v52, 0.0 }
 0x19a   : > { %6403 = vmatpush.msk.msrb.mxu1 %vm3007_vm10, %v6888_v14  ;;  %6435 = vmatpush.msk.msrb.mxu3 %vm3009_vm5, %v6888_v14  ;;  %vm2106_vm10 = vcmp.eq.s32.totalorder %v6930_v1, %v10919_v46  ;;  %v2262_v36 = vadd.f32 %v2261_v31, %v2255_v32  ;;  %v2136_v43 = vsel %vm2104_vm3, %v10600_v40, 0.0  ;;  %vm2107_vm5 = vcmp.eq.s32.totalorder %v6930_v1, %v10934_v27 }
 0x19b   : > { %6420 = vmatpush.msk.msrb.mxu2 %vm3000_vm14, %v6888_v14  ;;  %6388 = vmatpush.msk.msrb.mxu0 %vm2998_vm6, %v6888_v14  ;;  %v10993_v44 = vpop.f32.mrf.mxu0  ;;  %vm2114_vm14 = vcmp.eq.s32.totalorder %v7138_v25, %v10919_v46  ;;  %v2256_v52 = vmul.f32 %v2240_v2, %v2199_v37  ;;  %v2137_v0 = vsel %vm2105_vm8, %v10602_v10, 0.0  ;;  %vm14647_vm6 = vcmp.eq.s32.totalorder %v7138_v25, %v10365_v45 }
 0x19c   : > { %6404 = vmatpush.msk.msrb.mxu1 %vm2999_vm1, %v6888_v14  ;;  %6436 = vmatpush.msk.msrb.mxu3 %vm3001_vm15, %v6888_v14  ;;  %v10995_v56 = vpop.f32.mrf.mxu1  ;;  %v11025_v40 = vadd.f32 %v2144_v4, %v2136_v43  ;;  %vm2115_vm1 = vcmp.eq.s32.totalorder %v7138_v25, %v10934_v27  ;;  %vm14648_vm15 = vcmp.eq.s32.totalorder %v6930_v1, %v10333_v55  ;;  %v2138_v12 = vsel %vm2106_vm10, %v10698_v28, 0.0 }
 0x19d   : > { %6421 = vmatpush.msk.msrb.mxu2 %vm2992_vm7, %v6888_v14  ;;  %6389 = vmatpush.msk.msrb.mxu0 %vm2990_vm12, %v6888_v14  ;;  %vm3787_vm7 = vcmp.eq.s32.totalorder %v6937_v5, %v10964_v29  ;;  %vm3785_vm3 = vcmp.eq.s32.totalorder %v6937_v5, %v10967_v30  ;;  %v11041_v10 = vadd.f32 %v2145_v33, %v2137_v0  ;;  %v2147_v53 = vsel %vm2115_vm1, %v10818_v6, 0.0 }
 0x19e   : > { %6405 = vmatpush.msk.msrb.mxu1 %vm2991_vm2, %v6888_v14  ;;  %6437 = vmatpush.msk.msrb.mxu3 %vm14647_vm6, %v6888_v14  ;;  %vm3786_vm8 = vcmp.eq.s32.totalorder %v6937_v5, %v10982_v35  ;;  %vm3788_vm12 = vcmp.eq.s32.totalorder %v6937_v5, %v10985_v54  ;;  %vm3779_vm2 = vcmp.eq.s32.totalorder %v6943_v7, %v10964_v29 }
 0x19f   : > { %6422 = vmatpush.msk.msrb.mxu2 %vm14648_vm15, %v6888_v14  ;;  %6390 = vmatpush.msk.msrb.mxu0 %vm2982_vm13, %v6888_v14  ;;  %v11057_v55 = vadd.f32 %v2262_v36, %v2256_v52  ;;  %vm3777_vm11 = vcmp.eq.s32.totalorder %v6943_v7, %v10967_v30  ;;  %vm3778_vm13 = vcmp.eq.s32.totalorder %v6943_v7, %v10982_v35  ;;  %v2241_v36 = vperm.slane %v10772_v50, 4 }
 0x1a0   : > { %6406 = vmatpush.msk.msrb.mxu1 %vm2983_vm0, %v6888_v14  ;;  %6438 = vmatpush.msk.msrb.mxu3 %vm2985_vm9, %v6888_v14  ;;  %vm3780_vm4 = vcmp.eq.s32.totalorder %v6943_v7, %v10985_v54  ;;  %vm3771_vm0 = vcmp.eq.s32.totalorder %v6946_v8, %v10964_v29  ;;  %vm3769_vm9 = vcmp.eq.s32.totalorder %v6946_v8, %v10967_v30 }
 0x1a1   : > { %3366 = vmatmul.f32.vlgmr.msrb.gmra.mxu0 %v9976_v41  ;;  %3395 = vmatmul.f32.vlgmr.msrb.gmra.mxu1 %v9976_v41  ;;  %vm3770_vm10 = vcmp.eq.s32.totalorder %v6946_v8, %v10982_v35  ;;  %vm3772_vm6 = vcmp.eq.s32.totalorder %v6946_v8, %v10985_v54  ;;  %vm2120_vm15 = vcmp.eq.s32.totalorder %v7123_v24, %v10799_v9 }
 0x1a2   : > { %3424 = vmatmul.f32.vlgmr.msrb.gmra.mxu2 %v9976_v41  ;;  %3453 = vmatmul.f32.vlgmr.msrb.gmra.mxu3 %v9976_v41  ;;  %v2146_v41 = vsel %vm2114_vm14, %v10816_v61, 0.0  ;;  %vm2121_vm14 = vcmp.eq.s32.totalorder %v7123_v24, %v10860_v63  ;;  %v11113_v45 = vpop.f32.mrf.mxu2  ;;  %v2139_v61 = vsel %vm2107_vm5, %v10700_v42, 0.0  ;;  %vm3762_vm1 = vcmp.eq.s32.totalorder %v6961_v13, %v10982_v35 }
 0x1a3   : > { %6475 = vmatpush.msk.msra.mxu2 %vm3787_vm7, %v6888_v14  ;;  %6443 = vmatpush.msk.msra.mxu0 %vm3785_vm3, %v6888_v14  ;;  %vm3763_vm7 = vcmp.eq.s32.totalorder %v6961_v13, %v10964_v29  ;;  %vm3761_vm3 = vcmp.eq.s32.totalorder %v6961_v13, %v10967_v30  ;;  %v11115_v28 = vpop.f32.mrf.mxu3  ;;  %vm3753_vm5 = vcmp.eq.s32.totalorder %v6988_v15, %v10967_v30  ;;  %v2152_v42 = vsel %vm2120_vm15, %v10843_v3, 0.0 }
 0x1a4   : > { %6459 = vmatpush.msk.msra.mxu1 %vm3786_vm8, %v6888_v14  ;;  %6491 = vmatpush.msk.msra.mxu3 %vm3788_vm12, %v6888_v14  ;;  %vm3764_vm8 = vcmp.eq.s32.totalorder %v6961_v13, %v10985_v54  ;;  %vm3755_vm12 = vcmp.eq.s32.totalorder %v6988_v15, %v10964_v29  ;;  %v2218_v11 = vadd.f32 %v2146_v41, %v2138_v12  ;;  %v2153_v3 = vsel %vm2121_vm14, %v10845_v62, 0.0 }
 0x1a5   : > { %6476 = vmatpush.msk.msra.mxu2 %vm3779_vm2, %v6888_v14  ;;  %6444 = vmatpush.msk.msra.mxu0 %vm3777_vm11, %v6888_v14  ;;  %vm3754_vm2 = vcmp.eq.s32.totalorder %v6988_v15, %v10982_v35  ;;  %vm3756_vm11 = vcmp.eq.s32.totalorder %v6988_v15, %v10985_v54  ;;  %v11153_v6 = vpop.f32.mrf.mxu0  ;;  %v2227_v38 = vadd.f32 %v2147_v53, %v2139_v61 }
 0x1a6   : > { %6460 = vmatpush.msk.msra.mxu1 %vm3778_vm13, %v6888_v14  ;;  %6492 = vmatpush.msk.msra.mxu3 %vm3780_vm4, %v6888_v14  ;;  %v11155_v26 = vpop.f32.mrf.mxu1  ;;  %vm3747_vm13 = vcmp.eq.s32.totalorder %v7003_v16, %v10964_v29  ;;  %vm3745_vm4 = vcmp.eq.s32.totalorder %v7003_v16, %v10967_v30  ;;  %v2201_v62 = vadd.f32 %v11025_v40, %v2152_v42 }
 0x1a7   : > { %6477 = vmatpush.msk.msra.mxu2 %vm3771_vm0, %v6888_v14  ;;  %6445 = vmatpush.msk.msra.mxu0 %vm3769_vm9, %v6888_v14  ;;  %vm3746_vm0 = vcmp.eq.s32.totalorder %v7003_v16, %v10982_v35  ;;  %vm3748_vm9 = vcmp.eq.s32.totalorder %v7003_v16, %v10985_v54  ;;  %v2210_v39 = vadd.f32 %v11041_v10, %v2153_v3  ;;  %v11348_v3 = vshra.s32 %v8577_v59, 7 }
 0x1a8   : > { %6461 = vmatpush.msk.msra.mxu1 %vm3770_vm10, %v6888_v14  ;;  %6493 = vmatpush.msk.msra.mxu3 %vm3772_vm6, %v6888_v14  ;;  %vm3739_vm10 = vcmp.eq.s32.totalorder %v7018_v17, %v10964_v29  ;;  %vm2122_vm6 = vcmp.eq.s32.totalorder %v7123_v24, %v10919_v46  ;;  %vm2128_vm15 = vcmp.eq.s32.totalorder %v7108_v23, %v10799_v9  ;;  %v2243_v59 = vperm.slane %v10772_v50, 6 }
 0x1a9   : > { %6478 = vmatpush.msk.msra.mxu2 %vm3763_vm7, %v6888_v14  ;;  %6446 = vmatpush.msk.msra.mxu0 %vm3761_vm3, %v6888_v14  ;;  %vm2129_vm7 = vcmp.eq.s32.totalorder %v7108_v23, %v10860_v63  ;;  %vm3737_vm3 = vcmp.eq.s32.totalorder %v7018_v17, %v10967_v30  ;;  %vm2123_vm14 = vcmp.eq.s32.totalorder %v7123_v24, %v10934_v27  ;;  %v2160_v9 = vsel %vm2128_vm15, %v10993_v44, 0.0 }
 0x1aa   : > { %6462 = vmatpush.msk.msra.mxu1 %vm3762_vm1, %v6888_v14  ;;  %6494 = vmatpush.msk.msra.mxu3 %vm3764_vm8, %v6888_v14  ;;  %v2161_v32 = vsel %vm2129_vm7, %v10995_v56, 0.0  ;;  %vm3738_vm1 = vcmp.eq.s32.totalorder %v7018_v17, %v10982_v35  ;;  %v2154_v63 = vsel %vm2122_vm6, %v10949_v47, 0.0  ;;  %v2202_v31 = vadd.f32 %v2201_v62, %v2160_v9 }
 0x1ab   : > { %3369 = vmatmul.f32.gmra.mxu0 %v11214_v57  ;;  %3398 = vmatmul.f32.gmra.mxu1 %v11214_v57  ;;  %v2211_v37 = vadd.f32 %v2210_v39, %v2161_v32  ;;  %vm3740_vm8 = vcmp.eq.s32.totalorder %v7018_v17, %v10985_v54  ;;  %vm3731_vm15 = vcmp.eq.s32.totalorder %v7033_v18, %v10964_v29  ;;  %v2155_v2 = vsel %vm2123_vm14, %v10951_v58, 0.0 }
 0x1ac   : > { %3427 = vmatmul.f32.gmra.mxu2 %v11214_v57  ;;  %3456 = vmatmul.f32.gmra.mxu3 %v11214_v57  ;;  %vm3729_vm6 = vcmp.eq.s32.totalorder %v7033_v18, %v10967_v30  ;;  %v2203_v47 = vrot.slane %v2202_v31, 4  ;;  %v11260_v33 = vpop.f32.mrf.mxu2  ;;  %v2219_v58 = vadd.f32 %v2218_v11, %v2154_v63  ;;  %v2228_v40 = vadd.f32 %v2227_v38, %v2155_v2  ;;  %v11339_v11 = vld [vmem:[%s14569_s0 + $0x10] sm:$0xff] }
 0x1ad   : > { %6479 = vmatpush.msk.msra.mxu2 %vm3755_vm12, %v6888_v14  ;;  %6447 = vmatpush.msk.msra.mxu0 %vm3753_vm5, %v6888_v14  ;;  %vm3730_vm12 = vcmp.eq.s32.totalorder %v7033_v18, %v10982_v35  ;;  %v2212_v4 = vrot.slane %v2211_v37, 4  ;;  %v11262_v44 = vpop.f32.mrf.mxu3  ;;  %vm3732_vm5 = vcmp.eq.s32.totalorder %v7033_v18, %v10985_v54  ;;  %vm3713_vm7 = vcmp.eq.s32.totalorder %v7063_v20, %v10967_v30 }
 0x1ae   : > { %6463 = vmatpush.msk.msra.mxu1 %vm3754_vm2, %v6888_v14  ;;  %6495 = vmatpush.msk.msra.mxu3 %vm3756_vm11, %v6888_v14  ;;  %vm3723_vm2 = vcmp.eq.s32.totalorder %v7048_v19, %v10964_v29  ;;  %v2204_v56 = vadd.f32 %v2203_v47, %v2202_v31  ;;  %vm2130_vm11 = vcmp.eq.s32.totalorder %v7108_v23, %v10919_v46  ;;  %v11289_v0 = vpop.f32.mrf.mxu1 }
 0x1af   : > { %6480 = vmatpush.msk.msra.mxu2 %vm3747_vm13, %v6888_v14  ;;  %6448 = vmatpush.msk.msra.mxu0 %vm3745_vm4, %v6888_v14  ;;  %v2213_v43 = vadd.f32 %v2212_v4, %v2211_v37  ;;  %vm3721_vm13 = vcmp.eq.s32.totalorder %v7048_v19, %v10967_v30  ;;  %v2162_v46 = vsel %vm2130_vm11, %v11113_v45, 0.0  ;;  %vm2131_vm4 = vcmp.eq.s32.totalorder %v7108_v23, %v10934_v27 }
 0x1b0   : > { %6464 = vmatpush.msk.msra.mxu1 %vm3746_vm0, %v6888_v14  ;;  %6496 = vmatpush.msk.msra.mxu3 %vm3748_vm9, %v6888_v14  ;;  %v11287_v52 = vpop.f32.mrf.mxu0  ;;  %v2205_v10 = vrot.slane %v2204_v56, 2  ;;  %v2220_v41 = vadd.f32 %v2219_v58, %v2162_v46  ;;  %v2163_v53 = vsel %vm2131_vm4, %v11115_v28, 0.0  ;;  %vm3722_vm0 = vcmp.eq.s32.totalorder %v7048_v19, %v10982_v35 }
 0x1b1   : > { %6481 = vmatpush.msk.msra.mxu2 %vm3739_vm10, %v6888_v14  ;;  %6449 = vmatpush.msk.msra.mxu0 %vm3737_vm3, %v6888_v14  ;;  %v2214_v12 = vrot.slane %v2213_v43, 2  ;;  %vm3724_vm9 = vcmp.eq.s32.totalorder %v7048_v19, %v10985_v54  ;;  %v2242_v27 = vperm.slane %v10772_v50, 5  ;;  %v2229_v45 = vadd.f32 %v2228_v40, %v2163_v53 }
 0x1b2   : > { %6465 = vmatpush.msk.msra.mxu1 %vm3738_vm1, %v6888_v14  ;;  %6497 = vmatpush.msk.msra.mxu3 %vm3740_vm8, %v6888_v14  ;;  %vm3715_vm10 = vcmp.eq.s32.totalorder %v7063_v20, %v10964_v29  ;;  %v2206_v28 = vadd.f32 %v2205_v10, %v2204_v56  ;;  %v2221_v42 = vrot.slane %v2220_v41, 4  ;;  %vm3714_vm3 = vcmp.eq.s32.totalorder %v7063_v20, %v10982_v35 }
 0x1b3   : > { %6482 = vmatpush.msk.msra.mxu2 %vm3731_vm15, %v6888_v14  ;;  %6450 = vmatpush.msk.msra.mxu0 %vm3729_vm6, %v6888_v14  ;;  %v2215_v61 = vadd.f32 %v2214_v12, %v2213_v43  ;;  %v2230_v38 = vrot.slane %v2229_v45, 4  ;;  %vm3716_vm14 = vcmp.eq.s32.totalorder %v7063_v20, %v10985_v54  ;;  %vm3707_vm1 = vcmp.eq.s32.totalorder %v7078_v21, %v10964_v29 }
 0x1b4   : > { %6466 = vmatpush.msk.msra.mxu1 %vm3730_vm12, %v6888_v14  ;;  %6498 = vmatpush.msk.msra.mxu3 %vm3732_vm5, %v6888_v14  ;;  %v2207_v62 = vrot.slane %v2206_v28, 1  ;;  %v2222_v9 = vadd.f32 %v2221_v42, %v2220_v41  ;;  %vm3705_vm8 = vcmp.eq.s32.totalorder %v7078_v21, %v10967_v30  ;;  %vm3706_vm15 = vcmp.eq.s32.totalorder %v7078_v21, %v10982_v35 }
 0x1b5   : > { %3372 = vmatmul.f32.gmra.mxu0 %v11339_v11  ;;  %3401 = vmatmul.f32.gmra.mxu1 %v11339_v11  ;;  %v2216_v39 = vrot.slane %v2215_v61, 1  ;;  %v2231_v32 = vadd.f32 %v2230_v38, %v2229_v45  ;;  %vm3708_vm6 = vcmp.eq.s32.totalorder %v7078_v21, %v10985_v54  ;;  %vm3699_vm12 = vcmp.eq.s32.totalorder %v7093_v22, %v10964_v29 }
 0x1b6   : > { %3430 = vmatmul.f32.gmra.mxu2 %v11339_v11  ;;  %3459 = vmatmul.f32.gmra.mxu3 %v11339_v11  ;;  %v2208_v63 = vadd.f32 %v2207_v62, %v2206_v28  ;;  %v2223_v31 = vrot.slane %v2222_v9, 2  ;;  %v11379_v37 = vpop.f32.mrf.mxu2  ;;  %vm3697_vm5 = vcmp.eq.s32.totalorder %v7093_v22, %v10967_v30  ;;  %v11408_v43 = vperm.slane %v11348_v3, 0 }
 0x1b7   : > { %6483 = vmatpush.msk.msra.mxu2 %vm3723_vm2, %v6888_v14  ;;  %6451 = vmatpush.msk.msra.mxu0 %vm3721_vm13, %v6888_v14  ;;  %v11381_v2 = vpop.f32.mrf.mxu3  ;;  %vm3698_vm2 = vcmp.eq.s32.totalorder %v7093_v22, %v10982_v35  ;;  %v2232_v47 = vrot.slane %v2231_v32, 2  ;;  %v2217_v58 = vadd.f32 %v2216_v39, %v2215_v61  ;;  %vm3700_vm11 = vcmp.eq.s32.totalorder %v7093_v22, %v10985_v54 }
 0x1b8   : > { %6467 = vmatpush.msk.msra.mxu1 %vm3722_vm0, %v6888_v14  ;;  %6499 = vmatpush.msk.msra.mxu3 %vm3724_vm9, %v6888_v14  ;;  %v2257_v4 = vmul.f32 %v2241_v36, %v2208_v63  ;;  %v2224_v56 = vadd.f32 %v2223_v31, %v2222_v9  ;;  %vm3691_vm13 = vcmp.eq.s32.totalorder %v7108_v23, %v10964_v29  ;;  %v11427_v10 = vperm.slane %v11348_v3, 1 }
 0x1b9   : > { %6484 = vmatpush.msk.msra.mxu2 %vm3715_vm10, %v6888_v14  ;;  %6452 = vmatpush.msk.msra.mxu0 %vm3713_vm7, %v6888_v14  ;;  %v2233_v36 = vadd.f32 %v2232_v47, %v2231_v32  ;;  %vm3689_vm4 = vcmp.eq.s32.totalorder %v7108_v23, %v10967_v30  ;;  %vm3690_vm0 = vcmp.eq.s32.totalorder %v7108_v23, %v10982_v35  ;;  %v2244_v28 = vperm.slane %v10772_v50, 7 }
 0x1ba   : > { %6468 = vmatpush.msk.msra.mxu1 %vm3714_vm3, %v6888_v14  ;;  %6500 = vmatpush.msk.msra.mxu3 %vm3716_vm14, %v6888_v14  ;;  %v11410_v40 = vpop.f32.mrf.mxu0  ;;  %v11412_v46 = vpop.f32.mrf.mxu1  ;;  %v2264_v12 = vadd.f32 %v11057_v55, %v2257_v4  ;;  %v2225_v41 = vrot.slane %v2224_v56, 1  ;;  %vm3692_vm9 = vcmp.eq.s32.totalorder %v7108_v23, %v10985_v54  ;;  %vm3683_vm10 = vcmp.eq.s32.totalorder %v7123_v24, %v10964_v29 }
 0x1bb   : > { %6485 = vmatpush.msk.msra.mxu2 %vm3707_vm1, %v6888_v14  ;;  %6453 = vmatpush.msk.msra.mxu0 %vm3705_vm8, %v6888_v14  ;;  %v2234_v55 = vrot.slane %v2233_v36, 1  ;;  %vm3681_vm7 = vcmp.eq.s32.totalorder %v7123_v24, %v10967_v30  ;;  %v2258_v53 = vmul.f32 %v2242_v27, %v2217_v58  ;;  %vm3682_vm3 = vcmp.eq.s32.totalorder %v7123_v24, %v10982_v35 }
 0x1bc   : > { %6469 = vmatpush.msk.msra.mxu1 %vm3706_vm15, %v6888_v14  ;;  %6501 = vmatpush.msk.msra.mxu3 %vm3708_vm6, %v6888_v14  ;;  %v2226_v45 = vadd.f32 %v2225_v41, %v2224_v56  ;;  %vm3684_vm14 = vcmp.eq.s32.totalorder %v7123_v24, %v10985_v54  ;;  %vm3675_vm1 = vcmp.eq.s32.totalorder %v7138_v25, %v10964_v29  ;;  %v11476_v61 = vperm.slane %v10910_v51, 6 }
 0x1bd   : > { %6486 = vmatpush.msk.msra.mxu2 %vm3699_vm12, %v6888_v14  ;;  %6454 = vmatpush.msk.msra.mxu0 %vm3697_vm5, %v6888_v14  ;;  %v2235_v27 = vadd.f32 %v2234_v55, %v2233_v36  ;;  %v2265_v42 = vadd.f32 %v2264_v12, %v2258_v53  ;;  %vm2787_vm8 = vcmp.eq.s32.totalorder %v6930_v1, %v11408_v43  ;;  %v11483_v38 = vperm.slane %v10910_v51, 4 }
 0x1be   : > { %6470 = vmatpush.msk.msra.mxu1 %vm3698_vm2, %v6888_v14  ;;  %6502 = vmatpush.msk.msra.mxu3 %vm3700_vm11, %v6888_v14  ;;  %v2259_v50 = vmul.f32 %v2243_v59, %v2226_v45  ;;  %vm2788_vm15 = vcmp.eq.s32.totalorder %v6930_v1, %v11427_v10  ;;  %vm3673_vm6 = vcmp.eq.s32.totalorder %v7138_v25, %v10967_v30  ;;  %v11513_v9 = vperm.slane %v10910_v51, 7 }
 0x1bf   : > { %3375 = vmatmul.f32.gmra.mxu0 %v10355_v49  ;;  %3404 = vmatmul.f32.gmra.mxu1 %v10355_v49  ;;  %vm3674_vm12 = vcmp.eq.s32.totalorder %v7138_v25, %v10982_v35  ;;  %v2260_v39 = vmul.f32 %v2244_v28, %v2235_v27  ;;  %vm3676_vm5 = vcmp.eq.s32.totalorder %v7138_v25, %v10985_v54  ;;  %v11545_v31 = vperm.slane %v11348_v3, 3 }
 0x1c0   : > { %3433 = vmatmul.f32.gmra.mxu2 %v10355_v49  ;;  %3462 = vmatmul.f32.gmra.mxu3 %v10355_v49  ;;  %v11500_v49 = vperm.slane %v10910_v51, 5  ;;  %v2266_v62 = vadd.f32 %v2265_v42, %v2259_v50  ;;  %vm3667_vm2 = vcmp.eq.s32.totalorder %v6930_v1, %v10964_v29  ;;  %vm3665_vm11 = vcmp.eq.s32.totalorder %v6930_v1, %v10967_v30 }
 0x1c1   : > { %6487 = vmatpush.msk.msra.mxu2 %vm3691_vm13, %v6888_v14  ;;  %6455 = vmatpush.msk.msra.mxu0 %vm3689_vm4, %v6888_v14  ;;  %v11515_v59 = vpop.f32.mrf.mxu2  ;;  %v11517_v32 = vpop.f32.mrf.mxu3  ;;  %vm3666_vm13 = vcmp.eq.s32.totalorder %v6930_v1, %v10982_v35  ;;  %v11534_v51 = vperm.slane %v11348_v3, 2  ;;  %vm2795_vm4 = vcmp.eq.s32.totalorder %v7138_v25, %v11408_v43  ;;  %v2819_v56 = vsel %vm2787_vm8, %v11153_v6, 0.0  ;;  %v11630_v35 = vld [vmem:[%s14569_s0] sm:$0xff] }
 0x1c2   : > { %6471 = vmatpush.msk.msra.mxu1 %vm3690_vm0, %v6888_v14  ;;  %6503 = vmatpush.msk.msra.mxu3 %vm3692_vm9, %v6888_v14  ;;  %v2267_v63 = vadd.f32 %v2266_v62, %v2260_v39  ;;  %vm2796_vm0 = vcmp.eq.s32.totalorder %v7138_v25, %v11427_v10  ;;  %vm3668_vm9 = vcmp.eq.s32.totalorder %v6930_v1, %v10985_v54  ;;  %v2820_v30 = vsel %vm2788_vm15, %v11155_v26, 0.0 }
 0x1c3   : > { %6488 = vmatpush.msk.msra.mxu2 %vm3683_vm10, %v6888_v14  ;;  %6456 = vmatpush.msk.msra.mxu0 %vm3681_vm7, %v6888_v14  ;;  %vm3791_vm10 = vcmp.eq.s32.totalorder %v6937_v5, %v11476_v61  ;;  %vm3789_vm7 = vcmp.eq.s32.totalorder %v6937_v5, %v11483_v38  ;;  %vm2789_vm8 = vcmp.eq.s32.totalorder %v6930_v1, %v11534_v51  ;;  %v2828_v29 = vsel %vm2796_vm0, %v11289_v0, 0.0 }
 0x1c4   : > { %6472 = vmatpush.msk.msra.mxu1 %vm3682_vm3, %v6888_v14  ;;  %6504 = vmatpush.msk.msra.mxu3 %vm3684_vm14, %v6888_v14  ;;  %v11551_v47 = vpop.f32.mrf.mxu0  ;;  %v11553_v4 = vpop.f32.mrf.mxu1  ;;  %v11570_v58 = vadd.f32 %v2267_v63, %v10387_v60  ;;  %vm3790_vm3 = vcmp.eq.s32.totalorder %v6937_v5, %v11500_v49  ;;  %vm3792_vm14 = vcmp.eq.s32.totalorder %v6937_v5, %v11513_v9  ;;  %v2827_v60 = vsel %vm2795_vm4, %v11287_v52, 0.0 }
 0x1c5   : > { %6489 = vmatpush.msk.msra.mxu2 %vm3675_vm1, %v6888_v14  ;;  %6457 = vmatpush.msk.msra.mxu0 %vm3673_vm6, %v6888_v14  ;;  %vm3783_vm1 = vcmp.eq.s32.totalorder %v6943_v7, %v11476_v61  ;;  %vm2790_vm6 = vcmp.eq.s32.totalorder %v6930_v1, %v11545_v31  ;;  %v2851_v26 = vadd.f32 %v2827_v60, %v2819_v56  ;;  %v2821_v12 = vsel %vm2789_vm8, %v11260_v33, 0.0 }
 0x1c6   : > { %6473 = vmatpush.msk.msra.mxu1 %vm3674_vm12, %v6888_v14  ;;  %6505 = vmatpush.msk.msra.mxu3 %vm3676_vm5, %v6888_v14  ;;  %v2269_v6 = vsub.f32 0.0, %v11570_v58  ;;  %vm3781_vm12 = vcmp.eq.s32.totalorder %v6943_v7, %v11483_v38  ;;  %vm3782_vm5 = vcmp.eq.s32.totalorder %v6943_v7, %v11500_v49  ;;  %v2860_v52 = vadd.f32 %v2828_v29, %v2820_v30 }
 0x1c7   : > { %6490 = vmatpush.msk.msra.mxu2 %vm3667_vm2, %v6888_v14  ;;  %6458 = vmatpush.msk.msra.mxu0 %vm3665_vm11, %v6888_v14  ;;  %vm3784_vm2 = vcmp.eq.s32.totalorder %v6943_v7, %v11513_v9  ;;  %vm3775_vm11 = vcmp.eq.s32.totalorder %v6946_v8, %v11476_v61  ;;  %vm3774_vm15 = vcmp.eq.s32.totalorder %v6946_v8, %v11500_v49  ;;  %v2822_v45 = vsel %vm2790_vm6, %v11262_v44, 0.0 }
 0x1c8   : > { %6474 = vmatpush.msk.msra.mxu1 %vm3666_vm13, %v6888_v14  ;;  %6506 = vmatpush.msk.msra.mxu3 %vm3668_vm9, %v6888_v14  ;;  %vm3773_vm13 = vcmp.eq.s32.totalorder %v6946_v8, %v11483_v38  ;;  %v2270_v54 = vmul.f32 1.442695, %v2269_v6  ;;  %vm2797_vm0 = vcmp.eq.s32.totalorder %v7138_v25, %v11534_v51  ;;  %vm2798_vm9 = vcmp.eq.s32.totalorder %v7138_v25, %v11545_v31 }
 0x1c9   : > { %3937 = vmatmul.f32.vlgmr.msra.gmra.mxu0 %v11630_v35  ;;  %3966 = vmatmul.f32.vlgmr.msra.gmra.mxu1 %v11630_v35  ;;  %vm2804_vm4 = vcmp.eq.s32.totalorder %v7123_v24, %v11427_v10  ;;  %vm3757_vm8 = vcmp.eq.s32.totalorder %v6988_v15, %v11483_v38  ;;  %v2829_v33 = vsel %vm2797_vm0, %v11379_v37, 0.0  ;;  %v2830_v41 = vsel %vm2798_vm9, %v11381_v2, 0.0 }
 0x1ca   : > { %3995 = vmatmul.f32.vlgmr.msra.gmra.mxu2 %v11630_v35  ;;  %4024 = vmatmul.f32.vlgmr.msra.gmra.mxu3 %v11630_v35  ;;  %6850 = vpow2.f32 %v2270_v54  ;;  %vm14649_vm6 = vcmp.eq.s32.totalorder %v6946_v8, %v11513_v9  ;;  %v2836_v37 = vsel %vm2804_vm4, %v11412_v46, 0.0  ;;  %v2869_v2 = vadd.f32 %v2829_v33, %v2821_v12 }
 0x1cb   : > { %6539 = vmatpush.msk.msrb.mxu2 %vm3791_vm10, %v6888_v14  ;;  %6507 = vmatpush.msk.msrb.mxu0 %vm3789_vm7, %v6888_v14  ;;  %vm3767_vm10 = vcmp.eq.s32.totalorder %v6961_v13, %v11476_v61  ;;  %vm3765_vm7 = vcmp.eq.s32.totalorder %v6961_v13, %v11483_v38  ;;  %v11672_v0 = vpop.f32.mrf.mxu2  ;;  %v11674_v36 = vpop.f32.mrf.mxu3  ;;  %v2878_v28 = vadd.f32 %v2830_v41, %v2822_v45 }
 0x1cc   : > { %6523 = vmatpush.msk.msrb.mxu1 %vm3790_vm3, %v6888_v14  ;;  %6555 = vmatpush.msk.msrb.mxu3 %vm3792_vm14, %v6888_v14  ;;  %vm3768_vm3 = vcmp.eq.s32.totalorder %v6961_v13, %v11513_v9  ;;  %vm2803_vm14 = vcmp.eq.s32.totalorder %v7123_v24, %v11408_v43  ;;  %vm14650_vm4 = vcmp.eq.s32.totalorder %v6961_v13, %v11500_v49 }
 0x1cd   : > { %6540 = vmatpush.msk.msrb.mxu2 %vm3783_vm1, %v6888_v14  ;;  %6508 = vmatpush.msk.msrb.mxu0 %vm3781_vm12, %v6888_v14  ;;  %vm3759_vm1 = vcmp.eq.s32.totalorder %v6988_v15, %v11476_v61  ;;  %vm3758_vm12 = vcmp.eq.s32.totalorder %v6988_v15, %v11500_v49  ;;  %v2835_v44 = vsel %vm2803_vm14, %v11410_v40, 0.0  ;;  %vm3743_vm0 = vcmp.eq.s32.totalorder %v7018_v17, %v11476_v61 }
 0x1ce   : > { %6524 = vmatpush.msk.msrb.mxu1 %vm3782_vm5, %v6888_v14  ;;  %6556 = vmatpush.msk.msrb.mxu3 %vm3784_vm2, %v6888_v14  ;;  %v11714_v55 = vpop.f32.mrf.mxu0  ;;  %v11716_v53 = vpop.f32.mrf.mxu1  ;;  %vm3760_vm5 = vcmp.eq.s32.totalorder %v6988_v15, %v11513_v9  ;;  %vm3751_vm2 = vcmp.eq.s32.totalorder %v7003_v16, %v11476_v61  ;;  %vm3741_vm9 = vcmp.eq.s32.totalorder %v7018_v17, %v11483_v38 }
 0x1cf   : > { %6541 = vmatpush.msk.msrb.mxu2 %vm3775_vm11, %v6888_v14  ;;  %6509 = vmatpush.msk.msrb.mxu0 %vm3773_vm13, %v6888_v14  ;;  %vm3749_vm11 = vcmp.eq.s32.totalorder %v7003_v16, %v11483_v38  ;;  %vm3750_vm13 = vcmp.eq.s32.totalorder %v7003_v16, %v11500_v49  ;;  %v2852_v46 = vadd.f32 %v2851_v26, %v2835_v44 }
 0x1d0   : > { %6525 = vmatpush.msk.msrb.mxu1 %vm3774_vm15, %v6888_v14  ;;  %6557 = vmatpush.msk.msrb.mxu3 %vm14649_vm6, %v6888_v14  ;;  %vm3752_vm15 = vcmp.eq.s32.totalorder %v7003_v16, %v11513_v9  ;;  %v6851_v40 = vpop.eup %6850  ;;  %v2861_v27 = vadd.f32 %v2860_v52, %v2836_v37  ;;  %vm2811_vm14 = vcmp.eq.s32.totalorder %v7108_v23, %v11408_v43 }
 0x1d1   : > { %6542 = vmatpush.msk.msrb.mxu2 %vm3767_vm10, %v6888_v14  ;;  %6510 = vmatpush.msk.msrb.mxu0 %vm3765_vm7, %v6888_v14  ;;  %vm3742_vm10 = vcmp.eq.s32.totalorder %v7018_v17, %v11500_v49  ;;  %2272 = vst [vmem:[%s9355_s15 + $0x2] sm:$0x1] %v6851_v40  ;;  %vm2812_vm6 = vcmp.eq.s32.totalorder %v7108_v23, %v11427_v10  ;;  %v2843_v43 = vsel %vm2811_vm14, %v11551_v47, 0.0 }
 0x1d2   : > { %6526 = vmatpush.msk.msrb.mxu1 %vm14650_vm4, %v6888_v14  ;;  %6558 = vmatpush.msk.msrb.mxu3 %vm3768_vm3, %v6888_v14  ;;  %vm2805_vm3 = vcmp.eq.s32.totalorder %v7123_v24, %v11534_v51  ;;  %vm3735_vm4 = vcmp.eq.s32.totalorder %v7033_v18, %v11476_v61  ;;  %vm2806_vm7 = vcmp.eq.s32.totalorder %v7123_v24, %v11545_v31  ;;  %v2844_v10 = vsel %vm2812_vm6, %v11553_v4, 0.0 }
 0x1d3   : > { %3940 = vmatmul.f32.gmra.mxu0 %v11214_v57  ;;  %3969 = vmatmul.f32.gmra.mxu1 %v11214_v57  ;;  %v2853_v42 = vadd.f32 %v2852_v46, %v2843_v43  ;;  %v2862_v50 = vadd.f32 %v2861_v27, %v2844_v10  ;;  %v2837_v63 = vsel %vm2805_vm3, %v11515_v59, 0.0  ;;  %v2838_v47 = vsel %vm2806_vm7, %v11517_v32, 0.0 }
 0x1d4   : > { %3998 = vmatmul.f32.gmra.mxu2 %v11214_v57  ;;  %4027 = vmatmul.f32.gmra.mxu3 %v11214_v57  ;;  %v2870_v32 = vadd.f32 %v2869_v2, %v2837_v63  ;;  %v2879_v30 = vadd.f32 %v2878_v28, %v2838_v47  ;;  %vm3717_vm7 = vcmp.eq.s32.totalorder %v7063_v20, %v11483_v38  ;;  %v11938_v2 = vperm.slane %v11348_v3, 4 }
 0x1d5   : > { %6543 = vmatpush.msk.msrb.mxu2 %vm3759_vm1, %v6888_v14  ;;  %6511 = vmatpush.msk.msrb.mxu0 %vm3757_vm8, %v6888_v14  ;;  %vm3733_vm1 = vcmp.eq.s32.totalorder %v7033_v18, %v11483_v38  ;;  %v11817_v62 = vpop.f32.mrf.mxu2  ;;  %v11819_v39 = vpop.f32.mrf.mxu3  ;;  %vm3734_vm8 = vcmp.eq.s32.totalorder %v7033_v18, %v11500_v49  ;;  %v2854_v4 = vrot.slane %v2853_v42, 4  ;;  %v2863_v59 = vrot.slane %v2862_v50, 4 }
 0x1d6   : > { %6527 = vmatpush.msk.msrb.mxu1 %vm3758_vm12, %v6888_v14  ;;  %6559 = vmatpush.msk.msrb.mxu3 %vm3760_vm5, %v6888_v14  ;;  %vm3736_vm12 = vcmp.eq.s32.totalorder %v7033_v18, %v11513_v9  ;;  %vm3727_vm5 = vcmp.eq.s32.totalorder %v7048_v19, %v11476_v61  ;;  %vm3718_vm3 = vcmp.eq.s32.totalorder %v7063_v20, %v11500_v49  ;;  %v11955_v43 = vperm.slane %v11348_v3, 5 }
 0x1d7   : > { %6544 = vmatpush.msk.msrb.mxu2 %vm3751_vm2, %v6888_v14  ;;  %6512 = vmatpush.msk.msrb.mxu0 %vm3749_vm11, %v6888_v14  ;;  %vm3725_vm2 = vcmp.eq.s32.totalorder %v7048_v19, %v11483_v38  ;;  %vm3726_vm11 = vcmp.eq.s32.totalorder %v7048_v19, %v11500_v49  ;;  %v2855_v29 = vadd.f32 %v2854_v4, %v2853_v42 }
 0x1d8   : > { %6528 = vmatpush.msk.msrb.mxu1 %vm3750_vm13, %v6888_v14  ;;  %6560 = vmatpush.msk.msrb.mxu3 %vm3752_vm15, %v6888_v14  ;;  %v11853_v56 = vpop.f32.mrf.mxu0  ;;  %v11855_v60 = vpop.f32.mrf.mxu1  ;;  %vm3728_vm13 = vcmp.eq.s32.totalorder %v7048_v19, %v11513_v9  ;;  %vm3719_vm15 = vcmp.eq.s32.totalorder %v7063_v20, %v11476_v61  ;;  %v2864_v6 = vadd.f32 %v2863_v59, %v2862_v50  ;;  %v6571_v59 = vld [vmem:[%s6928_s18 + $0x6] ss:$8 sm:$0xf] }
 0x1d9   : > { %6545 = vmatpush.msk.msrb.mxu2 %vm3743_vm0, %v6888_v14  ;;  %6513 = vmatpush.msk.msrb.mxu0 %vm3741_vm9, %v6888_v14  ;;  %vm14651_vm0 = vcmp.eq.s32.totalorder %v7018_v17, %v11513_v9  ;;  %vm2813_vm9 = vcmp.eq.s32.totalorder %v7108_v23, %v11534_v51  ;;  %v2856_v54 = vrot.slane %v2855_v29, 2  ;;  %v6177_v51 = vld [vmem:[%s8432_s4 + $0x3] ss:$8 sm:$0xf]  ;;  %vm3720_vm14 = vcmp.eq.s32.totalorder %v7063_v20, %v11513_v9 }
 0x1da   : > { %6529 = vmatpush.msk.msrb.mxu1 %vm3742_vm10, %v6888_v14  ;;  %6561 = vmatpush.msk.msrb.mxu3 %vm14651_vm0, %v6888_v14  ;;  %vm2814_vm10 = vcmp.eq.s32.totalorder %v7108_v23, %v11545_v31  ;;  %v2865_v26 = vrot.slane %v2864_v6, 2  ;;  %v2845_v52 = vsel %vm2813_vm9, %v11672_v0, 0.0  ;;  %v6178_v31 = vld [vmem:[%s8432_s4 + $0x3] ss:$8 sm:$0xf0]  ;;  %vm3711_vm6 = vcmp.eq.s32.totalorder %v7078_v21, %v11476_v61 }
 0x1db   : > { %6546 = vmatpush.msk.msrb.mxu2 %vm3735_vm4, %v6888_v14  ;;  %6514 = vmatpush.msk.msrb.mxu0 %vm3733_vm1, %v6888_v14  ;;  %v2846_v12 = vsel %vm2814_vm10, %v11674_v36, 0.0  ;;  %v2871_v33 = vadd.f32 %v2870_v32, %v2845_v52  ;;  %v2857_v0 = vadd.f32 %v2856_v54, %v2855_v29  ;;  %v11931_v37 = vor.u32 %v6178_v31, %v6177_v51  ;;  %v6572_v32 = vld [vmem:[%s6928_s18 + $0x6] ss:$8 sm:$0xf0] }
 0x1dc   : > { %6530 = vmatpush.msk.msrb.mxu1 %vm3734_vm8, %v6888_v14  ;;  %6562 = vmatpush.msk.msrb.mxu3 %vm3736_vm12, %v6888_v14  ;;  %v2880_v41 = vadd.f32 %v2879_v30, %v2846_v12  ;;  %v2866_v36 = vadd.f32 %v2865_v26, %v2864_v6  ;;  %vm3709_vm4 = vcmp.eq.s32.totalorder %v7078_v21, %v11483_v38  ;;  %v12002_v29 = vperm.slane %v11348_v3, 6  ;;  %v12029_v51 = vld [vmem:[%s14569_s0 + $0x18] sm:$0xff] }
 0x1dd   : > { %3943 = vmatmul.f32.gmra.mxu0 %v11339_v11  ;;  %3972 = vmatmul.f32.gmra.mxu1 %v11339_v11  ;;  %v2872_v45 = vrot.slane %v2871_v33, 4  ;;  %vm3710_vm1 = vcmp.eq.s32.totalorder %v7078_v21, %v11500_v49  ;;  %vm3712_vm8 = vcmp.eq.s32.totalorder %v7078_v21, %v11513_v9  ;;  %v2858_v10 = vrot.slane %v2857_v0, 1 }
 0x1de   : > { %4001 = vmatmul.f32.gmra.mxu2 %v11339_v11  ;;  %4030 = vmatmul.f32.gmra.mxu3 %v11339_v11  ;;  %v2881_v44 = vrot.slane %v2880_v41, 4  ;;  %v2867_v42 = vrot.slane %v2866_v36, 1  ;;  %vm3703_vm12 = vcmp.eq.s32.totalorder %v7093_v22, %v11476_v61  ;;  %vm3694_vm0 = vcmp.eq.s32.totalorder %v7108_v23, %v11500_v49 }
 0x1df   : > { %6547 = vmatpush.msk.msrb.mxu2 %vm3727_vm5, %v6888_v14  ;;  %6515 = vmatpush.msk.msrb.mxu0 %vm3725_vm2, %v6888_v14  ;;  %v11940_v28 = vpop.f32.mrf.mxu2  ;;  %v11942_v40 = vpop.f32.mrf.mxu3  ;;  %v2873_v46 = vadd.f32 %v2872_v45, %v2871_v33  ;;  %vm3701_vm5 = vcmp.eq.s32.totalorder %v7093_v22, %v11483_v38  ;;  %vm3702_vm2 = vcmp.eq.s32.totalorder %v7093_v22, %v11500_v49  ;;  %v2924_v6 = vperm.slane %v11931_v37, 0 }
 0x1e0   : > { %6531 = vmatpush.msk.msrb.mxu1 %vm3726_vm11, %v6888_v14  ;;  %6563 = vmatpush.msk.msrb.mxu3 %vm3728_vm13, %v6888_v14  ;;  %v2882_v27 = vadd.f32 %v2881_v44, %v2880_v41  ;;  %vm3704_vm11 = vcmp.eq.s32.totalorder %v7093_v22, %v11513_v9  ;;  %vm3695_vm13 = vcmp.eq.s32.totalorder %v7108_v23, %v11476_v61  ;;  %v2925_v52 = vperm.slane %v11931_v37, 1 }
 0x1e1   : > { %6548 = vmatpush.msk.msrb.mxu2 %vm3719_vm15, %v6888_v14  ;;  %6516 = vmatpush.msk.msrb.mxu0 %vm3717_vm7, %v6888_v14  ;;  %v2874_v47 = vrot.slane %v2873_v46, 2  ;;  %vm3693_vm15 = vcmp.eq.s32.totalorder %v7108_v23, %v11483_v38  ;;  %vm3696_vm9 = vcmp.eq.s32.totalorder %v7108_v23, %v11513_v9  ;;  %vm3687_vm10 = vcmp.eq.s32.totalorder %v7123_v24, %v11476_v61 }
 0x1e2   : > { %6532 = vmatpush.msk.msrb.mxu1 %vm3718_vm3, %v6888_v14  ;;  %6564 = vmatpush.msk.msrb.mxu3 %vm3720_vm14, %v6888_v14  ;;  %v11969_v50 = vpop.f32.mrf.mxu0  ;;  %v11971_v63 = vpop.f32.mrf.mxu1  ;;  %v2883_v4 = vrot.slane %v2882_v27, 2  ;;  %v2859_v54 = vadd.f32 %v2858_v10, %v2857_v0  ;;  %v2868_v26 = vadd.f32 %v2867_v42, %v2866_v36  ;;  %vm3685_vm7 = vcmp.eq.s32.totalorder %v7123_v24, %v11483_v38 }
 0x1e3   : > { %6549 = vmatpush.msk.msrb.mxu2 %vm3711_vm6, %v6888_v14  ;;  %6517 = vmatpush.msk.msrb.mxu0 %vm3709_vm4, %v6888_v14  ;;  %v2875_v30 = vadd.f32 %v2874_v47, %v2873_v46  ;;  %vm3686_vm3 = vcmp.eq.s32.totalorder %v7123_v24, %v11500_v49  ;;  %v12037_v33 = vor.u32 %v6572_v32, %v6571_v59  ;;  %v2926_v41 = vperm.slane %v11931_v37, 2 }
 0x1e4   : > { %6533 = vmatpush.msk.msrb.mxu1 %vm3710_vm1, %v6888_v14  ;;  %6565 = vmatpush.msk.msrb.mxu3 %vm3712_vm8, %v6888_v14  ;;  %v2884_v12 = vadd.f32 %v2883_v4, %v2882_v27  ;;  %vm3688_vm14 = vcmp.eq.s32.totalorder %v7123_v24, %v11513_v9  ;;  %vm3679_vm6 = vcmp.eq.s32.totalorder %v7138_v25, %v11476_v61  ;;  %v12092_v42 = vperm.slane %v11348_v3, 7 }
 0x1e5   : > { %6550 = vmatpush.msk.msrb.mxu2 %vm3703_vm12, %v6888_v14  ;;  %6518 = vmatpush.msk.msrb.mxu0 %vm3701_vm5, %v6888_v14  ;;  %v2876_v31 = vrot.slane %v2875_v30, 1  ;;  %vm2791_vm4 = vcmp.eq.s32.totalorder %v6930_v1, %v11938_v2  ;;  %vm2792_vm1 = vcmp.eq.s32.totalorder %v6930_v1, %v11955_v43  ;;  %vm3677_vm8 = vcmp.eq.s32.totalorder %v7138_v25, %v11483_v38 }
 0x1e6   : > { %6534 = vmatpush.msk.msrb.mxu1 %vm3702_vm2, %v6888_v14  ;;  %6566 = vmatpush.msk.msrb.mxu3 %vm3704_vm11, %v6888_v14  ;;  %v12061_v36 = vand.u32 127, %v12037_v33  ;;  %v2940_v45 = vmul.f32 %v2924_v6, %v2859_v54  ;;  %v2941_v44 = vmul.f32 %v2925_v52, %v2868_v26  ;;  %v2885_v46 = vrot.slane %v2884_v12, 1 }
 0x1e7   : > { %3946 = vmatmul.f32.gmra.mxu0 %v12029_v51  ;;  %3975 = vmatmul.f32.gmra.mxu1 %v12029_v51  ;;  %v2877_v0 = vadd.f32 %v2876_v31, %v2875_v30  ;;  %vm3678_vm12 = vcmp.eq.s32.totalorder %v7138_v25, %v11500_v49  ;;  %vm3680_vm5 = vcmp.eq.s32.totalorder %v7138_v25, %v11513_v9  ;;  %v2927_v52 = vperm.slane %v11931_v37, 3 }
 0x1e8   : > { %4004 = vmatmul.f32.gmra.mxu2 %v12029_v51  ;;  %4033 = vmatmul.f32.gmra.mxu3 %v12029_v51  ;;  %vm3671_vm2 = vcmp.eq.s32.totalorder %v6930_v1, %v11476_v61  ;;  %vm3669_vm11 = vcmp.eq.s32.totalorder %v6930_v1, %v11483_v38  ;;  %v12107_v47 = vperm.slane %v12061_v36, 2  ;;  %v12110_v3 = vperm.slane %v12061_v36, 0 }
 0x1e9   : > { %6551 = vmatpush.msk.msrb.mxu2 %vm3695_vm13, %v6888_v14  ;;  %6519 = vmatpush.msk.msrb.mxu0 %vm3693_vm15, %v6888_v14  ;;  %v12073_v27 = vpop.f32.mrf.mxu2  ;;  %v12075_v10 = vpop.f32.mrf.mxu3  ;;  %vm3670_vm13 = vcmp.eq.s32.totalorder %v6930_v1, %v11500_v49  ;;  %vm3672_vm15 = vcmp.eq.s32.totalorder %v6930_v1, %v11513_v9  ;;  %v2942_v32 = vmul.f32 %v2926_v41, %v2877_v0  ;;  %v12125_v6 = vperm.slane %v12061_v36, 1 }
 0x1ea   : > { %6535 = vmatpush.msk.msrb.mxu1 %vm3694_vm0, %v6888_v14  ;;  %6567 = vmatpush.msk.msrb.mxu3 %vm3696_vm9, %v6888_v14  ;;  %v12128_v30 = vperm.slane %v12061_v36, 3  ;;  %vm2799_vm0 = vcmp.eq.s32.totalorder %v7138_v25, %v11938_v2  ;;  %v2948_v54 = vadd.f32 %v2941_v44, %v2940_v45  ;;  %v2886_v26 = vadd.f32 %v2885_v46, %v2884_v12 }
 0x1eb   : > { %6552 = vmatpush.msk.msrb.mxu2 %vm3687_vm10, %v6888_v14  ;;  %6520 = vmatpush.msk.msrb.mxu0 %vm3685_vm7, %v6888_v14  ;;  %vm2800_vm9 = vcmp.eq.s32.totalorder %v7138_v25, %v11955_v43  ;;  %vm2793_vm10 = vcmp.eq.s32.totalorder %v6930_v1, %v12002_v29  ;;  %vm2794_vm7 = vcmp.eq.s32.totalorder %v6930_v1, %v12092_v42  ;;  %v2831_v61 = vsel %vm2799_vm0, %v11853_v56, 0.0 }
 0x1ec   : > { %6536 = vmatpush.msk.msrb.mxu1 %vm3686_vm3, %v6888_v14  ;;  %6568 = vmatpush.msk.msrb.mxu3 %vm3688_vm14, %v6888_v14  ;;  %v12112_v4 = vpop.f32.mrf.mxu0  ;;  %v12114_v59 = vpop.f32.mrf.mxu1  ;;  %vm2801_vm3 = vcmp.eq.s32.totalorder %v7138_v25, %v12002_v29  ;;  %vm4474_vm14 = vcmp.eq.s32.totalorder %v6937_v5, %v12107_v47  ;;  %v2949_v38 = vadd.f32 %v2948_v54, %v2942_v32  ;;  %v2832_v49 = vsel %vm2800_vm9, %v11855_v60, 0.0 }
 0x1ed   : > { %6553 = vmatpush.msk.msrb.mxu2 %vm3679_vm6, %v6888_v14  ;;  %6521 = vmatpush.msk.msrb.mxu0 %vm3677_vm8, %v6888_v14  ;;  %vm4472_vm6 = vcmp.eq.s32.totalorder %v6937_v5, %v12110_v3  ;;  %vm2802_vm8 = vcmp.eq.s32.totalorder %v7138_v25, %v12092_v42  ;;  %v2943_v9 = vmul.f32 %v2927_v52, %v2886_v26  ;;  %v2823_v56 = vsel %vm2791_vm4, %v11714_v55, 0.0 }
 0x1ee   : > { %6537 = vmatpush.msk.msrb.mxu1 %vm3678_vm12, %v6888_v14  ;;  %6569 = vmatpush.msk.msrb.mxu3 %vm3680_vm5, %v6888_v14  ;;  %vm4473_vm12 = vcmp.eq.s32.totalorder %v6937_v5, %v12125_v6  ;;  %vm4475_vm5 = vcmp.eq.s32.totalorder %v6937_v5, %v12128_v30  ;;  %v2824_v60 = vsel %vm2792_vm1, %v11716_v53, 0.0  ;;  %vm4465_vm4 = vcmp.eq.s32.totalorder %v6943_v7, %v12125_v6 }
 0x1ef   : > { %6554 = vmatpush.msk.msrb.mxu2 %vm3671_vm2, %v6888_v14  ;;  %6522 = vmatpush.msk.msrb.mxu0 %vm3669_vm11, %v6888_v14  ;;  %vm4466_vm2 = vcmp.eq.s32.totalorder %v6943_v7, %v12107_v47  ;;  %vm4464_vm11 = vcmp.eq.s32.totalorder %v6943_v7, %v12110_v3  ;;  %v2887_v55 = vadd.f32 %v2831_v61, %v2823_v56  ;;  %v2825_v0 = vsel %vm2793_vm10, %v11817_v62, 0.0 }
 0x1f0   : > { %6538 = vmatpush.msk.msrb.mxu1 %vm3670_vm13, %v6888_v14  ;;  %6570 = vmatpush.msk.msrb.mxu3 %vm3672_vm15, %v6888_v14  ;;  %vm4467_vm13 = vcmp.eq.s32.totalorder %v6943_v7, %v12128_v30  ;;  %vm4458_vm1 = vcmp.eq.s32.totalorder %v6946_v8, %v12107_v47  ;;  %v2896_v53 = vadd.f32 %v2832_v49, %v2824_v60  ;;  %v2833_v62 = vsel %vm2801_vm3, %v11940_v28, 0.0 }
 0x1f1   : > { %4053 = vmatmul.f32.vlgmr.msrb.gmra.mxu0 %v11630_v35  ;;  %4082 = vmatmul.f32.vlgmr.msrb.gmra.mxu1 %v11630_v35  ;;  %vm4456_vm15 = vcmp.eq.s32.totalorder %v6946_v8, %v12110_v3  ;;  %v12221_v41 = vadd.f32 %v2949_v38, %v2943_v9  ;;  %vm4457_vm0 = vcmp.eq.s32.totalorder %v6946_v8, %v12125_v6  ;;  %v2834_v28 = vsel %vm2802_vm8, %v11942_v40, 0.0 }
 0x1f2   : > { %4111 = vmatmul.f32.vlgmr.msrb.gmra.mxu2 %v11630_v35  ;;  %4140 = vmatmul.f32.vlgmr.msrb.gmra.mxu3 %v11630_v35  ;;  %vm4459_vm9 = vcmp.eq.s32.totalorder %v6946_v8, %v12128_v30  ;;  %vm4450_vm10 = vcmp.eq.s32.totalorder %v6961_v13, %v12107_v47  ;;  %vm4449_vm3 = vcmp.eq.s32.totalorder %v6961_v13, %v12125_v6  ;;  %v2826_v46 = vsel %vm2794_vm7, %v11819_v39, 0.0 }
 0x1f3   : > { %6607 = vmatpush.msk.msra.mxu2 %vm4474_vm14, %v6888_v14  ;;  %6575 = vmatpush.msk.msra.mxu0 %vm4472_vm6, %v6888_v14  ;;  %v12217_v12 = vpop.f32.mrf.mxu2  ;;  %v12219_v31 = vpop.f32.mrf.mxu3  ;;  %vm4448_vm14 = vcmp.eq.s32.totalorder %v6961_v13, %v12110_v3  ;;  %vm2807_vm6 = vcmp.eq.s32.totalorder %v7123_v24, %v11938_v2  ;;  %vm4442_vm8 = vcmp.eq.s32.totalorder %v6988_v15, %v12107_v47  ;;  %v2929_v26 = vperm.slane %v11931_v37, 5 }
 0x1f4   : > { %6591 = vmatpush.msk.msra.mxu1 %vm4473_vm12, %v6888_v14  ;;  %6623 = vmatpush.msk.msra.mxu3 %vm4475_vm5, %v6888_v14  ;;  %vm4451_vm12 = vcmp.eq.s32.totalorder %v6961_v13, %v12128_v30  ;;  %vm2808_vm5 = vcmp.eq.s32.totalorder %v7123_v24, %v11955_v43  ;;  %vm4443_vm7 = vcmp.eq.s32.totalorder %v6988_v15, %v12128_v30  ;;  %v2839_v40 = vsel %vm2807_vm6, %v11969_v50, 0.0 }
 0x1f5   : > { %6608 = vmatpush.msk.msra.mxu2 %vm4466_vm2, %v6888_v14  ;;  %6576 = vmatpush.msk.msra.mxu0 %vm4464_vm11, %v6888_v14  ;;  %vm4440_vm2 = vcmp.eq.s32.totalorder %v6988_v15, %v12110_v3  ;;  %vm4441_vm11 = vcmp.eq.s32.totalorder %v6988_v15, %v12125_v6  ;;  %v12309_v39 = vadd.f32 %v2833_v62, %v2825_v0  ;;  %v2840_v50 = vsel %vm2808_vm5, %v11971_v63, 0.0 }
 0x1f6   : > { %6592 = vmatpush.msk.msra.mxu1 %vm4465_vm4, %v6888_v14  ;;  %6624 = vmatpush.msk.msra.mxu3 %vm4467_vm13, %v6888_v14  ;;  %v12257_v45 = vpop.f32.mrf.mxu0  ;;  %v12259_v44 = vpop.f32.mrf.mxu1  ;;  %vm4434_vm4 = vcmp.eq.s32.totalorder %v7003_v16, %v12107_v47  ;;  %v12323_v32 = vadd.f32 %v2834_v28, %v2826_v46  ;;  %vm4432_vm13 = vcmp.eq.s32.totalorder %v7003_v16, %v12110_v3  ;;  %v12394_v38 = vshra.s32 %v9723_v34, 7 }
 0x1f7   : > { %6609 = vmatpush.msk.msra.mxu2 %vm4458_vm1, %v6888_v14  ;;  %6577 = vmatpush.msk.msra.mxu0 %vm4456_vm15, %v6888_v14  ;;  %vm4433_vm1 = vcmp.eq.s32.totalorder %v7003_v16, %v12125_v6  ;;  %vm4435_vm15 = vcmp.eq.s32.totalorder %v7003_v16, %v12128_v30  ;;  %v2888_v54 = vadd.f32 %v2887_v55, %v2839_v40  ;;  %v2931_v46 = vperm.slane %v11931_v37, 7 }
 0x1f8   : > { %6593 = vmatpush.msk.msra.mxu1 %vm4457_vm0, %v6888_v14  ;;  %6625 = vmatpush.msk.msra.mxu3 %vm4459_vm9, %v6888_v14  ;;  %vm4426_vm0 = vcmp.eq.s32.totalorder %v7018_v17, %v12107_v47  ;;  %vm4424_vm9 = vcmp.eq.s32.totalorder %v7018_v17, %v12110_v3  ;;  %v2897_v63 = vadd.f32 %v2896_v53, %v2840_v50  ;;  %v12470_v0 = vperm.slane %v12394_v38, 0 }
 0x1f9   : > { %6610 = vmatpush.msk.msra.mxu2 %vm4450_vm10, %v6888_v14  ;;  %6578 = vmatpush.msk.msra.mxu0 %vm4448_vm14, %v6888_v14  ;;  %vm4425_vm10 = vcmp.eq.s32.totalorder %v7018_v17, %v12125_v6  ;;  %vm4427_vm14 = vcmp.eq.s32.totalorder %v7018_v17, %v12128_v30  ;;  %vm4418_vm6 = vcmp.eq.s32.totalorder %v7033_v18, %v12107_v47 }
 0x1fa   : > { %6594 = vmatpush.msk.msra.mxu1 %vm4449_vm3, %v6888_v14  ;;  %6626 = vmatpush.msk.msra.mxu3 %vm4451_vm12, %v6888_v14  ;;  %vm4416_vm3 = vcmp.eq.s32.totalorder %v7033_v18, %v12110_v3  ;;  %vm4417_vm12 = vcmp.eq.s32.totalorder %v7033_v18, %v12125_v6  ;;  %vm2809_vm5 = vcmp.eq.s32.totalorder %v7123_v24, %v12002_v29 }
 0x1fb   : > { %4056 = vmatmul.f32.gmra.mxu0 %v11214_v57  ;;  %4085 = vmatmul.f32.gmra.mxu1 %v11214_v57 }
 0x1fc   : > { %4114 = vmatmul.f32.gmra.mxu2 %v11214_v57  ;;  %4143 = vmatmul.f32.gmra.mxu3 %v11214_v57  ;;  %v2928_v57 = vperm.slane %v11931_v37, 4 }
 0x1fd   : > { %6611 = vmatpush.msk.msra.mxu2 %vm4442_vm8, %v6888_v14  ;;  %6579 = vmatpush.msk.msra.mxu0 %vm4440_vm2, %v6888_v14  ;;  %vm2810_vm8 = vcmp.eq.s32.totalorder %v7123_v24, %v12092_v42  ;;  %v12375_v52 = vpop.f32.mrf.mxu2  ;;  %v12377_v61 = vpop.f32.mrf.mxu3  ;;  %vm4419_vm2 = vcmp.eq.s32.totalorder %v7033_v18, %v12128_v30 }
 0x1fe   : > { %6595 = vmatpush.msk.msra.mxu1 %vm4441_vm11, %v6888_v14  ;;  %6627 = vmatpush.msk.msra.mxu3 %vm4443_vm7, %v6888_v14  ;;  %vm2815_vm11 = vcmp.eq.s32.totalorder %v7108_v23, %v11938_v2  ;;  %vm2816_vm7 = vcmp.eq.s32.totalorder %v7108_v23, %v11955_v43 }
 0x1ff   : > { %6612 = vmatpush.msk.msra.mxu2 %vm4434_vm4, %v6888_v14  ;;  %6580 = vmatpush.msk.msra.mxu0 %vm4432_vm13, %v6888_v14  ;;  %vm4410_vm4 = vcmp.eq.s32.totalorder %v7048_v19, %v12107_v47  ;;  %vm4408_vm13 = vcmp.eq.s32.totalorder %v7048_v19, %v12110_v3  ;;  %v2847_v2 = vsel %vm2815_vm11, %v12112_v4, 0.0  ;;  %v2848_v34 = vsel %vm2816_vm7, %v12114_v59, 0.0 }
 0x200   : > { %6596 = vmatpush.msk.msra.mxu1 %vm4433_vm1, %v6888_v14  ;;  %6628 = vmatpush.msk.msra.mxu3 %vm4435_vm15, %v6888_v14  ;;  %v12410_v43 = vpop.f32.mrf.mxu0  ;;  %v12412_v49 = vpop.f32.mrf.mxu1  ;;  %v2841_v4 = vsel %vm2809_vm5, %v12073_v27, 0.0  ;;  %v2842_v59 = vsel %vm2810_vm8, %v12075_v10, 0.0  ;;  %v2889_v9 = vadd.f32 %v2888_v54, %v2847_v2  ;;  %v2898_v56 = vadd.f32 %v2897_v63, %v2848_v34 }
 0x201   : > { %6613 = vmatpush.msk.msra.mxu2 %vm4426_vm0, %v6888_v14  ;;  %6581 = vmatpush.msk.msra.mxu0 %vm4424_vm9, %v6888_v14  ;;  %vm4409_vm1 = vcmp.eq.s32.totalorder %v7048_v19, %v12125_v6  ;;  %vm4411_vm15 = vcmp.eq.s32.totalorder %v7048_v19, %v12128_v30  ;;  %vm4402_vm0 = vcmp.eq.s32.totalorder %v7063_v20, %v12107_v47  ;;  %v2930_v27 = vperm.slane %v11931_v37, 6 }
 0x202   : > { %6597 = vmatpush.msk.msra.mxu1 %vm4425_vm10, %v6888_v14  ;;  %6629 = vmatpush.msk.msra.mxu3 %vm4427_vm14, %v6888_v14  ;;  %vm4400_vm9 = vcmp.eq.s32.totalorder %v7063_v20, %v12110_v3  ;;  %vm4401_vm10 = vcmp.eq.s32.totalorder %v7063_v20, %v12125_v6  ;;  %v2890_v10 = vrot.slane %v2889_v9, 4  ;;  %v2899_v60 = vrot.slane %v2898_v56, 4 }
 0x203   : > { %6614 = vmatpush.msk.msra.mxu2 %vm4418_vm6, %v6888_v14  ;;  %6582 = vmatpush.msk.msra.mxu0 %vm4416_vm3, %v6888_v14  ;;  %v2906_v55 = vadd.f32 %v12309_v39, %v2841_v4  ;;  %v2915_v53 = vadd.f32 %v12323_v32, %v2842_v59  ;;  %vm4403_vm14 = vcmp.eq.s32.totalorder %v7063_v20, %v12128_v30 }
 0x204   : > { %6598 = vmatpush.msk.msra.mxu1 %vm4417_vm12, %v6888_v14  ;;  %6630 = vmatpush.msk.msra.mxu3 %vm4419_vm2, %v6888_v14  ;;  %v2891_v62 = vadd.f32 %v2890_v10, %v2889_v9  ;;  %v2900_v28 = vadd.f32 %v2899_v60, %v2898_v56  ;;  %vm2817_vm6 = vcmp.eq.s32.totalorder %v7108_v23, %v12002_v29 }
 0x205   : > { %4059 = vmatmul.f32.gmra.mxu0 %v11339_v11  ;;  %4088 = vmatmul.f32.gmra.mxu1 %v11339_v11  ;;  %vm4394_vm3 = vcmp.eq.s32.totalorder %v7078_v21, %v12107_v47  ;;  %vm4392_vm12 = vcmp.eq.s32.totalorder %v7078_v21, %v12110_v3  ;;  %v2849_v39 = vsel %vm2817_vm6, %v12217_v12, 0.0  ;;  %vm2818_vm5 = vcmp.eq.s32.totalorder %v7108_v23, %v12092_v42 }
 0x206   : > { %4117 = vmatmul.f32.gmra.mxu2 %v11339_v11  ;;  %4146 = vmatmul.f32.gmra.mxu3 %v11339_v11  ;;  %v2892_v11 = vrot.slane %v2891_v62, 2  ;;  %v2901_v29 = vrot.slane %v2900_v28, 2  ;;  %v2907_v40 = vadd.f32 %v2906_v55, %v2849_v39  ;;  %v2850_v32 = vsel %vm2818_vm5, %v12219_v31, 0.0 }
 0x207   : > { %6615 = vmatpush.msk.msra.mxu2 %vm4410_vm4, %v6888_v14  ;;  %6583 = vmatpush.msk.msra.mxu0 %vm4408_vm13, %v6888_v14  ;;  %vm4393_vm8 = vcmp.eq.s32.totalorder %v7078_v21, %v12125_v6  ;;  %vm4395_vm2 = vcmp.eq.s32.totalorder %v7078_v21, %v12128_v30  ;;  %v2916_v42 = vadd.f32 %v2915_v53, %v2850_v32  ;;  %v12508_v12 = vperm.slane %v12394_v38, 1  ;;  %v12510_v31 = vpop.f32.mrf.mxu2  ;;  %v12512_v50 = vpop.f32.mrf.mxu3 }
 0x208   : > { %6599 = vmatpush.msk.msra.mxu1 %vm4409_vm1, %v6888_v14  ;;  %6631 = vmatpush.msk.msra.mxu3 %vm4411_vm15, %v6888_v14  ;;  %v2893_v54 = vadd.f32 %v2892_v11, %v2891_v62  ;;  %v2902_v63 = vadd.f32 %v2901_v29, %v2900_v28  ;;  %vm4386_vm11 = vcmp.eq.s32.totalorder %v7093_v22, %v12107_v47  ;;  %v2908_v2 = vrot.slane %v2907_v40, 4 }
 0x209   : > { %6616 = vmatpush.msk.msra.mxu2 %vm4402_vm0, %v6888_v14  ;;  %6584 = vmatpush.msk.msra.mxu0 %vm4400_vm9, %v6888_v14  ;;  %vm4384_vm7 = vcmp.eq.s32.totalorder %v7093_v22, %v12110_v3  ;;  %vm4385_vm4 = vcmp.eq.s32.totalorder %v7093_v22, %v12125_v6  ;;  %vm4387_vm13 = vcmp.eq.s32.totalorder %v7093_v22, %v12128_v30  ;;  %v2917_v34 = vrot.slane %v2916_v42, 4 }
 0x20a   : > { %6600 = vmatpush.msk.msra.mxu1 %vm4401_vm10, %v6888_v14  ;;  %6632 = vmatpush.msk.msra.mxu3 %vm4403_vm14, %v6888_v14  ;;  %v12538_v4 = vpop.f32.mrf.mxu0  ;;  %v12540_v59 = vpop.f32.mrf.mxu1  ;;  %v2894_v9 = vrot.slane %v2893_v54, 1  ;;  %v2903_v56 = vrot.slane %v2902_v63, 1  ;;  %vm4378_vm1 = vcmp.eq.s32.totalorder %v7108_v23, %v12107_v47  ;;  %v2909_v10 = vadd.f32 %v2908_v2, %v2907_v40 }
 0x20b   : > { %6617 = vmatpush.msk.msra.mxu2 %vm4394_vm3, %v6888_v14  ;;  %6585 = vmatpush.msk.msra.mxu0 %vm4392_vm12, %v6888_v14  ;;  %vm4376_vm15 = vcmp.eq.s32.totalorder %v7108_v23, %v12110_v3  ;;  %vm4377_vm0 = vcmp.eq.s32.totalorder %v7108_v23, %v12125_v6  ;;  %v2918_v60 = vadd.f32 %v2917_v34, %v2916_v42  ;;  %v12565_v55 = vperm.slane %v12061_v36, 6 }
 0x20c   : > { %6601 = vmatpush.msk.msra.mxu1 %vm4393_vm8, %v6888_v14  ;;  %6633 = vmatpush.msk.msra.mxu3 %vm4395_vm2, %v6888_v14  ;;  %v2895_v53 = vadd.f32 %v2894_v9, %v2893_v54  ;;  %vm4379_vm9 = vcmp.eq.s32.totalorder %v7108_v23, %v12128_v30  ;;  %vm4370_vm10 = vcmp.eq.s32.totalorder %v7123_v24, %v12107_v47  ;;  %v2910_v62 = vrot.slane %v2909_v10, 2 }
 0x20d   : > { %6618 = vmatpush.msk.msra.mxu2 %vm4386_vm11, %v6888_v14  ;;  %6586 = vmatpush.msk.msra.mxu0 %vm4384_vm7, %v6888_v14  ;;  %v2919_v28 = vrot.slane %v2918_v60, 2  ;;  %vm4368_vm14 = vcmp.eq.s32.totalorder %v7123_v24, %v12110_v3  ;;  %vm4369_vm6 = vcmp.eq.s32.totalorder %v7123_v24, %v12125_v6  ;;  %vm4371_vm3 = vcmp.eq.s32.totalorder %v7123_v24, %v12128_v30 }
 0x20e   : > { %6602 = vmatpush.msk.msra.mxu1 %vm4385_vm4, %v6888_v14  ;;  %6634 = vmatpush.msk.msra.mxu3 %vm4387_vm13, %v6888_v14  ;;  %v2944_v39 = vmul.f32 %v2928_v57, %v2895_v53  ;;  %v2904_v11 = vadd.f32 %v2903_v56, %v2902_v63  ;;  %v2911_v29 = vadd.f32 %v2910_v62, %v2909_v10  ;;  %v12598_v40 = vperm.slane %v12061_v36, 4 }
 0x20f   : > { %4062 = vmatmul.f32.gmra.mxu0 %v12029_v51  ;;  %4091 = vmatmul.f32.gmra.mxu1 %v12029_v51  ;;  %v2920_v32 = vadd.f32 %v2919_v28, %v2918_v60  ;;  %vm4362_vm12 = vcmp.eq.s32.totalorder %v7138_v25, %v12107_v47  ;;  %vm3474_vm5 = vcmp.eq.s32.totalorder %v6930_v1, %v12470_v0  ;;  %v12607_v57 = vperm.slane %v12061_v36, 5 }
 0x210   : > { %4120 = vmatmul.f32.gmra.mxu2 %v12029_v51  ;;  %4149 = vmatmul.f32.gmra.mxu3 %v12029_v51  ;;  %v2951_v42 = vadd.f32 %v12221_v41, %v2944_v39  ;;  %v2912_v54 = vrot.slane %v2911_v29, 1  ;;  %vm3475_vm8 = vcmp.eq.s32.totalorder %v6930_v1, %v12508_v12  ;;  %vm4360_vm2 = vcmp.eq.s32.totalorder %v7138_v25, %v12110_v3 }
 0x211   : > { %6619 = vmatpush.msk.msra.mxu2 %vm4378_vm1, %v6888_v14  ;;  %6587 = vmatpush.msk.msra.mxu0 %vm4376_vm15, %v6888_v14  ;;  %v2921_v41 = vrot.slane %v2920_v32, 1  ;;  %vm4361_vm11 = vcmp.eq.s32.totalorder %v7138_v25, %v12125_v6  ;;  %vm4363_vm7 = vcmp.eq.s32.totalorder %v7138_v25, %v12128_v30  ;;  %vm4354_vm4 = vcmp.eq.s32.totalorder %v6930_v1, %v12107_v47  ;;  %v12636_v63 = vpop.f32.mrf.mxu2  ;;  %v12638_v2 = vpop.f32.mrf.mxu3 }
 0x212   : > { %6603 = vmatpush.msk.msra.mxu1 %vm4377_vm0, %v6888_v14  ;;  %6635 = vmatpush.msk.msra.mxu3 %vm4379_vm9, %v6888_v14  ;;  %v2945_v34 = vmul.f32 %v2929_v26, %v2904_v11  ;;  %v2913_v9 = vadd.f32 %v2912_v54, %v2911_v29  ;;  %vm4352_vm13 = vcmp.eq.s32.totalorder %v6930_v1, %v12110_v3  ;;  %v12653_v56 = vperm.slane %v12061_v36, 7 }
 0x213   : > { %6620 = vmatpush.msk.msra.mxu2 %vm4370_vm10, %v6888_v14  ;;  %6588 = vmatpush.msk.msra.mxu0 %vm4368_vm14, %v6888_v14  ;;  %v2922_v10 = vadd.f32 %v2921_v41, %v2920_v32  ;;  %vm4353_vm1 = vcmp.eq.s32.totalorder %v6930_v1, %v12125_v6  ;;  %vm4355_vm15 = vcmp.eq.s32.totalorder %v6930_v1, %v12128_v30  ;;  %v12668_v36 = vperm.slane %v12394_v38, 2 }
 0x214   : > { %6604 = vmatpush.msk.msra.mxu1 %vm4369_vm6, %v6888_v14  ;;  %6636 = vmatpush.msk.msra.mxu3 %vm4371_vm3, %v6888_v14  ;;  %v12670_v26 = vpop.f32.mrf.mxu0  ;;  %v12672_v60 = vpop.f32.mrf.mxu1  ;;  %v2952_v53 = vadd.f32 %v2951_v42, %v2945_v34  ;;  %v2946_v62 = vmul.f32 %v2930_v27, %v2913_v9  ;;  %vm4478_vm0 = vcmp.eq.s32.totalorder %v6937_v5, %v12565_v55  ;;  %v12687_v28 = vperm.slane %v12394_v38, 3 }
 0x215   : > { %6621 = vmatpush.msk.msra.mxu2 %vm4362_vm12, %v6888_v14  ;;  %6589 = vmatpush.msk.msra.mxu0 %vm4360_vm2, %v6888_v14  ;;  %vm4476_vm9 = vcmp.eq.s32.totalorder %v6937_v5, %v12598_v40  ;;  %vm3482_vm10 = vcmp.eq.s32.totalorder %v7138_v25, %v12470_v0  ;;  %vm3483_vm14 = vcmp.eq.s32.totalorder %v7138_v25, %v12508_v12  ;;  %v3506_v6 = vsel %vm3474_vm5, %v12257_v45, 0.0 }
 0x216   : > { %6605 = vmatpush.msk.msra.mxu1 %vm4361_vm11, %v6888_v14  ;;  %6637 = vmatpush.msk.msra.mxu3 %vm4363_vm7, %v6888_v14  ;;  %v2953_v27 = vadd.f32 %v2952_v53, %v2946_v62  ;;  %v2947_v39 = vmul.f32 %v2931_v46, %v2922_v10  ;;  %vm4477_vm6 = vcmp.eq.s32.totalorder %v6937_v5, %v12607_v57  ;;  %v3514_v37 = vsel %vm3482_vm10, %v12410_v43, 0.0 }
 0x217   : > { %6622 = vmatpush.msk.msra.mxu2 %vm4354_vm4, %v6888_v14  ;;  %6590 = vmatpush.msk.msra.mxu0 %vm4352_vm13, %v6888_v14  ;;  %vm4479_vm3 = vcmp.eq.s32.totalorder %v6937_v5, %v12653_v56  ;;  %vm4470_vm12 = vcmp.eq.s32.totalorder %v6943_v7, %v12565_v55  ;;  %vm3476_vm2 = vcmp.eq.s32.totalorder %v6930_v1, %v12668_v36  ;;  %v3515_v3 = vsel %vm3483_vm14, %v12412_v49, 0.0 }
 0x218   : > { %6606 = vmatpush.msk.msra.mxu1 %vm4353_vm1, %v6888_v14  ;;  %6638 = vmatpush.msk.msra.mxu3 %vm4355_vm15, %v6888_v14  ;;  %v2954_v47 = vadd.f32 %v2953_v27, %v2947_v39  ;;  %vm3477_vm11 = vcmp.eq.s32.totalorder %v6930_v1, %v12687_v28  ;;  %vm4468_vm7 = vcmp.eq.s32.totalorder %v6943_v7, %v12598_v40  ;;  %v3507_v45 = vsel %vm3475_vm8, %v12259_v44, 0.0 }
 0x219   : > { %4624 = vmatmul.f32.vlgmr.msra.gmra.mxu0 %v11630_v35  ;;  %4653 = vmatmul.f32.vlgmr.msra.gmra.mxu1 %v11630_v35  ;;  %vm4469_vm4 = vcmp.eq.s32.totalorder %v6943_v7, %v12607_v57  ;;  %vm4471_vm13 = vcmp.eq.s32.totalorder %v6943_v7, %v12653_v56  ;;  %vm4462_vm1 = vcmp.eq.s32.totalorder %v6946_v8, %v12565_v55 }
 0x21a   : > { %4682 = vmatmul.f32.vlgmr.msra.gmra.mxu2 %v11630_v35  ;;  %4711 = vmatmul.f32.vlgmr.msra.gmra.mxu3 %v11630_v35  ;;  %v12753_v30 = vadd.f32 %v2954_v47, %v11570_v58  ;;  %v3538_v35 = vadd.f32 %v3514_v37, %v3506_v6  ;;  %vm4460_vm5 = vcmp.eq.s32.totalorder %v6946_v8, %v12598_v40  ;;  %v3508_v58 = vsel %vm3476_vm2, %v12375_v52, 0.0  ;;  %v6309_v47 = vld [vmem:[%s8432_s4 + $0x4] ss:$8 sm:$0xf] }
 0x21b   : > { %6671 = vmatpush.msk.msrb.mxu2 %vm4478_vm0, %v6888_v14  ;;  %6639 = vmatpush.msk.msrb.mxu0 %vm4476_vm9, %v6888_v14  ;;  %v3547_v44 = vadd.f32 %v3515_v3, %v3507_v45  ;;  %vm4461_vm8 = vcmp.eq.s32.totalorder %v6946_v8, %v12607_v57  ;;  %vm4463_vm15 = vcmp.eq.s32.totalorder %v6946_v8, %v12653_v56  ;;  %v12785_v43 = vpop.f32.mrf.mxu2  ;;  %v12787_v49 = vpop.f32.mrf.mxu3  ;;  %v3509_v52 = vsel %vm3477_vm11, %v12377_v61, 0.0  ;;  %v13025_v6 = vld [vmem:[%s14569_s0 + $0x10] sm:$0xff] }
 0x21c   : > { %6655 = vmatpush.msk.msrb.mxu1 %vm4477_vm6, %v6888_v14  ;;  %6687 = vmatpush.msk.msrb.mxu3 %vm4479_vm3, %v6888_v14  ;;  %v2956_v46 = vsub.f32 0.0, %v12753_v30  ;;  %vm4454_vm0 = vcmp.eq.s32.totalorder %v6961_v13, %v12565_v55  ;;  %vm3484_vm9 = vcmp.eq.s32.totalorder %v7138_v25, %v12668_v36  ;;  %vm3485_vm10 = vcmp.eq.s32.totalorder %v7138_v25, %v12687_v28 }
 0x21d   : > { %6672 = vmatpush.msk.msrb.mxu2 %vm4470_vm12, %v6888_v14  ;;  %6640 = vmatpush.msk.msrb.mxu0 %vm4468_vm7, %v6888_v14  ;;  %vm4452_vm14 = vcmp.eq.s32.totalorder %v6961_v13, %v12598_v40  ;;  %vm4453_vm6 = vcmp.eq.s32.totalorder %v6961_v13, %v12607_v57  ;;  %vm4455_vm3 = vcmp.eq.s32.totalorder %v6961_v13, %v12653_v56  ;;  %v3516_v32 = vsel %vm3484_vm9, %v12510_v31, 0.0 }
 0x21e   : > { %6656 = vmatpush.msk.msrb.mxu1 %vm4469_vm4, %v6888_v14  ;;  %6688 = vmatpush.msk.msrb.mxu3 %vm4471_vm13, %v6888_v14  ;;  %v12822_v61 = vpop.f32.mrf.mxu0  ;;  %v12824_v11 = vpop.f32.mrf.mxu1  ;;  %v2957_v29 = vmul.f32 1.442695, %v2956_v46  ;;  %vm4446_vm12 = vcmp.eq.s32.totalorder %v6988_v15, %v12565_v55  ;;  %vm4444_vm2 = vcmp.eq.s32.totalorder %v6988_v15, %v12598_v40  ;;  %vm4445_vm11 = vcmp.eq.s32.totalorder %v6988_v15, %v12607_v57 }
 0x21f   : > { %6673 = vmatpush.msk.msrb.mxu2 %vm4462_vm1, %v6888_v14  ;;  %6641 = vmatpush.msk.msrb.mxu0 %vm4460_vm5, %v6888_v14  ;;  %v3517_v42 = vsel %vm3485_vm10, %v12512_v50, 0.0  ;;  %vm3490_vm7 = vcmp.eq.s32.totalorder %v7123_v24, %v12470_v0  ;;  %vm3491_vm4 = vcmp.eq.s32.totalorder %v7123_v24, %v12508_v12  ;;  %vm4447_vm13 = vcmp.eq.s32.totalorder %v6988_v15, %v12653_v56 }
 0x220   : > { %6657 = vmatpush.msk.msrb.mxu1 %vm4461_vm8, %v6888_v14  ;;  %6689 = vmatpush.msk.msrb.mxu3 %vm4463_vm15, %v6888_v14  ;;  %6852 = vpow2.f32 %v2957_v29  ;;  %vm4438_vm1 = vcmp.eq.s32.totalorder %v7003_v16, %v12565_v55  ;;  %v3522_v31 = vsel %vm3490_vm7, %v12538_v4, 0.0  ;;  %vm4436_vm5 = vcmp.eq.s32.totalorder %v7003_v16, %v12598_v40  ;;  %v12891_v4 = vld [vmem:[%s14569_s0 + $0x8] sm:$0xff] }
 0x221   : > { %6674 = vmatpush.msk.msrb.mxu2 %vm4454_vm0, %v6888_v14  ;;  %6642 = vmatpush.msk.msrb.mxu0 %vm4452_vm14, %v6888_v14  ;;  %vm4437_vm8 = vcmp.eq.s32.totalorder %v7003_v16, %v12607_v57  ;;  %vm4439_vm15 = vcmp.eq.s32.totalorder %v7003_v16, %v12653_v56  ;;  %v3523_v50 = vsel %vm3491_vm4, %v12540_v59, 0.0  ;;  %v3556_v54 = vadd.f32 %v3516_v32, %v3508_v58 }
 0x222   : > { %6658 = vmatpush.msk.msrb.mxu1 %vm4453_vm6, %v6888_v14  ;;  %6690 = vmatpush.msk.msrb.mxu3 %vm4455_vm3, %v6888_v14  ;;  %v3565_v41 = vadd.f32 %v3517_v42, %v3509_v52  ;;  %vm4430_vm0 = vcmp.eq.s32.totalorder %v7018_v17, %v12565_v55  ;;  %v3539_v34 = vadd.f32 %v3538_v35, %v3522_v31 }
 0x223   : > { %4627 = vmatmul.f32.gmra.mxu0 %v12891_v4  ;;  %4656 = vmatmul.f32.gmra.mxu1 %v12891_v4  ;;  %vm4428_vm9 = vcmp.eq.s32.totalorder %v7018_v17, %v12598_v40  ;;  %vm4429_vm10 = vcmp.eq.s32.totalorder %v7018_v17, %v12607_v57  ;;  %v3548_v59 = vadd.f32 %v3547_v44, %v3523_v50 }
 0x224   : > { %4685 = vmatmul.f32.gmra.mxu2 %v12891_v4  ;;  %4714 = vmatmul.f32.gmra.mxu3 %v12891_v4  ;;  %vm4431_vm14 = vcmp.eq.s32.totalorder %v7018_v17, %v12653_v56  ;;  %vm4422_vm6 = vcmp.eq.s32.totalorder %v7033_v18, %v12565_v55  ;;  %vm4420_vm3 = vcmp.eq.s32.totalorder %v7033_v18, %v12598_v40 }
 0x225   : > { %6675 = vmatpush.msk.msrb.mxu2 %vm4446_vm12, %v6888_v14  ;;  %6643 = vmatpush.msk.msrb.mxu0 %vm4444_vm2, %v6888_v14  ;;  %vm3492_vm12 = vcmp.eq.s32.totalorder %v7123_v24, %v12668_v36  ;;  %vm3493_vm2 = vcmp.eq.s32.totalorder %v7123_v24, %v12687_v28  ;;  %v12929_v9 = vpop.f32.mrf.mxu2  ;;  %v12931_v10 = vpop.f32.mrf.mxu3  ;;  %vm4423_vm7 = vcmp.eq.s32.totalorder %v7033_v18, %v12653_v56 }
 0x226   : > { %6659 = vmatpush.msk.msrb.mxu1 %vm4445_vm11, %v6888_v14  ;;  %6691 = vmatpush.msk.msrb.mxu3 %vm4447_vm13, %v6888_v14  ;;  %v6853_v53 = vpop.eup %6852  ;;  %vm4421_vm11 = vcmp.eq.s32.totalorder %v7033_v18, %v12607_v57  ;;  %vm4414_vm4 = vcmp.eq.s32.totalorder %v7048_v19, %v12565_v55  ;;  %vm4412_vm13 = vcmp.eq.s32.totalorder %v7048_v19, %v12598_v40  ;;  %v3524_v39 = vsel %vm3492_vm12, %v12636_v63, 0.0 }
 0x227   : > { %6676 = vmatpush.msk.msrb.mxu2 %vm4438_vm1, %v6888_v14  ;;  %6644 = vmatpush.msk.msrb.mxu0 %vm4436_vm5, %v6888_v14  ;;  %2959 = vst [vmem:[%s9355_s15 + $0x3] sm:$0x1] %v6853_v53  ;;  %vm4413_vm1 = vcmp.eq.s32.totalorder %v7048_v19, %v12607_v57  ;;  %vm4415_vm5 = vcmp.eq.s32.totalorder %v7048_v19, %v12653_v56  ;;  %v3525_v37 = vsel %vm3493_vm2, %v12638_v2, 0.0  ;;  %v13114_v53 = vperm.slane %v12394_v38, 4 }
 0x228   : > { %6660 = vmatpush.msk.msrb.mxu1 %vm4437_vm8, %v6888_v14  ;;  %6692 = vmatpush.msk.msrb.mxu3 %vm4439_vm15, %v6888_v14  ;;  %v12962_v62 = vpop.f32.mrf.mxu0  ;;  %v12964_v27 = vpop.f32.mrf.mxu1  ;;  %vm3498_vm8 = vcmp.eq.s32.totalorder %v7108_v23, %v12470_v0  ;;  %vm3499_vm15 = vcmp.eq.s32.totalorder %v7108_v23, %v12508_v12  ;;  %v6310_v0 = vld [vmem:[%s8432_s4 + $0x4] ss:$8 sm:$0xf0]  ;;  %vm4397_vm12 = vcmp.eq.s32.totalorder %v7078_v21, %v12607_v57 }
 0x229   : > { %6677 = vmatpush.msk.msrb.mxu2 %vm4430_vm0, %v6888_v14  ;;  %6645 = vmatpush.msk.msrb.mxu0 %vm4428_vm9, %v6888_v14  ;;  %vm4406_vm0 = vcmp.eq.s32.totalorder %v7063_v20, %v12565_v55  ;;  %vm4404_vm9 = vcmp.eq.s32.totalorder %v7063_v20, %v12598_v40  ;;  %v3530_v63 = vsel %vm3498_vm8, %v12670_v26, 0.0  ;;  %v3531_v12 = vsel %vm3499_vm15, %v12672_v60, 0.0 }
 0x22a   : > { %6661 = vmatpush.msk.msrb.mxu1 %vm4429_vm10, %v6888_v14  ;;  %6693 = vmatpush.msk.msrb.mxu3 %vm4431_vm14, %v6888_v14  ;;  %vm4405_vm10 = vcmp.eq.s32.totalorder %v7063_v20, %v12607_v57  ;;  %v3540_v2 = vadd.f32 %v3539_v34, %v3530_v63  ;;  %v3549_v3 = vadd.f32 %v3548_v59, %v3531_v12 }
 0x22b   : > { %6678 = vmatpush.msk.msrb.mxu2 %vm4422_vm6, %v6888_v14  ;;  %6646 = vmatpush.msk.msrb.mxu0 %vm4420_vm3, %v6888_v14  ;;  %v3557_v26 = vadd.f32 %v3556_v54, %v3524_v39  ;;  %v3566_v60 = vadd.f32 %v3565_v41, %v3525_v37  ;;  %vm4407_vm14 = vcmp.eq.s32.totalorder %v7063_v20, %v12653_v56 }
 0x22c   : > { %6662 = vmatpush.msk.msrb.mxu1 %vm4421_vm11, %v6888_v14  ;;  %6694 = vmatpush.msk.msrb.mxu3 %vm4423_vm7, %v6888_v14  ;;  %vm4398_vm6 = vcmp.eq.s32.totalorder %v7078_v21, %v12565_v55  ;;  %v13031_v45 = vor.u32 %v6310_v0, %v6309_v47  ;;  %v3541_v35 = vrot.slane %v3540_v2, 4  ;;  %v3550_v58 = vrot.slane %v3549_v3, 4 }
 0x22d   : > { %4630 = vmatmul.f32.gmra.mxu0 %v13025_v6  ;;  %4659 = vmatmul.f32.gmra.mxu1 %v13025_v6  ;;  %vm4396_vm3 = vcmp.eq.s32.totalorder %v7078_v21, %v12598_v40  ;;  %vm4399_vm2 = vcmp.eq.s32.totalorder %v7078_v21, %v12653_v56  ;;  %vm4390_vm11 = vcmp.eq.s32.totalorder %v7093_v22, %v12565_v55 }
 0x22e   : > { %4688 = vmatmul.f32.gmra.mxu2 %v13025_v6  ;;  %4717 = vmatmul.f32.gmra.mxu3 %v13025_v6  ;;  %v3542_v44 = vadd.f32 %v3541_v35, %v3540_v2  ;;  %v3551_v46 = vadd.f32 %v3550_v58, %v3549_v3  ;;  %vm4388_vm7 = vcmp.eq.s32.totalorder %v7093_v22, %v12598_v40  ;;  %v3611_v47 = vperm.slane %v13031_v45, 0  ;;  %v6703_v35 = vld [vmem:[%s6928_s18 + $0x7] ss:$8 sm:$0xf] }
 0x22f   : > { %6679 = vmatpush.msk.msrb.mxu2 %vm4414_vm4, %v6888_v14  ;;  %6647 = vmatpush.msk.msrb.mxu0 %vm4412_vm13, %v6888_v14  ;;  %vm3500_vm4 = vcmp.eq.s32.totalorder %v7108_v23, %v12668_v36  ;;  %vm3501_vm13 = vcmp.eq.s32.totalorder %v7108_v23, %v12687_v28  ;;  %v13065_v52 = vpop.f32.mrf.mxu2  ;;  %v13067_v29 = vpop.f32.mrf.mxu3  ;;  %vm4382_vm8 = vcmp.eq.s32.totalorder %v7108_v23, %v12565_v55  ;;  %v3612_v3 = vperm.slane %v13031_v45, 1  ;;  %v6704_v58 = vld [vmem:[%s6928_s18 + $0x7] ss:$8 sm:$0xf0] }
 0x230   : > { %6663 = vmatpush.msk.msrb.mxu1 %vm4413_vm1, %v6888_v14  ;;  %6695 = vmatpush.msk.msrb.mxu3 %vm4415_vm5, %v6888_v14  ;;  %v3543_v32 = vrot.slane %v3542_v44, 2  ;;  %v3552_v42 = vrot.slane %v3551_v46, 2  ;;  %v3532_v36 = vsel %vm3500_vm4, %v12785_v43, 0.0  ;;  %v3533_v28 = vsel %vm3501_vm13, %v12787_v49, 0.0 }
 0x231   : > { %6680 = vmatpush.msk.msrb.mxu2 %vm4406_vm0, %v6888_v14  ;;  %6648 = vmatpush.msk.msrb.mxu0 %vm4404_vm9, %v6888_v14  ;;  %vm4389_vm1 = vcmp.eq.s32.totalorder %v7093_v22, %v12607_v57  ;;  %v3558_v31 = vadd.f32 %v3557_v26, %v3532_v36  ;;  %v3567_v50 = vadd.f32 %v3566_v60, %v3533_v28 }
 0x232   : > { %6664 = vmatpush.msk.msrb.mxu1 %vm4405_vm10, %v6888_v14  ;;  %6696 = vmatpush.msk.msrb.mxu3 %vm4407_vm14, %v6888_v14  ;;  %v13089_v54 = vpop.f32.mrf.mxu0  ;;  %v13091_v43 = vpop.f32.mrf.mxu1  ;;  %v3544_v49 = vadd.f32 %v3543_v32, %v3542_v44  ;;  %v3553_v41 = vadd.f32 %v3552_v42, %v3551_v46  ;;  %vm4391_vm5 = vcmp.eq.s32.totalorder %v7093_v22, %v12653_v56  ;;  %v13177_v32 = vperm.slane %v12394_v38, 6 }
 0x233   : > { %6681 = vmatpush.msk.msrb.mxu2 %vm4398_vm6, %v6888_v14  ;;  %6649 = vmatpush.msk.msrb.mxu0 %vm4396_vm3, %v6888_v14  ;;  %v3559_v34 = vrot.slane %v3558_v31, 4  ;;  %v3568_v59 = vrot.slane %v3567_v50, 4  ;;  %vm4380_vm15 = vcmp.eq.s32.totalorder %v7108_v23, %v12598_v40  ;;  %vm4381_vm0 = vcmp.eq.s32.totalorder %v7108_v23, %v12607_v57 }
 0x234   : > { %6665 = vmatpush.msk.msrb.mxu1 %vm4397_vm12, %v6888_v14  ;;  %6697 = vmatpush.msk.msrb.mxu3 %vm4399_vm2, %v6888_v14  ;;  %v3545_v39 = vrot.slane %v3544_v49, 1  ;;  %v3554_v37 = vrot.slane %v3553_v41, 1  ;;  %vm4383_vm9 = vcmp.eq.s32.totalorder %v7108_v23, %v12653_v56  ;;  %vm4374_vm10 = vcmp.eq.s32.totalorder %v7123_v24, %v12565_v55 }
 0x235   : > { %6682 = vmatpush.msk.msrb.mxu2 %vm4390_vm11, %v6888_v14  ;;  %6650 = vmatpush.msk.msrb.mxu0 %vm4388_vm7, %v6888_v14  ;;  %v3560_v0 = vadd.f32 %v3559_v34, %v3558_v31  ;;  %v3569_v63 = vadd.f32 %v3568_v59, %v3567_v50  ;;  %vm4372_vm14 = vcmp.eq.s32.totalorder %v7123_v24, %v12598_v40  ;;  %v3613_v50 = vperm.slane %v13031_v45, 2 }
 0x236   : > { %6666 = vmatpush.msk.msrb.mxu1 %vm4389_vm1, %v6888_v14  ;;  %6698 = vmatpush.msk.msrb.mxu3 %vm4391_vm5, %v6888_v14  ;;  %v3546_v12 = vadd.f32 %v3545_v39, %v3544_v49  ;;  %v3555_v2 = vadd.f32 %v3554_v37, %v3553_v41  ;;  %vm4373_vm6 = vcmp.eq.s32.totalorder %v7123_v24, %v12607_v57 }
 0x237   : > { %4633 = vmatmul.f32.gmra.mxu0 %v12029_v51  ;;  %4662 = vmatmul.f32.gmra.mxu1 %v12029_v51  ;;  %v3561_v26 = vrot.slane %v3560_v0, 2  ;;  %v3570_v60 = vrot.slane %v3569_v63, 2  ;;  %vm4375_vm3 = vcmp.eq.s32.totalorder %v7123_v24, %v12653_v56  ;;  %vm4366_vm12 = vcmp.eq.s32.totalorder %v7138_v25, %v12565_v55 }
 0x238   : > { %4691 = vmatmul.f32.gmra.mxu2 %v12029_v51  ;;  %4720 = vmatmul.f32.gmra.mxu3 %v12029_v51  ;;  %v13161_v51 = vperm.slane %v12394_v38, 5  ;;  %vm4364_vm2 = vcmp.eq.s32.totalorder %v7138_v25, %v12598_v40  ;;  %vm4365_vm11 = vcmp.eq.s32.totalorder %v7138_v25, %v12607_v57  ;;  %v3627_v28 = vmul.f32 %v3611_v47, %v3546_v12 }
 0x239   : > { %6683 = vmatpush.msk.msrb.mxu2 %vm4382_vm8, %v6888_v14  ;;  %6651 = vmatpush.msk.msrb.mxu0 %vm4380_vm15, %v6888_v14  ;;  %v3562_v44 = vadd.f32 %v3561_v26, %v3560_v0  ;;  %v3571_v46 = vadd.f32 %v3570_v60, %v3569_v63  ;;  %v13179_v42 = vpop.f32.mrf.mxu2  ;;  %v13181_v36 = vpop.f32.mrf.mxu3  ;;  %v3628_v31 = vmul.f32 %v3612_v3, %v3555_v2  ;;  %v13291_v3 = vperm.slane %v12394_v38, 7 }
 0x23a   : > { %6667 = vmatpush.msk.msrb.mxu1 %vm4381_vm0, %v6888_v14  ;;  %6699 = vmatpush.msk.msrb.mxu3 %vm4383_vm9, %v6888_v14  ;;  %vm4367_vm7 = vcmp.eq.s32.totalorder %v7138_v25, %v12653_v56  ;;  %vm4358_vm4 = vcmp.eq.s32.totalorder %v6930_v1, %v12565_v55  ;;  %vm4356_vm13 = vcmp.eq.s32.totalorder %v6930_v1, %v12598_v40  ;;  %v13262_v40 = vld [vmem:[%s14569_s0] sm:$0xff]  ;;  %v3614_v60 = vperm.slane %v13031_v45, 3 }
 0x23b   : > { %6684 = vmatpush.msk.msrb.mxu2 %vm4374_vm10, %v6888_v14  ;;  %6652 = vmatpush.msk.msrb.mxu0 %vm4372_vm14, %v6888_v14  ;;  %v3563_v49 = vrot.slane %v3562_v44, 1  ;;  %v13206_v41 = vor.u32 %v6704_v58, %v6703_v35  ;;  %v3572_v39 = vrot.slane %v3571_v46, 1  ;;  %vm4357_vm1 = vcmp.eq.s32.totalorder %v6930_v1, %v12607_v57 }
 0x23c   : > { %6668 = vmatpush.msk.msrb.mxu1 %vm4373_vm6, %v6888_v14  ;;  %6700 = vmatpush.msk.msrb.mxu3 %vm4375_vm3, %v6888_v14  ;;  %v13208_v34 = vpop.f32.mrf.mxu0  ;;  %v13210_v59 = vpop.f32.mrf.mxu1  ;;  %vm4359_vm5 = vcmp.eq.s32.totalorder %v6930_v1, %v12653_v56  ;;  %vm3478_vm8 = vcmp.eq.s32.totalorder %v6930_v1, %v13114_v53  ;;  %v3635_v0 = vadd.f32 %v3628_v31, %v3627_v28 }
 0x23d   : > { %6685 = vmatpush.msk.msrb.mxu2 %vm4366_vm12, %v6888_v14  ;;  %6653 = vmatpush.msk.msrb.mxu0 %vm4364_vm2, %v6888_v14  ;;  %v3564_v37 = vadd.f32 %v3563_v49, %v3562_v44  ;;  %v13235_v47 = vand.u32 127, %v13206_v41  ;;  %vm3479_vm15 = vcmp.eq.s32.totalorder %v6930_v1, %v13161_v51  ;;  %vm3480_vm0 = vcmp.eq.s32.totalorder %v6930_v1, %v13177_v32 }
 0x23e   : > { %6669 = vmatpush.msk.msrb.mxu1 %vm4365_vm11, %v6888_v14  ;;  %6701 = vmatpush.msk.msrb.mxu3 %vm4367_vm7, %v6888_v14  ;;  %vm3486_vm9 = vcmp.eq.s32.totalorder %v7138_v25, %v13114_v53  ;;  %v3573_v55 = vadd.f32 %v3572_v39, %v3571_v46  ;;  %vm3487_vm10 = vcmp.eq.s32.totalorder %v7138_v25, %v13161_v51  ;;  %v3510_v28 = vsel %vm3478_vm8, %v12822_v61, 0.0 }
 0x23f   : > { %6686 = vmatpush.msk.msrb.mxu2 %vm4358_vm4, %v6888_v14  ;;  %6654 = vmatpush.msk.msrb.mxu0 %vm4356_vm13, %v6888_v14  ;;  %v3629_v57 = vmul.f32 %v3613_v50, %v3564_v37  ;;  %v13252_v56 = vperm.slane %v13235_v47, 2  ;;  %v13255_v63 = vperm.slane %v13235_v47, 0  ;;  %v13267_v12 = vperm.slane %v13235_v47, 1 }
 0x240   : > { %6670 = vmatpush.msk.msrb.mxu1 %vm4357_vm1, %v6888_v14  ;;  %6702 = vmatpush.msk.msrb.mxu3 %vm4359_vm5, %v6888_v14  ;;  %v13270_v2 = vperm.slane %v13235_v47, 3  ;;  %vm3488_vm3 = vcmp.eq.s32.totalorder %v7138_v25, %v13177_v32  ;;  %v3518_v38 = vsel %vm3486_vm9, %v12962_v62, 0.0  ;;  %v3519_v44 = vsel %vm3487_vm10, %v12964_v27, 0.0 }
 0x241   : > { %4740 = vmatmul.f32.vlgmr.msrb.gmra.mxu0 %v13262_v40  ;;  %4769 = vmatmul.f32.vlgmr.msrb.gmra.mxu1 %v13262_v40  ;;  %vm5161_vm14 = vcmp.eq.s32.totalorder %v6937_v5, %v13252_v56  ;;  %vm5159_vm6 = vcmp.eq.s32.totalorder %v6937_v5, %v13255_v63  ;;  %vm5160_vm12 = vcmp.eq.s32.totalorder %v6937_v5, %v13267_v12  ;;  %v3511_v31 = vsel %vm3479_vm15, %v12824_v11, 0.0 }
 0x242   : > { %4798 = vmatmul.f32.vlgmr.msrb.gmra.mxu2 %v13262_v40  ;;  %4827 = vmatmul.f32.vlgmr.msrb.gmra.mxu3 %v13262_v40  ;;  %vm5162_vm2 = vcmp.eq.s32.totalorder %v6937_v5, %v13270_v2  ;;  %vm5153_vm11 = vcmp.eq.s32.totalorder %v6943_v7, %v13252_v56  ;;  %v3636_v26 = vadd.f32 %v3635_v0, %v3629_v57  ;;  %v3512_v50 = vsel %vm3480_vm0, %v12929_v9, 0.0 }
 0x243   : > { %6739 = vmatpush.msk.msra.mxu2 %vm5161_vm14, %v6888_v14  ;;  %6707 = vmatpush.msk.msra.mxu0 %vm5159_vm6, %v6888_v14  ;;  %vm5151_vm7 = vcmp.eq.s32.totalorder %v6943_v7, %v13255_v63  ;;  %vm5152_vm4 = vcmp.eq.s32.totalorder %v6943_v7, %v13267_v12  ;;  %v13300_v35 = vpop.f32.mrf.mxu2  ;;  %v13302_v58 = vpop.f32.mrf.mxu3  ;;  %vm5154_vm13 = vcmp.eq.s32.totalorder %v6943_v7, %v13270_v2  ;;  %v3520_v9 = vsel %vm3488_vm3, %v13065_v52, 0.0 }
 0x244   : > { %6723 = vmatpush.msk.msra.mxu1 %vm5160_vm12, %v6888_v14  ;;  %6755 = vmatpush.msk.msra.mxu3 %vm5162_vm2, %v6888_v14  ;;  %vm5145_vm1 = vcmp.eq.s32.totalorder %v6946_v8, %v13252_v56  ;;  %vm5143_vm5 = vcmp.eq.s32.totalorder %v6946_v8, %v13255_v63  ;;  %vm5144_vm14 = vcmp.eq.s32.totalorder %v6946_v8, %v13267_v12 }
 0x245   : > { %6740 = vmatpush.msk.msra.mxu2 %vm5153_vm11, %v6888_v14  ;;  %6708 = vmatpush.msk.msra.mxu0 %vm5151_vm7, %v6888_v14  ;;  %vm5146_vm6 = vcmp.eq.s32.totalorder %v6946_v8, %v13270_v2  ;;  %vm5137_vm9 = vcmp.eq.s32.totalorder %v6961_v13, %v13252_v56  ;;  %vm5135_vm10 = vcmp.eq.s32.totalorder %v6961_v13, %v13255_v63 }
 0x246   : > { %6724 = vmatpush.msk.msra.mxu1 %vm5152_vm4, %v6888_v14  ;;  %6756 = vmatpush.msk.msra.mxu3 %vm5154_vm13, %v6888_v14  ;;  %v13328_v62 = vpop.f32.mrf.mxu0  ;;  %v13330_v46 = vpop.f32.mrf.mxu1  ;;  %vm5136_vm12 = vcmp.eq.s32.totalorder %v6961_v13, %v13267_v12  ;;  %vm5138_vm2 = vcmp.eq.s32.totalorder %v6961_v13, %v13270_v2  ;;  %v3630_v27 = vmul.f32 %v3614_v60, %v3573_v55 }
 0x247   : > { %6741 = vmatpush.msk.msra.mxu2 %vm5145_vm1, %v6888_v14  ;;  %6709 = vmatpush.msk.msra.mxu0 %vm5143_vm5, %v6888_v14  ;;  %vm3489_vm11 = vcmp.eq.s32.totalorder %v7138_v25, %v13291_v3  ;;  %vm3481_vm8 = vcmp.eq.s32.totalorder %v6930_v1, %v13291_v3  ;;  %v3574_v61 = vadd.f32 %v3518_v38, %v3510_v28  ;;  %v3615_v28 = vperm.slane %v13031_v45, 4 }
 0x248   : > { %6725 = vmatpush.msk.msra.mxu1 %vm5144_vm14, %v6888_v14  ;;  %6757 = vmatpush.msk.msra.mxu3 %vm5146_vm6, %v6888_v14  ;;  %v3583_v49 = vadd.f32 %v3519_v44, %v3511_v31  ;;  %v13363_v11 = vadd.f32 %v3636_v26, %v3630_v27  ;;  %vm5129_vm15 = vcmp.eq.s32.totalorder %v6988_v15, %v13252_v56  ;;  %v3521_v39 = vsel %vm3489_vm11, %v13067_v29, 0.0 }
 0x249   : > { %6742 = vmatpush.msk.msra.mxu2 %vm5137_vm9, %v6888_v14  ;;  %6710 = vmatpush.msk.msra.mxu0 %vm5135_vm10, %v6888_v14  ;;  %vm5127_vm0 = vcmp.eq.s32.totalorder %v6988_v15, %v13255_v63  ;;  %vm5128_vm7 = vcmp.eq.s32.totalorder %v6988_v15, %v13267_v12  ;;  %vm5130_vm4 = vcmp.eq.s32.totalorder %v6988_v15, %v13270_v2  ;;  %v3513_v29 = vsel %vm3481_vm8, %v12931_v10, 0.0 }
 0x24a   : > { %6726 = vmatpush.msk.msra.mxu1 %vm5136_vm12, %v6888_v14  ;;  %6758 = vmatpush.msk.msra.mxu3 %vm5138_vm2, %v6888_v14  ;;  %vm3494_vm13 = vcmp.eq.s32.totalorder %v7123_v24, %v13114_v53  ;;  %vm5121_vm3 = vcmp.eq.s32.totalorder %v7003_v16, %v13252_v56  ;;  %vm5119_vm1 = vcmp.eq.s32.totalorder %v7003_v16, %v13255_v63  ;;  %v13508_v27 = vshra.s32 %v10862_v48, 7 }
 0x24b   : > { %4743 = vmatmul.f32.gmra.mxu0 %v12891_v4  ;;  %4772 = vmatmul.f32.gmra.mxu1 %v12891_v4  ;;  %v3526_v52 = vsel %vm3494_vm13, %v13089_v54, 0.0  ;;  %vm3495_vm5 = vcmp.eq.s32.totalorder %v7123_v24, %v13161_v51  ;;  %v3592_v37 = vadd.f32 %v3520_v9, %v3512_v50  ;;  %vm5120_vm14 = vcmp.eq.s32.totalorder %v7003_v16, %v13267_v12 }
 0x24c   : > { %4801 = vmatmul.f32.gmra.mxu2 %v12891_v4  ;;  %4830 = vmatmul.f32.gmra.mxu3 %v12891_v4  ;;  %vm5122_vm6 = vcmp.eq.s32.totalorder %v7003_v16, %v13270_v2  ;;  %v3601_v10 = vadd.f32 %v3521_v39, %v3513_v29  ;;  %vm5113_vm9 = vcmp.eq.s32.totalorder %v7018_v17, %v13252_v56  ;;  %v3527_v55 = vsel %vm3495_vm5, %v13091_v43, 0.0 }
 0x24d   : > { %6743 = vmatpush.msk.msra.mxu2 %vm5129_vm15, %v6888_v14  ;;  %6711 = vmatpush.msk.msra.mxu0 %vm5127_vm0, %v6888_v14  ;;  %vm5111_vm10 = vcmp.eq.s32.totalorder %v7018_v17, %v13255_v63  ;;  %v13424_v54 = vpop.f32.mrf.mxu2  ;;  %v13426_v0 = vpop.f32.mrf.mxu3  ;;  %v3575_v57 = vadd.f32 %v3574_v61, %v3526_v52  ;;  %vm5112_vm12 = vcmp.eq.s32.totalorder %v7018_v17, %v13267_v12  ;;  %v13563_v52 = vperm.slane %v13508_v27, 0 }
 0x24e   : > { %6727 = vmatpush.msk.msra.mxu1 %vm5128_vm7, %v6888_v14  ;;  %6759 = vmatpush.msk.msra.mxu3 %vm5130_vm4, %v6888_v14  ;;  %vm5114_vm2 = vcmp.eq.s32.totalorder %v7018_v17, %v13270_v2  ;;  %vm5105_vm11 = vcmp.eq.s32.totalorder %v7033_v18, %v13252_v56  ;;  %vm5103_vm8 = vcmp.eq.s32.totalorder %v7033_v18, %v13255_v63 }
 0x24f   : > { %6744 = vmatpush.msk.msra.mxu2 %vm5121_vm3, %v6888_v14  ;;  %6712 = vmatpush.msk.msra.mxu0 %vm5119_vm1, %v6888_v14  ;;  %vm5104_vm15 = vcmp.eq.s32.totalorder %v7033_v18, %v13267_v12  ;;  %vm5106_vm0 = vcmp.eq.s32.totalorder %v7033_v18, %v13270_v2  ;;  %vm3496_vm7 = vcmp.eq.s32.totalorder %v7123_v24, %v13177_v32 }
 0x250   : > { %6728 = vmatpush.msk.msra.mxu1 %vm5120_vm14, %v6888_v14  ;;  %6760 = vmatpush.msk.msra.mxu3 %vm5122_vm6, %v6888_v14  ;;  %v13452_v43 = vpop.f32.mrf.mxu0  ;;  %v13454_v26 = vpop.f32.mrf.mxu1  ;;  %vm3497_vm4 = vcmp.eq.s32.totalorder %v7123_v24, %v13291_v3  ;;  %v3584_v60 = vadd.f32 %v3583_v49, %v3527_v55  ;;  %vm5097_vm13 = vcmp.eq.s32.totalorder %v7048_v19, %v13252_v56  ;;  %v3528_v38 = vsel %vm3496_vm7, %v13179_v42, 0.0 }
 0x251   : > { %6745 = vmatpush.msk.msra.mxu2 %vm5113_vm9, %v6888_v14  ;;  %6713 = vmatpush.msk.msra.mxu0 %vm5111_vm10, %v6888_v14  ;;  %vm5095_vm3 = vcmp.eq.s32.totalorder %v7048_v19, %v13255_v63  ;;  %vm5096_vm1 = vcmp.eq.s32.totalorder %v7048_v19, %v13267_v12  ;;  %vm5098_vm5 = vcmp.eq.s32.totalorder %v7048_v19, %v13270_v2  ;;  %v3529_v44 = vsel %vm3497_vm4, %v13181_v36, 0.0 }
 0x252   : > { %6729 = vmatpush.msk.msra.mxu1 %vm5112_vm12, %v6888_v14  ;;  %6761 = vmatpush.msk.msra.mxu3 %vm5114_vm2, %v6888_v14  ;;  %vm5089_vm14 = vcmp.eq.s32.totalorder %v7063_v20, %v13252_v56  ;;  %vm3502_vm6 = vcmp.eq.s32.totalorder %v7108_v23, %v13114_v53  ;;  %vm3503_vm9 = vcmp.eq.s32.totalorder %v7108_v23, %v13161_v51  ;;  %v3616_v49 = vperm.slane %v13031_v45, 5 }
 0x253   : > { %6746 = vmatpush.msk.msra.mxu2 %vm5105_vm11, %v6888_v14  ;;  %6714 = vmatpush.msk.msra.mxu0 %vm5103_vm8, %v6888_v14  ;;  %vm5087_vm10 = vcmp.eq.s32.totalorder %v7063_v20, %v13255_v63  ;;  %vm5088_vm12 = vcmp.eq.s32.totalorder %v7063_v20, %v13267_v12  ;;  %v3534_v42 = vsel %vm3502_vm6, %v13208_v34, 0.0  ;;  %v3535_v36 = vsel %vm3503_vm9, %v13210_v59, 0.0 }
 0x254   : > { %6730 = vmatpush.msk.msra.mxu1 %vm5104_vm15, %v6888_v14  ;;  %6762 = vmatpush.msk.msra.mxu3 %vm5106_vm0, %v6888_v14  ;;  %vm5090_vm2 = vcmp.eq.s32.totalorder %v7063_v20, %v13270_v2  ;;  %v3576_v53 = vadd.f32 %v3575_v57, %v3534_v42  ;;  %v3585_v51 = vadd.f32 %v3584_v60, %v3535_v36  ;;  %v13621_v42 = vld [vmem:[%s14569_s0 + $0x18] sm:$0xff] }
 0x255   : > { %4746 = vmatmul.f32.gmra.mxu0 %v13025_v6  ;;  %4775 = vmatmul.f32.gmra.mxu1 %v13025_v6  ;;  %v3593_v34 = vadd.f32 %v3592_v37, %v3528_v38  ;;  %v3602_v59 = vadd.f32 %v3601_v10, %v3529_v44  ;;  %vm5081_vm11 = vcmp.eq.s32.totalorder %v7078_v21, %v13252_v56 }
 0x256   : > { %4804 = vmatmul.f32.gmra.mxu2 %v13025_v6  ;;  %4833 = vmatmul.f32.gmra.mxu3 %v13025_v6  ;;  %v3577_v48 = vrot.slane %v3576_v53, 4  ;;  %v3586_v31 = vrot.slane %v3585_v51, 4  ;;  %vm5079_vm8 = vcmp.eq.s32.totalorder %v7078_v21, %v13255_v63  ;;  %vm5080_vm15 = vcmp.eq.s32.totalorder %v7078_v21, %v13267_v12 }
 0x257   : > { %6747 = vmatpush.msk.msra.mxu2 %vm5097_vm13, %v6888_v14  ;;  %6715 = vmatpush.msk.msra.mxu0 %vm5095_vm3, %v6888_v14  ;;  %v13533_v50 = vpop.f32.mrf.mxu2  ;;  %v13535_v61 = vpop.f32.mrf.mxu3  ;;  %vm5082_vm0 = vcmp.eq.s32.totalorder %v7078_v21, %v13270_v2  ;;  %vm5073_vm7 = vcmp.eq.s32.totalorder %v7093_v22, %v13252_v56  ;;  %vm5071_vm4 = vcmp.eq.s32.totalorder %v7093_v22, %v13255_v63 }
 0x258   : > { %6731 = vmatpush.msk.msra.mxu1 %vm5096_vm1, %v6888_v14  ;;  %6763 = vmatpush.msk.msra.mxu3 %vm5098_vm5, %v6888_v14  ;;  %v3578_v9 = vadd.f32 %v3577_v48, %v3576_v53  ;;  %v3587_v39 = vadd.f32 %v3586_v31, %v3585_v51  ;;  %vm3504_vm13 = vcmp.eq.s32.totalorder %v7108_v23, %v13177_v32  ;;  %v13648_v48 = vperm.slane %v13235_v47, 4 }
 0x259   : > { %6748 = vmatpush.msk.msra.mxu2 %vm5089_vm14, %v6888_v14  ;;  %6716 = vmatpush.msk.msra.mxu0 %vm5087_vm10, %v6888_v14  ;;  %vm5072_vm3 = vcmp.eq.s32.totalorder %v7093_v22, %v13267_v12  ;;  %vm5074_vm1 = vcmp.eq.s32.totalorder %v7093_v22, %v13270_v2  ;;  %v3536_v32 = vsel %vm3504_vm13, %v13300_v35, 0.0  ;;  %vm3505_vm5 = vcmp.eq.s32.totalorder %v7108_v23, %v13291_v3 }
 0x25a   : > { %6732 = vmatpush.msk.msra.mxu1 %vm5088_vm12, %v6888_v14  ;;  %6764 = vmatpush.msk.msra.mxu3 %vm5090_vm2, %v6888_v14  ;;  %v13565_v29 = vpop.f32.mrf.mxu0  ;;  %v13567_v37 = vpop.f32.mrf.mxu1  ;;  %v3579_v10 = vrot.slane %v3578_v9, 2  ;;  %v3588_v57 = vrot.slane %v3587_v39, 2  ;;  %v3594_v55 = vadd.f32 %v3593_v34, %v3536_v32  ;;  %v3537_v60 = vsel %vm3505_vm5, %v13302_v58, 0.0 }
 0x25b   : > { %6749 = vmatpush.msk.msra.mxu2 %vm5081_vm11, %v6888_v14  ;;  %6717 = vmatpush.msk.msra.mxu0 %vm5079_vm8, %v6888_v14  ;;  %vm5065_vm14 = vcmp.eq.s32.totalorder %v7108_v23, %v13252_v56  ;;  %vm5063_vm6 = vcmp.eq.s32.totalorder %v7108_v23, %v13255_v63  ;;  %v3603_v3 = vadd.f32 %v3602_v59, %v3537_v60  ;;  %v13606_v35 = vperm.slane %v13235_v47, 6 }
 0x25c   : > { %6733 = vmatpush.msk.msra.mxu1 %vm5080_vm15, %v6888_v14  ;;  %6765 = vmatpush.msk.msra.mxu3 %vm5082_vm0, %v6888_v14  ;;  %v3580_v58 = vadd.f32 %v3579_v10, %v3578_v9  ;;  %v3589_v38 = vadd.f32 %v3588_v57, %v3587_v39  ;;  %vm5064_vm9 = vcmp.eq.s32.totalorder %v7108_v23, %v13267_v12  ;;  %v3595_v44 = vrot.slane %v3594_v55, 4 }
 0x25d   : > { %6750 = vmatpush.msk.msra.mxu2 %vm5073_vm7, %v6888_v14  ;;  %6718 = vmatpush.msk.msra.mxu0 %vm5071_vm4, %v6888_v14  ;;  %vm5066_vm10 = vcmp.eq.s32.totalorder %v7108_v23, %v13270_v2  ;;  %vm5057_vm12 = vcmp.eq.s32.totalorder %v7123_v24, %v13252_v56  ;;  %v3604_v36 = vrot.slane %v3603_v3, 4  ;;  %vm5055_vm2 = vcmp.eq.s32.totalorder %v7123_v24, %v13255_v63 }
 0x25e   : > { %6734 = vmatpush.msk.msra.mxu1 %vm5072_vm3, %v6888_v14  ;;  %6766 = vmatpush.msk.msra.mxu3 %vm5074_vm1, %v6888_v14  ;;  %v3581_v53 = vrot.slane %v3580_v58, 1  ;;  %v3590_v51 = vrot.slane %v3589_v38, 1  ;;  %v3596_v34 = vadd.f32 %v3595_v44, %v3594_v55  ;;  %vm5056_vm11 = vcmp.eq.s32.totalorder %v7123_v24, %v13267_v12 }
 0x25f   : > { %4749 = vmatmul.f32.gmra.mxu0 %v13621_v42  ;;  %4778 = vmatmul.f32.gmra.mxu1 %v13621_v42  ;;  %v3605_v59 = vadd.f32 %v3604_v36, %v3603_v3  ;;  %vm5058_vm8 = vcmp.eq.s32.totalorder %v7123_v24, %v13270_v2  ;;  %vm5049_vm15 = vcmp.eq.s32.totalorder %v7138_v25, %v13252_v56  ;;  %v13691_v3 = vperm.slane %v13235_v47, 5 }
 0x260   : > { %4807 = vmatmul.f32.gmra.mxu2 %v13621_v42  ;;  %4836 = vmatmul.f32.gmra.mxu3 %v13621_v42  ;;  %v3582_v31 = vadd.f32 %v3581_v53, %v3580_v58  ;;  %v3597_v9 = vrot.slane %v3596_v34, 2  ;;  %vm5047_vm0 = vcmp.eq.s32.totalorder %v7138_v25, %v13255_v63  ;;  %vm5048_vm7 = vcmp.eq.s32.totalorder %v7138_v25, %v13267_v12 }
 0x261   : > { %6751 = vmatpush.msk.msra.mxu2 %vm5065_vm14, %v6888_v14  ;;  %6719 = vmatpush.msk.msra.mxu0 %vm5063_vm6, %v6888_v14  ;;  %v13662_v39 = vpop.f32.mrf.mxu2  ;;  %v13664_v32 = vpop.f32.mrf.mxu3  ;;  %v3591_v10 = vadd.f32 %v3590_v51, %v3589_v38  ;;  %v3606_v57 = vrot.slane %v3605_v59, 2  ;;  %vm5050_vm4 = vcmp.eq.s32.totalorder %v7138_v25, %v13270_v2  ;;  %vm5041_vm13 = vcmp.eq.s32.totalorder %v6930_v1, %v13252_v56 }
 0x262   : > { %6735 = vmatpush.msk.msra.mxu1 %vm5064_vm9, %v6888_v14  ;;  %6767 = vmatpush.msk.msra.mxu3 %vm5066_vm10, %v6888_v14  ;;  %v3631_v55 = vmul.f32 %v3615_v28, %v3582_v31  ;;  %v3598_v60 = vadd.f32 %v3597_v9, %v3596_v34  ;;  %vm5039_vm3 = vcmp.eq.s32.totalorder %v6930_v1, %v13255_v63  ;;  %v13710_v44 = vperm.slane %v13235_v47, 7 }
 0x263   : > { %6752 = vmatpush.msk.msra.mxu2 %vm5057_vm12, %v6888_v14  ;;  %6720 = vmatpush.msk.msra.mxu0 %vm5055_vm2, %v6888_v14  ;;  %v3607_v38 = vadd.f32 %v3606_v57, %v3605_v59  ;;  %vm5040_vm1 = vcmp.eq.s32.totalorder %v6930_v1, %v13267_v12  ;;  %vm5042_vm5 = vcmp.eq.s32.totalorder %v6930_v1, %v13270_v2  ;;  %v3617_v51 = vperm.slane %v13031_v45, 6 }
 0x264   : > { %6736 = vmatpush.msk.msra.mxu1 %vm5056_vm11, %v6888_v14  ;;  %6768 = vmatpush.msk.msra.mxu3 %vm5058_vm8, %v6888_v14  ;;  %v13693_v58 = vpop.f32.mrf.mxu0  ;;  %v13695_v28 = vpop.f32.mrf.mxu1  ;;  %v3638_v36 = vadd.f32 %v13363_v11, %v3631_v55  ;;  %v3599_v53 = vrot.slane %v3598_v60, 1  ;;  %v13715_v34 = vperm.slane %v13508_v27, 1  ;;  %v3632_v47 = vmul.f32 %v3616_v49, %v3591_v10 }
 0x265   : > { %6753 = vmatpush.msk.msra.mxu2 %vm5049_vm15, %v6888_v14  ;;  %6721 = vmatpush.msk.msra.mxu0 %vm5047_vm0, %v6888_v14  ;;  %v3608_v11 = vrot.slane %v3607_v38, 1  ;;  %vm4161_vm14 = vcmp.eq.s32.totalorder %v6930_v1, %v13563_v52  ;;  %vm5165_vm6 = vcmp.eq.s32.totalorder %v6937_v5, %v13606_v35  ;;  %v3618_v49 = vperm.slane %v13031_v45, 7 }
 0x266   : > { %6737 = vmatpush.msk.msra.mxu1 %vm5048_vm7, %v6888_v14  ;;  %6769 = vmatpush.msk.msra.mxu3 %vm5050_vm4, %v6888_v14  ;;  %v3600_v59 = vadd.f32 %v3599_v53, %v3598_v60  ;;  %vm5163_vm9 = vcmp.eq.s32.totalorder %v6937_v5, %v13648_v48  ;;  %vm5164_vm10 = vcmp.eq.s32.totalorder %v6937_v5, %v13691_v3  ;;  %v13759_v45 = vperm.slane %v13508_v27, 2 }
 0x267   : > { %6754 = vmatpush.msk.msra.mxu2 %vm5041_vm13, %v6888_v14  ;;  %6722 = vmatpush.msk.msra.mxu0 %vm5039_vm3, %v6888_v14  ;;  %v3609_v56 = vadd.f32 %v3608_v11, %v3607_v38  ;;  %vm5166_vm12 = vcmp.eq.s32.totalorder %v6937_v5, %v13710_v44  ;;  %vm5157_vm2 = vcmp.eq.s32.totalorder %v6943_v7, %v13606_v35  ;;  %v13799_v5 = vperm.slane %v13508_v27, 3 }
 0x268   : > { %6738 = vmatpush.msk.msra.mxu1 %vm5040_vm1, %v6888_v14  ;;  %6770 = vmatpush.msk.msra.mxu3 %vm5042_vm5, %v6888_v14  ;;  %v3639_v63 = vadd.f32 %v3638_v36, %v3632_v47  ;;  %v3633_v12 = vmul.f32 %v3617_v51, %v3600_v59  ;;  %vm5155_vm11 = vcmp.eq.s32.totalorder %v6943_v7, %v13648_v48  ;;  %v4193_v38 = vsel %vm4161_vm14, %v13328_v62, 0.0 }
 0x269   : > { %5311 = vmatmul.f32.vlgmr.msra.gmra.mxu0 %v13262_v40  ;;  %5340 = vmatmul.f32.vlgmr.msra.gmra.mxu1 %v13262_v40  ;;  %vm5156_vm8 = vcmp.eq.s32.totalorder %v6943_v7, %v13691_v3  ;;  %vm5158_vm15 = vcmp.eq.s32.totalorder %v6943_v7, %v13710_v44  ;;  %vm5149_vm0 = vcmp.eq.s32.totalorder %v6946_v8, %v13606_v35 }
 0x26a   : > { %5369 = vmatmul.f32.vlgmr.msra.gmra.mxu2 %v13262_v40  ;;  %5398 = vmatmul.f32.vlgmr.msra.gmra.mxu3 %v13262_v40  ;;  %v3640_v2 = vadd.f32 %v3639_v63, %v3633_v12  ;;  %v3634_v31 = vmul.f32 %v3618_v49, %v3609_v56  ;;  %vm5147_vm7 = vcmp.eq.s32.totalorder %v6946_v8, %v13648_v48 }
 0x26b   : > { %6803 = vmatpush.msk.msrb.mxu2 %vm5165_vm6, %v6888_v14  ;;  %6771 = vmatpush.msk.msrb.mxu0 %vm5163_vm9, %v6888_v14  ;;  %v13786_v9 = vpop.f32.mrf.mxu2  ;;  %v13788_v10 = vpop.f32.mrf.mxu3  ;;  %vm4162_vm4 = vcmp.eq.s32.totalorder %v6930_v1, %v13715_v34  ;;  %vm4163_vm13 = vcmp.eq.s32.totalorder %v6930_v1, %v13759_v45  ;;  %vm5148_vm3 = vcmp.eq.s32.totalorder %v6946_v8, %v13691_v3 }
 0x26c   : > { %6787 = vmatpush.msk.msrb.mxu1 %vm5164_vm10, %v6888_v14  ;;  %6819 = vmatpush.msk.msrb.mxu3 %vm5166_vm12, %v6888_v14  ;;  %v3641_v57 = vadd.f32 %v3640_v2, %v3634_v31  ;;  %vm5150_vm1 = vcmp.eq.s32.totalorder %v6946_v8, %v13710_v44  ;;  %vm5141_vm5 = vcmp.eq.s32.totalorder %v6961_v13, %v13606_v35  ;;  %v4195_v62 = vsel %vm4163_vm13, %v13424_v54, 0.0 }
 0x26d   : > { %6804 = vmatpush.msk.msrb.mxu2 %vm5157_vm2, %v6888_v14  ;;  %6772 = vmatpush.msk.msrb.mxu0 %vm5155_vm11, %v6888_v14  ;;  %vm5139_vm6 = vcmp.eq.s32.totalorder %v6961_v13, %v13648_v48  ;;  %vm5140_vm9 = vcmp.eq.s32.totalorder %v6961_v13, %v13691_v3  ;;  %vm5142_vm10 = vcmp.eq.s32.totalorder %v6961_v13, %v13710_v44 }
 0x26e   : > { %6788 = vmatpush.msk.msrb.mxu1 %vm5156_vm8, %v6888_v14  ;;  %6820 = vmatpush.msk.msrb.mxu3 %vm5158_vm15, %v6888_v14  ;;  %v13819_v55 = vpop.f32.mrf.mxu0  ;;  %v13821_v60 = vpop.f32.mrf.mxu1  ;;  %v13838_v7 = vadd.f32 %v3641_v57, %v12753_v30  ;;  %vm4169_vm12 = vcmp.eq.s32.totalorder %v7138_v25, %v13563_v52  ;;  %v4194_v30 = vsel %vm4162_vm4, %v13330_v46, 0.0  ;;  %vm4164_vm14 = vcmp.eq.s32.totalorder %v6930_v1, %v13799_v5 }
 0x26f   : > { %6805 = vmatpush.msk.msrb.mxu2 %vm5149_vm0, %v6888_v14  ;;  %6773 = vmatpush.msk.msrb.mxu0 %vm5147_vm7, %v6888_v14  ;;  %vm4170_vm2 = vcmp.eq.s32.totalorder %v7138_v25, %v13715_v34  ;;  %vm5133_vm11 = vcmp.eq.s32.totalorder %v6988_v15, %v13606_v35  ;;  %vm5131_vm8 = vcmp.eq.s32.totalorder %v6988_v15, %v13648_v48  ;;  %v4201_v13 = vsel %vm4169_vm12, %v13452_v43, 0.0 }
 0x270   : > { %6789 = vmatpush.msk.msrb.mxu1 %vm5148_vm3, %v6888_v14  ;;  %6821 = vmatpush.msk.msrb.mxu3 %vm5150_vm1, %v6888_v14  ;;  %v3643_v8 = vsub.f32 0.0, %v13838_v7  ;;  %vm5132_vm15 = vcmp.eq.s32.totalorder %v6988_v15, %v13691_v3  ;;  %vm5134_vm0 = vcmp.eq.s32.totalorder %v6988_v15, %v13710_v44  ;;  %vm5125_vm7 = vcmp.eq.s32.totalorder %v7003_v16, %v13606_v35 }
 0x271   : > { %6806 = vmatpush.msk.msrb.mxu2 %vm5141_vm5, %v6888_v14  ;;  %6774 = vmatpush.msk.msrb.mxu0 %vm5139_vm6, %v6888_v14  ;;  %vm4171_vm4 = vcmp.eq.s32.totalorder %v7138_v25, %v13759_v45  ;;  %vm4172_vm13 = vcmp.eq.s32.totalorder %v7138_v25, %v13799_v5  ;;  %vm5123_vm3 = vcmp.eq.s32.totalorder %v7003_v16, %v13648_v48  ;;  %v4202_v54 = vsel %vm4170_vm2, %v13454_v26, 0.0 }
 0x272   : > { %6790 = vmatpush.msk.msrb.mxu1 %vm5140_vm9, %v6888_v14  ;;  %6822 = vmatpush.msk.msrb.mxu3 %vm5142_vm10, %v6888_v14  ;;  %v3644_v46 = vmul.f32 1.442695, %v3643_v8  ;;  %vm5124_vm1 = vcmp.eq.s32.totalorder %v7003_v16, %v13691_v3  ;;  %vm5126_vm5 = vcmp.eq.s32.totalorder %v7003_v16, %v13710_v44  ;;  %vm4177_vm6 = vcmp.eq.s32.totalorder %v7123_v24, %v13563_v52 }
 0x273   : > { %5314 = vmatmul.f32.gmra.mxu0 %v12891_v4  ;;  %5343 = vmatmul.f32.gmra.mxu1 %v12891_v4  ;;  %vm4178_vm9 = vcmp.eq.s32.totalorder %v7123_v24, %v13715_v34  ;;  %vm5117_vm10 = vcmp.eq.s32.totalorder %v7018_v17, %v13606_v35  ;;  %vm5115_vm12 = vcmp.eq.s32.totalorder %v7018_v17, %v13648_v48  ;;  %v4204_v15 = vsel %vm4172_vm13, %v13535_v61, 0.0 }
 0x274   : > { %5372 = vmatmul.f32.gmra.mxu2 %v12891_v4  ;;  %5401 = vmatmul.f32.gmra.mxu3 %v12891_v4  ;;  %6854 = vpow2.f32 %v3644_v46  ;;  %v4203_v4 = vsel %vm4171_vm4, %v13533_v50, 0.0  ;;  %v4209_v50 = vsel %vm4177_vm6, %v13565_v29, 0.0  ;;  %vm5116_vm2 = vcmp.eq.s32.totalorder %v7018_v17, %v13691_v3 }
 0x275   : > { %6807 = vmatpush.msk.msrb.mxu2 %vm5133_vm11, %v6888_v14  ;;  %6775 = vmatpush.msk.msrb.mxu0 %vm5131_vm8, %v6888_v14  ;;  %v13928_v43 = vpop.f32.mrf.mxu2  ;;  %v13930_v26 = vpop.f32.mrf.mxu3  ;;  %vm5118_vm11 = vcmp.eq.s32.totalorder %v7018_v17, %v13710_v44  ;;  %v4225_v36 = vadd.f32 %v4201_v13, %v4193_v38  ;;  %v4210_v61 = vsel %vm4178_vm9, %v13567_v37, 0.0  ;;  %vm5109_vm8 = vcmp.eq.s32.totalorder %v7033_v18, %v13606_v35  ;;  %v6441_v38 = vld [vmem:[%s8432_s4 + $0x5] ss:$8 sm:$0xf] }
 0x276   : > { %6791 = vmatpush.msk.msrb.mxu1 %vm5132_vm15, %v6888_v14  ;;  %6823 = vmatpush.msk.msrb.mxu3 %vm5134_vm0, %v6888_v14  ;;  %vm5107_vm15 = vcmp.eq.s32.totalorder %v7033_v18, %v13648_v48  ;;  %v4196_v16 = vsel %vm4164_vm14, %v13426_v0, 0.0  ;;  %v4234_v51 = vadd.f32 %v4202_v54, %v4194_v30  ;;  %vm5108_vm0 = vcmp.eq.s32.totalorder %v7033_v18, %v13691_v3 }
 0x277   : > { %6808 = vmatpush.msk.msrb.mxu2 %vm5125_vm7, %v6888_v14  ;;  %6776 = vmatpush.msk.msrb.mxu0 %vm5123_vm3, %v6888_v14  ;;  %vm5110_vm7 = vcmp.eq.s32.totalorder %v7033_v18, %v13710_v44  ;;  %v4243_v37 = vadd.f32 %v4203_v4, %v4195_v62  ;;  %v4252_v0 = vadd.f32 %v4204_v15, %v4196_v16  ;;  %v14166_v46 = vperm.slane %v13508_v27, 4 }
 0x278   : > { %6792 = vmatpush.msk.msrb.mxu1 %vm5124_vm1, %v6888_v14  ;;  %6824 = vmatpush.msk.msrb.mxu3 %vm5126_vm5, %v6888_v14  ;;  %v13965_v29 = vpop.f32.mrf.mxu0  ;;  %v13967_v53 = vpop.f32.mrf.mxu1  ;;  %v4226_v47 = vadd.f32 %v4225_v36, %v4209_v50  ;;  %v4235_v11 = vadd.f32 %v4234_v51, %v4210_v61  ;;  %vm5101_vm14 = vcmp.eq.s32.totalorder %v7048_v19, %v13606_v35  ;;  %v14177_v15 = vperm.slane %v13508_v27, 5 }
 0x279   : > { %6809 = vmatpush.msk.msrb.mxu2 %vm5117_vm10, %v6888_v14  ;;  %6777 = vmatpush.msk.msrb.mxu0 %vm5115_vm12, %v6888_v14  ;;  %vm4179_vm4 = vcmp.eq.s32.totalorder %v7123_v24, %v13759_v45  ;;  %vm5099_vm13 = vcmp.eq.s32.totalorder %v7048_v19, %v13648_v48  ;;  %vm5100_vm3 = vcmp.eq.s32.totalorder %v7048_v19, %v13691_v3  ;;  %v14192_v61 = vperm.slane %v13508_v27, 6 }
 0x27a   : > { %6793 = vmatpush.msk.msrb.mxu1 %vm5116_vm2, %v6888_v14  ;;  %6825 = vmatpush.msk.msrb.mxu3 %vm5118_vm11, %v6888_v14  ;;  %v6855_v59 = vpop.eup %6854  ;;  %vm5102_vm1 = vcmp.eq.s32.totalorder %v7048_v19, %v13710_v44  ;;  %vm5093_vm5 = vcmp.eq.s32.totalorder %v7063_v20, %v13606_v35  ;;  %vm4180_vm6 = vcmp.eq.s32.totalorder %v7123_v24, %v13799_v5  ;;  %v4211_v17 = vsel %vm4179_vm4, %v13662_v39, 0.0 }
 0x27b   : > { %6810 = vmatpush.msk.msrb.mxu2 %vm5109_vm8, %v6888_v14  ;;  %6778 = vmatpush.msk.msrb.mxu0 %vm5107_vm15, %v6888_v14  ;;  %3646 = vst [vmem:[%s9355_s15 + $0x4] sm:$0x1] %v6855_v59  ;;  %vm5091_vm9 = vcmp.eq.s32.totalorder %v7063_v20, %v13648_v48  ;;  %vm5092_vm10 = vcmp.eq.s32.totalorder %v7063_v20, %v13691_v3 }
 0x27c   : > { %6794 = vmatpush.msk.msrb.mxu1 %vm5108_vm0, %v6888_v14  ;;  %6826 = vmatpush.msk.msrb.mxu3 %vm5110_vm7, %v6888_v14  ;;  %vm4185_vm12 = vcmp.eq.s32.totalorder %v7108_v23, %v13563_v52  ;;  %vm4186_vm2 = vcmp.eq.s32.totalorder %v7108_v23, %v13715_v34  ;;  %vm5094_vm11 = vcmp.eq.s32.totalorder %v7063_v20, %v13710_v44 }
 0x27d   : > { %5317 = vmatmul.f32.gmra.mxu0 %v13025_v6  ;;  %5346 = vmatmul.f32.gmra.mxu1 %v13025_v6  ;;  %vm5085_vm8 = vcmp.eq.s32.totalorder %v7078_v21, %v13606_v35  ;;  %v4217_v18 = vsel %vm4185_vm12, %v13693_v58, 0.0  ;;  %v4212_v58 = vsel %vm4180_vm6, %v13664_v32, 0.0  ;;  %vm5083_vm15 = vcmp.eq.s32.totalorder %v7078_v21, %v13648_v48 }
 0x27e   : > { %5375 = vmatmul.f32.gmra.mxu2 %v13025_v6  ;;  %5404 = vmatmul.f32.gmra.mxu3 %v13025_v6  ;;  %v4218_v6 = vsel %vm4186_vm2, %v13695_v28, 0.0  ;;  %v4227_v28 = vadd.f32 %v4226_v47, %v4217_v18  ;;  %v4244_v49 = vadd.f32 %v4243_v37, %v4211_v17  ;;  %vm5084_vm0 = vcmp.eq.s32.totalorder %v7078_v21, %v13691_v3 }
 0x27f   : > { %6811 = vmatpush.msk.msrb.mxu2 %vm5101_vm14, %v6888_v14  ;;  %6779 = vmatpush.msk.msrb.mxu0 %vm5099_vm13, %v6888_v14  ;;  %v14045_v52 = vpop.f32.mrf.mxu2  ;;  %v14047_v39 = vpop.f32.mrf.mxu3  ;;  %v4236_v34 = vadd.f32 %v4235_v11, %v4218_v6  ;;  %vm5086_vm7 = vcmp.eq.s32.totalorder %v7078_v21, %v13710_v44  ;;  %vm5077_vm14 = vcmp.eq.s32.totalorder %v7093_v22, %v13606_v35 }
 0x280   : > { %6795 = vmatpush.msk.msrb.mxu1 %vm5100_vm3, %v6888_v14  ;;  %6827 = vmatpush.msk.msrb.mxu3 %vm5102_vm1, %v6888_v14  ;;  %v4228_v19 = vrot.slane %v4227_v28, 4  ;;  %vm5075_vm4 = vcmp.eq.s32.totalorder %v7093_v22, %v13648_v48  ;;  %v4253_v12 = vadd.f32 %v4252_v0, %v4212_v58  ;;  %vm5076_vm13 = vcmp.eq.s32.totalorder %v7093_v22, %v13691_v3 }
 0x281   : > { %6812 = vmatpush.msk.msrb.mxu2 %vm5093_vm5, %v6888_v14  ;;  %6780 = vmatpush.msk.msrb.mxu0 %vm5091_vm9, %v6888_v14  ;;  %v4237_v32 = vrot.slane %v4236_v34, 4  ;;  %vm5078_vm3 = vcmp.eq.s32.totalorder %v7093_v22, %v13710_v44  ;;  %vm5069_vm1 = vcmp.eq.s32.totalorder %v7108_v23, %v13606_v35  ;;  %vm5067_vm5 = vcmp.eq.s32.totalorder %v7108_v23, %v13648_v48 }
 0x282   : > { %6796 = vmatpush.msk.msrb.mxu1 %vm5092_vm10, %v6888_v14  ;;  %6828 = vmatpush.msk.msrb.mxu3 %vm5094_vm11, %v6888_v14  ;;  %v14087_v56 = vpop.f32.mrf.mxu0  ;;  %v14089_v63 = vpop.f32.mrf.mxu1  ;;  %v4229_v20 = vadd.f32 %v4228_v19, %v4227_v28  ;;  %vm4187_vm6 = vcmp.eq.s32.totalorder %v7108_v23, %v13759_v45  ;;  %vm4188_vm9 = vcmp.eq.s32.totalorder %v7108_v23, %v13799_v5  ;;  %v14208_v0 = vperm.slane %v13508_v27, 7 }
 0x283   : > { %6813 = vmatpush.msk.msrb.mxu2 %vm5085_vm8, %v6888_v14  ;;  %6781 = vmatpush.msk.msrb.mxu0 %vm5083_vm15, %v6888_v14  ;;  %v4238_v2 = vadd.f32 %v4237_v32, %v4236_v34  ;;  %vm5068_vm10 = vcmp.eq.s32.totalorder %v7108_v23, %v13691_v3  ;;  %v4219_v21 = vsel %vm4187_vm6, %v13786_v9, 0.0  ;;  %v4220_v31 = vsel %vm4188_vm9, %v13788_v10, 0.0  ;;  %v6442_v9 = vld [vmem:[%s8432_s4 + $0x5] ss:$8 sm:$0xf0] }
 0x284   : > { %6797 = vmatpush.msk.msrb.mxu1 %vm5084_vm0, %v6888_v14  ;;  %6829 = vmatpush.msk.msrb.mxu3 %vm5086_vm7, %v6888_v14  ;;  %v4230_v22 = vrot.slane %v4229_v20, 2  ;;  %vm5070_vm12 = vcmp.eq.s32.totalorder %v7108_v23, %v13710_v44  ;;  %v4245_v45 = vadd.f32 %v4244_v49, %v4219_v21  ;;  %v4254_v5 = vadd.f32 %v4253_v12, %v4220_v31  ;;  %v6878_v21 = vld [vmem:[%s14569_s0 + $0x8] sm:$0xff] }
 0x285   : > { %6814 = vmatpush.msk.msrb.mxu2 %vm5077_vm14, %v6888_v14  ;;  %6782 = vmatpush.msk.msrb.mxu0 %vm5075_vm4, %v6888_v14  ;;  %v4239_v57 = vrot.slane %v4238_v2, 2  ;;  %vm5061_vm2 = vcmp.eq.s32.totalorder %v7123_v24, %v13606_v35  ;;  %vm5059_vm11 = vcmp.eq.s32.totalorder %v7123_v24, %v13648_v48  ;;  %vm5060_vm8 = vcmp.eq.s32.totalorder %v7123_v24, %v13691_v3 }
 0x286   : > { %6798 = vmatpush.msk.msrb.mxu1 %vm5076_vm13, %v6888_v14  ;;  %6830 = vmatpush.msk.msrb.mxu3 %vm5078_vm3, %v6888_v14  ;;  %v4246_v10 = vrot.slane %v4245_v45, 4  ;;  %v4255_v30 = vrot.slane %v4254_v5, 4  ;;  %vm5062_vm15 = vcmp.eq.s32.totalorder %v7123_v24, %v13710_v44  ;;  %v4231_v13 = vadd.f32 %v4230_v22, %v4229_v20 }
 0x287   : > { %5320 = vmatmul.f32.gmra.mxu0 %v13621_v42  ;;  %5349 = vmatmul.f32.gmra.mxu1 %v13621_v42  ;;  %vm5053_vm0 = vcmp.eq.s32.totalorder %v7138_v25, %v13606_v35  ;;  %v4240_v54 = vadd.f32 %v4239_v57, %v4238_v2  ;;  %v14179_v50 = vor.u32 %v6442_v9, %v6441_v38 }
 0x288   : > { %5378 = vmatmul.f32.gmra.mxu2 %v13621_v42  ;;  %5407 = vmatmul.f32.gmra.mxu3 %v13621_v42  ;;  %v4247_v4 = vadd.f32 %v4246_v10, %v4245_v45  ;;  %v4256_v36 = vadd.f32 %v4255_v30, %v4254_v5  ;;  %vm5051_vm7 = vcmp.eq.s32.totalorder %v7138_v25, %v13648_v48  ;;  %v4232_v47 = vrot.slane %v4231_v13, 1 }
 0x289   : > { %6815 = vmatpush.msk.msrb.mxu2 %vm5069_vm1, %v6888_v14  ;;  %6783 = vmatpush.msk.msrb.mxu0 %vm5067_vm5, %v6888_v14  ;;  %v14151_v62 = vpop.f32.mrf.mxu2  ;;  %v14153_v8 = vpop.f32.mrf.mxu3  ;;  %vm5052_vm14 = vcmp.eq.s32.totalorder %v7138_v25, %v13691_v3  ;;  %vm5054_vm4 = vcmp.eq.s32.totalorder %v7138_v25, %v13710_v44  ;;  %vm4165_vm13 = vcmp.eq.s32.totalorder %v6930_v1, %v14166_v46  ;;  %v4241_v11 = vrot.slane %v4240_v54, 1 }
 0x28a   : > { %6799 = vmatpush.msk.msrb.mxu1 %vm5068_vm10, %v6888_v14  ;;  %6831 = vmatpush.msk.msrb.mxu3 %vm5070_vm12, %v6888_v14  ;;  %v4248_v37 = vrot.slane %v4247_v4, 2  ;;  %vm5045_vm3 = vcmp.eq.s32.totalorder %v6930_v1, %v13606_v35  ;;  %vm4166_vm1 = vcmp.eq.s32.totalorder %v6930_v1, %v14177_v15  ;;  %vm5043_vm5 = vcmp.eq.s32.totalorder %v6930_v1, %v13648_v48 }
 0x28b   : > { %6816 = vmatpush.msk.msrb.mxu2 %vm5061_vm2, %v6888_v14  ;;  %6784 = vmatpush.msk.msrb.mxu0 %vm5059_vm11, %v6888_v14  ;;  %vm5044_vm6 = vcmp.eq.s32.totalorder %v6930_v1, %v13691_v3  ;;  %v4298_v27 = vperm.slane %v14179_v50, 0  ;;  %v4257_v17 = vrot.slane %v4256_v36, 2  ;;  %vm5046_vm9 = vcmp.eq.s32.totalorder %v6930_v1, %v13710_v44 }
 0x28c   : > { %6800 = vmatpush.msk.msrb.mxu1 %vm5060_vm8, %v6888_v14  ;;  %6832 = vmatpush.msk.msrb.mxu3 %vm5062_vm15, %v6888_v14  ;;  %v14194_v16 = vpop.f32.mrf.mxu0  ;;  %v14196_v51 = vpop.f32.mrf.mxu1  ;;  %v14224_v59 = vadd.f32 %v4248_v37, %v4247_v4  ;;  %v4299_v35 = vperm.slane %v14179_v50, 1  ;;  %v4197_v48 = vsel %vm4165_vm13, %v13819_v55, 0.0  ;;  %vm4167_vm10 = vcmp.eq.s32.totalorder %v6930_v1, %v14192_v61 }
 0x28d   : > { %6817 = vmatpush.msk.msrb.mxu2 %vm5053_vm0, %v6888_v14  ;;  %6785 = vmatpush.msk.msrb.mxu0 %vm5051_vm7, %v6888_v14  ;;  %vm4168_vm12 = vcmp.eq.s32.totalorder %v6930_v1, %v14208_v0  ;;  %v4198_v3 = vsel %vm4166_vm1, %v13821_v60, 0.0  ;;  %vm4173_vm2 = vcmp.eq.s32.totalorder %v7138_v25, %v14166_v46  ;;  %vm4174_vm11 = vcmp.eq.s32.totalorder %v7138_v25, %v14177_v15 }
 0x28e   : > { %6801 = vmatpush.msk.msrb.mxu1 %vm5052_vm14, %v6888_v14  ;;  %6833 = vmatpush.msk.msrb.mxu3 %vm5054_vm4, %v6888_v14  ;;  %vm4175_vm8 = vcmp.eq.s32.totalorder %v7138_v25, %v14192_v61  ;;  %v4242_v44 = vadd.f32 %v4241_v11, %v4240_v54  ;;  %v4205_v55 = vsel %vm4173_vm2, %v13965_v29, 0.0  ;;  %v4206_v60 = vsel %vm4174_vm11, %v13967_v53, 0.0 }
 0x28f   : > { %6818 = vmatpush.msk.msrb.mxu2 %vm5045_vm3, %v6888_v14  ;;  %6786 = vmatpush.msk.msrb.mxu0 %vm5043_vm5, %v6888_v14  ;;  %v4250_v58 = vrot.slane %v14224_v59, 1  ;;  %v14257_v28 = vadd.f32 %v4257_v17, %v4256_v36  ;;  %v4207_v34 = vsel %vm4175_vm8, %v14045_v52, 0.0  ;;  %vm4176_vm15 = vcmp.eq.s32.totalorder %v7138_v25, %v14208_v0 }
 0x290   : > { %6802 = vmatpush.msk.msrb.mxu1 %vm5044_vm6, %v6888_v14  ;;  %6834 = vmatpush.msk.msrb.mxu3 %vm5046_vm9, %v6888_v14  ;;  %v4233_v14 = vadd.f32 %v4232_v47, %v4231_v13  ;;  %v4200_v29 = vsel %vm4168_vm12, %v13930_v26, 0.0  ;;  %v4261_v53 = vadd.f32 %v4205_v55, %v4197_v48  ;;  %v4208_v49 = vsel %vm4176_vm15, %v14047_v39, 0.0 }
 0x291   : > { %5427 = vmatmul.f32.vlgmr.msrb.gmra.mxu0 %v13262_v40  ;;  %5456 = vmatmul.f32.vlgmr.msrb.gmra.mxu1 %v13262_v40  ;;  %v4270_v19 = vadd.f32 %v4206_v60, %v4198_v3  ;;  %vm4181_vm0 = vcmp.eq.s32.totalorder %v7123_v24, %v14166_v46  ;;  %vm4182_vm7 = vcmp.eq.s32.totalorder %v7123_v24, %v14177_v15  ;;  %v4300_v10 = vperm.slane %v14179_v50, 2  ;;  %v6879_v3 = vld [vmem:[%s14569_s0 + $0x10] sm:$0xff] }
 0x292   : > { %5485 = vmatmul.f32.vlgmr.msrb.gmra.mxu2 %v13262_v40  ;;  %5514 = vmatmul.f32.vlgmr.msrb.gmra.mxu3 %v13262_v40  ;;  %v4199_v40 = vsel %vm4167_vm10, %v13928_v43, 0.0  ;;  %vm4183_vm14 = vcmp.eq.s32.totalorder %v7123_v24, %v14192_v61  ;;  %v4213_v26 = vsel %vm4181_vm0, %v14087_v56, 0.0  ;;  %v4214_v12 = vsel %vm4182_vm7, %v14089_v63, 0.0 }
 0x293   : > { %v4121_v18 = vpop.f32.mrf.mxu2  ;;  %v4150_v6 = vpop.f32.mrf.mxu3  ;;  %v4279_v32 = vadd.f32 %v4207_v34, %v4199_v40  ;;  %v4215_v39 = vsel %vm4183_vm14, %v14151_v62, 0.0  ;;  %v4288_v20 = vadd.f32 %v4208_v49, %v4200_v29  ;;  %v4262_v2 = vadd.f32 %v4261_v53, %v4213_v26 }
 0x294   : > { %v4271_v22 = vadd.f32 %v4270_v19, %v4214_v12  ;;  %vm4184_vm4 = vcmp.eq.s32.totalorder %v7123_v24, %v14208_v0  ;;  %vm4189_vm13 = vcmp.eq.s32.totalorder %v7108_v23, %v14166_v46  ;;  %vm4190_vm3 = vcmp.eq.s32.totalorder %v7108_v23, %v14177_v15 }
 0x295   : > { %v4280_v31 = vadd.f32 %v4279_v32, %v4215_v39  ;;  %v4216_v57 = vsel %vm4184_vm4, %v14153_v8, 0.0  ;;  %v4221_v63 = vsel %vm4189_vm13, %v14194_v16, 0.0  ;;  %v4222_v45 = vsel %vm4190_vm3, %v14196_v51, 0.0 }
 0x296   : > { %v14277_v52 = vpop.f32.mrf.mxu0  ;;  %v14279_v43 = vpop.f32.mrf.mxu1  ;;  %v4289_v56 = vadd.f32 %v4288_v20, %v4216_v57  ;;  %vm4191_vm1 = vcmp.eq.s32.totalorder %v7108_v23, %v14192_v61  ;;  %v4263_v5 = vadd.f32 %v4262_v2, %v4221_v63  ;;  %v4272_v38 = vadd.f32 %v4271_v22, %v4222_v45 }
 0x297   : > { %v4223_v9 = vsel %vm4191_vm1, %v4121_v18, 0.0  ;;  %vm4192_vm5 = vcmp.eq.s32.totalorder %v7108_v23, %v14208_v0  ;;  %v4251_v8 = vadd.f32 %v4250_v58, %v14224_v59  ;;  %v4314_v36 = vmul.f32 %v4298_v27, %v4233_v14 }
 0x298   : > { %v4281_v30 = vadd.f32 %v4280_v31, %v4223_v9  ;;  %v4224_v62 = vsel %vm4192_vm5, %v4150_v6, 0.0  ;;  %v4264_v13 = vrot.slane %v4263_v5, 4  ;;  %v4273_v46 = vrot.slane %v4272_v38, 4 }
 0x299   : > { %5430 = vmatmul.f32.gmra.mxu0 %v6878_v21  ;;  %5459 = vmatmul.f32.gmra.mxu1 %v6878_v21  ;;  %v4290_v54 = vadd.f32 %v4289_v56, %v4224_v62  ;;  %v4315_v61 = vmul.f32 %v4299_v35, %v4242_v44  ;;  %v4259_v51 = vrot.slane %v14257_v28, 1  ;;  %v4316_v48 = vmul.f32 %v4300_v10, %v4251_v8 }
 0x29a   : > { %5488 = vmatmul.f32.gmra.mxu2 %v6878_v21  ;;  %5517 = vmatmul.f32.gmra.mxu3 %v6878_v21  ;;  %v4282_v16 = vrot.slane %v4281_v30, 4  ;;  %v4265_v37 = vadd.f32 %v4264_v13, %v4263_v5  ;;  %v4274_v0 = vadd.f32 %v4273_v46, %v4272_v38  ;;  %v4301_v55 = vperm.slane %v14179_v50, 3 }
 0x29b   : > { %v4291_v47 = vrot.slane %v4290_v54, 4  ;;  %v4322_v44 = vadd.f32 %v4315_v61, %v4314_v36  ;;  %v4260_v18 = vadd.f32 %v4259_v51, %v14257_v28  ;;  %v4302_v40 = vperm.slane %v14179_v50, 4 }
 0x29c   : > { %v4283_v11 = vadd.f32 %v4282_v16, %v4281_v30  ;;  %v4266_v27 = vrot.slane %v4265_v37, 2  ;;  %v4275_v14 = vrot.slane %v4274_v0, 2  ;;  %v4303_v26 = vperm.slane %v14179_v50, 5 }
 0x29d   : > { %v14302_v4 = vpop.f32.mrf.mxu2  ;;  %v14304_v15 = vpop.f32.mrf.mxu3  ;;  %v4292_v35 = vadd.f32 %v4291_v47, %v4290_v54  ;;  %v4323_v53 = vadd.f32 %v4322_v44, %v4316_v48  ;;  %v4304_v39 = vperm.slane %v14179_v50, 6  ;;  %v4317_v20 = vmul.f32 %v4301_v55, %v4260_v18 }
 0x29e   : > { %v4284_v60 = vrot.slane %v4283_v11, 2  ;;  %v4267_v6 = vadd.f32 %v4266_v27, %v4265_v37  ;;  %v4276_v58 = vadd.f32 %v4275_v14, %v4274_v0  ;;  %v4305_v45 = vperm.slane %v14179_v50, 7 }
 0x29f   : > { %v4293_v34 = vrot.slane %v4292_v35, 2  ;;  %v4324_v56 = vadd.f32 %v4323_v53, %v4317_v20  ;;  %v14336_v50 = vshra.s32 %v12037_v33, 7 }
 0x2a0   : > { %v14311_v59 = vpop.f32.mrf.mxu0  ;;  %v14313_v17 = vpop.f32.mrf.mxu1  ;;  %v4285_v29 = vadd.f32 %v4284_v60, %v4283_v11  ;;  %v4268_v49 = vrot.slane %v4267_v6, 1  ;;  %v4277_v19 = vrot.slane %v4276_v58, 1 }
 0x2a1   : > { %5433 = vmatmul.f32.gmra.mxu0 %v6879_v3  ;;  %5462 = vmatmul.f32.gmra.mxu1 %v6879_v3  ;;  %v4294_v32 = vadd.f32 %v4293_v34, %v4292_v35  ;;  %v4840_v47 = vperm.slane %v14336_v50, 0  ;;  %v4841_v11 = vperm.slane %v14336_v50, 1  ;;  %v4842_v48 = vperm.slane %v14336_v50, 2 }
 0x2a2   : > { %5491 = vmatmul.f32.gmra.mxu2 %v6879_v3  ;;  %5520 = vmatmul.f32.gmra.mxu3 %v6879_v3  ;;  %v4286_v12 = vrot.slane %v4285_v29, 1  ;;  %v4269_v2 = vadd.f32 %v4268_v49, %v4267_v6  ;;  %v4278_v22 = vadd.f32 %v4277_v19, %v4276_v58  ;;  %v4843_v53 = vperm.slane %v14336_v50, 3 }
 0x2a3   : > { %v4295_v28 = vrot.slane %v4294_v32, 1  ;;  %vm4856_vm6 = vcmp.eq.s32.totalorder %v7138_v25, %v4840_v47  ;;  %vm4857_vm9 = vcmp.eq.s32.totalorder %v7138_v25, %v4841_v11  ;;  %vm4848_vm10 = vcmp.eq.s32.totalorder %v6930_v1, %v4840_v47 }
 0x2a4   : > { %v4287_v57 = vadd.f32 %v4286_v12, %v4285_v29  ;;  %v4318_v63 = vmul.f32 %v4302_v40, %v4269_v2  ;;  %v4319_v10 = vmul.f32 %v4303_v26, %v4278_v22  ;;  %vm4849_vm12 = vcmp.eq.s32.totalorder %v6930_v1, %v4841_v11 }
 0x2a5   : > { %v4296_v62 = vadd.f32 %v4295_v28, %v4294_v32  ;;  %vm4858_vm2 = vcmp.eq.s32.totalorder %v7138_v25, %v4842_v48  ;;  %vm4864_vm11 = vcmp.eq.s32.totalorder %v7123_v24, %v4840_v47  ;;  %vm4865_vm8 = vcmp.eq.s32.totalorder %v7123_v24, %v4841_v11 }
 0x2a6   : > { %v4325_v9 = vadd.f32 %v4324_v56, %v4318_v63  ;;  %v4320_v30 = vmul.f32 %v4304_v39, %v4287_v57  ;;  %vm4850_vm15 = vcmp.eq.s32.totalorder %v6930_v1, %v4842_v48  ;;  %v4888_v33 = vsel %vm4856_vm6, %v14311_v59, 0.0 }
 0x2a7   : > { %v4686_v21 = vpop.f32.mrf.mxu2  ;;  %v14323_v31 = vpop.f32.mrf.mxu3  ;;  %v4321_v46 = vmul.f32 %v4305_v45, %v4296_v62  ;;  %v4889_v27 = vsel %vm4857_vm9, %v14313_v17, 0.0  ;;  %v4880_v55 = vsel %vm4848_vm10, %v14277_v52, 0.0  ;;  %vm4866_vm0 = vcmp.eq.s32.totalorder %v7123_v24, %v4842_v48 }
 0x2a8   : > { %v4326_v8 = vadd.f32 %v4325_v9, %v4319_v10  ;;  %vm4872_vm7 = vcmp.eq.s32.totalorder %v7108_v23, %v4840_v47  ;;  %vm4873_vm14 = vcmp.eq.s32.totalorder %v7108_v23, %v4841_v11  ;;  %v4881_v60 = vsel %vm4849_vm12, %v14279_v43, 0.0  ;;  %v6574_v10 = vld [vmem:[%s8432_s4 + $0x6] ss:$8 sm:$0xf0] }
 0x2a9   : > { %5436 = vmatmul.f32.gmra.mxu0 %v13621_v42  ;;  %5465 = vmatmul.f32.gmra.mxu1 %v13621_v42  ;;  %v4890_v18 = vsel %vm4858_vm2, %v4686_v21, 0.0  ;;  %v4912_v17 = vadd.f32 %v4888_v33, %v4880_v55  ;;  %v4921_v58 = vadd.f32 %v4889_v27, %v4881_v60  ;;  %vm4874_vm4 = vcmp.eq.s32.totalorder %v7108_v23, %v4842_v48 }
 0x2aa   : > { %5494 = vmatmul.f32.gmra.mxu2 %v13621_v42  ;;  %v4631_v5 = vpop.f32.mrf.mxu0  ;;  %v4660_v38 = vpop.f32.mrf.mxu1  ;;  %5523 = vmatmul.f32.gmra.mxu3 %v13621_v42  ;;  %v4327_v13 = vadd.f32 %v4326_v8, %v4320_v30  ;;  %v4882_v52 = vsel %vm4850_vm15, %v14302_v4, 0.0  ;;  %vm4859_vm13 = vcmp.eq.s32.totalorder %v7138_v25, %v4843_v53  ;;  %vm4851_vm3 = vcmp.eq.s32.totalorder %v6930_v1, %v4843_v53 }
 0x2ab   : > { %v4896_v59 = vsel %vm4864_vm11, %v4631_v5, 0.0  ;;  %v4897_v6 = vsel %vm4865_vm8, %v4660_v38, 0.0  ;;  %v4930_v49 = vadd.f32 %v4890_v18, %v4882_v52  ;;  %vm4867_vm1 = vcmp.eq.s32.totalorder %v7123_v24, %v4843_v53  ;;  %v6573_v38 = vld [vmem:[%s8432_s4 + $0x6] ss:$8 sm:$0xf] }
 0x2ac   : > { %v4328_v54 = vadd.f32 %v4327_v13, %v4321_v46  ;;  %v4913_v19 = vadd.f32 %v4912_v17, %v4896_v59  ;;  %v4922_v32 = vadd.f32 %v4921_v58, %v4897_v6  ;;  %v4891_v22 = vsel %vm4859_vm13, %v14323_v31, 0.0 }
 0x2ad   : > { %vm4875_vm5 = vcmp.eq.s32.totalorder %v7108_v23, %v4843_v53  ;;  %v4883_v63 = vsel %vm4851_vm3, %v14304_v15, 0.0  ;;  %v14380_v46 = vor.u32 %v6574_v10, %v6573_v38  ;;  %v4844_v15 = vperm.slane %v14336_v50, 4 }
 0x2ae   : > { %v14333_v16 = vadd.f32 %v4328_v54, %v13838_v7  ;;  %v4939_v5 = vadd.f32 %v4891_v22, %v4883_v63  ;;  %v14389_v33 = vperm.slane %v14336_v50, 7 }
 0x2af   : > { %v4985_v11 = vperm.slane %v14380_v46, 0  ;;  %vm4860_vm6 = vcmp.eq.s32.totalorder %v7138_v25, %v4844_v15  ;;  %vm4852_vm10 = vcmp.eq.s32.totalorder %v6930_v1, %v4844_v15  ;;  %v4986_v55 = vperm.slane %v14380_v46, 1 }
 0x2b0   : > { %v4330_v0 = vsub.f32 0.0, %v14333_v16  ;;  %v4987_v60 = vperm.slane %v14380_v46, 2  ;;  %vm4868_vm2 = vcmp.eq.s32.totalorder %v7123_v24, %v4844_v15  ;;  %vm4855_vm15 = vcmp.eq.s32.totalorder %v6930_v1, %v14389_v33 }
 0x2b1   : > { %v4689_v36 = vpop.f32.mrf.mxu2  ;;  %v14330_v61 = vpop.f32.mrf.mxu3  ;;  %vm4871_vm3 = vcmp.eq.s32.totalorder %v7123_v24, %v14389_v33 }
 0x2b2   : > { %v4331_v42 = vmul.f32 1.442695, %v4330_v0  ;;  %v4898_v34 = vsel %vm4866_vm0, %v4689_v36, 0.0  ;;  %v4899_v45 = vsel %vm4867_vm1, %v14330_v61, 0.0  ;;  %v4845_v61 = vperm.slane %v14336_v50, 5 }
 0x2b3   : > { %v4931_v26 = vadd.f32 %v4930_v49, %v4898_v34  ;;  %v4940_v62 = vadd.f32 %v4939_v5, %v4899_v45  ;;  %vm4876_vm0 = vcmp.eq.s32.totalorder %v7108_v23, %v4844_v15 }
 0x2b4   : > { %v4634_v51 = vpop.f32.mrf.mxu0  ;;  %v4663_v37 = vpop.f32.mrf.mxu1  ;;  %6856 = vpow2.f32 %v4331_v42  ;;  %vm4861_vm9 = vcmp.eq.s32.totalorder %v7138_v25, %v4845_v61  ;;  %vm4853_vm12 = vcmp.eq.s32.totalorder %v6930_v1, %v4845_v61  ;;  %vm4869_vm11 = vcmp.eq.s32.totalorder %v7123_v24, %v4845_v61 }
 0x2b5   : > { %v4904_v40 = vsel %vm4872_vm7, %v4634_v51, 0.0  ;;  %v4905_v29 = vsel %vm4873_vm14, %v4663_v37, 0.0  ;;  %vm4877_vm7 = vcmp.eq.s32.totalorder %v7108_v23, %v4845_v61 }
 0x2b6   : > { %v4914_v12 = vadd.f32 %v4913_v19, %v4904_v40  ;;  %v4923_v39 = vadd.f32 %v4922_v32, %v4905_v29 }
 0x2b8   : > { %v4915_v57 = vrot.slane %v4914_v12, 4  ;;  %v4924_v56 = vrot.slane %v4923_v39, 4 }
 0x2ba   : > { %v6857_v44 = vpop.eup %6856  ;;  %v4916_v8 = vadd.f32 %v4915_v57, %v4914_v12  ;;  %v4925_v13 = vadd.f32 %v4924_v56, %v4923_v39 }
 0x2bb   : > { %v4692_v7 = vpop.f32.mrf.mxu2  ;;  %v4721_v3 = vpop.f32.mrf.mxu3  ;;  %4333 = vst [vmem:[%s9355_s15 + $0x5] sm:$0x1] %v6857_v44 }
 0x2bc   : > { %v4906_v43 = vsel %vm4874_vm4, %v4692_v7, 0.0  ;;  %v4907_v30 = vsel %vm4875_vm5, %v4721_v3, 0.0  ;;  %v4917_v37 = vrot.slane %v4916_v8, 2  ;;  %v4926_v0 = vrot.slane %v4925_v13, 2 }
 0x2bd   : > { %v4932_v4 = vadd.f32 %v4931_v26, %v4906_v43  ;;  %v4941_v54 = vadd.f32 %v4940_v62, %v4907_v30  ;;  %v14386_v3 = vperm.slane %v14336_v50, 6  ;;  %vm4863_vm4 = vcmp.eq.s32.totalorder %v7138_v25, %v14389_v33 }
 0x2be   : > { %v14352_v14 = vpop.f32.mrf.mxu0  ;;  %v14354_v35 = vpop.f32.mrf.mxu1  ;;  %v4918_v27 = vadd.f32 %v4917_v37, %v4916_v8  ;;  %v4927_v44 = vadd.f32 %v4926_v0, %v4925_v13  ;;  %vm4879_vm5 = vcmp.eq.s32.totalorder %v7108_v23, %v14389_v33 }
 0x2bf   : > { %v4933_v9 = vrot.slane %v4932_v4, 4  ;;  %v4942_v7 = vrot.slane %v4941_v54, 4  ;;  %v4884_v17 = vsel %vm4852_vm10, %v14352_v14, 0.0  ;;  %v4885_v58 = vsel %vm4853_vm12, %v14354_v35, 0.0 }
 0x2c0   : > { %vm4854_vm8 = vcmp.eq.s32.totalorder %v6930_v1, %v14386_v3  ;;  %v4919_v52 = vrot.slane %v4918_v27, 1  ;;  %v4928_v34 = vrot.slane %v4927_v44, 1  ;;  %vm4862_vm14 = vcmp.eq.s32.totalorder %v7138_v25, %v14386_v3 }
 0x2c1   : > { %v4934_v31 = vadd.f32 %v4933_v9, %v4932_v4  ;;  %v4943_v18 = vadd.f32 %v4942_v7, %v4941_v54  ;;  %vm4870_vm13 = vcmp.eq.s32.totalorder %v7123_v24, %v14386_v3  ;;  %vm4878_vm1 = vcmp.eq.s32.totalorder %v7108_v23, %v14386_v3 }
 0x2c2   : > { %v4920_v4 = vadd.f32 %v4919_v52, %v4918_v27  ;;  %v4929_v22 = vadd.f32 %v4928_v34, %v4927_v44 }
 0x2c3   : > { %v4935_v48 = vrot.slane %v4934_v31, 2  ;;  %v4944_v35 = vrot.slane %v4943_v18, 2 }
 0x2c5   : > { %v14368_v20 = vpop.f32.mrf.mxu2  ;;  %v14370_v2 = vpop.f32.mrf.mxu3  ;;  %v4936_v50 = vadd.f32 %v4935_v48, %v4934_v31  ;;  %v4945_v38 = vadd.f32 %v4944_v35, %v4943_v18 }
 0x2c6   : > { %v4886_v9 = vsel %vm4854_vm8, %v14368_v20, 0.0  ;;  %v4887_v10 = vsel %vm4855_vm15, %v14370_v2, 0.0  ;;  %v5001_v20 = vmul.f32 %v4985_v11, %v4920_v4 }
 0x2c7   : > { %v4937_v14 = vrot.slane %v4936_v50, 1  ;;  %v4946_v37 = vrot.slane %v4945_v38, 1 }
 0x2c8   : > { %v4744_v28 = vpop.f32.mrf.mxu0  ;;  %v4773_v21 = vpop.f32.mrf.mxu1 }
 0x2c9   : > { %v4892_v59 = vsel %vm4860_vm6, %v4744_v28, 0.0  ;;  %v4893_v6 = vsel %vm4861_vm9, %v4773_v21, 0.0  ;;  %v4938_v5 = vadd.f32 %v4937_v14, %v4936_v50  ;;  %v4988_v50 = vperm.slane %v14380_v46, 3 }
 0x2ca   : > { %v4948_v19 = vadd.f32 %v4892_v59, %v4884_v17  ;;  %v4957_v32 = vadd.f32 %v4893_v6, %v4885_v58  ;;  %v4947_v6 = vadd.f32 %v4946_v37, %v4945_v38 }
 0x2cb   : > { %v5003_v3 = vmul.f32 %v4987_v60, %v4938_v5 }
 0x2cf   : > { %v4802_v36 = vpop.f32.mrf.mxu2  ;;  %v4831_v51 = vpop.f32.mrf.mxu3 }
 0x2d0   : > { %v4894_v57 = vsel %vm4862_vm14, %v4802_v36, 0.0  ;;  %v4895_v56 = vsel %vm4863_vm4, %v4831_v51, 0.0  ;;  %v5002_v51 = vmul.f32 %v4986_v55, %v4929_v22 }
 0x2d1   : > { %v4966_v31 = vadd.f32 %v4894_v57, %v4886_v9  ;;  %v4975_v54 = vadd.f32 %v4895_v56, %v4887_v10 }
 0x2d2   : > { %v4747_v42 = vpop.f32.mrf.mxu0  ;;  %v4776_v47 = vpop.f32.mrf.mxu1  ;;  %v5009_v55 = vadd.f32 %v5002_v51, %v5001_v20 }
 0x2d3   : > { %v4900_v40 = vsel %vm4868_vm2, %v4747_v42, 0.0  ;;  %v4901_v29 = vsel %vm4869_vm11, %v4776_v47, 0.0 }
 0x2d4   : > { %v4949_v43 = vadd.f32 %v4948_v19, %v4900_v40  ;;  %v4958_v26 = vadd.f32 %v4957_v32, %v4901_v29  ;;  %v4989_v40 = vperm.slane %v14380_v46, 4  ;;  %v5010_v29 = vadd.f32 %v5009_v55, %v5003_v3 }
 0x2d5   : > { %v5004_v32 = vmul.f32 %v4988_v50, %v4947_v6 }
 0x2d9   : > { %v4805_v53 = vpop.f32.mrf.mxu2  ;;  %v4834_v49 = vpop.f32.mrf.mxu3 }
 0x2da   : > { %v4902_v30 = vsel %vm4870_vm13, %v4805_v53, 0.0  ;;  %v4903_v62 = vsel %vm4871_vm3, %v4834_v49, 0.0 }
 0x2db   : > { %v4967_v0 = vadd.f32 %v4966_v31, %v4902_v30  ;;  %v4976_v15 = vadd.f32 %v4975_v54, %v4903_v62  ;;  %v4992_v30 = vperm.slane %v14380_v46, 7 }
 0x2dc   : > { %v4750_v12 = vpop.f32.mrf.mxu0  ;;  %v4779_v39 = vpop.f32.mrf.mxu1 }
 0x2dd   : > { %v4908_v28 = vsel %vm4876_vm0, %v4750_v12, 0.0  ;;  %v4909_v21 = vsel %vm4877_vm7, %v4779_v39, 0.0  ;;  %v5011_v12 = vadd.f32 %v5010_v29, %v5004_v32 }
 0x2de   : > { %v4950_v63 = vadd.f32 %v4949_v43, %v4908_v28  ;;  %v4959_v45 = vadd.f32 %v4958_v26, %v4909_v21  ;;  %v4990_v26 = vperm.slane %v14380_v46, 5 }
 0x2e0   : > { %v4951_v8 = vrot.slane %v4950_v63, 4  ;;  %v4960_v13 = vrot.slane %v4959_v45, 4 }
 0x2e2   : > { %v4952_v2 = vadd.f32 %v4951_v8, %v4950_v63  ;;  %v4961_v36 = vadd.f32 %v4960_v13, %v4959_v45  ;;  %v4991_v63 = vperm.slane %v14380_v46, 6  ;;  %v14453_v46 = vshra.s32 %v13206_v41, 7 }
 0x2e3   : > { %v4808_v61 = vpop.f32.mrf.mxu2  ;;  %v4837_v42 = vpop.f32.mrf.mxu3 }
 0x2e4   : > { %v4953_v47 = vrot.slane %v4952_v2, 2  ;;  %v4962_v48 = vrot.slane %v4961_v36, 2  ;;  %v4910_v7 = vsel %vm4878_vm1, %v4808_v61, 0.0  ;;  %v4911_v27 = vsel %vm4879_vm5, %v4837_v42, 0.0 }
 0x2e5   : > { %v4968_v44 = vadd.f32 %v4967_v0, %v4910_v7  ;;  %v4977_v33 = vadd.f32 %v4976_v15, %v4911_v27  ;;  %v5528_v3 = vperm.slane %v14453_v46, 1 }
 0x2e6   : > { %v4954_v11 = vadd.f32 %v4953_v47, %v4952_v2  ;;  %v4963_v18 = vadd.f32 %v4962_v48, %v4961_v36  ;;  %v14438_v59 = vpop.f32.mrf.mxu0  ;;  %v14440_v52 = vpop.f32.mrf.mxu1  ;;  %v5527_v48 = vperm.slane %v14453_v46, 0 }
 0x2e7   : > { %v4969_v17 = vrot.slane %v4968_v44, 4  ;;  %v4978_v58 = vrot.slane %v4977_v33, 4  ;;  %vm5544_vm9 = vcmp.eq.s32.totalorder %v7138_v25, %v5528_v3  ;;  %vm5536_vm2 = vcmp.eq.s32.totalorder %v6930_v1, %v5528_v3 }
 0x2e8   : > { %v4955_v34 = vrot.slane %v4954_v11, 1  ;;  %v4964_v53 = vrot.slane %v4963_v18, 1  ;;  %vm5543_vm6 = vcmp.eq.s32.totalorder %v7138_v25, %v5527_v48  ;;  %vm5535_vm10 = vcmp.eq.s32.totalorder %v6930_v1, %v5527_v48 }
 0x2e9   : > { %v4970_v60 = vadd.f32 %v4969_v17, %v4968_v44  ;;  %v4979_v49 = vadd.f32 %v4978_v58, %v4977_v33  ;;  %vm5551_vm12 = vcmp.eq.s32.totalorder %v7123_v24, %v5527_v48  ;;  %vm5552_vm8 = vcmp.eq.s32.totalorder %v7123_v24, %v5528_v3 }
 0x2ea   : > { %v4956_v19 = vadd.f32 %v4955_v34, %v4954_v11  ;;  %v4965_v39 = vadd.f32 %v4964_v53, %v4963_v18  ;;  %vm5559_vm0 = vcmp.eq.s32.totalorder %v7108_v23, %v5527_v48  ;;  %v5567_v50 = vsel %vm5535_vm10, %v14438_v59, 0.0 }
 0x2eb   : > { %v4971_v14 = vrot.slane %v4970_v60, 2  ;;  %v4980_v35 = vrot.slane %v4979_v49, 2  ;;  %vm5560_vm14 = vcmp.eq.s32.totalorder %v7108_v23, %v5528_v3  ;;  %v5568_v55 = vsel %vm5536_vm2, %v14440_v52, 0.0 }
 0x2ec   : > { %v5005_v43 = vmul.f32 %v4989_v40, %v4956_v19  ;;  %v5006_v38 = vmul.f32 %v4990_v26, %v4965_v39  ;;  %v5530_v40 = vperm.slane %v14453_v46, 3 }
 0x2ed   : > { %v4972_v4 = vadd.f32 %v4971_v14, %v4970_v60  ;;  %v4981_v22 = vadd.f32 %v4980_v35, %v4979_v49  ;;  %v5370_v28 = vpop.f32.mrf.mxu2  ;;  %v14444_v21 = vpop.f32.mrf.mxu3 }
 0x2ee   : > { %v5012_v57 = vadd.f32 %v5011_v12, %v5005_v43  ;;  %vm5546_vm13 = vcmp.eq.s32.totalorder %v7138_v25, %v5530_v40  ;;  %vm5538_vm3 = vcmp.eq.s32.totalorder %v6930_v1, %v5530_v40  ;;  %vm5554_vm1 = vcmp.eq.s32.totalorder %v7123_v24, %v5530_v40 }
 0x2ef   : > { %v4973_v56 = vrot.slane %v4972_v4, 1  ;;  %v4982_v45 = vrot.slane %v4981_v22, 1  ;;  %vm5562_vm5 = vcmp.eq.s32.totalorder %v7108_v23, %v5530_v40 }
 0x2f0   : > { %v5315_v5 = vpop.f32.mrf.mxu0  ;;  %v5344_v62 = vpop.f32.mrf.mxu1  ;;  %v5013_v8 = vadd.f32 %v5012_v57, %v5006_v38  ;;  %v6705_v38 = vld [vmem:[%s8432_s4 + $0x7] ss:$8 sm:$0xf] }
 0x2f1   : > { %v4974_v9 = vadd.f32 %v4973_v56, %v4972_v4  ;;  %v4983_v10 = vadd.f32 %v4982_v45, %v4981_v22  ;;  %v5575_v41 = vsel %vm5543_vm6, %v5315_v5, 0.0  ;;  %v5576_v33 = vsel %vm5544_vm9, %v5344_v62, 0.0 }
 0x2f2   : > { %v5599_v6 = vadd.f32 %v5575_v41, %v5567_v50  ;;  %v5608_v29 = vadd.f32 %v5576_v33, %v5568_v55 }
 0x2f3   : > { %v5007_v13 = vmul.f32 %v4991_v63, %v4974_v9  ;;  %v5008_v54 = vmul.f32 %v4992_v30, %v4983_v10 }
 0x2f5   : > { %v5014_v31 = vadd.f32 %v5013_v8, %v5007_v13  ;;  %v6706_v8 = vld [vmem:[%s8432_s4 + $0x7] ss:$8 sm:$0xf0] }
 0x2f7   : > { %v5015_v20 = vadd.f32 %v5014_v31, %v5008_v54  ;;  %v5373_v2 = vpop.f32.mrf.mxu2  ;;  %v5402_v36 = vpop.f32.mrf.mxu3 }
 0x2f8   : > { %v5578_v4 = vsel %vm5546_vm13, %v5402_v36, 0.0  ;;  %v14491_v36 = vor.u32 %v6706_v8, %v6705_v38 }
 0x2f9   : > { %v14449_v51 = vadd.f32 %v5015_v20, %v14333_v16  ;;  %v5529_v16 = vperm.slane %v14453_v46, 2 }
 0x2fa   : > { %v5318_v37 = vpop.f32.mrf.mxu0  ;;  %v5347_v15 = vpop.f32.mrf.mxu1  ;;  %v5674_v55 = vperm.slane %v14491_v36, 2 }
 0x2fb   : > { %v5017_v0 = vsub.f32 0.0, %v14449_v51  ;;  %vm5545_vm11 = vcmp.eq.s32.totalorder %v7138_v25, %v5529_v16  ;;  %vm5537_vm15 = vcmp.eq.s32.totalorder %v6930_v1, %v5529_v16  ;;  %v5583_v11 = vsel %vm5551_vm12, %v5318_v37, 0.0 }
 0x2fc   : > { %vm5553_vm7 = vcmp.eq.s32.totalorder %v7123_v24, %v5529_v16  ;;  %v5577_v17 = vsel %vm5545_vm11, %v5373_v2, 0.0  ;;  %v5584_v58 = vsel %vm5552_vm8, %v5347_v15, 0.0  ;;  %vm5561_vm4 = vcmp.eq.s32.totalorder %v7108_v23, %v5529_v16 }
 0x2fd   : > { %v5018_v61 = vmul.f32 1.442695, %v5017_v0  ;;  %v5569_v59 = vsel %vm5537_vm15, %v5370_v28, 0.0  ;;  %v5600_v60 = vadd.f32 %v5599_v6, %v5583_v11  ;;  %v5609_v52 = vadd.f32 %v5608_v29, %v5584_v58 }
 0x2fe   : > { %v5617_v14 = vadd.f32 %v5577_v17, %v5569_v59  ;;  %v5570_v28 = vsel %vm5538_vm3, %v14444_v21, 0.0  ;;  %v5531_v37 = vperm.slane %v14453_v46, 4  ;;  %v5532_v15 = vperm.slane %v14453_v46, 5 }
 0x2ff   : > { %6858 = vpow2.f32 %v5018_v61  ;;  %v5626_v63 = vadd.f32 %v5578_v4, %v5570_v28  ;;  %v14496_v61 = vperm.slane %v14453_v46, 6  ;;  %v5673_v16 = vperm.slane %v14491_v36, 1 }
 0x300   : > { %vm5547_vm6 = vcmp.eq.s32.totalorder %v7138_v25, %v5531_v37  ;;  %vm5539_vm9 = vcmp.eq.s32.totalorder %v6930_v1, %v5531_v37  ;;  %vm5548_vm10 = vcmp.eq.s32.totalorder %v7138_v25, %v5532_v15  ;;  %vm5540_vm12 = vcmp.eq.s32.totalorder %v6930_v1, %v5532_v15 }
 0x301   : > { %v5376_v42 = vpop.f32.mrf.mxu2  ;;  %v5405_v47 = vpop.f32.mrf.mxu3  ;;  %vm5541_vm2 = vcmp.eq.s32.totalorder %v6930_v1, %v14496_v61  ;;  %vm5555_vm11 = vcmp.eq.s32.totalorder %v7123_v24, %v5531_v37  ;;  %vm5556_vm8 = vcmp.eq.s32.totalorder %v7123_v24, %v5532_v15  ;;  %vm5557_vm13 = vcmp.eq.s32.totalorder %v7123_v24, %v14496_v61 }
 0x302   : > { %v5585_v49 = vsel %vm5553_vm7, %v5376_v42, 0.0  ;;  %v5586_v57 = vsel %vm5554_vm1, %v5405_v47, 0.0  ;;  %vm5563_vm7 = vcmp.eq.s32.totalorder %v7108_v23, %v5531_v37  ;;  %vm5565_vm1 = vcmp.eq.s32.totalorder %v7108_v23, %v14496_v61 }
 0x303   : > { %v5618_v12 = vadd.f32 %v5617_v14, %v5585_v49  ;;  %v5627_v62 = vadd.f32 %v5626_v63, %v5586_v57 }
 0x304   : > { %v5321_v7 = vpop.f32.mrf.mxu0  ;;  %v5350_v44 = vpop.f32.mrf.mxu1 }
 0x305   : > { %v6859_v27 = vpop.eup %6858  ;;  %v5591_v53 = vsel %vm5559_vm0, %v5321_v7, 0.0  ;;  %v5592_v19 = vsel %vm5560_vm14, %v5350_v44, 0.0  ;;  %v5672_v7 = vperm.slane %v14491_v36, 0  ;;  %vm5549_vm0 = vcmp.eq.s32.totalorder %v7138_v25, %v14496_v61 }
 0x306   : > { %5020 = vst [vmem:[%s9355_s15 + $0x6] sm:$0x1] %v6859_v27  ;;  %v5601_v43 = vadd.f32 %v5600_v60, %v5591_v53  ;;  %v5610_v39 = vadd.f32 %v5609_v52, %v5592_v19  ;;  %v14500_v27 = vperm.slane %v14453_v46, 7  ;;  %vm5564_vm14 = vcmp.eq.s32.totalorder %v7108_v23, %v5532_v15 }
 0x308   : > { %v5602_v56 = vrot.slane %v5601_v43, 4  ;;  %v5611_v45 = vrot.slane %v5610_v39, 4  ;;  %vm5542_vm15 = vcmp.eq.s32.totalorder %v6930_v1, %v14500_v27  ;;  %vm5558_vm3 = vcmp.eq.s32.totalorder %v7123_v24, %v14500_v27 }
 0x30a   : > { %v5603_v54 = vadd.f32 %v5602_v56, %v5601_v43  ;;  %v5612_v20 = vadd.f32 %v5611_v45, %v5610_v39 }
 0x30b   : > { %v5379_v18 = vpop.f32.mrf.mxu2  ;;  %v5408_v34 = vpop.f32.mrf.mxu3 }
 0x30c   : > { %v5593_v26 = vsel %vm5561_vm4, %v5379_v18, 0.0  ;;  %v5594_v9 = vsel %vm5562_vm5, %v5408_v34, 0.0  ;;  %v5604_v0 = vrot.slane %v5603_v54, 2  ;;  %v5613_v42 = vrot.slane %v5612_v20, 2 }
 0x30d   : > { %v5619_v22 = vadd.f32 %v5618_v12, %v5593_v26  ;;  %v5628_v2 = vadd.f32 %v5627_v62, %v5594_v9  ;;  %vm5550_vm4 = vcmp.eq.s32.totalorder %v7138_v25, %v14500_v27  ;;  %vm5566_vm5 = vcmp.eq.s32.totalorder %v7108_v23, %v14500_v27 }
 0x30e   : > { %v14476_v32 = vpop.f32.mrf.mxu0  ;;  %v14479_v35 = vpop.f32.mrf.mxu1  ;;  %v5605_v50 = vadd.f32 %v5604_v0, %v5603_v54  ;;  %v5614_v46 = vadd.f32 %v5613_v42, %v5612_v20 }
 0x30f   : > { %v5620_v13 = vrot.slane %v5619_v22, 4  ;;  %v5629_v47 = vrot.slane %v5628_v2, 4  ;;  %v5571_v58 = vsel %vm5539_vm9, %v14476_v32, 0.0  ;;  %v5572_v29 = vsel %vm5540_vm12, %v14479_v35, 0.0 }
 0x310   : > { %v5606_v40 = vrot.slane %v5605_v50, 1  ;;  %v5615_v60 = vrot.slane %v5614_v46, 1 }
 0x311   : > { %v5621_v21 = vadd.f32 %v5620_v13, %v5619_v22  ;;  %v5630_v11 = vadd.f32 %v5629_v47, %v5628_v2 }
 0x312   : > { %v5607_v4 = vadd.f32 %v5606_v40, %v5605_v50  ;;  %v5616_v56 = vadd.f32 %v5615_v60, %v5614_v46 }
 0x313   : > { %v5622_v41 = vrot.slane %v5621_v21, 2  ;;  %v5631_v49 = vrot.slane %v5630_v11, 2 }
 0x314   : > { %v5688_v20 = vmul.f32 %v5672_v7, %v5607_v4  ;;  %v5689_v1 = vmul.f32 %v5673_v16, %v5616_v56  ;;  %v5679_v4 = vperm.slane %v14491_v36, 7 }
 0x315   : > { %v14485_v5 = vpop.f32.mrf.mxu2  ;;  %v14488_v10 = vpop.f32.mrf.mxu3  ;;  %v5623_v17 = vadd.f32 %v5622_v41, %v5621_v21  ;;  %v5632_v63 = vadd.f32 %v5631_v49, %v5630_v11  ;;  %v5675_v41 = vperm.slane %v14491_v36, 3 }
 0x316   : > { %v5431_v30 = vpop.f32.mrf.mxu0  ;;  %v5460_v31 = vpop.f32.mrf.mxu1  ;;  %v5573_v9 = vsel %vm5541_vm2, %v14485_v5, 0.0  ;;  %v5696_v16 = vadd.f32 %v5689_v1, %v5688_v20 }
 0x317   : > { %v5579_v18 = vsel %vm5547_vm6, %v5431_v30, 0.0  ;;  %v5580_v6 = vsel %vm5548_vm10, %v5460_v31, 0.0  ;;  %v5624_v43 = vrot.slane %v5623_v17, 1  ;;  %v5574_v30 = vsel %vm5542_vm15, %v14488_v10, 0.0 }
 0x318   : > { %v5635_v53 = vadd.f32 %v5579_v18, %v5571_v58  ;;  %v5644_v19 = vadd.f32 %v5580_v6, %v5572_v29  ;;  %v5633_v10 = vrot.slane %v5632_v63, 1  ;;  %v5676_v6 = vperm.slane %v14491_v36, 4 }
 0x319   : > { %v5625_v13 = vadd.f32 %v5624_v43, %v5623_v17  ;;  %v5678_v43 = vperm.slane %v14491_v36, 6 }
 0x31a   : > { %v5634_v50 = vadd.f32 %v5633_v10, %v5632_v63 }
 0x31c   : > { %v5691_v40 = vmul.f32 %v5675_v41, %v5634_v50 }
 0x31d   : > { %v5489_v48 = vpop.f32.mrf.mxu2  ;;  %v5518_v3 = vpop.f32.mrf.mxu3 }
 0x31e   : > { %v5434_v44 = vpop.f32.mrf.mxu0  ;;  %v5463_v33 = vpop.f32.mrf.mxu1  ;;  %v5581_v22 = vsel %vm5549_vm0, %v5489_v48, 0.0  ;;  %v5582_v45 = vsel %vm5550_vm4, %v5518_v3, 0.0  ;;  %v5690_v48 = vmul.f32 %v5674_v55, %v5625_v13 }
 0x31f   : > { %v5587_v34 = vsel %vm5555_vm11, %v5434_v44, 0.0  ;;  %v5588_v59 = vsel %vm5556_vm8, %v5463_v33, 0.0  ;;  %v5653_v31 = vadd.f32 %v5581_v22, %v5573_v9  ;;  %v5662_v2 = vadd.f32 %v5582_v45, %v5574_v30 }
 0x320   : > { %v5636_v32 = vadd.f32 %v5635_v53, %v5587_v34  ;;  %v5645_v26 = vadd.f32 %v5644_v19, %v5588_v59  ;;  %v5697_v58 = vadd.f32 %v5696_v16, %v5690_v48  ;;  %v5677_v19 = vperm.slane %v14491_v36, 5 }
 0x322   : > { %v5698_v60 = vadd.f32 %v5697_v58, %v5691_v40 }
 0x325   : > { %v5492_v14 = vpop.f32.mrf.mxu2  ;;  %v5521_v52 = vpop.f32.mrf.mxu3 }
 0x326   : > { %v5437_v35 = vpop.f32.mrf.mxu0  ;;  %v5466_v39 = vpop.f32.mrf.mxu1  ;;  %v5589_v62 = vsel %vm5557_vm13, %v5492_v14, 0.0  ;;  %v5590_v25 = vsel %vm5558_vm3, %v5521_v52, 0.0 }
 0x327   : > { %v5595_v12 = vsel %vm5563_vm7, %v5437_v35, 0.0  ;;  %v5596_v57 = vsel %vm5564_vm14, %v5466_v39, 0.0  ;;  %v5654_v21 = vadd.f32 %v5653_v31, %v5589_v62  ;;  %v5663_v15 = vadd.f32 %v5662_v2, %v5590_v25 }
 0x328   : > { %v5637_v28 = vadd.f32 %v5636_v32, %v5595_v12  ;;  %v5646_v38 = vadd.f32 %v5645_v26, %v5596_v57 }
 0x32a   : > { %v5638_v8 = vrot.slane %v5637_v28, 4  ;;  %v5647_v54 = vrot.slane %v5646_v38, 4 }
 0x32c   : > { %v5639_v5 = vadd.f32 %v5638_v8, %v5637_v28  ;;  %v5648_v37 = vadd.f32 %v5647_v54, %v5646_v38 }
 0x32d   : > { %v5495_v0 = vpop.f32.mrf.mxu2  ;;  %v5524_v24 = vpop.f32.mrf.mxu3 }
 0x32e   : > { %v5640_v42 = vrot.slane %v5639_v5, 2  ;;  %v5597_v47 = vsel %vm5565_vm1, %v5495_v0, 0.0  ;;  %v5649_v3 = vrot.slane %v5648_v37, 2  ;;  %v5598_v44 = vsel %vm5566_vm5, %v5524_v24, 0.0 }
 0x32f   : > { %v5655_v7 = vadd.f32 %v5654_v21, %v5597_v47  ;;  %v5664_v27 = vadd.f32 %v5663_v15, %v5598_v44 }
 0x330   : > { %v5641_v33 = vadd.f32 %v5640_v42, %v5639_v5  ;;  %v5650_v46 = vadd.f32 %v5649_v3, %v5648_v37 }
 0x331   : > { %v5656_v11 = vrot.slane %v5655_v7, 4  ;;  %v5665_v17 = vrot.slane %v5664_v27, 4 }
 0x332   : > { %v5642_v18 = vrot.slane %v5641_v33, 1  ;;  %v5651_v23 = vrot.slane %v5650_v46, 1 }
 0x333   : > { %v5657_v61 = vadd.f32 %v5656_v11, %v5655_v7  ;;  %v5666_v55 = vadd.f32 %v5665_v17, %v5664_v27 }
 0x334   : > { %v5643_v34 = vadd.f32 %v5642_v18, %v5641_v33  ;;  %v5652_v49 = vadd.f32 %v5651_v23, %v5650_v46 }
 0x335   : > { %v5658_v29 = vrot.slane %v5657_v61, 2  ;;  %v5667_v59 = vrot.slane %v5666_v55, 2 }
 0x336   : > { %v5692_v53 = vmul.f32 %v5676_v6, %v5643_v34  ;;  %v5693_v12 = vmul.f32 %v5677_v19, %v5652_v49 }
 0x337   : > { %v5659_v14 = vadd.f32 %v5658_v29, %v5657_v61  ;;  %v5668_v32 = vadd.f32 %v5667_v59, %v5666_v55 }
 0x338   : > { %v5699_v52 = vadd.f32 %v5698_v60, %v5692_v53 }
 0x339   : > { %v5660_v35 = vrot.slane %v5659_v14, 1  ;;  %v5669_v26 = vrot.slane %v5668_v32, 1 }
 0x33a   : > { %v5700_v28 = vadd.f32 %v5699_v52, %v5693_v12 }
 0x33b   : > { %v5661_v39 = vadd.f32 %v5660_v35, %v5659_v14  ;;  %v5670_v22 = vadd.f32 %v5669_v26, %v5668_v32 }
 0x33d   : > { %v5694_v57 = vmul.f32 %v5678_v43, %v5661_v39  ;;  %v5695_v63 = vmul.f32 %v5679_v4, %v5670_v22 }
 0x33f   : > { %v5701_v56 = vadd.f32 %v5700_v28, %v5694_v57 }
 0x341   : > { %v5702_v45 = vadd.f32 %v5701_v56, %v5695_v63 }
 0x343   : > { %v5703_v38 = vadd.f32 %v5702_v45, %v14449_v51 }
 0x345   : > { %v5704_v9 = vsub.f32 0.0, %v5703_v38 }
 0x347   : > { %v5705_v30 = vmul.f32 1.442695, %v5704_v9 }
 0x349   : > { %6860 = vpow2.f32 %v5705_v30 }
 0x34f   : > { %v6861_v62 = vpop.eup %6860 }
 0x350   : > { %5707 = vst [vmem:[%s9355_s15 + $0x7] sm:$0x1] %v6861_v62 }
 0x351 PF: > { %s13_s12 = sadd.s32 1, %s6886_s12  }
 0x352   : > { %p10_p5 = scmp.ge.s32.totalorder %s13_s12, 4  }
 0x354   :  { %12 = sbr.rel (!%p10_p5) target bundleno = 1 (0x1), region = 79 }

</bundles_post_ra>
